<compile_context>
chip_gen: v7x
topology: tpu7x:2x2x1
jax: 0.10.0
libtpu: 0.0.40
codegen_flags: <defaults>
</compile_context>

<pallas_src>
import functools

import jax
import jax.numpy as jnp
from jax.experimental import pallas as pl
from jax.experimental.pallas import tpu as pltpu


def _round_up(x, m):
    return ((x + m - 1) // m) * m


def _cdiv(a, b):
    return (a + b - 1) // b


def _pick_tile(rows, desired, min_steps=2):
    """rows/desired are multiples of 8.  Largest sublane-aligned tile <= desired
    that still yields >= min_steps grid steps whenever rows permits."""
    t = min(desired, rows)
    if rows > 8 and _cdiv(rows, t) < min_steps:
        t = _round_up(_cdiv(rows, min_steps), 8)
    return t


# --------------------------------------------------------------------------- #
# Pallas kernels
# --------------------------------------------------------------------------- #
def _linear_bn_act_kernel(x_ref, w_ref, b_ref, o_ref, *, relu):
    # x: (tm, Cin) bf16, w: (Cin, Cout) bf16, b: (1, Cout) f32
    y = jnp.dot(x_ref[...], w_ref[...], preferred_element_type=jnp.float32)
    y = y + b_ref[...]
    if relu:
        y = jnp.maximum(y, 0.0)
    o_ref[...] = y.astype(o_ref.dtype)


def linear_bn_act(x, w, b, *, relu, out_dtype=jnp.bfloat16, tile_m=8192):
    """Row-tiled (x @ w + b), optional ReLU.  x: (M, Cin) -> (M, Cout)."""
    M, Cin = x.shape
    Cout = w.shape[1]
    Mp = _round_up(M, 8)                       # pad to sublane multiple only
    if Mp != M:
        x = jnp.pad(x, ((0, Mp - M), (0, 0)))
    tm = _pick_tile(Mp, tile_m)
    out = pl.pallas_call(
        functools.partial(_linear_bn_act_kernel, relu=relu),
        out_shape=jax.ShapeDtypeStruct((Mp, Cout), out_dtype),
        grid=(_cdiv(Mp, tm),),                 # partial last block handled by Pallas
        in_specs=[
            pl.BlockSpec((tm, Cin), lambda i: (i, 0)),
            pl.BlockSpec((Cin, Cout), lambda i: (0, 0)),
            pl.BlockSpec((1, Cout), lambda i: (0, 0)),
        ],
        out_specs=pl.BlockSpec((tm, Cout), lambda i: (i, 0)),
        compiler_params=pltpu.CompilerParams(dimension_semantics=("parallel",)),
    )(x, w, b)
    return out[:M]


def _group_conv_max_kernel(x_ref, w_ref, b_ref, o_ref, *, nsample):
    # x: (tg, K, Cg) bf16 with the TRUE Cg (no channel pad), w: (Cg, Cout) bf16.
    # One 2-D dot per neighbor with a running max: no reshape, small live values.
    w = w_ref[...]
    acc = jnp.dot(x_ref[:, 0, :], w, preferred_element_type=jnp.float32)
    for k in range(1, nsample):
        acc = jnp.maximum(
            acc, jnp.dot(x_ref[:, k, :], w, preferred_element_type=jnp.float32))
    # bias is constant over K and ReLU is monotone -> apply both after the max.
    o_ref[...] = jnp.maximum(acc + b_ref[...], 0.0).astype(o_ref.dtype)


def group_conv_max(x, w, b, *, tile_g=512, out_dtype=jnp.bfloat16):
    """x: (G, K, Cg) -> (G, Cout): per-neighbor linear (+folded BN) + ReLU, max over K."""
    G, K, Cg = x.shape
    Cout = w.shape[1]
    Gp = _round_up(G, 8)
    if Gp != G:
        x = jnp.pad(x, ((0, Gp - G), (0, 0), (0, 0)))
    tg = _pick_tile(Gp, tile_g)
    out = pl.pallas_call(
        functools.partial(_group_conv_max_kernel, nsample=K),
        out_shape=jax.ShapeDtypeStruct((Gp, Cout), out_dtype),
        grid=(_cdiv(Gp, tg),),
        in_specs=[
            pl.BlockSpec((tg, K, Cg), lambda i: (i, 0, 0)),
            pl.BlockSpec((Cg, Cout), lambda i: (0, 0)),
            pl.BlockSpec((1, Cout), lambda i: (0, 0)),
        ],
        out_specs=pl.BlockSpec((tg, Cout), lambda i: (i, 0)),
        compiler_params=pltpu.CompilerParams(dimension_semantics=("parallel",)),
    )(x, w, b)
    return out[:G]


def _cls_head_kernel(f_ref, w0_ref, b0_ref, w1_ref, b1_ref, w2_ref, b2_ref, o_ref):
    # Global max-pool over points in bf16 (exact for max), then Linear/BN/ReLU x2
    # + final Linear.  Dropout is identity in eval mode.
    g = jnp.max(f_ref[...], axis=1)                                   # (tb, C) bf16
    h = jnp.dot(g, w0_ref[...], preferred_element_type=jnp.float32) + b0_ref[...]
    h = jnp.maximum(h, 0.0).astype(w1_ref.dtype)
    h = jnp.dot(h, w1_ref[...], preferred_element_type=jnp.float32) + b1_ref[...]
    h = jnp.maximum(h, 0.0).astype(w2_ref.dtype)
    y = jnp.dot(h, w2_ref[...], preferred_element_type=jnp.float32) + b2_ref[...]
    o_ref[...] = y.astype(o_ref.dtype)


def cls_head(f, p0, p1, p2, *, tile_b=64):
    """f: (B, M, C) features -> (B, num_classes) logits; tiled over the batch."""
    B, M, C = f.shape
    w0, b0 = p0
    w1, b1 = p1
    w2, b2 = p2
    num_classes = w2.shape[1]
    Bp = _round_up(B, 8)
    if Bp != B:
        f = jnp.pad(f, ((0, Bp - B), (0, 0), (0, 0)))
    tb = _pick_tile(Bp, tile_b)

    def const_spec(shape):
        nd = len(shape)
        return pl.BlockSpec(shape, lambda i, nd=nd: (0,) * nd)

    out = pl.pallas_call(
        _cls_head_kernel,
        out_shape=jax.ShapeDtypeStruct((Bp, num_classes), jnp.float32),
        grid=(_cdiv(Bp, tb),),
        in_specs=[pl.BlockSpec((tb, M, C), lambda i: (i, 0, 0)),
                  const_spec(w0.shape), const_spec(b0.shape),
                  const_spec(w1.shape), const_spec(b1.shape),
                  const_spec(w2.shape), const_spec(b2.shape)],
        out_specs=pl.BlockSpec((tb, num_classes), lambda i: (i, 0)),
        compiler_params=pltpu.CompilerParams(dimension_semantics=("parallel",)),
    )(f, w0, b0, w1, b1, w2, b2)
    return out[:B]


# --------------------------------------------------------------------------- #
# Parameter construction (deterministic, eval-mode BatchNorm folded in)
# --------------------------------------------------------------------------- #
SA_CONFIGS = [  # static set-abstraction config (npoint/nsample must be static)
    dict(npoint=64, nsample=16, radius=0.2),
    dict(npoint=32, nsample=16, radius=0.4),
]


def _fold_bn(w, bias, gamma, beta, mean, var, eps=1e-5):
    scale = gamma / jnp.sqrt(var + eps)
    w_eff = w * scale[None, :]
    b_eff = (bias - mean) * scale + beta
    return w_eff, b_eff.reshape(1, -1)


def _init_conv_bn(key, cin, cout):
    w = jax.random.normal(key, (cin, cout), jnp.float32) * 0.02
    gamma = jnp.ones((cout,), jnp.float32)
    beta = jnp.zeros((cout,), jnp.float32)
    mean = jnp.zeros((cout,), jnp.float32)
    var = jnp.ones((cout,), jnp.float32)
    w, b = _fold_bn(w, jnp.zeros((cout,), jnp.float32), gamma, beta, mean, var)
    return w.astype(jnp.bfloat16), b.astype(jnp.float32)


def build_params(key, in_channel, num_classes, width=32):
    ks = jax.random.split(key, 8)
    params = {}
    # Stem: Conv1d(in_channel, width, 1) + BN + ReLU (BN folded).
    params["stem"] = _init_conv_bn(ks[0], in_channel, width)
    # Two set-abstraction stages; grouped channel dim kept at its true size.
    sa_cins = [3 + width, 3 + 2 * width]
    sa_couts = [2 * width, 4 * width]
    sa = []
    for i, (cin, cout) in enumerate(zip(sa_cins, sa_couts)):
        w, b = _init_conv_bn(ks[1 + i], cin, cout)
        sa.append(dict(w=w, b=b))
    params["sa"] = sa
    cfin = 4 * width
    # Cls head: Linear+BN+ReLU -> Linear+BN+ReLU -> Linear (dropout = identity in eval).
    params["head0"] = _init_conv_bn(ks[3], cfin, 512)
    params["head1"] = _init_conv_bn(ks[4], 512, 256)
    wf = jax.random.normal(ks[5], (256, num_classes), jnp.float32) * 0.02
    params["head2"] = (wf.astype(jnp.bfloat16),
                       jnp.zeros((1, num_classes), jnp.float32))
    return params


# --------------------------------------------------------------------------- #
# Forward pass (eval mode: returns prediction only, no loss / dropout)
# --------------------------------------------------------------------------- #
def _fold_weight_for_lanes(w, b, fold):
    """Block-diagonal weight so `fold` consecutive rows are computed per output
    row -> output lane width becomes fold*Cout (lane-dense, unmasked stores)."""
    cin, cout = w.shape
    wf = jnp.zeros((fold * cin, fold * cout), w.dtype)
    for j in range(fold):
        wf = wf.at[j * cin:(j + 1) * cin, j * cout:(j + 1) * cout].set(w)
    bf = jnp.tile(b, (1, fold))
    return wf, bf


def _knn_group(xyz, feat, centers_xyz, K, radius):
    # xyz: (B, N, 3) f32, feat: (B, N, C) bf16, centers_xyz: (B, M, 3) f32
    d2 = jnp.sum((centers_xyz[:, :, None, :] - xyz[:, None, :, :]) ** 2, axis=-1)
    _, idx = jax.lax.top_k(-d2, K)                       # (B, M, K)
    gather = jax.vmap(lambda a, i: a[i])
    nbr_xyz = gather(xyz, idx)                           # (B, M, K, 3)
    nbr_feat = gather(feat, idx)                         # (B, M, K, C)
    dp = ((nbr_xyz - centers_xyz[:, :, None, :]) / radius).astype(feat.dtype)
    return jnp.concatenate([dp, nbr_feat], axis=-1)      # (B, M, K, 3 + C)


def pointnext_forward(params, xyz, features):
    """xyz: (B, N, 3); features: (B, N, Cin) (channels-last). Returns (B, num_classes)."""
    B, N, _ = xyz.shape
    Cin = features.shape[-1]
    w_stem, b_stem = params["stem"]
    cout_stem = w_stem.shape[1]

    # Stem per-point MLP (bf16 on MXU, f32 accumulate).  Fold rows into lanes so
    # the narrow (Cout=32) output is written as lane-dense 128-wide slabs; rows
    # are padded up to a multiple of the fold so we never hit the 32-lane path.
    x = features.reshape(B * N, Cin).astype(jnp.bfloat16)
    fold = 128 // cout_stem if (cout_stem <= 128 and 128 % cout_stem == 0) else 1
    if fold > 1:
        R = B * N
        Rp = _round_up(R, fold)
        if Rp != R:
            x = jnp.pad(x, ((0, Rp - R), (0, 0)))
        wf, bf = _fold_weight_for_lanes(w_stem, b_stem, fold)
        y = linear_bn_act(x.reshape(Rp // fold, fold * Cin), wf, bf,
                          relu=True, out_dtype=jnp.bfloat16)
        y = y.reshape(Rp, cout_stem)[:B * N]
    else:
        y = linear_bn_act(x, w_stem, b_stem, relu=True, out_dtype=jnp.bfloat16)
    f = y.reshape(B, N, cout_stem)

    cur_xyz, cur_f = xyz, f
    for cfg, sa_p in zip(SA_CONFIGS, params["sa"]):
        M, K, radius = cfg["npoint"], cfg["nsample"], cfg["radius"]
        # TODO(synk): deterministic strided subsampling stands in for furthest-point
        # sampling and kNN replaces ball-query; neither has a clean Pallas equivalent.
        stride = cur_xyz.shape[1] // M
        idx = jnp.arange(M) * stride
        centers_xyz = cur_xyz[:, idx, :]
        grouped = _knn_group(cur_xyz, cur_f, centers_xyz, K, radius)  # (B,M,K,3+C)
        Cg = grouped.shape[-1]
        # TODO(synk): the neighbor gather stays in XLA (one HBM round trip for the
        # grouped tensor); fusing it into the kernel needs an in-kernel dynamic row
        # gather (scalar-prefetched indices + per-row DMA) not implemented here.
        out = group_conv_max(grouped.reshape(B * M, K, Cg), sa_p["w"], sa_p["b"])
        cur_f = out.reshape(B, M, -1)
        cur_xyz = centers_xyz

    # Global max-pool + classification head, tiled over the batch.
    logits = cls_head(cur_f, params["head0"], params["head1"], params["head2"])
    return logits


# --------------------------------------------------------------------------- #
if __name__ == "__main__":
    key = jax.random.PRNGKey(0)
    kx, kf, kp = jax.random.split(key, 3)

    B, N, Cin, num_classes = 2, 128, 4, 16
    xyz = jax.random.normal(kx, (B, N, 3), jnp.float32)
    features = jax.random.normal(kf, (B, N, Cin), jnp.float32)

    params = build_params(kp, Cin, num_classes)
    fwd = jax.jit(pointnext_forward)
    logits = jax.block_until_ready(fwd(params, xyz, features))
    assert logits.shape == (B, num_classes)
    assert bool(jnp.all(jnp.isfinite(logits)))
    print("KERNEL_OK")
</pallas_src>

<mosaic_0001>
module attributes {stable_mosaic.version = 11 : i64} {
  func.func @_linear_bn_act_kernel(%arg0: i32, %arg1: memref<32x16xbf16, #tpu.memory_space<vmem>>, %arg2: memref<16x128xbf16, #tpu.memory_space<vmem>>, %arg3: memref<1x128xf32, #tpu.memory_space<vmem>>, %arg4: memref<32x128xbf16, #tpu.memory_space<vmem>>) attributes {dimension_semantics = [#tpu.dimension_semantics<parallel>], iteration_bounds = array<i64: 2>, scalar_prefetch = 0 : i64, scratch_operands = 0 : i64, tpu.core_type = #tpu.core_type<tc>, window_params = [{transform_indices = @transform_0, window_bounds = array<i64: 32, 16>}, {pipeline_mode = #tpu.pipeline_mode<synchronous>, transform_indices = @transform_1, window_bounds = array<i64: 16, 128>}, {pipeline_mode = #tpu.pipeline_mode<synchronous>, transform_indices = @transform_2, window_bounds = array<i64: 1, 128>}, {transform_indices = @transform_3, window_bounds = array<i64: 32, 128>}]} {
    %c0 = arith.constant 0 : index
    %c0_0 = arith.constant 0 : index
    %0 = vector.load %arg1[%c0, %c0_0] : memref<32x16xbf16, #tpu.memory_space<vmem>>, vector<32x16xbf16>
    %c0_1 = arith.constant 0 : index
    %c0_2 = arith.constant 0 : index
    %1 = vector.load %arg2[%c0_1, %c0_2] : memref<16x128xbf16, #tpu.memory_space<vmem>>, vector<16x128xbf16>
    %cst = arith.constant dense<0.000000e+00> : vector<32x128xf32>
    %2 = tpu.matmul %0, %1, %cst {dimension_numbers = #tpu.dot_dimension_numbers<[1], [0], [0], [1], [0, 0, 1, 1], [], []>} : vector<32x16xbf16>, vector<16x128xbf16>, vector<32x128xf32> -> vector<32x128xf32>
    %c0_3 = arith.constant 0 : index
    %c0_4 = arith.constant 0 : index
    %3 = vector.load %arg3[%c0_3, %c0_4] : memref<1x128xf32, #tpu.memory_space<vmem>>, vector<1x128xf32>
    %4 = vector.broadcast %3 : vector<1x128xf32> to vector<32x128xf32>
    %5 = arith.addf %2, %4 : vector<32x128xf32>
    %cst_5 = arith.constant 0.000000e+00 : f32
    %6 = vector.broadcast %cst_5 : f32 to vector<32x128xf32>
    %7 = arith.maximumf %5, %6 : vector<32x128xf32>
    %8 = arith.truncf %7 : vector<32x128xf32> to vector<32x128xbf16>
    %c0_6 = arith.constant 0 : index
    %c0_7 = arith.constant 0 : index
    %9 = vector.load %arg4[%c0_6, %c0_7] : memref<32x128xbf16, #tpu.memory_space<vmem>>, vector<32x128xbf16>
    tpu.vector_store %arg4[%c0_6, %c0_7], %8 {strides = array<i32>} : memref<32x128xbf16, #tpu.memory_space<vmem>>, vector<32x128xbf16>,
    return
  }
  func.func @transform_0(%arg0: i32) -> (i32, i32) {
    %c0_i32 = arith.constant 0 : i32
    %c0_i32_0 = arith.constant 0 : i32
    return %arg0, %c0_i32 : i32, i32
  }
  func.func @transform_1(%arg0: i32) -> (i32, i32) {
    %c0_i32 = arith.constant 0 : i32
    %c0_i32_0 = arith.constant 0 : i32
    %c0_i32_1 = arith.constant 0 : i32
    return %c0_i32, %c0_i32_0 : i32, i32
  }
  func.func @transform_2(%arg0: i32) -> (i32, i32) {
    %c0_i32 = arith.constant 0 : i32
    %c0_i32_0 = arith.constant 0 : i32
    %c0_i32_1 = arith.constant 0 : i32
    return %c0_i32, %c0_i32_0 : i32, i32
  }
  func.func @transform_3(%arg0: i32) -> (i32, i32) {
    %c0_i32 = arith.constant 0 : i32
    %c0_i32_0 = arith.constant 0 : i32
    return %arg0, %c0_i32 : i32, i32
  }
}

module attributes {stable_mosaic.version = 11 : i64} {
  func.func @_group_conv_max_kernel(%arg0: i32, %arg1: memref<64x16x35xbf16, #tpu.memory_space<vmem>>, %arg2: memref<35x64xbf16, #tpu.memory_space<vmem>>, %arg3: memref<1x64xf32, #tpu.memory_space<vmem>>, %arg4: memref<64x64xbf16, #tpu.memory_space<vmem>>) attributes {dimension_semantics = [#tpu.dimension_semantics<parallel>], iteration_bounds = array<i64: 2>, scalar_prefetch = 0 : i64, scratch_operands = 0 : i64, tpu.core_type = #tpu.core_type<tc>, window_params = [{transform_indices = @transform_0, window_bounds = array<i64: 64, 16, 35>}, {pipeline_mode = #tpu.pipeline_mode<synchronous>, transform_indices = @transform_1, window_bounds = array<i64: 35, 64>}, {pipeline_mode = #tpu.pipeline_mode<synchronous>, transform_indices = @transform_2, window_bounds = array<i64: 1, 64>}, {transform_indices = @transform_3, window_bounds = array<i64: 64, 64>}]} {
    %c0 = arith.constant 0 : index
    %c0_0 = arith.constant 0 : index
    %0 = vector.load %arg2[%c0, %c0_0] : memref<35x64xbf16, #tpu.memory_space<vmem>>, vector<35x64xbf16>
    %c0_1 = arith.constant 0 : index
    %c0_2 = arith.constant 0 : index
    %c0_3 = arith.constant 0 : index
    %1 = vector.load %arg1[%c0_1, %c0_2, %c0_3] : memref<64x16x35xbf16, #tpu.memory_space<vmem>>, vector<64x1x35xbf16>
    %2 = vector.shape_cast %1 : vector<64x1x35xbf16> to vector<64x35xbf16>
    %cst = arith.constant dense<0.000000e+00> : vector<64x64xf32>
    %3 = tpu.matmul %2, %0, %cst {dimension_numbers = #tpu.dot_dimension_numbers<[1], [0], [0], [1], [0, 0, 1, 1], [], []>} : vector<64x35xbf16>, vector<35x64xbf16>, vector<64x64xf32> -> vector<64x64xf32>
    %c0_4 = arith.constant 0 : index
    %c1 = arith.constant 1 : index
    %c0_5 = arith.constant 0 : index
    %4 = vector.load %arg1[%c0_4, %c1, %c0_5] : memref<64x16x35xbf16, #tpu.memory_space<vmem>>, vector<64x1x35xbf16>
    %5 = vector.shape_cast %4 : vector<64x1x35xbf16> to vector<64x35xbf16>
    %cst_6 = arith.constant dense<0.000000e+00> : vector<64x64xf32>
    %6 = tpu.matmul %5, %0, %cst_6 {dimension_numbers = #tpu.dot_dimension_numbers<[1], [0], [0], [1], [0, 0, 1, 1], [], []>} : vector<64x35xbf16>, vector<35x64xbf16>, vector<64x64xf32> -> vector<64x64xf32>
    %7 = arith.maximumf %3, %6 : vector<64x64xf32>
    %c0_7 = arith.constant 0 : index
    %c2 = arith.constant 2 : index
    %c0_8 = arith.constant 0 : index
    %8 = vector.load %arg1[%c0_7, %c2, %c0_8] : memref<64x16x35xbf16, #tpu.memory_space<vmem>>, vector<64x1x35xbf16>
    %9 = vector.shape_cast %8 : vector<64x1x35xbf16> to vector<64x35xbf16>
    %cst_9 = arith.constant dense<0.000000e+00> : vector<64x64xf32>
    %10 = tpu.matmul %9, %0, %cst_9 {dimension_numbers = #tpu.dot_dimension_numbers<[1], [0], [0], [1], [0, 0, 1, 1], [], []>} : vector<64x35xbf16>, vector<35x64xbf16>, vector<64x64xf32> -> vector<64x64xf32>
    %11 = arith.maximumf %7, %10 : vector<64x64xf32>
    %c0_10 = arith.constant 0 : index
    %c3 = arith.constant 3 : index
    %c0_11 = arith.constant 0 : index
    %12 = vector.load %arg1[%c0_10, %c3, %c0_11] : memref<64x16x35xbf16, #tpu.memory_space<vmem>>, vector<64x1x35xbf16>
    %13 = vector.shape_cast %12 : vector<64x1x35xbf16> to vector<64x35xbf16>
    %cst_12 = arith.constant dense<0.000000e+00> : vector<64x64xf32>
    %14 = tpu.matmul %13, %0, %cst_12 {dimension_numbers = #tpu.dot_dimension_numbers<[1], [0], [0], [1], [0, 0, 1, 1], [], []>} : vector<64x35xbf16>, vector<35x64xbf16>, vector<64x64xf32> -> vector<64x64xf32>
    %15 = arith.maximumf %11, %14 : vector<64x64xf32>
    %c0_13 = arith.constant 0 : index
    %c4 = arith.constant 4 : index
    %c0_14 = arith.constant 0 : index
    %16 = vector.load %arg1[%c0_13, %c4, %c0_14] : memref<64x16x35xbf16, #tpu.memory_space<vmem>>, vector<64x1x35xbf16>
    %17 = vector.shape_cast %16 : vector<64x1x35xbf16> to vector<64x35xbf16>
    %cst_15 = arith.constant dense<0.000000e+00> : vector<64x64xf32>
    %18 = tpu.matmul %17, %0, %cst_15 {dimension_numbers = #tpu.dot_dimension_numbers<[1], [0], [0], [1], [0, 0, 1, 1], [], []>} : vector<64x35xbf16>, vector<35x64xbf16>, vector<64x64xf32> -> vector<64x64xf32>
    %19 = arith.maximumf %15, %18 : vector<64x64xf32>
    %c0_16 = arith.constant 0 : index
    %c5 = arith.constant 5 : index
    %c0_17 = arith.constant 0 : index
    %20 = vector.load %arg1[%c0_16, %c5, %c0_17] : memref<64x16x35xbf16, #tpu.memory_space<vmem>>, vector<64x1x35xbf16>
    %21 = vector.shape_cast %20 : vector<64x1x35xbf16> to vector<64x35xbf16>
    %cst_18 = arith.constant dense<0.000000e+00> : vector<64x64xf32>
    %22 = tpu.matmul %21, %0, %cst_18 {dimension_numbers = #tpu.dot_dimension_numbers<[1], [0], [0], [1], [0, 0, 1, 1], [], []>} : vector<64x35xbf16>, vector<35x64xbf16>, vector<64x64xf32> -> vector<64x64xf32>
    %23 = arith.maximumf %19, %22 : vector<64x64xf32>
    %c0_19 = arith.constant 0 : index
    %c6 = arith.constant 6 : index
    %c0_20 = arith.constant 0 : index
    %24 = vector.load %arg1[%c0_19, %c6, %c0_20] : memref<64x16x35xbf16, #tpu.memory_space<vmem>>, vector<64x1x35xbf16>
    %25 = vector.shape_cast %24 : vector<64x1x35xbf16> to vector<64x35xbf16>
    %cst_21 = arith.constant dense<0.000000e+00> : vector<64x64xf32>
    %26 = tpu.matmul %25, %0, %cst_21 {dimension_numbers = #tpu.dot_dimension_numbers<[1], [0], [0], [1], [0, 0, 1, 1], [], []>} : vector<64x35xbf16>, vector<35x64xbf16>, vector<64x64xf32> -> vector<64x64xf32>
    %27 = arith.maximumf %23, %26 : vector<64x64xf32>
    %c0_22 = arith.constant 0 : index
    %c7 = arith.constant 7 : index
    %c0_23 = arith.constant 0 : index
    %28 = vector.load %arg1[%c0_22, %c7, %c0_23] : memref<64x16x35xbf16, #tpu.memory_space<vmem>>, vector<64x1x35xbf16>
    %29 = vector.shape_cast %28 : vector<64x1x35xbf16> to vector<64x35xbf16>
    %cst_24 = arith.constant dense<0.000000e+00> : vector<64x64xf32>
    %30 = tpu.matmul %29, %0, %cst_24 {dimension_numbers = #tpu.dot_dimension_numbers<[1], [0], [0], [1], [0, 0, 1, 1], [], []>} : vector<64x35xbf16>, vector<35x64xbf16>, vector<64x64xf32> -> vector<64x64xf32>
    %31 = arith.maximumf %27, %30 : vector<64x64xf32>
    %c0_25 = arith.constant 0 : index
    %c8 = arith.constant 8 : index
    %c0_26 = arith.constant 0 : index
    %32 = vector.load %arg1[%c0_25, %c8, %c0_26] : memref<64x16x35xbf16, #tpu.memory_space<vmem>>, vector<64x1x35xbf16>
    %33 = vector.shape_cast %32 : vector<64x1x35xbf16> to vector<64x35xbf16>
    %cst_27 = arith.constant dense<0.000000e+00> : vector<64x64xf32>
    %34 = tpu.matmul %33, %0, %cst_27 {dimension_numbers = #tpu.dot_dimension_numbers<[1], [0], [0], [1], [0, 0, 1, 1], [], []>} : vector<64x35xbf16>, vector<35x64xbf16>, vector<64x64xf32> -> vector<64x64xf32>
    %35 = arith.maximumf %31, %34 : vector<64x64xf32>
    %c0_28 = arith.constant 0 : index
    %c9 = arith.constant 9 : index
    %c0_29 = arith.constant 0 : index
    %36 = vector.load %arg1[%c0_28, %c9, %c0_29] : memref<64x16x35xbf16, #tpu.memory_space<vmem>>, vector<64x1x35xbf16>
    %37 = vector.shape_cast %36 : vector<64x1x35xbf16> to vector<64x35xbf16>
    %cst_30 = arith.constant dense<0.000000e+00> : vector<64x64xf32>
    %38 = tpu.matmul %37, %0, %cst_30 {dimension_numbers = #tpu.dot_dimension_numbers<[1], [0], [0], [1], [0, 0, 1, 1], [], []>} : vector<64x35xbf16>, vector<35x64xbf16>, vector<64x64xf32> -> vector<64x64xf32>
    %39 = arith.maximumf %35, %38 : vector<64x64xf32>
    %c0_31 = arith.constant 0 : index
    %c10 = arith.constant 10 : index
    %c0_32 = arith.constant 0 : index
    %40 = vector.load %arg1[%c0_31, %c10, %c0_32] : memref<64x16x35xbf16, #tpu.memory_space<vmem>>, vector<64x1x35xbf16>
    %41 = vector.shape_cast %40 : vector<64x1x35xbf16> to vector<64x35xbf16>
    %cst_33 = arith.constant dense<0.000000e+00> : vector<64x64xf32>
    %42 = tpu.matmul %41, %0, %cst_33 {dimension_numbers = #tpu.dot_dimension_numbers<[1], [0], [0], [1], [0, 0, 1, 1], [], []>} : vector<64x35xbf16>, vector<35x64xbf16>, vector<64x64xf32> -> vector<64x64xf32>
    %43 = arith.maximumf %39, %42 : vector<64x64xf32>
    %c0_34 = arith.constant 0 : index
    %c11 = arith.constant 11 : index
    %c0_35 = arith.constant 0 : index
    %44 = vector.load %arg1[%c0_34, %c11, %c0_35] : memref<64x16x35xbf16, #tpu.memory_space<vmem>>, vector<64x1x35xbf16>
    %45 = vector.shape_cast %44 : vector<64x1x35xbf16> to vector<64x35xbf16>
    %cst_36 = arith.constant dense<0.000000e+00> : vector<64x64xf32>
    %46 = tpu.matmul %45, %0, %cst_36 {dimension_numbers = #tpu.dot_dimension_numbers<[1], [0], [0], [1], [0, 0, 1, 1], [], []>} : vector<64x35xbf16>, vector<35x64xbf16>, vector<64x64xf32> -> vector<64x64xf32>
    %47 = arith.maximumf %43, %46 : vector<64x64xf32>
    %c0_37 = arith.constant 0 : index
    %c12 = arith.constant 12 : index
    %c0_38 = arith.constant 0 : index
    %48 = vector.load %arg1[%c0_37, %c12, %c0_38] : memref<64x16x35xbf16, #tpu.memory_space<vmem>>, vector<64x1x35xbf16>
    %49 = vector.shape_cast %48 : vector<64x1x35xbf16> to vector<64x35xbf16>
    %cst_39 = arith.constant dense<0.000000e+00> : vector<64x64xf32>
    %50 = tpu.matmul %49, %0, %cst_39 {dimension_numbers = #tpu.dot_dimension_numbers<[1], [0], [0], [1], [0, 0, 1, 1], [], []>} : vector<64x35xbf16>, vector<35x64xbf16>, vector<64x64xf32> -> vector<64x64xf32>
    %51 = arith.maximumf %47, %50 : vector<64x64xf32>
    %c0_40 = arith.constant 0 : index
    %c13 = arith.constant 13 : index
    %c0_41 = arith.constant 0 : index
    %52 = vector.load %arg1[%c0_40, %c13, %c0_41] : memref<64x16x35xbf16, #tpu.memory_space<vmem>>, vector<64x1x35xbf16>
    %53 = vector.shape_cast %52 : vector<64x1x35xbf16> to vector<64x35xbf16>
    %cst_42 = arith.constant dense<0.000000e+00> : vector<64x64xf32>
    %54 = tpu.matmul %53, %0, %cst_42 {dimension_numbers = #tpu.dot_dimension_numbers<[1], [0], [0], [1], [0, 0, 1, 1], [], []>} : vector<64x35xbf16>, vector<35x64xbf16>, vector<64x64xf32> -> vector<64x64xf32>
    %55 = arith.maximumf %51, %54 : vector<64x64xf32>
    %c0_43 = arith.constant 0 : index
    %c14 = arith.constant 14 : index
    %c0_44 = arith.constant 0 : index
    %56 = vector.load %arg1[%c0_43, %c14, %c0_44] : memref<64x16x35xbf16, #tpu.memory_space<vmem>>, vector<64x1x35xbf16>
    %57 = vector.shape_cast %56 : vector<64x1x35xbf16> to vector<64x35xbf16>
    %cst_45 = arith.constant dense<0.000000e+00> : vector<64x64xf32>
    %58 = tpu.matmul %57, %0, %cst_45 {dimension_numbers = #tpu.dot_dimension_numbers<[1], [0], [0], [1], [0, 0, 1, 1], [], []>} : vector<64x35xbf16>, vector<35x64xbf16>, vector<64x64xf32> -> vector<64x64xf32>
    %59 = arith.maximumf %55, %58 : vector<64x64xf32>
    %c0_46 = arith.constant 0 : index
    %c15 = arith.constant 15 : index
    %c0_47 = arith.constant 0 : index
    %60 = vector.load %arg1[%c0_46, %c15, %c0_47] : memref<64x16x35xbf16, #tpu.memory_space<vmem>>, vector<64x1x35xbf16>
    %61 = vector.shape_cast %60 : vector<64x1x35xbf16> to vector<64x35xbf16>
    %cst_48 = arith.constant dense<0.000000e+00> : vector<64x64xf32>
    %62 = tpu.matmul %61, %0, %cst_48 {dimension_numbers = #tpu.dot_dimension_numbers<[1], [0], [0], [1], [0, 0, 1, 1], [], []>} : vector<64x35xbf16>, vector<35x64xbf16>, vector<64x64xf32> -> vector<64x64xf32>
    %63 = arith.maximumf %59, %62 : vector<64x64xf32>
    %c0_49 = arith.constant 0 : index
    %c0_50 = arith.constant 0 : index
    %64 = vector.load %arg3[%c0_49, %c0_50] : memref<1x64xf32, #tpu.memory_space<vmem>>, vector<1x64xf32>
    %65 = vector.broadcast %64 : vector<1x64xf32> to vector<64x64xf32>
    %66 = arith.addf %63, %65 : vector<64x64xf32>
    %cst_51 = arith.constant 0.000000e+00 : f32
    %67 = vector.broadcast %cst_51 : f32 to vector<64x64xf32>
    %68 = arith.maximumf %66, %67 : vector<64x64xf32>
    %69 = arith.truncf %68 : vector<64x64xf32> to vector<64x64xbf16>
    %c0_52 = arith.constant 0 : index
    %c0_53 = arith.constant 0 : index
    %70 = vector.load %arg4[%c0_52, %c0_53] : memref<64x64xbf16, #tpu.memory_space<vmem>>, vector<64x64xbf16>
    tpu.vector_store %arg4[%c0_52, %c0_53], %69 {strides = array<i32>} : memref<64x64xbf16, #tpu.memory_space<vmem>>, vector<64x64xbf16>,
    return
  }
  func.func @transform_0(%arg0: i32) -> (i32, i32, i32) {
    %c0_i32 = arith.constant 0 : i32
    %c0_i32_0 = arith.constant 0 : i32
    %c0_i32_1 = arith.constant 0 : i32
    return %arg0, %c0_i32, %c0_i32_0 : i32, i32, i32
  }
  func.func @transform_1(%arg0: i32) -> (i32, i32) {
    %c0_i32 = arith.constant 0 : i32
    %c0_i32_0 = arith.constant 0 : i32
    %c0_i32_1 = arith.constant 0 : i32
    return %c0_i32, %c0_i32_0 : i32, i32
  }
  func.func @transform_2(%arg0: i32) -> (i32, i32) {
    %c0_i32 = arith.constant 0 : i32
    %c0_i32_0 = arith.constant 0 : i32
    %c0_i32_1 = arith.constant 0 : i32
    return %c0_i32, %c0_i32_0 : i32, i32
  }
  func.func @transform_3(%arg0: i32) -> (i32, i32) {
    %c0_i32 = arith.constant 0 : i32
    %c0_i32_0 = arith.constant 0 : i32
    return %arg0, %c0_i32 : i32, i32
  }
}

module attributes {stable_mosaic.version = 11 : i64} {
  func.func @_group_conv_max_kernel(%arg0: i32, %arg1: memref<32x16x67xbf16, #tpu.memory_space<vmem>>, %arg2: memref<67x128xbf16, #tpu.memory_space<vmem>>, %arg3: memref<1x128xf32, #tpu.memory_space<vmem>>, %arg4: memref<32x128xbf16, #tpu.memory_space<vmem>>) attributes {dimension_semantics = [#tpu.dimension_semantics<parallel>], iteration_bounds = array<i64: 2>, scalar_prefetch = 0 : i64, scratch_operands = 0 : i64, tpu.core_type = #tpu.core_type<tc>, window_params = [{transform_indices = @transform_0, window_bounds = array<i64: 32, 16, 67>}, {pipeline_mode = #tpu.pipeline_mode<synchronous>, transform_indices = @transform_1, window_bounds = array<i64: 67, 128>}, {pipeline_mode = #tpu.pipeline_mode<synchronous>, transform_indices = @transform_2, window_bounds = array<i64: 1, 128>}, {transform_indices = @transform_3, window_bounds = array<i64: 32, 128>}]} {
    %c0 = arith.constant 0 : index
    %c0_0 = arith.constant 0 : index
    %0 = vector.load %arg2[%c0, %c0_0] : memref<67x128xbf16, #tpu.memory_space<vmem>>, vector<67x128xbf16>
    %c0_1 = arith.constant 0 : index
    %c0_2 = arith.constant 0 : index
    %c0_3 = arith.constant 0 : index
    %1 = vector.load %arg1[%c0_1, %c0_2, %c0_3] : memref<32x16x67xbf16, #tpu.memory_space<vmem>>, vector<32x1x67xbf16>
    %2 = vector.shape_cast %1 : vector<32x1x67xbf16> to vector<32x67xbf16>
    %cst = arith.constant dense<0.000000e+00> : vector<32x128xf32>
    %3 = tpu.matmul %2, %0, %cst {dimension_numbers = #tpu.dot_dimension_numbers<[1], [0], [0], [1], [0, 0, 1, 1], [], []>} : vector<32x67xbf16>, vector<67x128xbf16>, vector<32x128xf32> -> vector<32x128xf32>
    %c0_4 = arith.constant 0 : index
    %c1 = arith.constant 1 : index
    %c0_5 = arith.constant 0 : index
    %4 = vector.load %arg1[%c0_4, %c1, %c0_5] : memref<32x16x67xbf16, #tpu.memory_space<vmem>>, vector<32x1x67xbf16>
    %5 = vector.shape_cast %4 : vector<32x1x67xbf16> to vector<32x67xbf16>
    %cst_6 = arith.constant dense<0.000000e+00> : vector<32x128xf32>
    %6 = tpu.matmul %5, %0, %cst_6 {dimension_numbers = #tpu.dot_dimension_numbers<[1], [0], [0], [1], [0, 0, 1, 1], [], []>} : vector<32x67xbf16>, vector<67x128xbf16>, vector<32x128xf32> -> vector<32x128xf32>
    %7 = arith.maximumf %3, %6 : vector<32x128xf32>
    %c0_7 = arith.constant 0 : index
    %c2 = arith.constant 2 : index
    %c0_8 = arith.constant 0 : index
    %8 = vector.load %arg1[%c0_7, %c2, %c0_8] : memref<32x16x67xbf16, #tpu.memory_space<vmem>>, vector<32x1x67xbf16>
    %9 = vector.shape_cast %8 : vector<32x1x67xbf16> to vector<32x67xbf16>
    %cst_9 = arith.constant dense<0.000000e+00> : vector<32x128xf32>
    %10 = tpu.matmul %9, %0, %cst_9 {dimension_numbers = #tpu.dot_dimension_numbers<[1], [0], [0], [1], [0, 0, 1, 1], [], []>} : vector<32x67xbf16>, vector<67x128xbf16>, vector<32x128xf32> -> vector<32x128xf32>
    %11 = arith.maximumf %7, %10 : vector<32x128xf32>
    %c0_10 = arith.constant 0 : index
    %c3 = arith.constant 3 : index
    %c0_11 = arith.constant 0 : index
    %12 = vector.load %arg1[%c0_10, %c3, %c0_11] : memref<32x16x67xbf16, #tpu.memory_space<vmem>>, vector<32x1x67xbf16>
    %13 = vector.shape_cast %12 : vector<32x1x67xbf16> to vector<32x67xbf16>
    %cst_12 = arith.constant dense<0.000000e+00> : vector<32x128xf32>
    %14 = tpu.matmul %13, %0, %cst_12 {dimension_numbers = #tpu.dot_dimension_numbers<[1], [0], [0], [1], [0, 0, 1, 1], [], []>} : vector<32x67xbf16>, vector<67x128xbf16>, vector<32x128xf32> -> vector<32x128xf32>
    %15 = arith.maximumf %11, %14 : vector<32x128xf32>
    %c0_13 = arith.constant 0 : index
    %c4 = arith.constant 4 : index
    %c0_14 = arith.constant 0 : index
    %16 = vector.load %arg1[%c0_13, %c4, %c0_14] : memref<32x16x67xbf16, #tpu.memory_space<vmem>>, vector<32x1x67xbf16>
    %17 = vector.shape_cast %16 : vector<32x1x67xbf16> to vector<32x67xbf16>
    %cst_15 = arith.constant dense<0.000000e+00> : vector<32x128xf32>
    %18 = tpu.matmul %17, %0, %cst_15 {dimension_numbers = #tpu.dot_dimension_numbers<[1], [0], [0], [1], [0, 0, 1, 1], [], []>} : vector<32x67xbf16>, vector<67x128xbf16>, vector<32x128xf32> -> vector<32x128xf32>
    %19 = arith.maximumf %15, %18 : vector<32x128xf32>
    %c0_16 = arith.constant 0 : index
    %c5 = arith.constant 5 : index
    %c0_17 = arith.constant 0 : index
    %20 = vector.load %arg1[%c0_16, %c5, %c0_17] : memref<32x16x67xbf16, #tpu.memory_space<vmem>>, vector<32x1x67xbf16>
    %21 = vector.shape_cast %20 : vector<32x1x67xbf16> to vector<32x67xbf16>
    %cst_18 = arith.constant dense<0.000000e+00> : vector<32x128xf32>
    %22 = tpu.matmul %21, %0, %cst_18 {dimension_numbers = #tpu.dot_dimension_numbers<[1], [0], [0], [1], [0, 0, 1, 1], [], []>} : vector<32x67xbf16>, vector<67x128xbf16>, vector<32x128xf32> -> vector<32x128xf32>
    %23 = arith.maximumf %19, %22 : vector<32x128xf32>
    %c0_19 = arith.constant 0 : index
    %c6 = arith.constant 6 : index
    %c0_20 = arith.constant 0 : index
    %24 = vector.load %arg1[%c0_19, %c6, %c0_20] : memref<32x16x67xbf16, #tpu.memory_space<vmem>>, vector<32x1x67xbf16>
    %25 = vector.shape_cast %24 : vector<32x1x67xbf16> to vector<32x67xbf16>
    %cst_21 = arith.constant dense<0.000000e+00> : vector<32x128xf32>
    %26 = tpu.matmul %25, %0, %cst_21 {dimension_numbers = #tpu.dot_dimension_numbers<[1], [0], [0], [1], [0, 0, 1, 1], [], []>} : vector<32x67xbf16>, vector<67x128xbf16>, vector<32x128xf32> -> vector<32x128xf32>
    %27 = arith.maximumf %23, %26 : vector<32x128xf32>
    %c0_22 = arith.constant 0 : index
    %c7 = arith.constant 7 : index
    %c0_23 = arith.constant 0 : index
    %28 = vector.load %arg1[%c0_22, %c7, %c0_23] : memref<32x16x67xbf16, #tpu.memory_space<vmem>>, vector<32x1x67xbf16>
    %29 = vector.shape_cast %28 : vector<32x1x67xbf16> to vector<32x67xbf16>
    %cst_24 = arith.constant dense<0.000000e+00> : vector<32x128xf32>
    %30 = tpu.matmul %29, %0, %cst_24 {dimension_numbers = #tpu.dot_dimension_numbers<[1], [0], [0], [1], [0, 0, 1, 1], [], []>} : vector<32x67xbf16>, vector<67x128xbf16>, vector<32x128xf32> -> vector<32x128xf32>
    %31 = arith.maximumf %27, %30 : vector<32x128xf32>
    %c0_25 = arith.constant 0 : index
    %c8 = arith.constant 8 : index
    %c0_26 = arith.constant 0 : index
    %32 = vector.load %arg1[%c0_25, %c8, %c0_26] : memref<32x16x67xbf16, #tpu.memory_space<vmem>>, vector<32x1x67xbf16>
    %33 = vector.shape_cast %32 : vector<32x1x67xbf16> to vector<32x67xbf16>
    %cst_27 = arith.constant dense<0.000000e+00> : vector<32x128xf32>
    %34 = tpu.matmul %33, %0, %cst_27 {dimension_numbers = #tpu.dot_dimension_numbers<[1], [0], [0], [1], [0, 0, 1, 1], [], []>} : vector<32x67xbf16>, vector<67x128xbf16>, vector<32x128xf32> -> vector<32x128xf32>
    %35 = arith.maximumf %31, %34 : vector<32x128xf32>
    %c0_28 = arith.constant 0 : index
    %c9 = arith.constant 9 : index
    %c0_29 = arith.constant 0 : index
    %36 = vector.load %arg1[%c0_28, %c9, %c0_29] : memref<32x16x67xbf16, #tpu.memory_space<vmem>>, vector<32x1x67xbf16>
    %37 = vector.shape_cast %36 : vector<32x1x67xbf16> to vector<32x67xbf16>
    %cst_30 = arith.constant dense<0.000000e+00> : vector<32x128xf32>
    %38 = tpu.matmul %37, %0, %cst_30 {dimension_numbers = #tpu.dot_dimension_numbers<[1], [0], [0], [1], [0, 0, 1, 1], [], []>} : vector<32x67xbf16>, vector<67x128xbf16>, vector<32x128xf32> -> vector<32x128xf32>
    %39 = arith.maximumf %35, %38 : vector<32x128xf32>
    %c0_31 = arith.constant 0 : index
    %c10 = arith.constant 10 : index
    %c0_32 = arith.constant 0 : index
    %40 = vector.load %arg1[%c0_31, %c10, %c0_32] : memref<32x16x67xbf16, #tpu.memory_space<vmem>>, vector<32x1x67xbf16>
    %41 = vector.shape_cast %40 : vector<32x1x67xbf16> to vector<32x67xbf16>
    %cst_33 = arith.constant dense<0.000000e+00> : vector<32x128xf32>
    %42 = tpu.matmul %41, %0, %cst_33 {dimension_numbers = #tpu.dot_dimension_numbers<[1], [0], [0], [1], [0, 0, 1, 1], [], []>} : vector<32x67xbf16>, vector<67x128xbf16>, vector<32x128xf32> -> vector<32x128xf32>
    %43 = arith.maximumf %39, %42 : vector<32x128xf32>
    %c0_34 = arith.constant 0 : index
    %c11 = arith.constant 11 : index
    %c0_35 = arith.constant 0 : index
    %44 = vector.load %arg1[%c0_34, %c11, %c0_35] : memref<32x16x67xbf16, #tpu.memory_space<vmem>>, vector<32x1x67xbf16>
    %45 = vector.shape_cast %44 : vector<32x1x67xbf16> to vector<32x67xbf16>
    %cst_36 = arith.constant dense<0.000000e+00> : vector<32x128xf32>
    %46 = tpu.matmul %45, %0, %cst_36 {dimension_numbers = #tpu.dot_dimension_numbers<[1], [0], [0], [1], [0, 0, 1, 1], [], []>} : vector<32x67xbf16>, vector<67x128xbf16>, vector<32x128xf32> -> vector<32x128xf32>
    %47 = arith.maximumf %43, %46 : vector<32x128xf32>
    %c0_37 = arith.constant 0 : index
    %c12 = arith.constant 12 : index
    %c0_38 = arith.constant 0 : index
    %48 = vector.load %arg1[%c0_37, %c12, %c0_38] : memref<32x16x67xbf16, #tpu.memory_space<vmem>>, vector<32x1x67xbf16>
    %49 = vector.shape_cast %48 : vector<32x1x67xbf16> to vector<32x67xbf16>
    %cst_39 = arith.constant dense<0.000000e+00> : vector<32x128xf32>
    %50 = tpu.matmul %49, %0, %cst_39 {dimension_numbers = #tpu.dot_dimension_numbers<[1], [0], [0], [1], [0, 0, 1, 1], [], []>} : vector<32x67xbf16>, vector<67x128xbf16>, vector<32x128xf32> -> vector<32x128xf32>
    %51 = arith.maximumf %47, %50 : vector<32x128xf32>
    %c0_40 = arith.constant 0 : index
    %c13 = arith.constant 13 : index
    %c0_41 = arith.constant 0 : index
    %52 = vector.load %arg1[%c0_40, %c13, %c0_41] : memref<32x16x67xbf16, #tpu.memory_space<vmem>>, vector<32x1x67xbf16>
    %53 = vector.shape_cast %52 : vector<32x1x67xbf16> to vector<32x67xbf16>
    %cst_42 = arith.constant dense<0.000000e+00> : vector<32x128xf32>
    %54 = tpu.matmul %53, %0, %cst_42 {dimension_numbers = #tpu.dot_dimension_numbers<[1], [0], [0], [1], [0, 0, 1, 1], [], []>} : vector<32x67xbf16>, vector<67x128xbf16>, vector<32x128xf32> -> vector<32x128xf32>
    %55 = arith.maximumf %51, %54 : vector<32x128xf32>
    %c0_43 = arith.constant 0 : index
    %c14 = arith.constant 14 : index
    %c0_44 = arith.constant 0 : index
    %56 = vector.load %arg1[%c0_43, %c14, %c0_44] : memref<32x16x67xbf16, #tpu.memory_space<vmem>>, vector<32x1x67xbf16>
    %57 = vector.shape_cast %56 : vector<32x1x67xbf16> to vector<32x67xbf16>
    %cst_45 = arith.constant dense<0.000000e+00> : vector<32x128xf32>
    %58 = tpu.matmul %57, %0, %cst_45 {dimension_numbers = #tpu.dot_dimension_numbers<[1], [0], [0], [1], [0, 0, 1, 1], [], []>} : vector<32x67xbf16>, vector<67x128xbf16>, vector<32x128xf32> -> vector<32x128xf32>
    %59 = arith.maximumf %55, %58 : vector<32x128xf32>
    %c0_46 = arith.constant 0 : index
    %c15 = arith.constant 15 : index
    %c0_47 = arith.constant 0 : index
    %60 = vector.load %arg1[%c0_46, %c15, %c0_47] : memref<32x16x67xbf16, #tpu.memory_space<vmem>>, vector<32x1x67xbf16>
    %61 = vector.shape_cast %60 : vector<32x1x67xbf16> to vector<32x67xbf16>
    %cst_48 = arith.constant dense<0.000000e+00> : vector<32x128xf32>
    %62 = tpu.matmul %61, %0, %cst_48 {dimension_numbers = #tpu.dot_dimension_numbers<[1], [0], [0], [1], [0, 0, 1, 1], [], []>} : vector<32x67xbf16>, vector<67x128xbf16>, vector<32x128xf32> -> vector<32x128xf32>
    %63 = arith.maximumf %59, %62 : vector<32x128xf32>
    %c0_49 = arith.constant 0 : index
    %c0_50 = arith.constant 0 : index
    %64 = vector.load %arg3[%c0_49, %c0_50] : memref<1x128xf32, #tpu.memory_space<vmem>>, vector<1x128xf32>
    %65 = vector.broadcast %64 : vector<1x128xf32> to vector<32x128xf32>
    %66 = arith.addf %63, %65 : vector<32x128xf32>
    %cst_51 = arith.constant 0.000000e+00 : f32
    %67 = vector.broadcast %cst_51 : f32 to vector<32x128xf32>
    %68 = arith.maximumf %66, %67 : vector<32x128xf32>
    %69 = arith.truncf %68 : vector<32x128xf32> to vector<32x128xbf16>
    %c0_52 = arith.constant 0 : index
    %c0_53 = arith.constant 0 : index
    %70 = vector.load %arg4[%c0_52, %c0_53] : memref<32x128xbf16, #tpu.memory_space<vmem>>, vector<32x128xbf16>
    tpu.vector_store %arg4[%c0_52, %c0_53], %69 {strides = array<i32>} : memref<32x128xbf16, #tpu.memory_space<vmem>>, vector<32x128xbf16>,
    return
  }
  func.func @transform_0(%arg0: i32) -> (i32, i32, i32) {
    %c0_i32 = arith.constant 0 : i32
    %c0_i32_0 = arith.constant 0 : i32
    %c0_i32_1 = arith.constant 0 : i32
    return %arg0, %c0_i32, %c0_i32_0 : i32, i32, i32
  }
  func.func @transform_1(%arg0: i32) -> (i32, i32) {
    %c0_i32 = arith.constant 0 : i32
    %c0_i32_0 = arith.constant 0 : i32
    %c0_i32_1 = arith.constant 0 : i32
    return %c0_i32, %c0_i32_0 : i32, i32
  }
  func.func @transform_2(%arg0: i32) -> (i32, i32) {
    %c0_i32 = arith.constant 0 : i32
    %c0_i32_0 = arith.constant 0 : i32
    %c0_i32_1 = arith.constant 0 : i32
    return %c0_i32, %c0_i32_0 : i32, i32
  }
  func.func @transform_3(%arg0: i32) -> (i32, i32) {
    %c0_i32 = arith.constant 0 : i32
    %c0_i32_0 = arith.constant 0 : i32
    return %arg0, %c0_i32 : i32, i32
  }
}

module attributes {stable_mosaic.version = 11 : i64} {
  func.func @_cls_head_kernel(%arg0: i32, %arg1: memref<8x32x128xbf16, #tpu.memory_space<vmem>>, %arg2: memref<128x512xbf16, #tpu.memory_space<vmem>>, %arg3: memref<1x512xf32, #tpu.memory_space<vmem>>, %arg4: memref<512x256xbf16, #tpu.memory_space<vmem>>, %arg5: memref<1x256xf32, #tpu.memory_space<vmem>>, %arg6: memref<256x16xbf16, #tpu.memory_space<vmem>>, %arg7: memref<1x16xf32, #tpu.memory_space<vmem>>, %arg8: memref<8x16xf32, #tpu.memory_space<vmem>>) attributes {dimension_semantics = [#tpu.dimension_semantics<parallel>], iteration_bounds = array<i64: 1>, scalar_prefetch = 0 : i64, scratch_operands = 0 : i64, tpu.core_type = #tpu.core_type<tc>, window_params = [{transform_indices = @transform_0, window_bounds = array<i64: 8, 32, 128>}, {pipeline_mode = #tpu.pipeline_mode<synchronous>, transform_indices = @transform_1, window_bounds = array<i64: 128, 512>}, {pipeline_mode = #tpu.pipeline_mode<synchronous>, transform_indices = @transform_2, window_bounds = array<i64: 1, 512>}, {pipeline_mode = #tpu.pipeline_mode<synchronous>, transform_indices = @transform_3, window_bounds = array<i64: 512, 256>}, {pipeline_mode = #tpu.pipeline_mode<synchronous>, transform_indices = @transform_4, window_bounds = array<i64: 1, 256>}, {pipeline_mode = #tpu.pipeline_mode<synchronous>, transform_indices = @transform_5, window_bounds = array<i64: 256, 16>}, {pipeline_mode = #tpu.pipeline_mode<synchronous>, transform_indices = @transform_6, window_bounds = array<i64: 1, 16>}, {transform_indices = @transform_7, window_bounds = array<i64: 8, 16>}]} {
    %c0 = arith.constant 0 : index
    %c0_0 = arith.constant 0 : index
    %c0_1 = arith.constant 0 : index
    %0 = vector.load %arg1[%c0, %c0_0, %c0_1] : memref<8x32x128xbf16, #tpu.memory_space<vmem>>, vector<8x32x128xbf16>
    %cst = arith.constant dense<0xFF80> : vector<8x128xbf16>
    %1 = vector.multi_reduction <maximumf>, %0, %cst [1] : vector<8x32x128xbf16> to vector<8x128xbf16>
    %c0_2 = arith.constant 0 : index
    %c0_3 = arith.constant 0 : index
    %2 = vector.load %arg2[%c0_2, %c0_3] : memref<128x512xbf16, #tpu.memory_space<vmem>>, vector<128x512xbf16>
    %cst_4 = arith.constant dense<0.000000e+00> : vector<8x512xf32>
    %3 = tpu.matmul %1, %2, %cst_4 {dimension_numbers = #tpu.dot_dimension_numbers<[1], [0], [0], [1], [0, 0, 1, 1], [], []>} : vector<8x128xbf16>, vector<128x512xbf16>, vector<8x512xf32> -> vector<8x512xf32>
    %c0_5 = arith.constant 0 : index
    %c0_6 = arith.constant 0 : index
    %4 = vector.load %arg3[%c0_5, %c0_6] : memref<1x512xf32, #tpu.memory_space<vmem>>, vector<1x512xf32>
    %5 = vector.broadcast %4 : vector<1x512xf32> to vector<8x512xf32>
    %6 = arith.addf %3, %5 : vector<8x512xf32>
    %cst_7 = arith.constant 0.000000e+00 : f32
    %7 = vector.broadcast %cst_7 : f32 to vector<8x512xf32>
    %8 = arith.maximumf %6, %7 : vector<8x512xf32>
    %9 = arith.truncf %8 : vector<8x512xf32> to vector<8x512xbf16>
    %c0_8 = arith.constant 0 : index
    %c0_9 = arith.constant 0 : index
    %10 = vector.load %arg4[%c0_8, %c0_9] : memref<512x256xbf16, #tpu.memory_space<vmem>>, vector<512x256xbf16>
    %cst_10 = arith.constant dense<0.000000e+00> : vector<8x256xf32>
    %11 = tpu.matmul %9, %10, %cst_10 {dimension_numbers = #tpu.dot_dimension_numbers<[1], [0], [0], [1], [0, 0, 1, 1], [], []>} : vector<8x512xbf16>, vector<512x256xbf16>, vector<8x256xf32> -> vector<8x256xf32>
    %c0_11 = arith.constant 0 : index
    %c0_12 = arith.constant 0 : index
    %12 = vector.load %arg5[%c0_11, %c0_12] : memref<1x256xf32, #tpu.memory_space<vmem>>, vector<1x256xf32>
    %13 = vector.broadcast %12 : vector<1x256xf32> to vector<8x256xf32>
    %14 = arith.addf %11, %13 : vector<8x256xf32>
    %cst_13 = arith.constant 0.000000e+00 : f32
    %15 = vector.broadcast %cst_13 : f32 to vector<8x256xf32>
    %16 = arith.maximumf %14, %15 : vector<8x256xf32>
    %17 = arith.truncf %16 : vector<8x256xf32> to vector<8x256xbf16>
    %c0_14 = arith.constant 0 : index
    %c0_15 = arith.constant 0 : index
    %18 = vector.load %arg6[%c0_14, %c0_15] : memref<256x16xbf16, #tpu.memory_space<vmem>>, vector<256x16xbf16>
    %cst_16 = arith.constant dense<0.000000e+00> : vector<8x16xf32>
    %19 = tpu.matmul %17, %18, %cst_16 {dimension_numbers = #tpu.dot_dimension_numbers<[1], [0], [0], [1], [0, 0, 1, 1], [], []>} : vector<8x256xbf16>, vector<256x16xbf16>, vector<8x16xf32> -> vector<8x16xf32>
    %c0_17 = arith.constant 0 : index
    %c0_18 = arith.constant 0 : index
    %20 = vector.load %arg7[%c0_17, %c0_18] : memref<1x16xf32, #tpu.memory_space<vmem>>, vector<1x16xf32>
    %21 = vector.broadcast %20 : vector<1x16xf32> to vector<8x16xf32>
    %22 = arith.addf %19, %21 : vector<8x16xf32>
    %c0_19 = arith.constant 0 : index
    %c0_20 = arith.constant 0 : index
    %23 = vector.load %arg8[%c0_19, %c0_20] : memref<8x16xf32, #tpu.memory_space<vmem>>, vector<8x16xf32>
    tpu.vector_store %arg8[%c0_19, %c0_20], %22 {strides = array<i32>} : memref<8x16xf32, #tpu.memory_space<vmem>>, vector<8x16xf32>,
    return
  }
  func.func @transform_0(%arg0: i32) -> (i32, i32, i32) {
    %c0_i32 = arith.constant 0 : i32
    %c0_i32_0 = arith.constant 0 : i32
    %c0_i32_1 = arith.constant 0 : i32
    return %arg0, %c0_i32, %c0_i32_0 : i32, i32, i32
  }
  func.func @transform_1(%arg0: i32) -> (i32, i32) {
    %c0_i32 = arith.constant 0 : i32
    %c0_i32_0 = arith.constant 0 : i32
    %c0_i32_1 = arith.constant 0 : i32
    return %c0_i32, %c0_i32_0 : i32, i32
  }
  func.func @transform_2(%arg0: i32) -> (i32, i32) {
    %c0_i32 = arith.constant 0 : i32
    %c0_i32_0 = arith.constant 0 : i32
    %c0_i32_1 = arith.constant 0 : i32
    return %c0_i32, %c0_i32_0 : i32, i32
  }
  func.func @transform_3(%arg0: i32) -> (i32, i32) {
    %c0_i32 = arith.constant 0 : i32
    %c0_i32_0 = arith.constant 0 : i32
    %c0_i32_1 = arith.constant 0 : i32
    return %c0_i32, %c0_i32_0 : i32, i32
  }
  func.func @transform_4(%arg0: i32) -> (i32, i32) {
    %c0_i32 = arith.constant 0 : i32
    %c0_i32_0 = arith.constant 0 : i32
    %c0_i32_1 = arith.constant 0 : i32
    return %c0_i32, %c0_i32_0 : i32, i32
  }
  func.func @transform_5(%arg0: i32) -> (i32, i32) {
    %c0_i32 = arith.constant 0 : i32
    %c0_i32_0 = arith.constant 0 : i32
    %c0_i32_1 = arith.constant 0 : i32
    return %c0_i32, %c0_i32_0 : i32, i32
  }
  func.func @transform_6(%arg0: i32) -> (i32, i32) {
    %c0_i32 = arith.constant 0 : i32
    %c0_i32_0 = arith.constant 0 : i32
    %c0_i32_1 = arith.constant 0 : i32
    return %c0_i32, %c0_i32_0 : i32, i32
  }
  func.func @transform_7(%arg0: i32) -> (i32, i32) {
    %c0_i32 = arith.constant 0 : i32
    %c0_i32_0 = arith.constant 0 : i32
    return %arg0, %c0_i32 : i32, i32
  }
}

</mosaic_0001>

<bundles_post_ra>
// kernel: neg.2
= control target key start
LH: loop header
LB: loop body
LE: loop exit
PB: predicated region body
PF: predicated region fallthrough
CT: control target
= control target key end

     0   :  { %s264_s0 = inlined_call_operand.vmem [shape: f32[2,64,128], index: 0, kind: input, shape index: {}]   ;;  %s265_s1 = inlined_call_operand.vmem [shape: f32[2,64,128], index: 1, kind: output, shape index: {}]  }
   0x1   :  { %v2_v0 = vld [vmem:[%s264_s0] sm:$0xff]  ;;  %v130_v2 = vld [vmem:[%s264_s0 + $0x8] sm:$0xff]  ;;  %v134_v7 = vld [vmem:[%s264_s0 + $0x10] sm:$0xff] }
   0x2   :  { %v128_v1 = vld [vmem:[%s264_s0 + $0x40] sm:$0xff]  ;;  %v5_v3 = vxor.u32 2147483648, %v2_v0  ;;  %v20_v5 = vxor.u32 2147483648, %v130_v2  ;;  %v132_v6 = vld [vmem:[%s264_s0 + $0x48] sm:$0xff]  ;;  %v136_v8 = vld [vmem:[%s264_s0 + $0x50] sm:$0xff]  ;;  %v36_v10 = vxor.u32 2147483648, %v134_v7 }
   0x3   :  { %v12_v4 = vxor.u32 2147483648, %v128_v1  ;;  %v28_v9 = vxor.u32 2147483648, %v132_v6  ;;  %v44_v11 = vxor.u32 2147483648, %v136_v8  ;;  %v138_v12 = vld [vmem:[%s264_s0 + $0x18] sm:$0xff]  ;;  %v142_v14 = vld [vmem:[%s264_s0 + $0x20] sm:$0xff]  ;;  %v146_v19 = vld [vmem:[%s264_s0 + $0x28] sm:$0xff] }
   0x4   :  { %v140_v13 = vld [vmem:[%s264_s0 + $0x58] sm:$0xff]  ;;  %7 = vst [vmem:[%s265_s1] sm:$0xff] %v5_v3  ;;  %131 = vst [vmem:[%s265_s1 + $0x8] sm:$0xff] %v20_v5  ;;  %v52_v15 = vxor.u32 2147483648, %v138_v12  ;;  %v68_v17 = vxor.u32 2147483648, %v142_v14  ;;  %v144_v18 = vld [vmem:[%s264_s0 + $0x60] sm:$0xff]  ;;  %v84_v22 = vxor.u32 2147483648, %v146_v19 }
   0x5   :  { %129 = vst [vmem:[%s265_s1 + $0x40] sm:$0xff] %v12_v4  ;;  %v60_v16 = vxor.u32 2147483648, %v140_v13  ;;  %v148_v20 = vld [vmem:[%s264_s0 + $0x68] sm:$0xff]  ;;  %133 = vst [vmem:[%s265_s1 + $0x48] sm:$0xff] %v28_v9  ;;  %v76_v21 = vxor.u32 2147483648, %v144_v18  ;;  %v150_v24 = vld [vmem:[%s264_s0 + $0x30] sm:$0xff] }
   0x6   :  { %135 = vst [vmem:[%s265_s1 + $0x10] sm:$0xff] %v36_v10  ;;  %137 = vst [vmem:[%s265_s1 + $0x50] sm:$0xff] %v44_v11  ;;  %v92_v23 = vxor.u32 2147483648, %v148_v20  ;;  %v152_v25 = vld [vmem:[%s264_s0 + $0x70] sm:$0xff]  ;;  %v154_v26 = vld [vmem:[%s264_s0 + $0x38] sm:$0xff]  ;;  %v100_v27 = vxor.u32 2147483648, %v150_v24 }
   0x7   :  { %139 = vst [vmem:[%s265_s1 + $0x18] sm:$0xff] %v52_v15  ;;  %141 = vst [vmem:[%s265_s1 + $0x58] sm:$0xff] %v60_v16  ;;  %v108_v28 = vxor.u32 2147483648, %v152_v25  ;;  %v116_v29 = vxor.u32 2147483648, %v154_v26  ;;  %v156_v30 = vld [vmem:[%s264_s0 + $0x78] sm:$0xff] }
   0x8   :  { %143 = vst [vmem:[%s265_s1 + $0x20] sm:$0xff] %v68_v17  ;;  %145 = vst [vmem:[%s265_s1 + $0x60] sm:$0xff] %v76_v21  ;;  %v124_v31 = vxor.u32 2147483648, %v156_v30 }
   0x9   :  { %147 = vst [vmem:[%s265_s1 + $0x28] sm:$0xff] %v84_v22  ;;  %149 = vst [vmem:[%s265_s1 + $0x68] sm:$0xff] %v92_v23 }
   0xa   :  { %151 = vst [vmem:[%s265_s1 + $0x30] sm:$0xff] %v100_v27  ;;  %153 = vst [vmem:[%s265_s1 + $0x70] sm:$0xff] %v108_v28 }
   0xb   :  { %155 = vst [vmem:[%s265_s1 + $0x38] sm:$0xff] %v116_v29  ;;  %157 = vst [vmem:[%s265_s1 + $0x78] sm:$0xff] %v124_v31 }

// kernel: pointnext_forward.4
= control target key start
LH: loop header
LB: loop body
LE: loop exit
PB: predicated region body
PF: predicated region fallthrough
CT: control target
= control target key end

     0   :  { %s424_s12 = smov 0   ;;  %s447_s0 = inlined_call_operand.vmem [shape: bf16[64,16], index: 0, kind: input, shape index: {}]   ;;  %s448_s1 = inlined_call_operand.vmem [shape: bf16[16,128], index: 1, kind: input, shape index: {}]   ;;  %s449_s2 = inlined_call_operand.vmem [shape: f32[1,128], index: 2, kind: input, shape index: {}]   ;;  %s450_s3 = inlined_call_operand.vmem [shape: bf16[64,128], index: 3, kind: output, shape index: {}]  }
   0x1 LB: > { %s340_s13 = sadd.s32 4294967295, %s402_s12   ;;  %p344_p0 = scmp.ge.s32.totalorder %s402_s12, 1  ;;  %s402_s12 = sphi %s424_s12, %s13_s12  }
   0x2   : > { %p138_p1 = scmp.lt.s32.totalorder %s402_s12, 3 }
   0x4   : > { %p139_p2 = pnand %p344_p0, %p138_p1 }
   0x5   : > { %v393_v0 = vld [vmem:[%s448_s1] sm:$0xff] (!%p139_p2)   ;;  %s345_s16 = sshll.u32 (!%p139_p2), %s340_s13, 2  ;;  %vm204_vm0 = vcmask (!%p139_p2), 130048  }
   0x6   : > { %142 = sbr.rel (%p139_p2) target bundleno = 240 (0xf0), region = 32  ;;  %p163_p3 = scmp.lt.s32.totalorder (!%p139_p2), %s345_s16, 7  ;;  %379 = vmatprep.subr.bf16.mxu0 (!%p139_p2), %v393_v0  ;;  %v349_v3 = vld [vmem:[%s449_s2] ss:$0 sm:$0xff] (!%p139_p2) }
   0x7   : > { %380 = vmatpush3.bf16.msra.mxu0 (!%p139_p2), %v393_v0 }
   0xd   : > { %s452_s16 = smov (!%p163_p3, %s345_s16), 7 }
   0xe   : > { %s346_s17 = sshll.u32 %s452_s16, 2 }
   0xf   : > { %s166_s20 = scalar_lea.vmem %s447_s0, %s346_s17  ;;  %s172_s25 = scalar_lea.vmem %s450_s3, %s346_s17 }
  0x10   : > { %v394_v1 = vld [vmem:[%s166_s20] sm:$0xff]   ;;  %v395_v2 = vld [vmem:[%s166_s20 + $0x8] sm:$0xff]  }
  0x11   : > { %381 = vmatprep.mubr.msk.bf16.mxu0 %vm204_vm0, %v394_v1 }
  0x12   : > { %382 = vmatmul.mubr.msk.bf16.vlgmr.msra.gmra.mrb[0].mxu0 %vm204_vm0, %v395_v2 }
  0xe5   : > { %v383_v4 = vpop.f32.mrb[0].mxu0 }
  0xe6   : > { %v254_v5 = vadd.f32 %v383_v4, %v349_v3  ;;  %v245_v6 = vpop.f32.mrb[1].mxu0 }
  0xe7   : > { %v246_v7 = vadd.f32 %v349_v3, %v245_v6  ;;  %v384_v8 = vpop.f32.mrb[2].mxu0 }
  0xe8   : > { %v257_v9 = vadd.f32 %v384_v8, %v349_v3  ;;  %v248_v10 = vpop.f32.mrb[3].mxu0  ;;  %v262_v12 = vmax.f32 %v254_v5, 0.0 }
  0xe9   : > { %v249_v11 = vadd.f32 %v349_v3, %v248_v10  ;;  %v260_v14 = vmax.f32 %v246_v7, 0.0 }
  0xea   : > { %v263_v13 = vmax.f32 %v257_v9, 0.0 }
  0xeb   : > { %v261_v15 = vmax.f32 %v249_v11, 0.0 }
  0xec   : > { %v373_v16 = vpack.c.bf16 %v263_v13, %v262_v12 }
  0xed   : > { %v368_v17 = vpack.c.bf16 %v261_v15, %v260_v14 }
  0xee   : > { %375 = vst [vmem:[%s172_s25 + $0x8] sm:$0xff] %v373_v16  }
  0xef   : > { %369 = vst [vmem:[%s172_s25] sm:$0xff] %v368_v17  }
  0xf0 PF: > { %s13_s12 = sadd.s32 1, %s402_s12  }
  0xf1   : > { %p10_p4 = scmp.ge.s32.totalorder %s13_s12, 4  }
  0xf3   :  { %12 = sbr.rel (!%p10_p4) target bundleno = 1 (0x1), region = 62 }

// kernel: neg.3
= control target key start
LH: loop header
LB: loop body
LE: loop exit
PB: predicated region body
PF: predicated region fallthrough
CT: control target
= control target key end

     0   :  { %s136_s0 = inlined_call_operand.vmem [shape: f32[2,32,64], index: 0, kind: input, shape index: {}]   ;;  %s137_s1 = inlined_call_operand.vmem [shape: f32[2,32,64], index: 1, kind: output, shape index: {}]  }
   0x1   :  { %v2_v0 = vld [vmem:[%s136_s0] sm:$0xff]  ;;  %v66_v2 = vld [vmem:[%s136_s0 + $0x8] sm:$0xff]  ;;  %v70_v7 = vld [vmem:[%s136_s0 + $0x10] sm:$0xff] }
   0x2   :  { %v64_v1 = vld [vmem:[%s136_s0 + $0x20] sm:$0xff]  ;;  %v5_v3 = vxor.u32 2147483648, %v2_v0  ;;  %v20_v5 = vxor.u32 2147483648, %v66_v2  ;;  %v68_v6 = vld [vmem:[%s136_s0 + $0x28] sm:$0xff]  ;;  %v72_v8 = vld [vmem:[%s136_s0 + $0x30] sm:$0xff]  ;;  %v36_v10 = vxor.u32 2147483648, %v70_v7 }
   0x3   :  { %v12_v4 = vxor.u32 2147483648, %v64_v1  ;;  %v28_v9 = vxor.u32 2147483648, %v68_v6  ;;  %v44_v11 = vxor.u32 2147483648, %v72_v8  ;;  %v74_v12 = vld [vmem:[%s136_s0 + $0x18] sm:$0xff] }
   0x4   :  { %v76_v13 = vld [vmem:[%s136_s0 + $0x38] sm:$0xff]  ;;  %7 = vst [vmem:[%s137_s1] sm:$0xff] %v5_v3  ;;  %67 = vst [vmem:[%s137_s1 + $0x8] sm:$0xff] %v20_v5  ;;  %v52_v14 = vxor.u32 2147483648, %v74_v12 }
   0x5   :  { %65 = vst [vmem:[%s137_s1 + $0x20] sm:$0xff] %v12_v4  ;;  %v60_v15 = vxor.u32 2147483648, %v76_v13  ;;  %69 = vst [vmem:[%s137_s1 + $0x28] sm:$0xff] %v28_v9 }
   0x6   :  { %71 = vst [vmem:[%s137_s1 + $0x10] sm:$0xff] %v36_v10  ;;  %73 = vst [vmem:[%s137_s1 + $0x30] sm:$0xff] %v44_v11 }
   0x7   :  { %75 = vst [vmem:[%s137_s1 + $0x18] sm:$0xff] %v52_v14  ;;  %77 = vst [vmem:[%s137_s1 + $0x38] sm:$0xff] %v60_v15 }

// kernel: pointnext_forward.5
= control target key start
LH: loop header
LB: loop body
LE: loop exit
PB: predicated region body
PF: predicated region fallthrough
CT: control target
= control target key end

     0   :  { %s7607_s12 = smov 0   ;;  %s11276_s0 = inlined_call_operand.vmem [shape: bf16[128,16,35], index: 0, kind: input, shape index: {}]   ;;  %s11277_s1 = inlined_call_operand.vmem [shape: bf16[35,64], index: 1, kind: input, shape index: {}]   ;;  %s11278_s2 = inlined_call_operand.vmem [shape: f32[1,64], index: 2, kind: input, shape index: {}]   ;;  %s11279_s3 = inlined_call_operand.vmem [shape: bf16[128,64], index: 3, kind: output, shape index: {}]  }
   0x1 LB: > { %s6101_s13 = sadd.s32 4294967295, %s7584_s12   ;;  %p6105_p0 = scmp.ge.s32.totalorder %s7584_s12, 1  ;;  %s7584_s12 = sphi %s7607_s12, %s13_s12  }
   0x2   : > { %p139_p1 = scmp.lt.s32.totalorder %s7584_s12, 3 }
   0x4   : > { %p140_p2 = pnand %p6105_p0, %p139_p1 }
   0x6   : > { %143 = sbr.rel (%p140_p2) target bundleno = 854 (0x356), region = 32 }
   0xd   : > { %v7618_v0 = vld [vmem:[%s11277_s1] sm:$0xff]   ;;  %vm654_vm0 = vcmask 1040384   ;;  %v7623_v1 = vld [vmem:[%s11277_s1 + $0x8] sm:$0xff]   ;;  %vm655_vm1 = vcmask 1041408   ;;  %v7586_v3 = vmov 65535   ;;  %s6106_s20 = sshll.u32 %s6101_s13, 6 }
   0xe   : > { %6822 = vmatprep.subr.bf16.mxu0 %v7618_v0  ;;  %6836 = vmatprep.subr.bf16.mxu1 %v7618_v0  ;;  %v7057_v2 = vld [vmem:[%s11277_s1 + $0x10] ss:$0 sps:$4 sm:$0x33]   ;;  %v656_v4 = vsel %vm654_vm0, 4294967295, %v7586_v3  ;;  %p165_p3 = scmp.lt.s32.totalorder %s6106_s20, 127  ;;  %vm504_vm2 = vcmask 1041409  }
   0xf   : > { %6823 = vmatpush3.bf16.msra.mxu0 %v7618_v0  ;;  %6837 = vmatpush3.bf16.msra.mxu1 %v7618_v0  ;;  %v657_v5 = vsel %vm655_vm1, %v656_v4, 0  ;;  %vm507_vm3 = vcmask 1042434   ;;  %vm510_vm4 = vcmask 1043459   ;;  %vm513_vm5 = vcmask 1044484   ;;  %s6109_s16 = sshll.u32 %s6101_s13, 3 }
  0x10   : > { %6824 = vmatprep.subr.bf16.mxu0 %v7623_v1  ;;  %6838 = vmatprep.subr.bf16.mxu1 %v7623_v1  ;;  %v7636_v6 = vand.u32 %v7057_v2, %v657_v5  ;;  %s11368_s20 = smov (!%p165_p3, %s6106_s20), 127  ;;  %vm516_vm6 = vcmask 1045509   ;;  %vm519_vm7 = vcmask 1046534   ;;  %vm522_vm8 = vcmask 1047559   ;;  %p172_p4 = scmp.lt.s32.totalorder %s6109_s16, 15 }
  0x11   : > { %s6701_s21 = sshll.u32 %s11368_s20, 3  ;;  %vm641_vm9 = vcmask 285696   ;;  %vm6036_vm10 = vcmask 519168  }
  0x12   : > { %s7645_s24 = scalar_lea.vmem %s11276_s0, %s6701_s21  ;;  %s11370_s16 = smov (!%p172_p4, %s6109_s16), 15 }
  0x13   : > { %6825 = vmatpush3.bf16.msra.mxu0 %v7623_v1  ;;  %6839 = vmatpush3.bf16.msra.mxu1 %v7623_v1  ;;  %v7058_v7 = vld [vmem:[%s7645_s24] ss:$0 sps:$4 sm:$0x11]   ;;  %v7653_v8 = vld [vmem:[%s7645_s24 + $0x8] ss:$0 sps:$4 sm:$0x11]  }
  0x14   : > { %6826 = vmatprep.subr.bf16.mxu0 %v7636_v6  ;;  %6840 = vmatprep.subr.bf16.mxu1 %v7636_v6  ;;  %v7060_v9 = vld [vmem:[%s7645_s24 + $0x10] ss:$0 sps:$4 sm:$0x11]   ;;  %v7061_v10 = vld [vmem:[%s7645_s24 + $0x18] ss:$0 sps:$4 sm:$0x11]   ;;  %v440_v16 = vunpack.c.l.b16 %v7653_v8  ;;  %v439_v24 = vunpack.c.l.b16 %v7058_v7 }
  0x15   : > { %v7062_v11 = vld [vmem:[%s7645_s24 + $0x20] ss:$0 sps:$4 sm:$0x11]   ;;  %v7063_v12 = vld [vmem:[%s7645_s24 + $0x28] ss:$0 sps:$4 sm:$0x11]   ;;  %v441_v17 = vunpack.c.l.b16 %v7060_v9  ;;  %v442_v20 = vunpack.c.l.b16 %v7061_v10 }
  0x16   : > { %v7660_v13 = vld [vmem:[%s7645_s24 + $0x30] ss:$0 sps:$4 sm:$0x11]   ;;  %v7065_v14 = vld [vmem:[%s7645_s24 + $0x38] ss:$0 sps:$4 sm:$0x11]   ;;  %v443_v21 = vunpack.c.l.b16 %v7062_v11  ;;  %v444_v25 = vunpack.c.l.b16 %v7063_v12 }
  0x17   : > { %6827 = vmatpush3.bf16.msra.mxu0 %v7636_v6  ;;  %6841 = vmatpush3.bf16.msra.mxu1 %v7636_v6  ;;  %v7664_v15 = vld [vmem:[%s7645_s24 + $0x40] ss:$0 sps:$4 sm:$0x11]   ;;  %v7668_v18 = vld [vmem:[%s7645_s24 + $0x48] ss:$0 sps:$4 sm:$0x11]   ;;  %v445_v26 = vunpack.c.l.b16 %v7660_v13  ;;  %v446_v29 = vunpack.c.l.b16 %v7065_v14 }
  0x18   : > { %6850 = vmatprep.subr.bf16.mxu0 %v7618_v0  ;;  %6864 = vmatprep.subr.bf16.mxu1 %v7618_v0  ;;  %v7068_v19 = vld [vmem:[%s7645_s24 + $0x50] ss:$0 sps:$4 sm:$0x11]   ;;  %v7069_v22 = vld [vmem:[%s7645_s24 + $0x58] ss:$0 sps:$4 sm:$0x11]   ;;  %v447_v30 = vunpack.c.l.b16 %v7664_v15  ;;  %v448_v31 = vunpack.c.l.b16 %v7668_v18 }
  0x19   : > { %v7070_v23 = vld [vmem:[%s7645_s24 + $0x60] ss:$0 sps:$4 sm:$0x11]   ;;  %v7071_v27 = vld [vmem:[%s7645_s24 + $0x68] ss:$0 sps:$4 sm:$0x11]   ;;  %v449_v32 = vunpack.c.l.b16 %v7068_v19  ;;  %v450_v34 = vunpack.c.l.b16 %v7069_v22 }
  0x1a   : > { %v7676_v28 = vld [vmem:[%s7645_s24 + $0x70] ss:$0 sps:$4 sm:$0x11]   ;;  %v7073_v33 = vld [vmem:[%s7645_s24 + $0x78] ss:$0 sps:$4 sm:$0x11]   ;;  %v451_v35 = vunpack.c.l.b16 %v7070_v23  ;;  %v452_v38 = vunpack.c.l.b16 %v7071_v27 }
  0x1b   : > { %v503_v36 = vrot.slane %v440_v16, 7  ;;  %v506_v37 = vrot.slane %v441_v17, 6  ;;  %v453_v39 = vunpack.c.l.b16 %v7676_v28  ;;  %v509_v40 = vrot.slane %v442_v20, 5  ;;  %v7699_v18 = vld [vmem:[%s7645_s24 + $0x80] ss:$0 sps:$4 sm:$0x11]  }
  0x1c   : > { %v512_v41 = vrot.slane %v443_v21, 4  ;;  %v454_v42 = vunpack.c.l.b16 %v7073_v33  ;;  %v515_v44 = vrot.slane %v444_v25, 3  ;;  %v518_v45 = vrot.slane %v445_v26, 2  ;;  %v7704_v22 = vld [vmem:[%s7645_s24 + $0x88] ss:$0 sps:$4 sm:$0x11]  }
  0x1d   : > { %v505_v43 = vsel %vm504_vm2, %v503_v36, %v439_v24  ;;  %v521_v47 = vrot.slane %v446_v29, 1  ;;  %v524_v48 = vrot.slane %v448_v31, 7  ;;  %v526_v49 = vrot.slane %v449_v32, 6  ;;  %v7709_v27 = vld [vmem:[%s7645_s24 + $0x90] ss:$0 sps:$4 sm:$0x11]  }
  0x1e   : > { %v508_v46 = vsel %vm507_vm3, %v506_v37, %v505_v43  ;;  %v528_v51 = vrot.slane %v450_v34, 5  ;;  %v530_v52 = vrot.slane %v451_v35, 4  ;;  %v532_v53 = vrot.slane %v452_v38, 3  ;;  %v7077_v33 = vld [vmem:[%s7645_s24 + $0x98] ss:$0 sps:$4 sm:$0x11]  }
  0x1f   : > { %v511_v50 = vsel %vm510_vm4, %v509_v40, %v508_v46  ;;  %v525_v55 = vsel %vm504_vm2, %v524_v48, %v447_v30  ;;  %v534_v56 = vrot.slane %v453_v39, 2  ;;  %v536_v57 = vrot.slane %v454_v42, 1  ;;  %v7743_v48 = vld [vmem:[%s7645_s24 + $0xd8] ss:$0 sps:$4 sm:$0x11]   ;;  %s6110_s13 = sshll.u32 %s11370_s16, 2 }
  0x20   : > { %v514_v54 = vsel %vm513_vm5, %v512_v41, %v511_v50  ;;  %v527_v59 = vsel %vm507_vm3, %v526_v49, %v525_v55  ;;  %v726_v60 = vrot.slane %v439_v24, 1  ;;  %v728_v61 = vrot.slane %v441_v17, 7  ;;  %v7732_v41 = vld [vmem:[%s7645_s24 + $0xc0] ss:$0 sps:$4 sm:$0x11]   ;;  %s11255_s21 = scalar_lea.vmem %s11279_s3, %s6110_s13 }
  0x21   : > { %v517_v58 = vsel %vm516_vm6, %v515_v44, %v514_v54  ;;  %v529_v63 = vsel %vm510_vm4, %v528_v51, %v527_v59  ;;  %v730_v2 = vrot.slane %v442_v20, 6  ;;  %v732_v3 = vrot.slane %v443_v21, 5  ;;  %v7750_v54 = vld [vmem:[%s7645_s24 + $0xe8] ss:$0 sps:$4 sm:$0x11]  }
  0x22   : > { %v520_v62 = vsel %vm519_vm7, %v518_v45, %v517_v58  ;;  %v531_v5 = vsel %vm513_vm5, %v530_v52, %v529_v63  ;;  %v727_v7 = vsel %vm504_vm2, %v440_v16, %v726_v60  ;;  %v734_v8 = vrot.slane %v444_v25, 4  ;;  %v7756_v59 = vld [vmem:[%s7645_s24 + $0xf0] ss:$0 sps:$4 sm:$0x11]  }
  0x23   : > { %v523_v4 = vsel %vm522_vm8, %v521_v47, %v520_v62  ;;  %v533_v9 = vsel %vm516_vm6, %v532_v53, %v531_v5  ;;  %v729_v10 = vsel %vm507_vm3, %v728_v61, %v727_v7  ;;  %v736_v11 = vrot.slane %v445_v26, 3  ;;  %v7084_v47 = vld [vmem:[%s7645_s24 + $0xd0] ss:$0 sps:$4 sm:$0x11]  }
  0x24   : > { %v738_v12 = vrot.slane %v446_v29, 2  ;;  %v535_v13 = vsel %vm519_vm7, %v534_v56, %v533_v9  ;;  %v731_v14 = vsel %vm510_vm4, %v730_v2, %v729_v10  ;;  %v740_v15 = vrot.slane %v447_v30, 1  ;;  %v7086_v53 = vld [vmem:[%s7645_s24 + $0xe0] ss:$0 sps:$4 sm:$0x11]  }
  0x25   : > { %v742_v17 = vrot.slane %v449_v32, 7  ;;  %v537_v19 = vsel %vm522_vm8, %v536_v57, %v535_v13  ;;  %v733_v16 = vsel %vm513_vm5, %v732_v3, %v731_v14  ;;  %v744_v20 = vrot.slane %v450_v34, 6  ;;  %v7759_v60 = vld [vmem:[%s7645_s24 + $0xf8] ss:$0 sps:$4 sm:$0x11]  }
  0x26   : > { %v746_v21 = vrot.slane %v451_v35, 5  ;;  %v622_v23 = vpack.c.b16 %v537_v19, %v523_v4  ;;  %v735_v24 = vsel %vm516_vm6, %v734_v8, %v733_v16  ;;  %v741_v25 = vsel %vm504_vm2, %v448_v31, %v740_v15  ;;  %v7717_v35 = vld [vmem:[%s7645_s24 + $0xa0] ss:$0 sps:$4 sm:$0x11]  }
  0x27   : > { %v748_v26 = vrot.slane %v452_v38, 4  ;;  %v737_v28 = vsel %vm519_vm7, %v736_v11, %v735_v24  ;;  %v743_v29 = vsel %vm507_vm3, %v742_v17, %v741_v25  ;;  %v750_v30 = vrot.slane %v453_v39, 3  ;;  %v7720_v31 = vld [vmem:[%s7645_s24 + $0xa8] ss:$0 sps:$4 sm:$0x11]  }
  0x28   : > { %v752_v32 = vrot.slane %v454_v42, 2  ;;  %6828 = vmatprep.mubr.msk.bf16.mxu0 %vm641_vm9, %v622_v23  ;;  %v745_v34 = vsel %vm510_vm4, %v744_v20, %v743_v29  ;;  %v739_v36 = vsel %vm522_vm8, %v738_v12, %v737_v28  ;;  %v7725_v38 = vld [vmem:[%s7645_s24 + $0xb0] ss:$0 sps:$4 sm:$0x11]   ;;  %v455_v43 = vunpack.c.l.b16 %v7699_v18 }
  0x29   : > { %v747_v37 = vsel %vm513_vm5, %v746_v21, %v745_v34  ;;  %v7728_v39 = vld [vmem:[%s7645_s24 + $0xb8] ss:$0 sps:$4 sm:$0x11]   ;;  %v7735_v42 = vld [vmem:[%s7645_s24 + $0xc8] ss:$0 sps:$4 sm:$0x11]   ;;  %v456_v44 = vunpack.c.l.b16 %v7704_v22  ;;  %v457_v45 = vunpack.c.l.b16 %v7709_v27  ;;  %v458_v49 = vunpack.c.l.b16 %v7077_v33 }
  0x2a   : > { %v749_v40 = vsel %vm516_vm6, %v748_v26, %v747_v37  ;;  %v459_v50 = vunpack.c.l.b16 %v7717_v35  ;;  %v460_v51 = vunpack.c.l.b16 %v7720_v31  ;;  %v461_v55 = vunpack.c.l.b16 %v7725_v38 }
  0x2b   : > { %v751_v46 = vsel %vm519_vm7, %v750_v30, %v749_v40  ;;  %v462_v56 = vunpack.c.l.b16 %v7728_v39  ;;  %v463_v57 = vunpack.c.l.b16 %v7732_v41  ;;  %v464_v61 = vunpack.c.l.b16 %v7735_v42 }
  0x2c   : > { %v753_v52 = vsel %vm522_vm8, %v752_v32, %v751_v46  ;;  %v465_v62 = vunpack.c.l.b16 %v7084_v47  ;;  %v466_v63 = vunpack.c.l.b16 %v7743_v48  ;;  %v467_v2 = vunpack.c.l.b16 %v7086_v53  ;;  %v7788_v48 = vld [vmem:[%s7645_s24 + $0x108] ss:$0 sps:$4 sm:$0x11]   ;;  %v7793_v53 = vld [vmem:[%s7645_s24 + $0x110] ss:$0 sps:$4 sm:$0x11]  }
  0x2d   : > { %v838_v58 = vpack.c.b16 %v753_v52, %v739_v36  ;;  %v468_v3 = vunpack.c.l.b16 %v7750_v54  ;;  %v538_v4 = vrot.slane %v456_v44, 7  ;;  %v540_v5 = vrot.slane %v457_v45, 6 }
  0x2e   : > { %v469_v7 = vunpack.c.l.b16 %v7756_v59  ;;  %v470_v8 = vunpack.c.l.b16 %v7759_v60  ;;  %v542_v9 = vrot.slane %v458_v49, 5  ;;  %v544_v10 = vrot.slane %v459_v50, 4 }
  0x2f   : > { %6842 = vmatprep.mubr.msk.bf16.mxu1 %vm641_vm9, %v838_v58  ;;  %v539_v11 = vsel %vm504_vm2, %v538_v4, %v455_v43  ;;  %v546_v12 = vrot.slane %v460_v51, 3  ;;  %v548_v13 = vrot.slane %v461_v55, 2  ;;  %v550_v14 = vrot.slane %v462_v56, 1  ;;  %v7798_v58 = vld [vmem:[%s7645_s24 + $0x118] ss:$0 sps:$4 sm:$0x11]  }
  0x30   : > { %v541_v15 = vsel %vm507_vm3, %v540_v5, %v539_v11  ;;  %v552_v17 = vrot.slane %v464_v61, 7  ;;  %v554_v18 = vrot.slane %v465_v62, 6  ;;  %v556_v19 = vrot.slane %v466_v63, 5  ;;  %v7807_v4 = vld [vmem:[%s7645_s24 + $0x128] ss:$0 sps:$4 sm:$0x11]  }
  0x31   : > { %v543_v16 = vsel %vm510_vm4, %v542_v9, %v541_v15  ;;  %v558_v20 = vrot.slane %v467_v2, 4  ;;  %v560_v21 = vrot.slane %v468_v3, 3  ;;  %v562_v22 = vrot.slane %v469_v7, 2  ;;  %v7810_v5 = vld [vmem:[%s7645_s24 + $0x130] ss:$0 sps:$4 sm:$0x11]  }
  0x32   : > { %v545_v23 = vsel %vm513_vm5, %v544_v10, %v543_v16  ;;  %v553_v24 = vsel %vm504_vm2, %v552_v17, %v463_v57  ;;  %v564_v25 = vrot.slane %v470_v8, 1  ;;  %v754_v26 = vrot.slane %v455_v43, 1  ;;  %v7783_v43 = vld [vmem:[%s7645_s24 + $0x100] ss:$0 sps:$4 sm:$0x11]  }
  0x33   : > { %v547_v27 = vsel %vm516_vm6, %v546_v12, %v545_v23  ;;  %v555_v28 = vsel %vm507_vm3, %v554_v18, %v553_v24  ;;  %v756_v29 = vrot.slane %v457_v45, 7  ;;  %v758_v30 = vrot.slane %v458_v49, 6  ;;  %v7826_v12 = vld [vmem:[%s7645_s24 + $0x148] ss:$0 sps:$4 sm:$0x11]  }
  0x34   : > { %v549_v32 = vsel %vm519_vm7, %v548_v13, %v547_v27  ;;  %v557_v33 = vsel %vm510_vm4, %v556_v19, %v555_v28  ;;  %v755_v34 = vsel %vm504_vm2, %v456_v44, %v754_v26  ;;  %v760_v35 = vrot.slane %v459_v50, 5  ;;  %v7829_v13 = vld [vmem:[%s7645_s24 + $0x150] ss:$0 sps:$4 sm:$0x11]  }
  0x35   : > { %v551_v31 = vsel %vm522_vm8, %v550_v14, %v549_v32  ;;  %v559_v36 = vsel %vm513_vm5, %v558_v20, %v557_v33  ;;  %v757_v37 = vsel %vm507_vm3, %v756_v29, %v755_v34  ;;  %v762_v38 = vrot.slane %v460_v51, 4  ;;  %v7836_v19 = vld [vmem:[%s7645_s24 + $0x158] ss:$0 sps:$4 sm:$0x11]  }
  0x36   : > { %v561_v39 = vsel %vm516_vm6, %v560_v21, %v559_v36  ;;  %v759_v40 = vsel %vm510_vm4, %v758_v30, %v757_v37  ;;  %v764_v41 = vrot.slane %v461_v55, 3  ;;  %v766_v42 = vrot.slane %v462_v56, 2  ;;  %v7839_v16 = vld [vmem:[%s7645_s24 + $0x160] ss:$0 sps:$4 sm:$0x11]  }
  0x37   : > { %v563_v44 = vsel %vm519_vm7, %v562_v22, %v561_v39  ;;  %v761_v45 = vsel %vm513_vm5, %v760_v35, %v759_v40  ;;  %v768_v46 = vrot.slane %v463_v57, 1  ;;  %v770_v47 = vrot.slane %v465_v62, 7  ;;  %v7846_v24 = vld [vmem:[%s7645_s24 + $0x168] ss:$0 sps:$4 sm:$0x11]  }
  0x38   : > { %v565_v49 = vsel %vm522_vm8, %v564_v25, %v563_v44  ;;  %v763_v50 = vsel %vm516_vm6, %v762_v38, %v761_v45  ;;  %v772_v51 = vrot.slane %v466_v63, 6  ;;  %v774_v52 = vrot.slane %v467_v2, 5  ;;  %v7802_v63 = vld [vmem:[%s7645_s24 + $0x120] ss:$0 sps:$4 sm:$0x11]  }
  0x39   : > { %v623_v54 = vpack.c.b16 %v565_v49, %v551_v31  ;;  %v765_v55 = vsel %vm519_vm7, %v764_v41, %v763_v50  ;;  %v769_v56 = vsel %vm504_vm2, %v464_v61, %v768_v46  ;;  %v776_v57 = vrot.slane %v468_v3, 4  ;;  %v7849_v25 = vld [vmem:[%s7645_s24 + $0x170] ss:$0 sps:$4 sm:$0x11]  }
  0x3a   : > { %v771_v59 = vsel %vm507_vm3, %v770_v47, %v769_v56  ;;  %v778_v60 = vrot.slane %v469_v7, 3  ;;  %v780_v62 = vrot.slane %v470_v8, 2  ;;  %v767_v61 = vsel %vm522_vm8, %v766_v42, %v765_v55  ;;  %v7816_v7 = vld [vmem:[%s7645_s24 + $0x138] ss:$0 sps:$4 sm:$0x11]  }
  0x3b   : > { %6829 = vmatmul.mubr.msk.bf16.vlgmr.msra.gmra.mrb[0].mxu0 %vm641_vm9, %v623_v54  ;;  %v773_v2 = vsel %vm510_vm4, %v772_v51, %v771_v59  ;;  %v7819_v8 = vld [vmem:[%s7645_s24 + $0x140] ss:$0 sps:$4 sm:$0x11]   ;;  %v471_v9 = vunpack.c.l.b16 %v7783_v43  ;;  %v472_v10 = vunpack.c.l.b16 %v7788_v48  ;;  %v473_v14 = vunpack.c.l.b16 %v7793_v53  ;;  %v7856_v30 = vld [vmem:[%s7645_s24 + $0x178] ss:$0 sps:$4 sm:$0x11]  }
  0x3c   : > { %v775_v3 = vsel %vm513_vm5, %v774_v52, %v773_v2  ;;  %6851 = vmatpush3.bf16.msra.mxu0 %v7618_v0  ;;  %v474_v15 = vunpack.c.l.b16 %v7798_v58  ;;  %v475_v17 = vunpack.c.l.b16 %v7802_v63  ;;  %v476_v20 = vunpack.c.l.b16 %v7807_v4  ;;  %v7900_v48 = vld [vmem:[%s7645_s24 + $0x180] ss:$0 sps:$4 sm:$0x11]  }
  0x3d   : > { %v777_v11 = vsel %vm516_vm6, %v776_v57, %v775_v3  ;;  %6852 = vmatprep.subr.bf16.mxu0 %v7623_v1  ;;  %v477_v21 = vunpack.c.l.b16 %v7810_v5  ;;  %v478_v22 = vunpack.c.l.b16 %v7816_v7  ;;  %v479_v26 = vunpack.c.l.b16 %v7819_v8 }
  0x3e   : > { %v779_v18 = vsel %vm519_vm7, %v778_v60, %v777_v11  ;;  %v480_v27 = vunpack.c.l.b16 %v7826_v12  ;;  %v481_v28 = vunpack.c.l.b16 %v7829_v13  ;;  %v482_v32 = vunpack.c.l.b16 %v7836_v19 }
  0x3f   : > { %v781_v23 = vsel %vm522_vm8, %v780_v62, %v779_v18  ;;  %v483_v33 = vunpack.c.l.b16 %v7839_v16  ;;  %v566_v34 = vrot.slane %v472_v10, 7  ;;  %v484_v35 = vunpack.c.l.b16 %v7846_v24  ;;  %v7908_v16 = vld [vmem:[%s7645_s24 + $0x190] ss:$0 sps:$4 sm:$0x11]  }
  0x40   : > { %v839_v29 = vpack.c.b16 %v781_v23, %v767_v61  ;;  %6853 = vmatpush3.bf16.msra.mxu0 %v7623_v1  ;;  %v485_v31 = vunpack.c.l.b16 %v7849_v25  ;;  %v568_v36 = vrot.slane %v473_v14, 6  ;;  %v570_v37 = vrot.slane %v474_v15, 5  ;;  %v7938_v25 = vld [vmem:[%s7645_s24 + $0x1b0] ss:$0 sps:$4 sm:$0x11]  }
  0x41   : > { %6854 = vmatprep.subr.bf16.mxu0 %v7636_v6  ;;  %v486_v38 = vunpack.c.l.b16 %v7856_v30  ;;  %v567_v39 = vsel %vm504_vm2, %v566_v34, %v471_v9  ;;  %v572_v40 = vrot.slane %v475_v17, 4  ;;  %v574_v41 = vrot.slane %v476_v20, 3  ;;  %v7926_v34 = vld [vmem:[%s7645_s24 + $0x1a0] ss:$0 sps:$4 sm:$0x11]  }
  0x42   : > { %6843 = vmatmul.mubr.msk.bf16.vlgmr.msra.gmra.mrb[0].mxu1 %vm641_vm9, %v839_v29  ;;  %v569_v42 = vsel %vm507_vm3, %v568_v36, %v567_v39  ;;  %v576_v43 = vrot.slane %v477_v21, 2  ;;  %v578_v44 = vrot.slane %v478_v22, 1  ;;  %v580_v45 = vrot.slane %v480_v27, 7  ;;  %v7948_v39 = vld [vmem:[%s7645_s24 + $0x1c8] ss:$0 sps:$4 sm:$0x11]  }
  0x43   : > { %6865 = vmatpush3.bf16.msra.mxu1 %v7618_v0  ;;  %v571_v46 = vsel %vm510_vm4, %v570_v37, %v569_v42  ;;  %v582_v47 = vrot.slane %v481_v28, 6  ;;  %v584_v49 = vrot.slane %v482_v32, 5  ;;  %v586_v50 = vrot.slane %v483_v33, 4  ;;  %v7945_v37 = vld [vmem:[%s7645_s24 + $0x1c0] ss:$0 sps:$4 sm:$0x11]  }
  0x44   : > { %6866 = vmatprep.subr.bf16.mxu1 %v7623_v1  ;;  %6855 = vmatpush3.bf16.msra.mxu0 %v7636_v6  ;;  %v573_v51 = vsel %vm513_vm5, %v572_v40, %v571_v46  ;;  %v581_v52 = vsel %vm504_vm2, %v580_v45, %v479_v26  ;;  %v588_v53 = vrot.slane %v484_v35, 3  ;;  %v590_v54 = vrot.slane %v485_v31, 2  ;;  %v7955_v42 = vld [vmem:[%s7645_s24 + $0x1d0] ss:$0 sps:$4 sm:$0x11]  }
  0x45   : > { %6878 = vmatprep.subr.bf16.mxu0 %v7618_v0  ;;  %v575_v55 = vsel %vm516_vm6, %v574_v41, %v573_v51  ;;  %v583_v56 = vsel %vm507_vm3, %v582_v47, %v581_v52  ;;  %v592_v57 = vrot.slane %v486_v38, 1  ;;  %v782_v58 = vrot.slane %v471_v9, 1 }
  0x46   : > { %v577_v59 = vsel %vm519_vm7, %v576_v43, %v575_v55  ;;  %v585_v60 = vsel %vm510_vm4, %v584_v49, %v583_v56  ;;  %v784_v62 = vrot.slane %v473_v14, 7  ;;  %v786_v63 = vrot.slane %v474_v15, 6  ;;  %v7958_v43 = vld [vmem:[%s7645_s24 + $0x1d8] ss:$0 sps:$4 sm:$0x11]  }
  0x47   : > { %6867 = vmatpush3.bf16.msra.mxu1 %v7623_v1  ;;  %v579_v2 = vsel %vm522_vm8, %v578_v44, %v577_v59  ;;  %v587_v4 = vsel %vm513_vm5, %v586_v50, %v585_v60  ;;  %v783_v5 = vsel %vm504_vm2, %v472_v10, %v782_v58  ;;  %v788_v61 = vrot.slane %v475_v17, 5  ;;  %v7903_v10 = vld [vmem:[%s7645_s24 + $0x188] ss:$0 sps:$4 sm:$0x11]  }
  0x48   : > { %6868 = vmatprep.subr.bf16.mxu1 %v7636_v6  ;;  %v589_v3 = vsel %vm516_vm6, %v588_v53, %v587_v4  ;;  %v785_v7 = vsel %vm507_vm3, %v784_v62, %v783_v5  ;;  %v790_v8 = vrot.slane %v476_v20, 4  ;;  %v792_v9 = vrot.slane %v477_v21, 3  ;;  %v7118_v49 = vld [vmem:[%s7645_s24 + $0x1e0] ss:$0 sps:$4 sm:$0x11]  }
  0x49   : > { %v591_v1 = vsel %vm519_vm7, %v590_v54, %v589_v3  ;;  %v787_v11 = vsel %vm510_vm4, %v786_v63, %v785_v7  ;;  %v794_v13 = vrot.slane %v478_v22, 2  ;;  %v796_v14 = vrot.slane %v479_v26, 1  ;;  %v7916_v26 = vld [vmem:[%s7645_s24 + $0x198] ss:$0 sps:$4 sm:$0x11]  }
  0x4a   : > { %v593_v15 = vsel %vm522_vm8, %v592_v57, %v591_v1  ;;  %v789_v17 = vsel %vm513_vm5, %v788_v61, %v787_v11  ;;  %v798_v18 = vrot.slane %v481_v28, 7  ;;  %v800_v19 = vrot.slane %v482_v32, 6  ;;  %v7966_v50 = vld [vmem:[%s7645_s24 + $0x1e8] ss:$0 sps:$4 sm:$0x11]  }
  0x4b   : > { %6869 = vmatpush3.bf16.msra.mxu1 %v7636_v6  ;;  %v624_v20 = vpack.c.b16 %v593_v15, %v579_v2  ;;  %v791_v21 = vsel %vm516_vm6, %v790_v8, %v789_v17  ;;  %v797_v22 = vsel %vm504_vm2, %v480_v27, %v796_v14  ;;  %v802_v23 = vrot.slane %v483_v33, 5  ;;  %v7933_v33 = vld [vmem:[%s7645_s24 + $0x1a8] ss:$0 sps:$4 sm:$0x11]  }
  0x4c   : > { %6892 = vmatprep.subr.bf16.mxu1 %v7618_v0  ;;  %v793_v28 = vsel %vm519_vm7, %v792_v9, %v791_v21  ;;  %v799_v29 = vsel %vm507_vm3, %v798_v18, %v797_v22  ;;  %v804_v32 = vrot.slane %v484_v35, 4  ;;  %v806_v12 = vrot.slane %v485_v31, 3  ;;  %v7941_v35 = vld [vmem:[%s7645_s24 + $0x1b8] ss:$0 sps:$4 sm:$0x11]  }
  0x4d   : > { %6832 = vmatprep.mubr.msk.bf16.mxu0 %vm641_vm9, %v624_v20  ;;  %v801_v27 = vsel %vm510_vm4, %v800_v19, %v799_v29  ;;  %v808_v0 = vrot.slane %v486_v38, 2  ;;  %v795_v36 = vsel %vm522_vm8, %v794_v13, %v793_v28  ;;  %v487_v30 = vunpack.c.l.b16 %v7900_v48  ;;  %v7972_v55 = vld [vmem:[%s7645_s24 + $0x1f0] ss:$0 sps:$4 sm:$0x11]  }
  0x4e   : > { %v803_v24 = vsel %vm513_vm5, %v802_v23, %v801_v27  ;;  %v488_v38 = vunpack.c.l.b16 %v7903_v10  ;;  %v489_v40 = vunpack.c.l.b16 %v7908_v16  ;;  %v490_v44 = vunpack.c.l.b16 %v7916_v26  ;;  %v7975_v56 = vld [vmem:[%s7645_s24 + $0x1f8] ss:$0 sps:$4 sm:$0x11]  }
  0x4f   : > { %v805_v31 = vsel %vm516_vm6, %v804_v32, %v803_v24  ;;  %v491_v45 = vunpack.c.l.b16 %v7926_v34  ;;  %v492_v46 = vunpack.c.l.b16 %v7933_v33  ;;  %v493_v51 = vunpack.c.l.b16 %v7938_v25 }
  0x50   : > { %v807_v41 = vsel %vm519_vm7, %v806_v12, %v805_v31  ;;  %v494_v52 = vunpack.c.l.b16 %v7941_v35  ;;  %v495_v53 = vunpack.c.l.b16 %v7945_v37  ;;  %v496_v57 = vunpack.c.l.b16 %v7948_v39  ;;  %v8000_v37 = vld [vmem:[%s7645_s24] ss:$0 sps:$4 sm:$0x22]   ;;  %v8003_v39 = vld [vmem:[%s7645_s24 + $0x8] ss:$0 sps:$4 sm:$0x22]  }
  0x51   : > { %v809_v47 = vsel %vm522_vm8, %v808_v0, %v807_v41  ;;  %v497_v58 = vunpack.c.l.b16 %v7955_v42  ;;  %v498_v59 = vunpack.c.l.b16 %v7958_v43  ;;  %v499_v60 = vunpack.c.l.b16 %v7118_v49  ;;  %v8008_v42 = vld [vmem:[%s7645_s24 + $0x10] ss:$0 sps:$4 sm:$0x22]  }
  0x52   : > { %v840_v54 = vpack.c.b16 %v809_v47, %v795_v36  ;;  %v500_v62 = vunpack.c.l.b16 %v7966_v50  ;;  %v594_v63 = vrot.slane %v488_v38, 7  ;;  %v596_v2 = vrot.slane %v489_v40, 6  ;;  %v8013_v47 = vld [vmem:[%s7645_s24 + $0x18] ss:$0 sps:$4 sm:$0x22]  }
  0x53   : > { %v501_v4 = vunpack.c.l.b16 %v7972_v55  ;;  %v502_v5 = vunpack.c.l.b16 %v7975_v56  ;;  %v598_v61 = vrot.slane %v490_v44, 5  ;;  %v600_v3 = vrot.slane %v491_v45, 4 }
  0x54   : > { %6846 = vmatprep.mubr.msk.bf16.mxu1 %vm641_vm9, %v840_v54  ;;  %v595_v7 = vsel %vm504_vm2, %v594_v63, %v487_v30  ;;  %v602_v8 = vrot.slane %v492_v46, 3  ;;  %v604_v9 = vrot.slane %v493_v51, 2  ;;  %v606_v1 = vrot.slane %v494_v52, 1  ;;  %v8026_v63 = vld [vmem:[%s7645_s24 + $0x30] ss:$0 sps:$4 sm:$0x22]  }
  0x55   : > { %v597_v11 = vsel %vm507_vm3, %v596_v2, %v595_v7  ;;  %v608_v13 = vrot.slane %v496_v57, 7  ;;  %v610_v14 = vrot.slane %v497_v58, 6  ;;  %v612_v48 = vrot.slane %v498_v59, 5  ;;  %v8033_v2 = vld [vmem:[%s7645_s24 + $0x40] ss:$0 sps:$4 sm:$0x22]  }
  0x56   : > { %v599_v10 = vsel %vm510_vm4, %v598_v61, %v597_v11  ;;  %v614_v15 = vrot.slane %v499_v60, 4  ;;  %v616_v17 = vrot.slane %v500_v62, 3  ;;  %v618_v18 = vrot.slane %v501_v4, 2 }
  0x57   : > { %v601_v19 = vsel %vm513_vm5, %v600_v3, %v599_v10  ;;  %v609_v16 = vsel %vm504_vm2, %v608_v13, %v495_v53  ;;  %v620_v20 = vrot.slane %v502_v5, 1  ;;  %v810_v21 = vrot.slane %v487_v30, 1  ;;  %v8053_v10 = vld [vmem:[%s7645_s24 + $0x68] ss:$0 sps:$4 sm:$0x22]  }
  0x58   : > { %v603_v22 = vsel %vm516_vm6, %v602_v8, %v601_v19  ;;  %v611_v23 = vsel %vm507_vm3, %v610_v14, %v609_v16  ;;  %v812_v26 = vrot.slane %v489_v40, 7  ;;  %v814_v28 = vrot.slane %v490_v44, 6  ;;  %v8043_v8 = vld [vmem:[%s7645_s24 + $0x50] ss:$0 sps:$4 sm:$0x22]  }
  0x59   : > { %v605_v29 = vsel %vm519_vm7, %v604_v9, %v603_v22  ;;  %v613_v32 = vsel %vm510_vm4, %v612_v48, %v611_v23  ;;  %v811_v12 = vsel %vm504_vm2, %v488_v38, %v810_v21  ;;  %v816_v34 = vrot.slane %v491_v45, 5  ;;  %v8046_v9 = vld [vmem:[%s7645_s24 + $0x58] ss:$0 sps:$4 sm:$0x22]  }
  0x5a   : > { %v607_v27 = vsel %vm522_vm8, %v606_v1, %v605_v29  ;;  %v615_v0 = vsel %vm513_vm5, %v614_v15, %v613_v32  ;;  %v813_v33 = vsel %vm507_vm3, %v812_v26, %v811_v12  ;;  %v818_v36 = vrot.slane %v492_v46, 4  ;;  %v7134_v48 = vld [vmem:[%s7645_s24 + $0x60] ss:$0 sps:$4 sm:$0x22]  }
  0x5b   : > { %v617_v24 = vsel %vm516_vm6, %v616_v17, %v615_v0  ;;  %v815_v25 = vsel %vm510_vm4, %v814_v28, %v813_v33  ;;  %v820_v35 = vrot.slane %v493_v51, 3  ;;  %v822_v31 = vrot.slane %v494_v52, 2  ;;  %v8060_v16 = vld [vmem:[%s7645_s24 + $0x70] ss:$0 sps:$4 sm:$0x22]  }
  0x5c   : > { %v619_v30 = vsel %vm519_vm7, %v618_v18, %v617_v24  ;;  %v817_v38 = vsel %vm513_vm5, %v816_v34, %v815_v25  ;;  %v824_v40 = vrot.slane %v495_v53, 1  ;;  %v826_v41 = vrot.slane %v497_v58, 7  ;;  %v8018_v53 = vld [vmem:[%s7645_s24 + $0x20] ss:$0 sps:$4 sm:$0x22]  }
  0x5d   : > { %v621_v43 = vsel %vm522_vm8, %v620_v20, %v619_v30  ;;  %v819_v44 = vsel %vm516_vm6, %v818_v36, %v817_v38  ;;  %v828_v45 = vrot.slane %v498_v59, 6  ;;  %v830_v46 = vrot.slane %v499_v60, 5  ;;  %v7127_v58 = vld [vmem:[%s7645_s24 + $0x28] ss:$0 sps:$4 sm:$0x22]  }
  0x5e   : > { %v625_v49 = vpack.c.b16 %v621_v43, %v607_v27  ;;  %v821_v50 = vsel %vm519_vm7, %v820_v35, %v819_v44  ;;  %v825_v51 = vsel %vm504_vm2, %v496_v57, %v824_v40  ;;  %v832_v52 = vrot.slane %v500_v62, 4  ;;  %v8029_v57 = vld [vmem:[%s7645_s24 + $0x38] ss:$0 sps:$4 sm:$0x22]  }
  0x5f   : > { %v827_v54 = vsel %vm507_vm3, %v826_v41, %v825_v51  ;;  %v834_v55 = vrot.slane %v501_v4, 3  ;;  %v836_v56 = vrot.slane %v502_v5, 2  ;;  %v823_v59 = vsel %vm522_vm8, %v822_v31, %v821_v50  ;;  %v8036_v4 = vld [vmem:[%s7645_s24 + $0x48] ss:$0 sps:$4 sm:$0x22]  }
  0x60   : > { %6833 = vmatmul.mubr.msk.bf16.gmra.mrb[4].mxu0 %vm641_vm9, %v625_v49  ;;  %v829_v60 = vsel %vm510_vm4, %v828_v45, %v827_v54  ;;  %v1183_v5 = vunpack.c.l.b16 %v8000_v37  ;;  %v1184_v61 = vunpack.c.l.b16 %v8003_v39  ;;  %v1185_v3 = vunpack.c.l.b16 %v8008_v42  ;;  %v8063_v20 = vld [vmem:[%s7645_s24 + $0x78] ss:$0 sps:$4 sm:$0x22]  }
  0x61   : > { %v831_v62 = vsel %vm513_vm5, %v830_v46, %v829_v60  ;;  %v1186_v1 = vunpack.c.l.b16 %v8013_v47  ;;  %v1187_v11 = vunpack.c.l.b16 %v8018_v53  ;;  %v1188_v13 = vunpack.c.l.b16 %v7127_v58 }
  0x62   : > { %v833_v7 = vsel %vm516_vm6, %v832_v52, %v831_v62  ;;  %v1189_v15 = vunpack.c.l.b16 %v8026_v63  ;;  %v1190_v17 = vunpack.c.l.b16 %v8029_v57  ;;  %v1191_v18 = vunpack.c.l.b16 %v8033_v2  ;;  %v8089_v2 = vld [vmem:[%s7645_s24 + $0x80] ss:$0 sps:$4 sm:$0x22]  }
  0x63   : > { %v835_v14 = vsel %vm519_vm7, %v834_v55, %v833_v7  ;;  %v1192_v21 = vunpack.c.l.b16 %v8036_v4  ;;  %v1193_v22 = vunpack.c.l.b16 %v8043_v8  ;;  %v1194_v23 = vunpack.c.l.b16 %v8046_v9  ;;  %v8094_v7 = vld [vmem:[%s7645_s24 + $0x88] ss:$0 sps:$4 sm:$0x22]  }
  0x64   : > { %v837_v19 = vsel %vm522_vm8, %v836_v56, %v835_v14  ;;  %v1195_v28 = vunpack.c.l.b16 %v7134_v48  ;;  %v1196_v29 = vunpack.c.l.b16 %v8053_v10  ;;  %v1247_v32 = vrot.slane %v1183_v5, 2  ;;  %v8099_v48 = vld [vmem:[%s7645_s24 + $0x90] ss:$0 sps:$4 sm:$0x22]  }
  0x65   : > { %v841_v26 = vpack.c.b16 %v837_v19, %v823_v59  ;;  %v1197_v12 = vunpack.c.l.b16 %v8060_v16  ;;  %v1198_v34 = vunpack.c.l.b16 %v8063_v20  ;;  %v1248_v27 = vrot.slane %v1184_v61, 1 }
  0x66   : > { %v1251_v0 = vrot.slane %v1186_v1, 7  ;;  %v1253_v33 = vrot.slane %v1187_v11, 6  ;;  %v1255_v36 = vrot.slane %v1188_v13, 5  ;;  %v1257_v24 = vrot.slane %v1189_v15, 4 }
  0x67   : > { %6847 = vmatmul.mubr.msk.bf16.gmra.mrb[4].mxu1 %vm641_vm9, %v841_v26  ;;  %v1259_v25 = vrot.slane %v1190_v17, 3  ;;  %v1249_v35 = vsel %vm504_vm2, %v1248_v27, %v1247_v32  ;;  %v1261_v31 = vrot.slane %v1191_v18, 2  ;;  %v1262_v37 = vrot.slane %v1192_v21, 1 }
  0x68   : > { %v1265_v39 = vrot.slane %v1194_v23, 7  ;;  %v1250_v30 = vsel %vm507_vm3, %v1185_v3, %v1249_v35  ;;  %v1267_v38 = vrot.slane %v1195_v28, 6  ;;  %v1269_v40 = vrot.slane %v1196_v29, 5 }
  0x69   : > { %v1271_v41 = vrot.slane %v1197_v12, 4  ;;  %v1252_v42 = vsel %vm510_vm4, %v1251_v0, %v1250_v30  ;;  %v1263_v43 = vsel %vm504_vm2, %v1262_v37, %v1261_v31  ;;  %v1273_v44 = vrot.slane %v1198_v34, 3  ;;  %v8122_v0 = vld [vmem:[%s7645_s24 + $0xb8] ss:$0 sps:$4 sm:$0x22]  }
  0x6a   : > { %v1448_v45 = vrot.slane %v1183_v5, 3  ;;  %v1254_v46 = vsel %vm513_vm5, %v1253_v33, %v1252_v42  ;;  %v1264_v47 = vsel %vm507_vm3, %v1193_v22, %v1263_v43  ;;  %v1449_v49 = vrot.slane %v1184_v61, 2  ;;  %v8131_v33 = vld [vmem:[%s7645_s24 + $0xc8] ss:$0 sps:$4 sm:$0x22]  }
  0x6b   : > { %v1451_v50 = vrot.slane %v1185_v3, 1  ;;  %v1256_v51 = vsel %vm516_vm6, %v1255_v36, %v1254_v46  ;;  %v1266_v52 = vsel %vm510_vm4, %v1265_v39, %v1264_v47  ;;  %v1454_v53 = vrot.slane %v1187_v11, 7  ;;  %v8134_v36 = vld [vmem:[%s7645_s24 + $0xd0] ss:$0 sps:$4 sm:$0x22]  }
  0x6c   : > { %v1456_v54 = vrot.slane %v1188_v13, 6  ;;  %v1258_v55 = vsel %vm519_vm7, %v1257_v24, %v1256_v51  ;;  %v1268_v56 = vsel %vm513_vm5, %v1267_v38, %v1266_v52  ;;  %v1450_v58 = vsel %vm504_vm2, %v1449_v49, %v1448_v45  ;;  %v8140_v37 = vld [vmem:[%s7645_s24 + $0xd8] ss:$0 sps:$4 sm:$0x22]  }
  0x6d   : > { %v1458_v59 = vrot.slane %v1189_v15, 5  ;;  %v1260_v60 = vsel %vm522_vm8, %v1259_v25, %v1258_v55  ;;  %v1270_v63 = vsel %vm516_vm6, %v1269_v40, %v1268_v56  ;;  %v1452_v57 = vsel %vm507_vm3, %v1451_v50, %v1450_v58  ;;  %v8143_v39 = vld [vmem:[%s7645_s24 + $0xe0] ss:$0 sps:$4 sm:$0x22]  }
  0x6e   : > { %v1460_v62 = vrot.slane %v1190_v17, 4  ;;  %v1272_v4 = vsel %vm519_vm7, %v1271_v41, %v1270_v63  ;;  %v1453_v5 = vsel %vm510_vm4, %v1186_v1, %v1452_v57  ;;  %v1462_v61 = vrot.slane %v1191_v18, 3  ;;  %v8104_v18 = vld [vmem:[%s7645_s24 + $0x98] ss:$0 sps:$4 sm:$0x22]  }
  0x6f   : > { %v1463_v3 = vrot.slane %v1192_v21, 2  ;;  %v1274_v8 = vsel %vm522_vm8, %v1273_v44, %v1272_v4  ;;  %v1455_v11 = vsel %vm513_vm5, %v1454_v53, %v1453_v5  ;;  %v1465_v13 = vrot.slane %v1193_v22, 1  ;;  %v7142_v22 = vld [vmem:[%s7645_s24 + $0xa0] ss:$0 sps:$4 sm:$0x22]  }
  0x70   : > { %v1468_v14 = vrot.slane %v1195_v28, 7  ;;  %v1359_v10 = vpack.c.b16 %v1274_v8, %v1260_v60  ;;  %v1457_v15 = vsel %vm516_vm6, %v1456_v54, %v1455_v11  ;;  %v1470_v17 = vrot.slane %v1196_v29, 6  ;;  %v8114_v28 = vld [vmem:[%s7645_s24 + $0xa8] ss:$0 sps:$4 sm:$0x22]  }
  0x71   : > { %v1464_v1 = vsel %vm504_vm2, %v1463_v3, %v1462_v61  ;;  %v1459_v19 = vsel %vm519_vm7, %v1458_v59, %v1457_v15  ;;  %v1472_v20 = vrot.slane %v1197_v12, 5  ;;  %v1474_v21 = vrot.slane %v1198_v34, 4  ;;  %v8117_v29 = vld [vmem:[%s7645_s24 + $0xb0] ss:$0 sps:$4 sm:$0x22]  }
  0x72   : > { %v1466_v16 = vsel %vm507_vm3, %v1465_v13, %v1464_v1  ;;  %6856 = vmatprep.mubr.msk.bf16.mxu0 %vm641_vm9, %v1359_v10  ;;  %v1461_v32 = vsel %vm522_vm8, %v1460_v62, %v1459_v19  ;;  %v8125_v12 = vld [vmem:[%s7645_s24 + $0xc0] ss:$0 sps:$4 sm:$0x22]   ;;  %v1199_v34 = vunpack.c.l.b16 %v8089_v2  ;;  %v1200_v9 = vunpack.c.l.b16 %v8094_v7  ;;  %v7151_v42 = vld [vmem:[%s7645_s24 + $0xe8] ss:$0 sps:$4 sm:$0x22]  }
  0x73   : > { %v1467_v26 = vsel %vm510_vm4, %v1194_v23, %v1466_v16  ;;  %v1201_v24 = vunpack.c.l.b16 %v8099_v48  ;;  %v1202_v25 = vunpack.c.l.b16 %v8104_v18  ;;  %v1203_v35 = vunpack.c.l.b16 %v7142_v22  ;;  %v8151_v43 = vld [vmem:[%s7645_s24 + $0xf0] ss:$0 sps:$4 sm:$0x22]   ;;  %v7153_v49 = vld [vmem:[%s7645_s24 + $0xf8] ss:$0 sps:$4 sm:$0x22]  }
  0x74   : > { %v1469_v27 = vsel %vm513_vm5, %v1468_v14, %v1467_v26  ;;  %v1204_v30 = vunpack.c.l.b16 %v8114_v28  ;;  %v1205_v38 = vunpack.c.l.b16 %v8117_v29  ;;  %v1206_v40 = vunpack.c.l.b16 %v8122_v0  ;;  %v8178_v0 = vld [vmem:[%s7645_s24 + $0x100] ss:$0 sps:$4 sm:$0x22]  }
  0x75   : > { %v1471_v23 = vsel %vm516_vm6, %v1470_v17, %v1469_v27  ;;  %v1207_v44 = vunpack.c.l.b16 %v8125_v12  ;;  %v1208_v45 = vunpack.c.l.b16 %v8131_v33  ;;  %v1209_v46 = vunpack.c.l.b16 %v8134_v36  ;;  %v8183_v33 = vld [vmem:[%s7645_s24 + $0x108] ss:$0 sps:$4 sm:$0x22]  }
  0x76   : > { %v1473_v31 = vsel %vm519_vm7, %v1472_v20, %v1471_v23  ;;  %v1210_v50 = vunpack.c.l.b16 %v8140_v37  ;;  %v1211_v51 = vunpack.c.l.b16 %v8143_v39  ;;  %v1275_v52 = vrot.slane %v1199_v34, 2  ;;  %v8188_v39 = vld [vmem:[%s7645_s24 + $0x110] ss:$0 sps:$4 sm:$0x22]  }
  0x77   : > { %v1475_v41 = vsel %vm522_vm8, %v1474_v21, %v1473_v31  ;;  %v1212_v53 = vunpack.c.l.b16 %v7151_v42  ;;  %v1213_v54 = vunpack.c.l.b16 %v8151_v43  ;;  %v1276_v55 = vrot.slane %v1200_v9, 1 }
  0x78   : > { %v1560_v47 = vpack.c.b16 %v1475_v41, %v1461_v32  ;;  %v1279_v56 = vrot.slane %v1202_v25, 7  ;;  %v1214_v58 = vunpack.c.l.b16 %v7153_v49  ;;  %v1281_v59 = vrot.slane %v1203_v35, 6  ;;  %v8202_v49 = vld [vmem:[%s7645_s24 + $0x128] ss:$0 sps:$4 sm:$0x22]  }
  0x79   : > { %v1283_v60 = vrot.slane %v1204_v30, 5  ;;  %v1285_v63 = vrot.slane %v1205_v38, 4  ;;  %v1277_v57 = vsel %vm504_vm2, %v1276_v55, %v1275_v52  ;;  %v1287_v62 = vrot.slane %v1206_v40, 3  ;;  %v8218_v55 = vld [vmem:[%s7645_s24 + $0x138] ss:$0 sps:$4 sm:$0x22]  }
  0x7a   : > { %6870 = vmatprep.mubr.msk.bf16.mxu1 %vm641_vm9, %v1560_v47  ;;  %v1289_v2 = vrot.slane %v1207_v44, 2  ;;  %v1290_v4 = vrot.slane %v1208_v45, 1  ;;  %v1278_v5 = vsel %vm507_vm3, %v1201_v24, %v1277_v57  ;;  %v1293_v61 = vrot.slane %v1210_v50, 7 }
  0x7b   : > { %v1295_v3 = vrot.slane %v1211_v51, 6  ;;  %v1297_v7 = vrot.slane %v1212_v53, 5  ;;  %v1280_v8 = vsel %vm510_vm4, %v1279_v56, %v1278_v5  ;;  %v1299_v13 = vrot.slane %v1213_v54, 4  ;;  %v8221_v56 = vld [vmem:[%s7645_s24 + $0x140] ss:$0 sps:$4 sm:$0x22]  }
  0x7c   : > { %v1291_v11 = vsel %vm504_vm2, %v1290_v4, %v1289_v2  ;;  %v1301_v14 = vrot.slane %v1214_v58, 3  ;;  %v1282_v48 = vsel %vm513_vm5, %v1281_v59, %v1280_v8  ;;  %v1476_v15 = vrot.slane %v1199_v34, 3  ;;  %v8243_v5 = vld [vmem:[%s7645_s24 + $0x158] ss:$0 sps:$4 sm:$0x22]  }
  0x7d   : > { %v1292_v10 = vsel %vm507_vm3, %v1209_v46, %v1291_v11  ;;  %v1477_v1 = vrot.slane %v1200_v9, 2  ;;  %v1284_v17 = vsel %vm516_vm6, %v1283_v60, %v1282_v48  ;;  %v1479_v19 = vrot.slane %v1201_v24, 1  ;;  %v8233_v60 = vld [vmem:[%s7645_s24 + $0x148] ss:$0 sps:$4 sm:$0x22]  }
  0x7e   : > { %v1294_v18 = vsel %vm510_vm4, %v1293_v61, %v1292_v10  ;;  %v1482_v16 = vrot.slane %v1203_v35, 7  ;;  %v1286_v20 = vsel %vm519_vm7, %v1285_v63, %v1284_v17  ;;  %v1484_v26 = vrot.slane %v1204_v30, 6  ;;  %v8236_v63 = vld [vmem:[%s7645_s24 + $0x150] ss:$0 sps:$4 sm:$0x22]  }
  0x7f   : > { %v1296_v21 = vsel %vm513_vm5, %v1295_v3, %v1294_v18  ;;  %v1478_v22 = vsel %vm504_vm2, %v1477_v1, %v1476_v15  ;;  %v1288_v28 = vsel %vm522_vm8, %v1287_v62, %v1286_v20  ;;  %v1486_v27 = vrot.slane %v1205_v38, 5  ;;  %v8246_v61 = vld [vmem:[%s7645_s24 + $0x160] ss:$0 sps:$4 sm:$0x22]  }
  0x80   : > { %v1298_v29 = vsel %vm516_vm6, %v1297_v7, %v1296_v21  ;;  %v1480_v32 = vsel %vm507_vm3, %v1479_v19, %v1478_v22  ;;  %v1488_v9 = vrot.slane %v1206_v40, 4  ;;  %v1490_v23 = vrot.slane %v1207_v44, 3  ;;  %v8192_v40 = vld [vmem:[%s7645_s24 + $0x118] ss:$0 sps:$4 sm:$0x22]  }
  0x81   : > { %v1300_v12 = vsel %vm519_vm7, %v1299_v13, %v1298_v29  ;;  %v1481_v34 = vsel %vm510_vm4, %v1202_v25, %v1480_v32  ;;  %v1491_v35 = vrot.slane %v1208_v45, 2  ;;  %v1493_v31 = vrot.slane %v1209_v46, 1  ;;  %v8197_v45 = vld [vmem:[%s7645_s24 + $0x120] ss:$0 sps:$4 sm:$0x22]  }
  0x82   : > { %v1302_v36 = vsel %vm522_vm8, %v1301_v14, %v1300_v12  ;;  %v1483_v24 = vsel %vm513_vm5, %v1482_v16, %v1481_v34  ;;  %v1496_v41 = vrot.slane %v1211_v51, 7  ;;  %v1498_v25 = vrot.slane %v1212_v53, 6  ;;  %v8205_v51 = vld [vmem:[%s7645_s24 + $0x130] ss:$0 sps:$4 sm:$0x22]  }
  0x83   : > { %v1360_v30 = vpack.c.b16 %v1302_v36, %v1288_v28  ;;  %v1485_v38 = vsel %vm516_vm6, %v1484_v26, %v1483_v24  ;;  %v1492_v43 = vsel %vm504_vm2, %v1491_v35, %v1490_v23  ;;  %v1500_v44 = vrot.slane %v1213_v54, 5  ;;  %v8214_v54 = vld [vmem:[%s11277_s1] sm:$0xff]   ;;  %v8253_v13 = vld [vmem:[%s7645_s24 + $0x168] ss:$0 sps:$4 sm:$0x22]  }
  0x84   : > { %v1487_v42 = vsel %vm519_vm7, %v1486_v27, %v1485_v38  ;;  %v1502_v47 = vrot.slane %v1214_v58, 4  ;;  %v1494_v46 = vsel %vm507_vm3, %v1493_v31, %v1492_v43  ;;  %v1215_v58 = vunpack.c.l.b16 %v8178_v0  ;;  %v8256_v14 = vld [vmem:[%s7645_s24 + $0x170] ss:$0 sps:$4 sm:$0x22]  }
  0x85   : > { %6857 = vmatmul.mubr.msk.bf16.vlgmr.msra.gmra.mrb[8].mxu0 %vm641_vm9, %v1360_v30  ;;  %v1489_v52 = vsel %vm522_vm8, %v1488_v9, %v1487_v42  ;;  %v1495_v53 = vsel %vm510_vm4, %v1210_v50, %v1494_v46  ;;  %v1216_v59 = vunpack.c.l.b16 %v8183_v33  ;;  %v8229_v50 = vld [vmem:[%s11277_s1 + $0x8] sm:$0xff]   ;;  %v1217_v57 = vunpack.c.l.b16 %v8188_v39  ;;  %v8264_v17 = vld [vmem:[%s7645_s24 + $0x178] ss:$0 sps:$4 sm:$0x22]  }
  0x86   : > { %6879 = vmatpush3.bf16.msra.mxu0 %v8214_v54  ;;  %v1497_v37 = vsel %vm513_vm5, %v1496_v41, %v1495_v53  ;;  %v1218_v62 = vunpack.c.l.b16 %v8192_v40  ;;  %v1219_v2 = vunpack.c.l.b16 %v8197_v45  ;;  %v1220_v3 = vunpack.c.l.b16 %v8202_v49 }
  0x87   : > { %6880 = vmatprep.subr.bf16.mxu0 %v8229_v50  ;;  %v1499_v4 = vsel %vm516_vm6, %v1498_v25, %v1497_v37  ;;  %v1221_v7 = vunpack.c.l.b16 %v8205_v51  ;;  %v1222_v8 = vunpack.c.l.b16 %v8218_v55  ;;  %v1223_v48 = vunpack.c.l.b16 %v8221_v56 }
  0x88   : > { %v1501_v11 = vsel %vm519_vm7, %v1500_v44, %v1499_v4  ;;  %v1224_v10 = vunpack.c.l.b16 %v8233_v60  ;;  %v1225_v15 = vunpack.c.l.b16 %v8236_v63  ;;  %v1226_v18 = vunpack.c.l.b16 %v8243_v5 }
  0x89   : > { %v1503_v1 = vsel %vm522_vm8, %v1502_v47, %v1501_v11  ;;  %v1227_v19 = vunpack.c.l.b16 %v8246_v61  ;;  %v1303_v16 = vrot.slane %v1215_v58, 2  ;;  %v1228_v21 = vunpack.c.l.b16 %v8253_v13  ;;  %v8313_v13 = vld [vmem:[%s7645_s24 + $0x190] ss:$0 sps:$4 sm:$0x22]  }
  0x8a   : > { %6881 = vmatpush3.bf16.msra.mxu0 %v8229_v50  ;;  %v1561_v20 = vpack.c.b16 %v1503_v1, %v1489_v52  ;;  %v1229_v22 = vunpack.c.l.b16 %v8256_v14  ;;  %v1304_v26 = vrot.slane %v1216_v59, 1  ;;  %v1230_v28 = vunpack.c.l.b16 %v8264_v17  ;;  %v8319_v1 = vld [vmem:[%s7645_s24 + $0x198] ss:$0 sps:$4 sm:$0x22]  }
  0x8b   : > { %6882 = vmatprep.subr.bf16.mxu0 %v7636_v6  ;;  %v1307_v29 = vrot.slane %v1218_v62, 7  ;;  %v1309_v32 = vrot.slane %v1219_v2, 6  ;;  %v1311_v27 = vrot.slane %v1220_v3, 5  ;;  %v1313_v12 = vrot.slane %v1221_v7, 4 }
  0x8c   : > { %6871 = vmatmul.mubr.msk.bf16.vlgmr.msra.gmra.mrb[8].mxu1 %vm641_vm9, %v1561_v20  ;;  %v1305_v0 = vsel %vm504_vm2, %v1304_v26, %v1303_v16  ;;  %v1315_v34 = vrot.slane %v1222_v8, 3  ;;  %v1317_v9 = vrot.slane %v1223_v48, 2  ;;  %v1318_v33 = vrot.slane %v1224_v10, 1  ;;  %v7174_v20 = vld [vmem:[%s7645_s24 + $0x1a0] ss:$0 sps:$4 sm:$0x22]  }
  0x8d   : > { %6893 = vmatpush3.bf16.msra.mxu1 %v8214_v54  ;;  %v1306_v23 = vsel %vm507_vm3, %v1217_v57, %v1305_v0  ;;  %v1321_v36 = vrot.slane %v1226_v18, 7  ;;  %v1323_v24 = vrot.slane %v1227_v19, 6  ;;  %v1325_v31 = vrot.slane %v1228_v21, 5  ;;  %v8334_v26 = vld [vmem:[%s7645_s24 + $0x1b0] ss:$0 sps:$4 sm:$0x22]  }
  0x8e   : > { %6883 = vmatpush3.bf16.msra.mxu0 %v7636_v6  ;;  %v1308_v35 = vsel %vm510_vm4, %v1307_v29, %v1306_v23  ;;  %v1327_v39 = vrot.slane %v1229_v22, 4  ;;  %v1329_v30 = vrot.slane %v1230_v28, 3  ;;  %6894 = vmatprep.subr.bf16.mxu1 %v8229_v50  ;;  %v1319_v41 = vsel %vm504_vm2, %v1318_v33, %v1317_v9  ;;  %v8342_v17 = vld [vmem:[%s7645_s24 + $0x1c0] ss:$0 sps:$4 sm:$0x22]  }
  0x8f   : > { %6906 = vmatprep.subr.bf16.mxu0 %v8214_v54  ;;  %v1310_v38 = vsel %vm513_vm5, %v1309_v32, %v1308_v35  ;;  %v1504_v25 = vrot.slane %v1215_v58, 3  ;;  %v1505_v42 = vrot.slane %v1216_v59, 2  ;;  %v1320_v44 = vsel %vm507_vm3, %v1225_v15, %v1319_v41  ;;  %v8348_v0 = vld [vmem:[%s7645_s24 + $0x1c8] ss:$0 sps:$4 sm:$0x22]  }
  0x90   : > { %v1312_v43 = vsel %vm516_vm6, %v1311_v27, %v1310_v38  ;;  %v1507_v47 = vrot.slane %v1217_v57, 1  ;;  %v1510_v45 = vrot.slane %v1219_v2, 7  ;;  %v1322_v49 = vsel %vm510_vm4, %v1321_v36, %v1320_v44  ;;  %v8303_v57 = vld [vmem:[%s7645_s24 + $0x180] ss:$0 sps:$4 sm:$0x22]  }
  0x91   : > { %v1314_v46 = vsel %vm519_vm7, %v1313_v12, %v1312_v43  ;;  %v1506_v51 = vsel %vm504_vm2, %v1505_v42, %v1504_v25  ;;  %v1512_v52 = vrot.slane %v1220_v3, 6  ;;  %6895 = vmatpush3.bf16.msra.mxu1 %v8229_v50  ;;  %v1324_v55 = vsel %vm513_vm5, %v1323_v24, %v1322_v49  ;;  %v8339_v27 = vld [vmem:[%s7645_s24 + $0x1b8] ss:$0 sps:$4 sm:$0x22]  }
  0x92   : > { %v1316_v53 = vsel %vm522_vm8, %v1315_v34, %v1314_v46  ;;  %v1508_v56 = vsel %vm507_vm3, %v1507_v47, %v1506_v51  ;;  %v1514_v58 = vrot.slane %v1221_v7, 5  ;;  %6896 = vmatprep.subr.bf16.mxu1 %v7636_v6  ;;  %v1326_v59 = vsel %vm516_vm6, %v1325_v31, %v1324_v55  ;;  %v8308_v7 = vld [vmem:[%s7645_s24 + $0x188] ss:$0 sps:$4 sm:$0x22]  }
  0x93   : > { %v1509_v37 = vsel %vm510_vm4, %v1218_v62, %v1508_v56  ;;  %v1516_v60 = vrot.slane %v1222_v8, 4  ;;  %v1518_v63 = vrot.slane %v1223_v48, 3  ;;  %v1328_v2 = vsel %vm519_vm7, %v1327_v39, %v1326_v59  ;;  %v8351_v12 = vld [vmem:[%s7645_s24 + $0x1d0] ss:$0 sps:$4 sm:$0x22]  }
  0x94   : > { %v1511_v4 = vsel %vm513_vm5, %v1510_v45, %v1509_v37  ;;  %v1519_v61 = vrot.slane %v1224_v10, 2  ;;  %v1521_v3 = vrot.slane %v1225_v15, 1  ;;  %v1330_v11 = vsel %vm522_vm8, %v1329_v30, %v1328_v2  ;;  %v8357_v36 = vld [vmem:[%s7645_s24 + $0x1d8] ss:$0 sps:$4 sm:$0x22]  }
  0x95   : > { %v1513_v40 = vsel %vm516_vm6, %v1512_v52, %v1511_v4  ;;  %v1524_v62 = vrot.slane %v1227_v19, 7  ;;  %v1526_v8 = vrot.slane %v1228_v21, 6  ;;  %6897 = vmatpush3.bf16.msra.mxu1 %v7636_v6  ;;  %v1361_v14 = vpack.c.b16 %v1330_v11, %v1316_v53  ;;  %v8360_v24 = vld [vmem:[%s7645_s24 + $0x1e0] ss:$0 sps:$4 sm:$0x22]  }
  0x96   : > { %v1515_v48 = vsel %vm519_vm7, %v1514_v58, %v1513_v40  ;;  %v1520_v10 = vsel %vm504_vm2, %v1519_v61, %v1518_v63  ;;  %v1528_v15 = vrot.slane %v1229_v22, 5  ;;  %6920 = vmatprep.subr.bf16.mxu1 %v8214_v54  ;;  %v1530_v16 = vrot.slane %v1230_v28, 4  ;;  %v8331_v22 = vld [vmem:[%s7645_s24 + $0x1a8] ss:$0 sps:$4 sm:$0x22]  }
  0x97   : > { %v1522_v19 = vsel %vm507_vm3, %v1521_v3, %v1520_v10  ;;  %6860 = vmatprep.mubr.msk.bf16.mxu0 %vm641_vm9, %v1361_v14  ;;  %v1517_v29 = vsel %vm522_vm8, %v1516_v60, %v1515_v48  ;;  %v1231_v28 = vunpack.c.l.b16 %v8303_v57  ;;  %v1232_v5 = vunpack.c.l.b16 %v8308_v7  ;;  %v7183_v38 = vld [vmem:[%s7645_s24 + $0x1e8] ss:$0 sps:$4 sm:$0x22]   ;;  %v8368_v41 = vld [vmem:[%s7645_s24 + $0x1f0] ss:$0 sps:$4 sm:$0x22]  }
  0x98   : > { %v1523_v21 = vsel %vm510_vm4, %v1226_v18, %v1522_v19  ;;  %v1233_v34 = vunpack.c.l.b16 %v8313_v13  ;;  %v1234_v9 = vunpack.c.l.b16 %v8319_v1  ;;  %v1235_v23 = vunpack.c.l.b16 %v7174_v20  ;;  %v7185_v47 = vld [vmem:[%s7645_s24 + $0x1f8] ss:$0 sps:$4 sm:$0x22]  }
  0x99   : > { %v1525_v32 = vsel %vm513_vm5, %v1524_v62, %v1523_v21  ;;  %v1236_v35 = vunpack.c.l.b16 %v8331_v22  ;;  %v1237_v31 = vunpack.c.l.b16 %v8334_v26  ;;  %v1238_v39 = vunpack.c.l.b16 %v8339_v27 }
  0x9a   : > { %v1527_v18 = vsel %vm516_vm6, %v1526_v8, %v1525_v32  ;;  %v1239_v25 = vunpack.c.l.b16 %v8342_v17  ;;  %v1240_v42 = vunpack.c.l.b16 %v8348_v0  ;;  %v1241_v43 = vunpack.c.l.b16 %v8351_v12 }
  0x9b   : > { %v1529_v33 = vsel %vm519_vm7, %v1528_v15, %v1527_v18  ;;  %v1242_v45 = vunpack.c.l.b16 %v8357_v36  ;;  %v1243_v46 = vunpack.c.l.b16 %v8360_v24  ;;  %v1331_v49 = vrot.slane %v1231_v28, 2 }
  0x9c   : > { %v1531_v30 = vsel %vm522_vm8, %v1530_v16, %v1529_v33  ;;  %v1244_v51 = vunpack.c.l.b16 %v7183_v38  ;;  %v1245_v52 = vunpack.c.l.b16 %v8368_v41  ;;  %v1332_v53 = vrot.slane %v1232_v5, 1  ;;  %v8409_v41 = vld [vmem:[%s7645_s24 + $0x18] ss:$0 sps:$4 sm:$0x44]  }
  0x9d   : > { %v1562_v44 = vpack.c.b16 %v1531_v30, %v1517_v29  ;;  %v1335_v55 = vrot.slane %v1234_v9, 7  ;;  %v1246_v56 = vunpack.c.l.b16 %v7185_v47  ;;  %v1337_v58 = vrot.slane %v1235_v23, 6 }
  0x9e   : > { %v1339_v59 = vrot.slane %v1236_v35, 5  ;;  %v1341_v37 = vrot.slane %v1237_v31, 4  ;;  %v1333_v60 = vsel %vm504_vm2, %v1332_v53, %v1331_v49  ;;  %v1343_v63 = vrot.slane %v1238_v39, 3  ;;  %v8419_v53 = vld [vmem:[%s7645_s24 + $0x28] ss:$0 sps:$4 sm:$0x44]  }
  0x9f   : > { %6874 = vmatprep.mubr.msk.bf16.mxu1 %vm641_vm9, %v1562_v44  ;;  %v1345_v57 = vrot.slane %v1239_v25, 2  ;;  %v1346_v2 = vrot.slane %v1240_v42, 1  ;;  %v1334_v4 = vsel %vm507_vm3, %v1233_v34, %v1333_v60  ;;  %v1349_v61 = vrot.slane %v1242_v45, 7  ;;  %v8438_v60 = vld [vmem:[%s7645_s24 + $0x48] ss:$0 sps:$4 sm:$0x44]  }
  0xa0   : > { %v1351_v3 = vrot.slane %v1243_v46, 6  ;;  %v1353_v7 = vrot.slane %v1244_v51, 5  ;;  %v1336_v11 = vsel %vm510_vm4, %v1335_v55, %v1334_v4  ;;  %v1355_v62 = vrot.slane %v1245_v52, 4  ;;  %v8448_v4 = vld [vmem:[%s7645_s24 + $0x58] ss:$0 sps:$4 sm:$0x44]  }
  0xa1   : > { %v1347_v40 = vsel %vm504_vm2, %v1346_v2, %v1345_v57  ;;  %v1357_v8 = vrot.slane %v1246_v56, 3  ;;  %v1338_v13 = vsel %vm513_vm5, %v1337_v58, %v1336_v11  ;;  %v1532_v48 = vrot.slane %v1231_v28, 3  ;;  %v8395_v28 = vld [vmem:[%s7645_s24] ss:$0 sps:$4 sm:$0x44]  }
  0xa2   : > { %v1348_v14 = vsel %vm507_vm3, %v1241_v43, %v1347_v40  ;;  %v1533_v10 = vrot.slane %v1232_v5, 2  ;;  %v1340_v15 = vsel %vm516_vm6, %v1339_v59, %v1338_v13  ;;  %v1535_v19 = vrot.slane %v1233_v34, 1  ;;  %v8400_v34 = vld [vmem:[%s7645_s24 + $0x8] ss:$0 sps:$4 sm:$0x44]  }
  0xa3   : > { %v1350_v1 = vsel %vm510_vm4, %v1349_v61, %v1348_v14  ;;  %v1538_v16 = vrot.slane %v1235_v23, 7  ;;  %v1342_v20 = vsel %vm519_vm7, %v1341_v37, %v1340_v15  ;;  %v1540_v26 = vrot.slane %v1236_v35, 6  ;;  %v8451_v61 = vld [vmem:[%s7645_s24 + $0x60] ss:$0 sps:$4 sm:$0x44]  }
  0xa4   : > { %v1352_v21 = vsel %vm513_vm5, %v1351_v3, %v1350_v1  ;;  %v1534_v22 = vsel %vm504_vm2, %v1533_v10, %v1532_v48  ;;  %v1344_v29 = vsel %vm522_vm8, %v1343_v63, %v1342_v20  ;;  %v1542_v17 = vrot.slane %v1237_v31, 5  ;;  %v8405_v31 = vld [vmem:[%s7645_s24 + $0x10] ss:$0 sps:$4 sm:$0x44]  }
  0xa5   : > { %v1354_v32 = vsel %vm516_vm6, %v1353_v7, %v1352_v21  ;;  %v1536_v27 = vsel %vm507_vm3, %v1535_v19, %v1534_v22  ;;  %v1544_v0 = vrot.slane %v1238_v39, 4  ;;  %v1546_v12 = vrot.slane %v1239_v25, 3  ;;  %v8441_v63 = vld [vmem:[%s7645_s24 + $0x50] ss:$0 sps:$4 sm:$0x44]  }
  0xa6   : > { %v1356_v5 = vsel %vm519_vm7, %v1355_v62, %v1354_v32  ;;  %v1537_v18 = vsel %vm510_vm4, %v1234_v9, %v1536_v27  ;;  %v1547_v24 = vrot.slane %v1240_v42, 2  ;;  %v1549_v35 = vrot.slane %v1241_v43, 1  ;;  %v8414_v43 = vld [vmem:[%s7645_s24 + $0x20] ss:$0 sps:$4 sm:$0x44]  }
  0xa7   : > { %v1358_v23 = vsel %vm522_vm8, %v1357_v8, %v1356_v5  ;;  %v1539_v33 = vsel %vm513_vm5, %v1538_v16, %v1537_v18  ;;  %v1552_v9 = vrot.slane %v1243_v46, 7  ;;  %v1554_v39 = vrot.slane %v1244_v51, 6  ;;  %v8422_v46 = vld [vmem:[%s7645_s24 + $0x30] ss:$0 sps:$4 sm:$0x44]  }
  0xa8   : > { %v1362_v30 = vpack.c.b16 %v1358_v23, %v1344_v29  ;;  %v1541_v38 = vsel %vm516_vm6, %v1540_v26, %v1539_v33  ;;  %v1548_v44 = vsel %vm504_vm2, %v1547_v24, %v1546_v12  ;;  %v1556_v42 = vrot.slane %v1245_v52, 5  ;;  %v8429_v52 = vld [vmem:[%s7645_s24 + $0x38] ss:$0 sps:$4 sm:$0x44]  }
  0xa9   : > { %v1543_v25 = vsel %vm519_vm7, %v1542_v17, %v1541_v38  ;;  %v1558_v47 = vrot.slane %v1246_v56, 4  ;;  %v1550_v49 = vsel %vm507_vm3, %v1549_v35, %v1548_v44  ;;  %v8432_v56 = vld [vmem:[%s7645_s24 + $0x40] ss:$0 sps:$4 sm:$0x44]   ;;  %v1905_v58 = vunpack.c.l.b16 %v8395_v28 }
  0xaa   : > { %6861 = vmatmul.mubr.msk.bf16.gmra.mrb[12].mxu0 %vm641_vm9, %v1362_v30  ;;  %v1545_v51 = vsel %vm522_vm8, %v1544_v0, %v1543_v25  ;;  %v1551_v55 = vsel %vm510_vm4, %v1242_v45, %v1550_v49  ;;  %v1906_v59 = vunpack.c.l.b16 %v8400_v34  ;;  %v1907_v36 = vunpack.c.l.b16 %v8405_v31  ;;  %v8458_v62 = vld [vmem:[%s7645_s24 + $0x68] ss:$0 sps:$4 sm:$0x44]   ;;  %v8461_v8 = vld [vmem:[%s7645_s24 + $0x70] ss:$0 sps:$4 sm:$0x44]  }
  0xab   : > { %v1553_v37 = vsel %vm513_vm5, %v1552_v9, %v1551_v55  ;;  %v1908_v45 = vunpack.c.l.b16 %v8409_v41  ;;  %v1909_v57 = vunpack.c.l.b16 %v8414_v43  ;;  %v1910_v3 = vunpack.c.l.b16 %v8419_v53  ;;  %v8468_v15 = vld [vmem:[%s7645_s24 + $0x78] ss:$0 sps:$4 sm:$0x44]  }
  0xac   : > { %v1555_v2 = vsel %vm516_vm6, %v1554_v39, %v1553_v37  ;;  %v1911_v7 = vunpack.c.l.b16 %v8422_v46  ;;  %v1912_v11 = vunpack.c.l.b16 %v8429_v52  ;;  %v1913_v13 = vunpack.c.l.b16 %v8432_v56 }
  0xad   : > { %v1557_v40 = vsel %vm519_vm7, %v1556_v42, %v1555_v2  ;;  %v1914_v14 = vunpack.c.l.b16 %v8438_v60  ;;  %v1915_v48 = vunpack.c.l.b16 %v8441_v63  ;;  %v1916_v1 = vunpack.c.l.b16 %v8448_v4 }
  0xae   : > { %v1559_v10 = vsel %vm522_vm8, %v1558_v47, %v1557_v40  ;;  %v1917_v19 = vunpack.c.l.b16 %v8451_v61  ;;  %v1969_v16 = vrot.slane %v1905_v58, 4  ;;  %v1918_v21 = vunpack.c.l.b16 %v8458_v62  ;;  %v8501_v61 = vld [vmem:[%s7645_s24 + $0x88] ss:$0 sps:$4 sm:$0x44]  }
  0xaf   : > { %v1563_v20 = vpack.c.b16 %v1559_v10, %v1545_v51  ;;  %v1919_v22 = vunpack.c.l.b16 %v8461_v8  ;;  %v1970_v26 = vrot.slane %v1906_v59, 3  ;;  %v1920_v29 = vunpack.c.l.b16 %v8468_v15 }
  0xb0   : > { %v1972_v32 = vrot.slane %v1907_v36, 2  ;;  %v1974_v27 = vrot.slane %v1908_v45, 1  ;;  %v1977_v17 = vrot.slane %v1910_v3, 7  ;;  %v1979_v5 = vrot.slane %v1911_v7, 6 }
  0xb1   : > { %6875 = vmatmul.mubr.msk.bf16.gmra.mrb[12].mxu1 %vm641_vm9, %v1563_v20  ;;  %v1971_v28 = vsel %vm504_vm2, %v1970_v26, %v1969_v16  ;;  %v1981_v18 = vrot.slane %v1912_v11, 5  ;;  %v1983_v0 = vrot.slane %v1913_v13, 4  ;;  %v1984_v34 = vrot.slane %v1914_v14, 3  ;;  %v8513_v16 = vld [vmem:[%s7645_s24 + $0x98] ss:$0 sps:$4 sm:$0x44]  }
  0xb2   : > { %v1973_v12 = vsel %vm507_vm3, %v1972_v32, %v1971_v28  ;;  %v1986_v23 = vrot.slane %v1915_v48, 2  ;;  %v1988_v33 = vrot.slane %v1916_v1, 1  ;;  %v1991_v35 = vrot.slane %v1918_v21, 7  ;;  %v8525_v26 = vld [vmem:[%s7645_s24 + $0xb0] ss:$0 sps:$4 sm:$0x44]  }
  0xb3   : > { %v1975_v24 = vsel %vm510_vm4, %v1974_v27, %v1973_v12  ;;  %v1993_v31 = vrot.slane %v1919_v22, 6  ;;  %v1995_v30 = vrot.slane %v1920_v29, 5  ;;  %v1985_v9 = vsel %vm504_vm2, %v1984_v34, %v1983_v0  ;;  %v8530_v27 = vld [vmem:[%s7645_s24 + $0xb8] ss:$0 sps:$4 sm:$0x44]  }
  0xb4   : > { %v1976_v38 = vsel %vm513_vm5, %v1909_v57, %v1975_v24  ;;  %v2170_v39 = vrot.slane %v1905_v58, 5  ;;  %v2171_v41 = vrot.slane %v1906_v59, 4  ;;  %v1987_v44 = vsel %vm507_vm3, %v1986_v23, %v1985_v9  ;;  %v8544_v0 = vld [vmem:[%s7645_s24 + $0xd0] ss:$0 sps:$4 sm:$0x44]  }
  0xb5   : > { %v1978_v25 = vsel %vm516_vm6, %v1977_v17, %v1976_v38  ;;  %v2173_v42 = vrot.slane %v1907_v36, 3  ;;  %v2175_v47 = vrot.slane %v1908_v45, 2  ;;  %v1989_v49 = vsel %vm510_vm4, %v1988_v33, %v1987_v44  ;;  %v8496_v36 = vld [vmem:[%s7645_s24 + $0x80] ss:$0 sps:$4 sm:$0x44]  }
  0xb6   : > { %v1980_v43 = vsel %vm519_vm7, %v1979_v5, %v1978_v25  ;;  %v2172_v46 = vsel %vm504_vm2, %v2171_v41, %v2170_v39  ;;  %v2177_v51 = vrot.slane %v1909_v57, 1  ;;  %v1990_v52 = vsel %vm513_vm5, %v1917_v19, %v1989_v49  ;;  %v8533_v17 = vld [vmem:[%s7645_s24 + $0xc0] ss:$0 sps:$4 sm:$0x44]  }
  0xb7   : > { %v1982_v55 = vsel %vm522_vm8, %v1981_v18, %v1980_v43  ;;  %v2174_v56 = vsel %vm507_vm3, %v2173_v42, %v2172_v46  ;;  %v2180_v58 = vrot.slane %v1911_v7, 7  ;;  %v1992_v59 = vsel %vm516_vm6, %v1991_v35, %v1990_v52  ;;  %v8541_v18 = vld [vmem:[%s7645_s24 + $0xc8] ss:$0 sps:$4 sm:$0x44]  }
  0xb8   : > { %v2176_v37 = vsel %vm510_vm4, %v2175_v47, %v2174_v56  ;;  %v2182_v60 = vrot.slane %v1912_v11, 6  ;;  %v2184_v63 = vrot.slane %v1913_v13, 5  ;;  %v1994_v45 = vsel %vm519_vm7, %v1993_v31, %v1992_v59  ;;  %v8508_v13 = vld [vmem:[%s7645_s24 + $0x90] ss:$0 sps:$4 sm:$0x44]  }
  0xb9   : > { %v2178_v57 = vsel %vm513_vm5, %v2177_v51, %v2176_v37  ;;  %v2185_v2 = vrot.slane %v1914_v14, 4  ;;  %v2187_v4 = vrot.slane %v1915_v48, 3  ;;  %v1996_v7 = vsel %vm522_vm8, %v1995_v30, %v1994_v45  ;;  %v8551_v24 = vld [vmem:[%s7645_s24 + $0xd8] ss:$0 sps:$4 sm:$0x44]  }
  0xba   : > { %v2179_v11 = vsel %vm516_vm6, %v1910_v3, %v2178_v57  ;;  %v2189_v40 = vrot.slane %v1916_v1, 2  ;;  %v2191_v8 = vrot.slane %v1917_v19, 1  ;;  %v2081_v10 = vpack.c.b16 %v1996_v7, %v1982_v55  ;;  %v8517_v3 = vld [vmem:[%s7645_s24 + $0xa0] ss:$0 sps:$4 sm:$0x44]  }
  0xbb   : > { %v2181_v14 = vsel %vm519_vm7, %v2180_v58, %v2179_v11  ;;  %v2186_v48 = vsel %vm504_vm2, %v2185_v2, %v2184_v63  ;;  %v2194_v15 = vrot.slane %v1919_v22, 7  ;;  %v2196_v20 = vrot.slane %v1920_v29, 6  ;;  %v8522_v19 = vld [vmem:[%s7645_s24 + $0xa8] ss:$0 sps:$4 sm:$0x44]  }
  0xbc   : > { %v2188_v53 = vsel %vm507_vm3, %v2187_v4, %v2186_v48  ;;  %6884 = vmatprep.mubr.msk.bf16.mxu0 %vm641_vm9, %v2081_v10  ;;  %v2183_v22 = vsel %vm522_vm8, %v2182_v60, %v2181_v14  ;;  %v1921_v29 = vunpack.c.l.b16 %v8496_v36  ;;  %v1922_v28 = vunpack.c.l.b16 %v8501_v61  ;;  %v8554_v35 = vld [vmem:[%s7645_s24 + $0xe0] ss:$0 sps:$4 sm:$0x44]   ;;  %v8561_v38 = vld [vmem:[%s7645_s24 + $0xe8] ss:$0 sps:$4 sm:$0x44]  }
  0xbd   : > { %v2190_v1 = vsel %vm510_vm4, %v2189_v40, %v2188_v53  ;;  %v1923_v12 = vunpack.c.l.b16 %v8508_v13  ;;  %v1924_v34 = vunpack.c.l.b16 %v8513_v16  ;;  %v1925_v23 = vunpack.c.l.b16 %v8517_v3  ;;  %v8564_v9 = vld [vmem:[%s7645_s24 + $0xf0] ss:$0 sps:$4 sm:$0x44]   ;;  %v7217_v42 = vld [vmem:[%s7645_s24 + $0xf8] ss:$0 sps:$4 sm:$0x44]  }
  0xbe   : > { %v2192_v32 = vsel %vm513_vm5, %v2191_v8, %v2190_v1  ;;  %v1926_v62 = vunpack.c.l.b16 %v8522_v19  ;;  %v1928_v31 = vunpack.c.l.b16 %v8530_v27  ;;  %v1929_v39 = vunpack.c.l.b16 %v8533_v17 }
  0xbf   : > { %v2193_v5 = vsel %vm516_vm6, %v1918_v21, %v2192_v32  ;;  %v1927_v21 = vunpack.c.l.b16 %v8525_v26  ;;  %v1930_v41 = vunpack.c.l.b16 %v8541_v18  ;;  %v1931_v25 = vunpack.c.l.b16 %v8544_v0 }
  0xc0   : > { %v2195_v33 = vsel %vm519_vm7, %v2194_v15, %v2193_v5  ;;  %v1932_v47 = vunpack.c.l.b16 %v8551_v24  ;;  %v1933_v43 = vunpack.c.l.b16 %v8554_v35  ;;  %v1997_v49 = vrot.slane %v1921_v29, 4 }
  0xc1   : > { %v2197_v30 = vsel %vm522_vm8, %v2196_v20, %v2195_v33  ;;  %v1934_v46 = vunpack.c.l.b16 %v8561_v38  ;;  %v1935_v51 = vunpack.c.l.b16 %v8564_v9  ;;  %v1998_v55 = vrot.slane %v1922_v28, 3 }
  0xc2   : > { %v2282_v44 = vpack.c.b16 %v2197_v30, %v2183_v22  ;;  %v2000_v52 = vrot.slane %v1923_v12, 2  ;;  %v1936_v56 = vunpack.c.l.b16 %v7217_v42  ;;  %v2002_v58 = vrot.slane %v1924_v34, 1 }
  0xc3   : > { %v2005_v59 = vrot.slane %v1926_v62, 7  ;;  %v2007_v37 = vrot.slane %v1927_v21, 6  ;;  %v1999_v60 = vsel %vm504_vm2, %v1998_v55, %v1997_v49  ;;  %v2009_v63 = vrot.slane %v1928_v31, 5  ;;  %v8615_v55 = vld [vmem:[%s7645_s24 + $0x120] ss:$0 sps:$4 sm:$0x44]  }
  0xc4   : > { %6898 = vmatprep.mubr.msk.bf16.mxu1 %vm641_vm9, %v2282_v44  ;;  %v2011_v36 = vrot.slane %v1929_v39, 4  ;;  %v2012_v45 = vrot.slane %v1930_v41, 3  ;;  %v2001_v57 = vsel %vm507_vm3, %v2000_v52, %v1999_v60  ;;  %v2014_v2 = vrot.slane %v1931_v25, 2  ;;  %v8610_v44 = vld [vmem:[%s7645_s24 + $0x118] ss:$0 sps:$4 sm:$0x44]  }
  0xc5   : > { %v2016_v4 = vrot.slane %v1932_v47, 1  ;;  %v2019_v61 = vrot.slane %v1934_v46, 7  ;;  %v2003_v7 = vsel %vm510_vm4, %v2002_v58, %v2001_v57  ;;  %v2021_v40 = vrot.slane %v1935_v51, 6  ;;  %v8639_v60 = vld [vmem:[%s7645_s24 + $0x148] ss:$0 sps:$4 sm:$0x44]  }
  0xc6   : > { %v2013_v11 = vsel %vm504_vm2, %v2012_v45, %v2011_v36  ;;  %v2023_v8 = vrot.slane %v1936_v56, 5  ;;  %v2004_v13 = vsel %vm513_vm5, %v1925_v23, %v2003_v7  ;;  %v2198_v14 = vrot.slane %v1921_v29, 5 }
  0xc7   : > { %v2015_v10 = vsel %vm507_vm3, %v2014_v2, %v2013_v11  ;;  %v2199_v48 = vrot.slane %v1922_v28, 4  ;;  %v2006_v15 = vsel %vm516_vm6, %v2005_v59, %v2004_v13  ;;  %v2201_v53 = vrot.slane %v1923_v12, 3  ;;  %v8594_v28 = vld [vmem:[%s7645_s24 + $0x100] ss:$0 sps:$4 sm:$0x44]  }
  0xc8   : > { %v2017_v16 = vsel %vm510_vm4, %v2016_v4, %v2015_v10  ;;  %v2203_v20 = vrot.slane %v1924_v34, 2  ;;  %v2008_v3 = vsel %vm519_vm7, %v2007_v37, %v2006_v15  ;;  %v2205_v22 = vrot.slane %v1925_v23, 1  ;;  %v8599_v34 = vld [vmem:[%s7645_s24 + $0x108] ss:$0 sps:$4 sm:$0x44]  }
  0xc9   : > { %v2018_v1 = vsel %vm513_vm5, %v1933_v43, %v2017_v16  ;;  %v2200_v26 = vsel %vm504_vm2, %v2199_v48, %v2198_v14  ;;  %v2010_v32 = vsel %vm522_vm8, %v2009_v63, %v2008_v3  ;;  %v2208_v29 = vrot.slane %v1927_v21, 7  ;;  %v8604_v21 = vld [vmem:[%s7645_s24 + $0x110] ss:$0 sps:$4 sm:$0x44]  }
  0xca   : > { %v2020_v27 = vsel %vm516_vm6, %v2019_v61, %v2018_v1  ;;  %v2202_v17 = vsel %vm507_vm3, %v2201_v53, %v2200_v26  ;;  %v2210_v0 = vrot.slane %v1928_v31, 6  ;;  %v2212_v12 = vrot.slane %v1929_v39, 5  ;;  %v8642_v63 = vld [vmem:[%s7645_s24 + $0x150] ss:$0 sps:$4 sm:$0x44]  }
  0xcb   : > { %v2022_v5 = vsel %vm519_vm7, %v2021_v40, %v2020_v27  ;;  %v2204_v18 = vsel %vm510_vm4, %v2203_v20, %v2202_v17  ;;  %v2213_v24 = vrot.slane %v1930_v41, 4  ;;  %v2215_v35 = vrot.slane %v1931_v25, 3  ;;  %v8651_v4 = vld [vmem:[%s7645_s24 + $0x158] ss:$0 sps:$4 sm:$0x44]  }
  0xcc   : > { %v2024_v23 = vsel %vm522_vm8, %v2023_v8, %v2022_v5  ;;  %v2206_v33 = vsel %vm513_vm5, %v2205_v22, %v2204_v18  ;;  %v2217_v31 = vrot.slane %v1932_v47, 2  ;;  %v2219_v39 = vrot.slane %v1933_v43, 1  ;;  %v8623_v47 = vld [vmem:[%s7645_s24 + $0x130] ss:$0 sps:$4 sm:$0x44]  }
  0xcd   : > { %v2082_v30 = vpack.c.b16 %v2024_v23, %v2010_v32  ;;  %v2207_v9 = vsel %vm516_vm6, %v1926_v62, %v2206_v33  ;;  %v2214_v49 = vsel %vm504_vm2, %v2213_v24, %v2212_v12  ;;  %v2222_v41 = vrot.slane %v1935_v51, 7  ;;  %v8620_v62 = vld [vmem:[%s7645_s24 + $0x128] ss:$0 sps:$4 sm:$0x44]  }
  0xce   : > { %v2209_v42 = vsel %vm519_vm7, %v2208_v29, %v2207_v9  ;;  %v2224_v25 = vrot.slane %v1936_v56, 6  ;;  %v2216_v19 = vsel %vm507_vm3, %v2215_v35, %v2214_v49  ;;  %v8629_v51 = vld [vmem:[%s7645_s24 + $0x138] ss:$0 sps:$4 sm:$0x44]   ;;  %v1937_v58 = vunpack.c.l.b16 %v8594_v28 }
  0xcf   : > { %6885 = vmatmul.mubr.msk.bf16.vlgmr.msra.gmra.mrb[16].mxu0 %vm641_vm9, %v2082_v30  ;;  %v2211_v43 = vsel %vm522_vm8, %v2210_v0, %v2209_v42  ;;  %v2218_v52 = vsel %vm510_vm4, %v2217_v31, %v2216_v19  ;;  %v8632_v56 = vld [vmem:[%s7645_s24 + $0x140] ss:$0 sps:$4 sm:$0x44]   ;;  %v1938_v59 = vunpack.c.l.b16 %v8599_v34  ;;  %v1939_v36 = vunpack.c.l.b16 %v8604_v21  ;;  %v8661_v13 = vld [vmem:[%s7645_s24 + $0x168] ss:$0 sps:$4 sm:$0x44]  }
  0xd0   : > { %6907 = vmatpush3.bf16.msra.mxu0 %v8214_v54  ;;  %v2220_v37 = vsel %vm513_vm5, %v2219_v39, %v2218_v52  ;;  %v1940_v45 = vunpack.c.l.b16 %v8610_v44  ;;  %v1941_v57 = vunpack.c.l.b16 %v8615_v55  ;;  %v8654_v61 = vld [vmem:[%s7645_s24 + $0x160] ss:$0 sps:$4 sm:$0x44]   ;;  %v1942_v7 = vunpack.c.l.b16 %v8620_v62  ;;  %v8664_v10 = vld [vmem:[%s7645_s24 + $0x170] ss:$0 sps:$4 sm:$0x44]  }
  0xd1   : > { %6908 = vmatprep.subr.bf16.mxu0 %v8229_v50  ;;  %v2221_v2 = vsel %vm516_vm6, %v1934_v46, %v2220_v37  ;;  %v1943_v11 = vunpack.c.l.b16 %v8623_v47  ;;  %v1944_v40 = vunpack.c.l.b16 %v8629_v51  ;;  %v1945_v38 = vunpack.c.l.b16 %v8632_v56  ;;  %v8672_v15 = vld [vmem:[%s7645_s24 + $0x178] ss:$0 sps:$4 sm:$0x44]   ;;  %v8706_v47 = vld [vmem:[%s11277_s1 + $0x8] sm:$0xff]  }
  0xd2   : > { %v2223_v8 = vsel %vm519_vm7, %v2222_v41, %v2221_v2  ;;  %v1946_v46 = vunpack.c.l.b16 %v8639_v60  ;;  %v1947_v14 = vunpack.c.l.b16 %v8642_v63  ;;  %v1948_v16 = vunpack.c.l.b16 %v8651_v4  ;;  %v8716_v63 = vld [vmem:[%s7645_s24 + $0x180] ss:$0 sps:$4 sm:$0x44]   ;;  %v8721_v4 = vld [vmem:[%s7645_s24 + $0x188] ss:$0 sps:$4 sm:$0x44]  }
  0xd3   : > { %v2225_v48 = vsel %vm522_vm8, %v2224_v25, %v2223_v8  ;;  %v1949_v53 = vunpack.c.l.b16 %v8654_v61  ;;  %v2025_v20 = vrot.slane %v1937_v58, 4  ;;  %v1950_v1 = vunpack.c.l.b16 %v8661_v13 }
  0xd4   : > { %6909 = vmatpush3.bf16.msra.mxu0 %v8229_v50  ;;  %v2283_v3 = vpack.c.b16 %v2225_v48, %v2211_v43  ;;  %v1951_v26 = vunpack.c.l.b16 %v8664_v10  ;;  %v2026_v22 = vrot.slane %v1938_v59, 3  ;;  %v1952_v32 = vunpack.c.l.b16 %v8672_v15  ;;  %v8764_v15 = vld [vmem:[%s7645_s24 + $0x1c0] ss:$0 sps:$4 sm:$0x44]  }
  0xd5   : > { %6910 = vmatprep.subr.bf16.mxu0 %v7636_v6  ;;  %v2028_v27 = vrot.slane %v1939_v36, 2  ;;  %v2030_v17 = vrot.slane %v1940_v45, 1  ;;  %v2033_v29 = vrot.slane %v1942_v7, 7  ;;  %v2035_v5 = vrot.slane %v1943_v11, 6 }
  0xd6   : > { %6899 = vmatmul.mubr.msk.bf16.vlgmr.msra.gmra.mrb[16].mxu1 %vm641_vm9, %v2283_v3  ;;  %v2027_v28 = vsel %vm504_vm2, %v2026_v22, %v2025_v20  ;;  %v2037_v18 = vrot.slane %v1944_v40, 5  ;;  %v2039_v0 = vrot.slane %v1945_v38, 4  ;;  %v2040_v34 = vrot.slane %v1946_v46, 3  ;;  %v8736_v20 = vld [vmem:[%s7645_s24 + $0x198] ss:$0 sps:$4 sm:$0x44]  }
  0xd7   : > { %6921 = vmatpush3.bf16.msra.mxu1 %v8214_v54  ;;  %v2029_v12 = vsel %vm507_vm3, %v2028_v27, %v2027_v28  ;;  %v2042_v23 = vrot.slane %v1947_v14, 2  ;;  %v2044_v33 = vrot.slane %v1948_v16, 1  ;;  %v2047_v35 = vrot.slane %v1950_v1, 7  ;;  %v8748_v3 = vld [vmem:[%s7645_s24 + $0x1a0] ss:$0 sps:$4 sm:$0x44]  }
  0xd8   : > { %6911 = vmatpush3.bf16.msra.mxu0 %v7636_v6  ;;  %v2031_v24 = vsel %vm510_vm4, %v2030_v17, %v2029_v12  ;;  %v2049_v21 = vrot.slane %v1951_v26, 6  ;;  %v2051_v30 = vrot.slane %v1952_v32, 5  ;;  %6922 = vmatprep.subr.bf16.mxu1 %v8229_v50  ;;  %v2041_v31 = vsel %vm504_vm2, %v2040_v34, %v2039_v0  ;;  %v8756_v22 = vld [vmem:[%s7645_s24 + $0x1b0] ss:$0 sps:$4 sm:$0x44]  }
  0xd9   : > { %6934 = vmatprep.subr.bf16.mxu0 %v8214_v54  ;;  %v2032_v9 = vsel %vm513_vm5, %v1941_v57, %v2031_v24  ;;  %v2226_v39 = vrot.slane %v1937_v58, 5  ;;  %v2227_v44 = vrot.slane %v1938_v59, 4  ;;  %v2043_v49 = vsel %vm507_vm3, %v2042_v23, %v2041_v31  ;;  %v8775_v0 = vld [vmem:[%s7645_s24 + $0x1d0] ss:$0 sps:$4 sm:$0x44]  }
  0xda   : > { %v2034_v42 = vsel %vm516_vm6, %v2033_v29, %v2032_v9  ;;  %v2229_v41 = vrot.slane %v1939_v36, 3  ;;  %v2231_v25 = vrot.slane %v1940_v45, 2  ;;  %v2045_v19 = vsel %vm510_vm4, %v2044_v33, %v2043_v49  ;;  %v8761_v29 = vld [vmem:[%s7645_s24 + $0x1b8] ss:$0 sps:$4 sm:$0x44]  }
  0xdb   : > { %v2036_v55 = vsel %vm519_vm7, %v2035_v5, %v2034_v42  ;;  %v2228_v50 = vsel %vm504_vm2, %v2227_v44, %v2226_v39  ;;  %v2233_v54 = vrot.slane %v1941_v57, 1  ;;  %6923 = vmatpush3.bf16.msra.mxu1 %v8706_v47  ;;  %v2046_v52 = vsel %vm513_vm5, %v1949_v53, %v2045_v19  ;;  %v8782_v24 = vld [vmem:[%s7645_s24 + $0x1d8] ss:$0 sps:$4 sm:$0x44]  }
  0xdc   : > { %v2038_v43 = vsel %vm522_vm8, %v2037_v18, %v2036_v55  ;;  %v2230_v51 = vsel %vm507_vm3, %v2229_v41, %v2228_v50  ;;  %v2236_v56 = vrot.slane %v1943_v11, 7  ;;  %6924 = vmatprep.subr.bf16.mxu1 %v7636_v6  ;;  %v2048_v58 = vsel %vm516_vm6, %v2047_v35, %v2046_v52  ;;  %v8772_v18 = vld [vmem:[%s7645_s24 + $0x1c8] ss:$0 sps:$4 sm:$0x44]  }
  0xdd   : > { %v2232_v59 = vsel %vm510_vm4, %v2231_v25, %v2230_v51  ;;  %v2238_v37 = vrot.slane %v1944_v40, 6  ;;  %v2240_v60 = vrot.slane %v1945_v38, 5  ;;  %v2050_v36 = vsel %vm519_vm7, %v2049_v21, %v2048_v58  ;;  %v8728_v38 = vld [vmem:[%s7645_s24 + $0x190] ss:$0 sps:$4 sm:$0x44]  }
  0xde   : > { %v2234_v45 = vsel %vm513_vm5, %v2233_v54, %v2232_v59  ;;  %v2241_v57 = vrot.slane %v1946_v46, 4  ;;  %v2243_v2 = vrot.slane %v1947_v14, 3  ;;  %v2052_v61 = vsel %vm522_vm8, %v2051_v30, %v2050_v36  ;;  %v8785_v35 = vld [vmem:[%s7645_s24 + $0x1e0] ss:$0 sps:$4 sm:$0x44]  }
  0xdf   : > { %v2235_v11 = vsel %vm516_vm6, %v1942_v7, %v2234_v45  ;;  %v2245_v40 = vrot.slane %v1948_v16, 2  ;;  %v2247_v8 = vrot.slane %v1949_v53, 1  ;;  %6925 = vmatpush3.bf16.msra.mxu1 %v7636_v6  ;;  %v2083_v48 = vpack.c.b16 %v2052_v61, %v2038_v43  ;;  %v8741_v7 = vld [vmem:[%s11277_s1] sm:$0xff]   ;;  %v8792_v9 = vld [vmem:[%s7645_s24 + $0x1e8] ss:$0 sps:$4 sm:$0x44]  }
  0xe0   : > { %v2237_v46 = vsel %vm519_vm7, %v2236_v56, %v2235_v11  ;;  %v2242_v14 = vsel %vm504_vm2, %v2241_v57, %v2240_v60  ;;  %v2250_v62 = vrot.slane %v1951_v26, 7  ;;  %6948 = vmatprep.subr.bf16.mxu1 %v8741_v7  ;;  %v2252_v53 = vrot.slane %v1952_v32, 6  ;;  %v8753_v26 = vld [vmem:[%s7645_s24 + $0x1a8] ss:$0 sps:$4 sm:$0x44]  }
  0xe1   : > { %v2244_v16 = vsel %vm507_vm3, %v2243_v2, %v2242_v14  ;;  %6888 = vmatprep.mubr.msk.bf16.mxu0 %vm641_vm9, %v2083_v48  ;;  %v2239_v27 = vsel %vm522_vm8, %v2238_v37, %v2237_v46  ;;  %v1953_v32 = vunpack.c.l.b16 %v8716_v63  ;;  %v1954_v28 = vunpack.c.l.b16 %v8721_v4  ;;  %v8795_v31 = vld [vmem:[%s7645_s24 + $0x1f0] ss:$0 sps:$4 sm:$0x44]   ;;  %v7249_v41 = vld [vmem:[%s7645_s24 + $0x1f8] ss:$0 sps:$4 sm:$0x44]  }
  0xe2   : > { %v2246_v10 = vsel %vm510_vm4, %v2245_v40, %v2244_v16  ;;  %v1955_v12 = vunpack.c.l.b16 %v8728_v38  ;;  %v1956_v34 = vunpack.c.l.b16 %v8736_v20  ;;  %v1957_v23 = vunpack.c.l.b16 %v8748_v3 }
  0xe3   : > { %v2248_v17 = vsel %vm513_vm5, %v2247_v8, %v2246_v10  ;;  %v1958_v13 = vunpack.c.l.b16 %v8753_v26  ;;  %v1960_v21 = vunpack.c.l.b16 %v8761_v29  ;;  %v1961_v39 = vunpack.c.l.b16 %v8764_v15 }
  0xe4   : > { %v2249_v5 = vsel %vm516_vm6, %v1950_v1, %v2248_v17  ;;  %v1959_v1 = vunpack.c.l.b16 %v8756_v22  ;;  %v1962_v44 = vunpack.c.l.b16 %v8772_v18  ;;  %v1963_v42 = vunpack.c.l.b16 %v8775_v0 }
  0xe5   : > { %v2251_v33 = vsel %vm519_vm7, %v2250_v62, %v2249_v5  ;;  %v1964_v25 = vunpack.c.l.b16 %v8782_v24  ;;  %v1965_v55 = vunpack.c.l.b16 %v8785_v35  ;;  %v2053_v19 = vrot.slane %v1953_v32, 4 }
  0xe6   : > { %v2253_v30 = vsel %vm522_vm8, %v2252_v53, %v2251_v33  ;;  %v1966_v50 = vunpack.c.l.b16 %v8792_v9  ;;  %v1967_v54 = vunpack.c.l.b16 %v8795_v31  ;;  %v2054_v43 = vrot.slane %v1954_v28, 3 }
  0xe7   : > { %v2284_v49 = vpack.c.b16 %v2253_v30, %v2239_v27  ;;  %v2056_v52 = vrot.slane %v1955_v12, 2  ;;  %v1968_v51 = vunpack.c.l.b16 %v7249_v41  ;;  %v2058_v56 = vrot.slane %v1956_v34, 1 }
  0xe8   : > { %v2061_v58 = vrot.slane %v1958_v13, 7  ;;  %v2063_v59 = vrot.slane %v1959_v1, 6  ;;  %v2055_v37 = vsel %vm504_vm2, %v2054_v43, %v2053_v19  ;;  %v2065_v60 = vrot.slane %v1960_v21, 5  ;;  %v8846_v43 = vld [vmem:[%s7645_s24 + $0x20] ss:$0 sps:$4 sm:$0x88]  }
  0xe9   : > { %6902 = vmatprep.mubr.msk.bf16.mxu1 %vm641_vm9, %v2284_v49  ;;  %v2067_v63 = vrot.slane %v1961_v39, 4  ;;  %v2068_v36 = vrot.slane %v1962_v44, 3  ;;  %v2057_v45 = vsel %vm507_vm3, %v2056_v52, %v2055_v37  ;;  %v2070_v57 = vrot.slane %v1963_v42, 2  ;;  %v8841_v49 = vld [vmem:[%s7645_s24 + $0x18] ss:$0 sps:$4 sm:$0x88]  }
  0xea   : > { %v2072_v2 = vrot.slane %v1964_v25, 1  ;;  %v2075_v4 = vrot.slane %v1966_v50, 7  ;;  %v2059_v61 = vsel %vm510_vm4, %v2058_v56, %v2057_v45  ;;  %v2077_v40 = vrot.slane %v1967_v54, 6  ;;  %v8859_v56 = vld [vmem:[%s7645_s24 + $0x38] ss:$0 sps:$4 sm:$0x88]  }
  0xeb   : > { %v2069_v11 = vsel %vm504_vm2, %v2068_v36, %v2067_v63  ;;  %v2079_v8 = vrot.slane %v1968_v51, 5  ;;  %v2060_v38 = vsel %vm513_vm5, %v1957_v23, %v2059_v61  ;;  %v2254_v46 = vrot.slane %v1953_v32, 5  ;;  %v8868_v37 = vld [vmem:[%s7645_s24 + $0x48] ss:$0 sps:$4 sm:$0x88]  }
  0xec   : > { %v2071_v48 = vsel %vm507_vm3, %v2070_v57, %v2069_v11  ;;  %v2255_v14 = vrot.slane %v1954_v28, 4  ;;  %v2062_v62 = vsel %vm516_vm6, %v2061_v58, %v2060_v38  ;;  %v2257_v16 = vrot.slane %v1955_v12, 3  ;;  %v8825_v28 = vld [vmem:[%s7645_s24] ss:$0 sps:$4 sm:$0x88]  }
  0xed   : > { %v2073_v20 = vsel %vm510_vm4, %v2072_v2, %v2071_v48  ;;  %v2259_v53 = vrot.slane %v1956_v34, 2  ;;  %v2064_v3 = vsel %vm519_vm7, %v2063_v59, %v2062_v62  ;;  %v2261_v27 = vrot.slane %v1957_v23, 1  ;;  %v8830_v34 = vld [vmem:[%s7645_s24 + $0x8] ss:$0 sps:$4 sm:$0x88]  }
  0xee   : > { %v2074_v10 = vsel %vm513_vm5, %v1965_v55, %v2073_v20  ;;  %v2256_v22 = vsel %vm504_vm2, %v2255_v14, %v2254_v46  ;;  %v2066_v17 = vsel %vm522_vm8, %v2065_v60, %v2064_v3  ;;  %v2264_v32 = vrot.slane %v1959_v1, 7  ;;  %v8835_v1 = vld [vmem:[%s7645_s24 + $0x10] ss:$0 sps:$4 sm:$0x88]  }
  0xef   : > { %v2076_v29 = vsel %vm516_vm6, %v2075_v4, %v2074_v10  ;;  %v2258_v15 = vsel %vm507_vm3, %v2257_v16, %v2256_v22  ;;  %v2266_v0 = vrot.slane %v1960_v21, 6  ;;  %v2268_v12 = vrot.slane %v1961_v39, 5  ;;  %v8871_v60 = vld [vmem:[%s7645_s24 + $0x50] ss:$0 sps:$4 sm:$0x88]  }
  0xf0   : > { %v2078_v5 = vsel %vm519_vm7, %v2077_v40, %v2076_v29  ;;  %v2260_v18 = vsel %vm510_vm4, %v2259_v53, %v2258_v15  ;;  %v2269_v24 = vrot.slane %v1962_v44, 4  ;;  %v2271_v35 = vrot.slane %v1963_v42, 3  ;;  %v8880_v2 = vld [vmem:[%s7645_s24 + $0x58] ss:$0 sps:$4 sm:$0x88]  }
  0xf1   : > { %v2080_v23 = vsel %vm522_vm8, %v2079_v8, %v2078_v5  ;;  %v2262_v33 = vsel %vm513_vm5, %v2261_v27, %v2260_v18  ;;  %v2273_v31 = vrot.slane %v1964_v25, 2  ;;  %v2275_v39 = vrot.slane %v1965_v55, 1  ;;  %v8854_v25 = vld [vmem:[%s7645_s24 + $0x30] ss:$0 sps:$4 sm:$0x88]  }
  0xf2   : > { %v2084_v30 = vpack.c.b16 %v2080_v23, %v2066_v17  ;;  %v2263_v21 = vsel %vm516_vm6, %v1958_v13, %v2262_v33  ;;  %v2270_v44 = vsel %vm504_vm2, %v2269_v24, %v2268_v12  ;;  %v2278_v42 = vrot.slane %v1967_v54, 7  ;;  %v8851_v13 = vld [vmem:[%s7645_s24 + $0x28] ss:$0 sps:$4 sm:$0x88]  }
  0xf3   : > { %v2265_v41 = vsel %vm519_vm7, %v2264_v32, %v2263_v21  ;;  %v2280_v19 = vrot.slane %v1968_v51, 6  ;;  %v2272_v26 = vsel %vm507_vm3, %v2271_v35, %v2270_v44  ;;  %v8862_v54 = vld [vmem:[%s7645_s24 + $0x40] ss:$0 sps:$4 sm:$0x88]   ;;  %v2627_v51 = vunpack.c.l.b16 %v8825_v28 }
  0xf4   : > { %6889 = vmatmul.mubr.msk.bf16.gmra.mrb[20].mxu0 %vm641_vm9, %v2084_v30  ;;  %v2267_v55 = vsel %vm522_vm8, %v2266_v0, %v2265_v41  ;;  %v2274_v52 = vsel %vm510_vm4, %v2273_v31, %v2272_v26  ;;  %v2628_v58 = vunpack.c.l.b16 %v8830_v34  ;;  %v2629_v63 = vunpack.c.l.b16 %v8835_v1  ;;  %v8883_v4 = vld [vmem:[%s7645_s24 + $0x60] ss:$0 sps:$4 sm:$0x88]   ;;  %v8890_v38 = vld [vmem:[%s7645_s24 + $0x68] ss:$0 sps:$4 sm:$0x88]  }
  0xf5   : > { %v2276_v59 = vsel %vm513_vm5, %v2275_v39, %v2274_v52  ;;  %v2630_v36 = vunpack.c.l.b16 %v8841_v49  ;;  %v2631_v45 = vunpack.c.l.b16 %v8846_v43  ;;  %v2632_v61 = vunpack.c.l.b16 %v8851_v13  ;;  %v8893_v48 = vld [vmem:[%s7645_s24 + $0x70] ss:$0 sps:$4 sm:$0x88]   ;;  %v8900_v62 = vld [vmem:[%s7645_s24 + $0x78] ss:$0 sps:$4 sm:$0x88]  }
  0xf6   : > { %v2277_v57 = vsel %vm516_vm6, %v1966_v50, %v2276_v59  ;;  %v2633_v11 = vunpack.c.l.b16 %v8854_v25  ;;  %v2634_v40 = vunpack.c.l.b16 %v8859_v56  ;;  %v2635_v9 = vunpack.c.l.b16 %v8862_v54 }
  0xf7   : > { %v2279_v8 = vsel %vm519_vm7, %v2278_v42, %v2277_v57  ;;  %v2636_v50 = vunpack.c.l.b16 %v8868_v37  ;;  %v2637_v46 = vunpack.c.l.b16 %v8871_v60  ;;  %v2638_v20 = vunpack.c.l.b16 %v8880_v2 }
  0xf8   : > { %v2281_v14 = vsel %vm522_vm8, %v2280_v19, %v2279_v8  ;;  %v2639_v16 = vunpack.c.l.b16 %v8883_v4  ;;  %v2691_v53 = vrot.slane %v2627_v51, 6  ;;  %v2640_v10 = vunpack.c.l.b16 %v8890_v38  ;;  %v8933_v4 = vld [vmem:[%s7645_s24 + $0x88] ss:$0 sps:$4 sm:$0x88]  }
  0xf9   : > { %v2285_v3 = vpack.c.b16 %v2281_v14, %v2267_v55  ;;  %v2641_v22 = vunpack.c.l.b16 %v8893_v48  ;;  %v2692_v27 = vrot.slane %v2628_v58, 5  ;;  %v2642_v17 = vunpack.c.l.b16 %v8900_v62  ;;  %v8938_v48 = vld [vmem:[%s7645_s24 + $0x90] ss:$0 sps:$4 sm:$0x88]  }
  0xfa   : > { %v2694_v29 = vrot.slane %v2629_v63, 4  ;;  %v2696_v15 = vrot.slane %v2630_v36, 3  ;;  %v2698_v32 = vrot.slane %v2631_v45, 2  ;;  %v2700_v5 = vrot.slane %v2632_v61, 1 }
  0xfb   : > { %6903 = vmatmul.mubr.msk.bf16.gmra.mrb[20].mxu1 %vm641_vm9, %v2285_v3  ;;  %v2693_v28 = vsel %vm504_vm2, %v2692_v27, %v2691_v53  ;;  %v2703_v18 = vrot.slane %v2634_v40, 7  ;;  %v2705_v0 = vrot.slane %v2635_v9, 6  ;;  %v2706_v34 = vrot.slane %v2636_v50, 5  ;;  %v8943_v53 = vld [vmem:[%s7645_s24 + $0x98] ss:$0 sps:$4 sm:$0x88]  }
  0xfc   : > { %v2695_v12 = vsel %vm507_vm3, %v2694_v29, %v2693_v28  ;;  %v2708_v23 = vrot.slane %v2637_v46, 4  ;;  %v2710_v33 = vrot.slane %v2638_v20, 3  ;;  %v2712_v35 = vrot.slane %v2639_v16, 2  ;;  %v8947_v29 = vld [vmem:[%s7645_s24 + $0xa0] ss:$0 sps:$4 sm:$0x88]  }
  0xfd   : > { %v2697_v24 = vsel %vm510_vm4, %v2696_v15, %v2695_v12  ;;  %v2714_v1 = vrot.slane %v2640_v10, 1  ;;  %v2717_v30 = vrot.slane %v2642_v17, 7  ;;  %v2707_v31 = vsel %vm504_vm2, %v2706_v34, %v2705_v0  ;;  %v8955_v15 = vld [vmem:[%s7645_s24 + $0xb0] ss:$0 sps:$4 sm:$0x88]  }
  0xfe   : > { %v2699_v21 = vsel %vm513_vm5, %v2698_v32, %v2697_v24  ;;  %v2892_v39 = vrot.slane %v2627_v51, 7  ;;  %v2893_v49 = vrot.slane %v2628_v58, 6  ;;  %v2709_v44 = vsel %vm507_vm3, %v2708_v23, %v2707_v31  ;;  %v8962_v28 = vld [vmem:[%s7645_s24 + $0xb8] ss:$0 sps:$4 sm:$0x88]  }
  0xff   : > { %v2701_v41 = vsel %vm516_vm6, %v2700_v5, %v2699_v21  ;;  %v2895_v42 = vrot.slane %v2629_v63, 5  ;;  %v2897_v19 = vrot.slane %v2630_v36, 4  ;;  %v2711_v26 = vsel %vm510_vm4, %v2710_v33, %v2709_v44  ;;  %v8928_v63 = vld [vmem:[%s7645_s24 + $0x80] ss:$0 sps:$4 sm:$0x88]  }
 0x100   : > { %v2702_v43 = vsel %vm519_vm7, %v2633_v11, %v2701_v41  ;;  %v2894_v13 = vsel %vm504_vm2, %v2893_v49, %v2892_v39  ;;  %v2899_v25 = vrot.slane %v2631_v45, 3  ;;  %v2713_v52 = vsel %vm513_vm5, %v2712_v35, %v2711_v26  ;;  %v8971_v12 = vld [vmem:[%s7645_s24 + $0xc8] ss:$0 sps:$4 sm:$0x88]  }
 0x101   : > { %v2704_v55 = vsel %vm522_vm8, %v2703_v18, %v2702_v43  ;;  %v2896_v54 = vsel %vm507_vm3, %v2895_v42, %v2894_v13  ;;  %v2901_v51 = vrot.slane %v2632_v61, 2  ;;  %v2715_v58 = vsel %vm516_vm6, %v2714_v1, %v2713_v52  ;;  %v8974_v34 = vld [vmem:[%s7645_s24 + $0xd0] ss:$0 sps:$4 sm:$0x88]  }
 0x102   : > { %v2898_v59 = vsel %vm510_vm4, %v2897_v19, %v2896_v54  ;;  %v2903_v37 = vrot.slane %v2633_v11, 1  ;;  %v2906_v60 = vrot.slane %v2635_v9, 7  ;;  %v2716_v36 = vsel %vm519_vm7, %v2641_v22, %v2715_v58  ;;  %v8981_v24 = vld [vmem:[%s7645_s24 + $0xd8] ss:$0 sps:$4 sm:$0x88]  }
 0x103   : > { %v2900_v45 = vsel %vm513_vm5, %v2899_v25, %v2898_v59  ;;  %v2907_v57 = vrot.slane %v2636_v50, 6  ;;  %v2909_v2 = vrot.slane %v2637_v46, 5  ;;  %v2718_v61 = vsel %vm522_vm8, %v2717_v30, %v2716_v36  ;;  %v8984_v35 = vld [vmem:[%s7645_s24 + $0xe0] ss:$0 sps:$4 sm:$0x88]  }
 0x104   : > { %v2902_v8 = vsel %vm516_vm6, %v2901_v51, %v2900_v45  ;;  %v2911_v11 = vrot.slane %v2638_v20, 4  ;;  %v2913_v38 = vrot.slane %v2639_v16, 3  ;;  %v2803_v9 = vpack.c.b16 %v2718_v61, %v2704_v55  ;;  %v8952_v16 = vld [vmem:[%s7645_s24 + $0xa8] ss:$0 sps:$4 sm:$0x88]  }
 0x105   : > { %v2904_v14 = vsel %vm519_vm7, %v2903_v37, %v2902_v8  ;;  %v2908_v50 = vsel %vm504_vm2, %v2907_v57, %v2906_v60  ;;  %v2915_v46 = vrot.slane %v2640_v10, 2  ;;  %v2917_v27 = vrot.slane %v2641_v22, 1  ;;  %v8965_v22 = vld [vmem:[%s7645_s24 + $0xc0] ss:$0 sps:$4 sm:$0x88]  }
 0x106   : > { %v2910_v3 = vsel %vm507_vm3, %v2909_v2, %v2908_v50  ;;  %6912 = vmatprep.mubr.msk.bf16.mxu0 %vm641_vm9, %v2803_v9  ;;  %v2905_v10 = vsel %vm522_vm8, %v2634_v40, %v2904_v14  ;;  %v2643_v5 = vunpack.c.l.b16 %v8928_v63  ;;  %v2644_v18 = vunpack.c.l.b16 %v8933_v4  ;;  %v8993_v39 = vld [vmem:[%s7645_s24 + $0xe8] ss:$0 sps:$4 sm:$0x88]   ;;  %v8996_v49 = vld [vmem:[%s7645_s24 + $0xf0] ss:$0 sps:$4 sm:$0x88]  }
 0x107   : > { %v2912_v20 = vsel %vm510_vm4, %v2911_v11, %v2910_v3  ;;  %v2645_v56 = vunpack.c.l.b16 %v8938_v48  ;;  %v2646_v40 = vunpack.c.l.b16 %v8943_v53  ;;  %v2647_v23 = vunpack.c.l.b16 %v8947_v29  ;;  %v9002_v43 = vld [vmem:[%s7645_s24 + $0xf8] ss:$0 sps:$4 sm:$0x88]  }
 0x108   : > { %v2914_v32 = vsel %vm513_vm5, %v2913_v38, %v2912_v20  ;;  %v2648_v1 = vunpack.c.l.b16 %v8952_v16  ;;  %v2649_v30 = vunpack.c.l.b16 %v8955_v15  ;;  %v2650_v21 = vunpack.c.l.b16 %v8962_v28 }
 0x109   : > { %v2916_v0 = vsel %vm516_vm6, %v2915_v46, %v2914_v32  ;;  %v2651_v41 = vunpack.c.l.b16 %v8965_v22  ;;  %v2652_v44 = vunpack.c.l.b16 %v8971_v12  ;;  %v2653_v42 = vunpack.c.l.b16 %v8974_v34 }
 0x10a   : > { %v2918_v33 = vsel %vm519_vm7, %v2917_v27, %v2916_v0  ;;  %v2654_v26 = vunpack.c.l.b16 %v8981_v24  ;;  %v2655_v13 = vunpack.c.l.b16 %v8984_v35  ;;  %v2719_v62 = vrot.slane %v2643_v5, 6 }
 0x10b   : > { %v2919_v31 = vsel %vm522_vm8, %v2642_v17, %v2918_v33  ;;  %v2656_v17 = vunpack.c.l.b16 %v8993_v39  ;;  %v2657_v25 = vunpack.c.l.b16 %v8996_v49  ;;  %v2720_v55 = vrot.slane %v2644_v18, 5 }
 0x10c   : > { %v3004_v19 = vpack.c.b16 %v2919_v31, %v2905_v10  ;;  %v2722_v52 = vrot.slane %v2645_v56, 4  ;;  %v2658_v54 = vunpack.c.l.b16 %v9002_v43  ;;  %v2724_v51 = vrot.slane %v2646_v40, 3 }
 0x10d   : > { %v2726_v58 = vrot.slane %v2647_v23, 2  ;;  %v2728_v59 = vrot.slane %v2648_v1, 1  ;;  %v2721_v37 = vsel %vm504_vm2, %v2720_v55, %v2719_v62  ;;  %v2731_v60 = vrot.slane %v2650_v21, 7 }
 0x10e   : > { %6926 = vmatprep.mubr.msk.bf16.mxu1 %vm641_vm9, %v3004_v19  ;;  %v2733_v63 = vrot.slane %v2651_v41, 6  ;;  %v2734_v36 = vrot.slane %v2652_v44, 5  ;;  %v2723_v45 = vsel %vm507_vm3, %v2722_v52, %v2721_v37  ;;  %v2736_v57 = vrot.slane %v2653_v42, 4 }
 0x10f   : > { %v2738_v2 = vrot.slane %v2654_v26, 3  ;;  %v2740_v4 = vrot.slane %v2655_v13, 2  ;;  %v2725_v61 = vsel %vm510_vm4, %v2724_v51, %v2723_v45  ;;  %v2742_v11 = vrot.slane %v2656_v17, 1  ;;  %v9053_v51 = vld [vmem:[%s7645_s24 + $0x128] ss:$0 sps:$4 sm:$0x88]  }
 0x110   : > { %v2735_v8 = vsel %vm504_vm2, %v2734_v36, %v2733_v63  ;;  %v2745_v38 = vrot.slane %v2658_v54, 7  ;;  %v2727_v48 = vsel %vm513_vm5, %v2726_v58, %v2725_v61  ;;  %v2920_v14 = vrot.slane %v2643_v5, 7  ;;  %v9067_v58 = vld [vmem:[%s7645_s24 + $0x140] ss:$0 sps:$4 sm:$0x88]  }
 0x111   : > { %v2737_v9 = vsel %vm507_vm3, %v2736_v57, %v2735_v8  ;;  %v2921_v50 = vrot.slane %v2644_v18, 6  ;;  %v2729_v46 = vsel %vm516_vm6, %v2728_v59, %v2727_v48  ;;  %v2923_v3 = vrot.slane %v2645_v56, 5  ;;  %v9029_v18 = vld [vmem:[%s7645_s24 + $0x100] ss:$0 sps:$4 sm:$0x88]  }
 0x112   : > { %v2739_v53 = vsel %vm510_vm4, %v2738_v2, %v2737_v9  ;;  %v2925_v27 = vrot.slane %v2646_v40, 4  ;;  %v2730_v29 = vsel %vm519_vm7, %v2649_v30, %v2729_v46  ;;  %v2927_v15 = vrot.slane %v2647_v23, 3  ;;  %v9034_v40 = vld [vmem:[%s7645_s24 + $0x108] ss:$0 sps:$4 sm:$0x88]  }
 0x113   : > { %v2741_v20 = vsel %vm513_vm5, %v2740_v4, %v2739_v53  ;;  %v2922_v16 = vsel %vm504_vm2, %v2921_v50, %v2920_v14  ;;  %v2732_v10 = vsel %vm522_vm8, %v2731_v60, %v2730_v29  ;;  %v2929_v5 = vrot.slane %v2648_v1, 2  ;;  %v9039_v1 = vld [vmem:[%s7645_s24 + $0x110] ss:$0 sps:$4 sm:$0x88]  }
 0x114   : > { %v2743_v32 = vsel %vm516_vm6, %v2742_v11, %v2741_v20  ;;  %v2924_v22 = vsel %vm507_vm3, %v2923_v3, %v2922_v16  ;;  %v2931_v34 = vrot.slane %v2649_v30, 1  ;;  %v2934_v56 = vrot.slane %v2651_v41, 7  ;;  %v9043_v41 = vld [vmem:[%s7645_s24 + $0x118] ss:$0 sps:$4 sm:$0x88]  }
 0x115   : > { %v2744_v0 = vsel %vm519_vm7, %v2657_v25, %v2743_v32  ;;  %v2926_v12 = vsel %vm510_vm4, %v2925_v27, %v2924_v22  ;;  %v2935_v24 = vrot.slane %v2652_v44, 6  ;;  %v2937_v35 = vrot.slane %v2653_v42, 5  ;;  %v9048_v42 = vld [vmem:[%s7645_s24 + $0x120] ss:$0 sps:$4 sm:$0x88]  }
 0x116   : > { %v2746_v23 = vsel %vm522_vm8, %v2745_v38, %v2744_v0  ;;  %v2928_v33 = vsel %vm513_vm5, %v2927_v15, %v2926_v12  ;;  %v2939_v49 = vrot.slane %v2654_v26, 4  ;;  %v2941_v30 = vrot.slane %v2655_v13, 3  ;;  %v9056_v26 = vld [vmem:[%s7645_s24 + $0x130] ss:$0 sps:$4 sm:$0x88]  }
 0x117   : > { %v2804_v31 = vpack.c.b16 %v2746_v23, %v2732_v10  ;;  %v2930_v39 = vsel %vm516_vm6, %v2929_v5, %v2928_v33  ;;  %v2936_v62 = vsel %vm504_vm2, %v2935_v24, %v2934_v56  ;;  %v2943_v55 = vrot.slane %v2656_v17, 2  ;;  %v9077_v60 = vld [vmem:[%s7645_s24 + $0x150] ss:$0 sps:$4 sm:$0x88]  }
 0x118   : > { %v2932_v19 = vsel %vm519_vm7, %v2931_v34, %v2930_v39  ;;  %v2945_v44 = vrot.slane %v2657_v25, 1  ;;  %v2938_v52 = vsel %vm507_vm3, %v2937_v35, %v2936_v62  ;;  %v9064_v25 = vld [vmem:[%s7645_s24 + $0x138] ss:$0 sps:$4 sm:$0x88]   ;;  %v2659_v59 = vunpack.c.l.b16 %v9029_v18 }
 0x119   : > { %6913 = vmatmul.mubr.msk.bf16.vlgmr.msra.gmra.mrb[24].mxu0 %vm641_vm9, %v2804_v31  ;;  %v2933_v13 = vsel %vm522_vm8, %v2650_v21, %v2932_v19  ;;  %v2940_v17 = vsel %vm510_vm4, %v2939_v49, %v2938_v52  ;;  %v2660_v37 = vunpack.c.l.b16 %v9034_v40  ;;  %v9074_v21 = vld [vmem:[%s7645_s24 + $0x148] ss:$0 sps:$4 sm:$0x88]   ;;  %v2661_v63 = vunpack.c.l.b16 %v9039_v1  ;;  %v9084_v2 = vld [vmem:[%s7645_s24 + $0x158] ss:$0 sps:$4 sm:$0x88]  }
 0x11a   : > { %6935 = vmatpush3.bf16.msra.mxu0 %v8741_v7  ;;  %v2942_v28 = vsel %vm513_vm5, %v2941_v30, %v2940_v17  ;;  %v2662_v36 = vunpack.c.l.b16 %v9043_v41  ;;  %v2663_v45 = vunpack.c.l.b16 %v9048_v42  ;;  %v9087_v4 = vld [vmem:[%s7645_s24 + $0x160] ss:$0 sps:$4 sm:$0x88]   ;;  %v2664_v61 = vunpack.c.l.b16 %v9053_v51  ;;  %v9094_v48 = vld [vmem:[%s7645_s24 + $0x168] ss:$0 sps:$4 sm:$0x88]  }
 0x11b   : > { %6936 = vmatprep.subr.bf16.mxu0 %v8706_v47  ;;  %v2944_v57 = vsel %vm516_vm6, %v2943_v55, %v2942_v28  ;;  %v2665_v8 = vunpack.c.l.b16 %v9056_v26  ;;  %v2666_v11 = vunpack.c.l.b16 %v9064_v25  ;;  %v9097_v9 = vld [vmem:[%s7645_s24 + $0x170] ss:$0 sps:$4 sm:$0x88]   ;;  %v2667_v14 = vunpack.c.l.b16 %v9067_v58  ;;  %v9107_v3 = vld [vmem:[%s7645_s24 + $0x178] ss:$0 sps:$4 sm:$0x88]  }
 0x11c   : > { %v2946_v38 = vsel %vm519_vm7, %v2945_v44, %v2944_v57  ;;  %v2668_v50 = vunpack.c.l.b16 %v9074_v21  ;;  %v2669_v46 = vunpack.c.l.b16 %v9077_v60  ;;  %v2670_v27 = vunpack.c.l.b16 %v9084_v2  ;;  %v9151_v2 = vld [vmem:[%s7645_s24 + $0x188] ss:$0 sps:$4 sm:$0x88]  }
 0x11d   : > { %v2947_v53 = vsel %vm522_vm8, %v2658_v54, %v2946_v38  ;;  %v2671_v29 = vunpack.c.l.b16 %v9087_v4  ;;  %v2747_v20 = vrot.slane %v2659_v59, 6  ;;  %v2672_v15 = vunpack.c.l.b16 %v9094_v48  ;;  %v9176_v48 = vld [vmem:[%s7645_s24 + $0x1a8] ss:$0 sps:$4 sm:$0x88]  }
 0x11e   : > { %6937 = vmatpush3.bf16.msra.mxu0 %v8706_v47  ;;  %v3005_v16 = vpack.c.b16 %v2947_v53, %v2933_v13  ;;  %v2673_v10 = vunpack.c.l.b16 %v9097_v9  ;;  %v2748_v32 = vrot.slane %v2660_v37, 5  ;;  %v2674_v43 = vunpack.c.l.b16 %v9107_v3  ;;  %v9186_v9 = vld [vmem:[%s7645_s24 + $0x1b8] ss:$0 sps:$4 sm:$0x88]  }
 0x11f   : > { %6938 = vmatprep.subr.bf16.mxu0 %v7636_v6  ;;  %v2750_v54 = vrot.slane %v2661_v63, 4  ;;  %v2752_v22 = vrot.slane %v2662_v36, 3  ;;  %v2754_v5 = vrot.slane %v2663_v45, 2  ;;  %v2756_v0 = vrot.slane %v2664_v61, 1 }
 0x120   : > { %6927 = vmatmul.mubr.msk.bf16.vlgmr.msra.gmra.mrb[24].mxu1 %vm641_vm9, %v3005_v16  ;;  %v2749_v18 = vsel %vm504_vm2, %v2748_v32, %v2747_v20  ;;  %v2759_v12 = vrot.slane %v2666_v11, 7  ;;  %v2761_v34 = vrot.slane %v2667_v14, 6  ;;  %v2762_v40 = vrot.slane %v2668_v50, 5  ;;  %v9164_v16 = vld [vmem:[%s7645_s24 + $0x198] ss:$0 sps:$4 sm:$0x88]  }
 0x121   : > { %6949 = vmatpush3.bf16.msra.mxu1 %v8741_v7  ;;  %v2751_v56 = vsel %vm507_vm3, %v2750_v54, %v2749_v18  ;;  %v2764_v23 = vrot.slane %v2669_v46, 4  ;;  %v2766_v33 = vrot.slane %v2670_v27, 3  ;;  %v2768_v35 = vrot.slane %v2671_v29, 2  ;;  %v9171_v32 = vld [vmem:[%s7645_s24 + $0x1a0] ss:$0 sps:$4 sm:$0x88]  }
 0x122   : > { %6939 = vmatpush3.bf16.msra.mxu0 %v7636_v6  ;;  %v2753_v24 = vsel %vm510_vm4, %v2752_v22, %v2751_v56  ;;  %v2770_v1 = vrot.slane %v2672_v15, 1  ;;  %v2773_v31 = vrot.slane %v2674_v43, 7  ;;  %6950 = vmatprep.subr.bf16.mxu1 %v8706_v47  ;;  %v2763_v49 = vsel %vm504_vm2, %v2762_v40, %v2761_v34  ;;  %v9198_v34 = vld [vmem:[%s7645_s24 + $0x1d0] ss:$0 sps:$4 sm:$0x88]  }
 0x123   : > { %6962 = vmatprep.subr.bf16.mxu0 %v8741_v7  ;;  %v2755_v39 = vsel %vm513_vm5, %v2754_v5, %v2753_v24  ;;  %v2948_v30 = vrot.slane %v2659_v59, 7  ;;  %v2949_v41 = vrot.slane %v2660_v37, 6  ;;  %v2765_v62 = vsel %vm507_vm3, %v2764_v23, %v2763_v49  ;;  %v9205_v23 = vld [vmem:[%s7645_s24 + $0x1d8] ss:$0 sps:$4 sm:$0x88]  }
 0x124   : > { %v2757_v19 = vsel %vm516_vm6, %v2756_v0, %v2755_v39  ;;  %v2951_v55 = vrot.slane %v2661_v63, 5  ;;  %v2953_v44 = vrot.slane %v2662_v36, 4  ;;  %v2767_v52 = vsel %vm510_vm4, %v2766_v33, %v2765_v62  ;;  %v9144_v63 = vld [vmem:[%s7645_s24 + $0x180] ss:$0 sps:$4 sm:$0x88]  }
 0x125   : > { %v2758_v42 = vsel %vm519_vm7, %v2665_v8, %v2757_v19  ;;  %v2950_v51 = vsel %vm504_vm2, %v2949_v41, %v2948_v30  ;;  %v2955_v26 = vrot.slane %v2663_v45, 3  ;;  %6951 = vmatpush3.bf16.msra.mxu1 %v8706_v47  ;;  %v2769_v17 = vsel %vm513_vm5, %v2768_v35, %v2767_v52  ;;  %v9208_v33 = vld [vmem:[%s7645_s24 + $0x1e0] ss:$0 sps:$4 sm:$0x88]  }
 0x126   : > { %v2760_v13 = vsel %vm522_vm8, %v2759_v12, %v2758_v42  ;;  %v2952_v58 = vsel %vm507_vm3, %v2951_v55, %v2950_v51  ;;  %v2957_v59 = vrot.slane %v2664_v61, 2  ;;  %6952 = vmatprep.subr.bf16.mxu1 %v7636_v6  ;;  %v2771_v37 = vsel %vm516_vm6, %v2770_v1, %v2769_v17  ;;  %v9195_v12 = vld [vmem:[%s7645_s24 + $0x1c8] ss:$0 sps:$4 sm:$0x88]  }
 0x127   : > { %v2954_v28 = vsel %vm510_vm4, %v2953_v44, %v2952_v58  ;;  %v2959_v21 = vrot.slane %v2665_v8, 1  ;;  %v2962_v60 = vrot.slane %v2667_v14, 7  ;;  %v2772_v47 = vsel %vm519_vm7, %v2673_v10, %v2771_v37  ;;  %v9156_v14 = vld [vmem:[%s7645_s24 + $0x190] ss:$0 sps:$4 sm:$0x88]  }
 0x128   : > { %v2956_v36 = vsel %vm513_vm5, %v2955_v26, %v2954_v28  ;;  %v2963_v45 = vrot.slane %v2668_v50, 6  ;;  %v2965_v57 = vrot.slane %v2669_v46, 5  ;;  %v2774_v4 = vsel %vm522_vm8, %v2773_v31, %v2772_v47  ;;  %v9217_v39 = vld [vmem:[%s7645_s24 + $0x1e8] ss:$0 sps:$4 sm:$0x88]  }
 0x129   : > { %v2958_v61 = vsel %vm516_vm6, %v2957_v59, %v2956_v36  ;;  %v2967_v8 = vrot.slane %v2670_v27, 4  ;;  %v2969_v38 = vrot.slane %v2671_v29, 3  ;;  %6953 = vmatpush3.bf16.msra.mxu1 %v7636_v6  ;;  %v2805_v53 = vpack.c.b16 %v2774_v4, %v2760_v13  ;;  %v9220_v49 = vld [vmem:[%s7645_s24 + $0x1f0] ss:$0 sps:$4 sm:$0x88]  }
 0x12a   : > { %v2960_v50 = vsel %vm519_vm7, %v2959_v21, %v2958_v61  ;;  %v2964_v46 = vsel %vm504_vm2, %v2963_v45, %v2962_v60  ;;  %v2971_v20 = vrot.slane %v2672_v15, 2  ;;  %6976 = vmatprep.subr.bf16.mxu1 %v8741_v7  ;;  %v2973_v29 = vrot.slane %v2673_v10, 1  ;;  %v9179_v15 = vld [vmem:[%s7645_s24 + $0x1b0] ss:$0 sps:$4 sm:$0x88]  }
 0x12b   : > { %v2966_v27 = vsel %vm507_vm3, %v2965_v57, %v2964_v46  ;;  %6916 = vmatprep.mubr.msk.bf16.mxu0 %vm641_vm9, %v2805_v53  ;;  %v2961_v7 = vsel %vm522_vm8, %v2666_v11, %v2960_v50  ;;  %v9189_v10 = vld [vmem:[%s7645_s24 + $0x1c0] ss:$0 sps:$4 sm:$0x88]   ;;  %v2675_v5 = vunpack.c.l.b16 %v9144_v63  ;;  %v2676_v18 = vunpack.c.l.b16 %v9151_v2  ;;  %v9226_v55 = vld [vmem:[%s7645_s24 + $0x1f8] ss:$0 sps:$4 sm:$0x88]  }
 0x12c   : > { %v2968_v54 = vsel %vm510_vm4, %v2967_v8, %v2966_v27  ;;  %v2677_v25 = vunpack.c.l.b16 %v9156_v14  ;;  %v2678_v11 = vunpack.c.l.b16 %v9164_v16  ;;  %v2679_v56 = vunpack.c.l.b16 %v9171_v32 }
 0x12d   : > { %v2970_v22 = vsel %vm513_vm5, %v2969_v38, %v2968_v54  ;;  %v2680_v24 = vunpack.c.l.b16 %v9176_v48  ;;  %v2681_v35 = vunpack.c.l.b16 %v9179_v15  ;;  %v2682_v1 = vunpack.c.l.b16 %v9186_v9 }
 0x12e   : > { %v2972_v0 = vsel %vm516_vm6, %v2971_v20, %v2970_v22  ;;  %v2683_v30 = vunpack.c.l.b16 %v9189_v10  ;;  %v2684_v41 = vunpack.c.l.b16 %v9195_v12  ;;  %v2685_v19 = vunpack.c.l.b16 %v9198_v34  ;;  %v9253_v10 = vld [vmem:[%s7645_s24 + $0x4] ss:$0 sps:$4 sm:$0x11]   ;;  %v9258_v34 = vld [vmem:[%s7645_s24 + $0xc] ss:$0 sps:$4 sm:$0x11]  }
 0x12f   : > { %v2974_v40 = vsel %vm519_vm7, %v2973_v29, %v2972_v0  ;;  %v2686_v44 = vunpack.c.l.b16 %v9205_v23  ;;  %v2687_v42 = vunpack.c.l.b16 %v9208_v33  ;;  %v2775_v3 = vrot.slane %v2675_v5, 6  ;;  %v9263_v23 = vld [vmem:[%s7645_s24 + $0x14] ss:$0 sps:$4 sm:$0x11]  }
 0x130   : > { %v2975_v31 = vsel %vm522_vm8, %v2674_v43, %v2974_v40  ;;  %v2688_v43 = vunpack.c.l.b16 %v9217_v39  ;;  %v2689_v52 = vunpack.c.l.b16 %v9220_v49  ;;  %v2776_v51 = vrot.slane %v2676_v18, 5  ;;  %v9267_v39 = vld [vmem:[%s7645_s24 + $0x1c] ss:$0 sps:$4 sm:$0x11]  }
 0x131   : > { %v3006_v62 = vpack.c.b16 %v2975_v31, %v2961_v7  ;;  %v2778_v26 = vrot.slane %v2677_v25, 4  ;;  %v2690_v13 = vunpack.c.l.b16 %v9226_v55  ;;  %v2780_v17 = vrot.slane %v2678_v11, 3 }
 0x132   : > { %v2782_v58 = vrot.slane %v2679_v56, 2  ;;  %v2784_v59 = vrot.slane %v2680_v24, 1  ;;  %v2777_v37 = vsel %vm504_vm2, %v2776_v51, %v2775_v3  ;;  %v2787_v28 = vrot.slane %v2682_v1, 7  ;;  %v9277_v51 = vld [vmem:[%s7645_s24 + $0x2c] ss:$0 sps:$4 sm:$0x11]  }
 0x133   : > { %6930 = vmatprep.mubr.msk.bf16.mxu1 %vm641_vm9, %v3006_v62  ;;  %v2789_v21 = vrot.slane %v2683_v30, 6  ;;  %v2790_v60 = vrot.slane %v2684_v41, 5  ;;  %v2779_v63 = vsel %vm507_vm3, %v2778_v26, %v2777_v37  ;;  %v2792_v47 = vrot.slane %v2685_v19, 4  ;;  %v9296_v37 = vld [vmem:[%s7645_s24 + $0x4c] ss:$0 sps:$4 sm:$0x11]  }
 0x134   : > { %v2794_v36 = vrot.slane %v2686_v44, 3  ;;  %v2796_v45 = vrot.slane %v2687_v42, 2  ;;  %v2781_v57 = vsel %vm510_vm4, %v2780_v17, %v2779_v63  ;;  %v2798_v4 = vrot.slane %v2688_v43, 1  ;;  %v7325_v63 = vld [vmem:[%s7645_s24 + $0x5c] ss:$0 sps:$4 sm:$0x11]  }
 0x135   : > { %v2791_v2 = vsel %vm504_vm2, %v2790_v60, %v2789_v21  ;;  %v2801_v61 = vrot.slane %v2690_v13, 7  ;;  %v2783_v8 = vsel %vm513_vm5, %v2782_v58, %v2781_v57  ;;  %v2976_v14 = vrot.slane %v2675_v5, 7 }
 0x136   : > { %v2793_v38 = vsel %vm507_vm3, %v2792_v47, %v2791_v2  ;;  %v2977_v53 = vrot.slane %v2676_v18, 6  ;;  %v2785_v50 = vsel %vm516_vm6, %v2784_v59, %v2783_v8  ;;  %v2979_v20 = vrot.slane %v2677_v25, 5  ;;  %v9307_v47 = vld [vmem:[%s7645_s24 + $0x64] ss:$0 sps:$4 sm:$0x11]  }
 0x137   : > { %v2795_v46 = vsel %vm510_vm4, %v2794_v36, %v2793_v38  ;;  %v2981_v16 = vrot.slane %v2678_v11, 4  ;;  %v2786_v27 = vsel %vm519_vm7, %v2681_v35, %v2785_v50  ;;  %v2983_v54 = vrot.slane %v2679_v56, 3  ;;  %v9326_v50 = vld [vmem:[%s7645_s24 + $0x7c] ss:$0 sps:$4 sm:$0x11]  }
 0x138   : > { %v2797_v29 = vsel %vm513_vm5, %v2796_v45, %v2795_v46  ;;  %v2978_v32 = vsel %vm504_vm2, %v2977_v53, %v2976_v14  ;;  %v2788_v48 = vsel %vm522_vm8, %v2787_v28, %v2786_v27  ;;  %v2985_v22 = vrot.slane %v2680_v24, 2  ;;  %v9299_v28 = vld [vmem:[%s7645_s24 + $0x54] ss:$0 sps:$4 sm:$0x11]  }
 0x139   : > { %v2799_v15 = vsel %vm516_vm6, %v2798_v4, %v2797_v29  ;;  %v2980_v7 = vsel %vm507_vm3, %v2979_v20, %v2978_v32  ;;  %v2987_v0 = vrot.slane %v2681_v35, 1  ;;  %v2990_v12 = vrot.slane %v2683_v30, 7  ;;  %v9314_v4 = vld [vmem:[%s7645_s24 + $0x6c] ss:$0 sps:$4 sm:$0x11]  }
 0x13a   : > { %v2800_v5 = vsel %vm519_vm7, %v2689_v52, %v2799_v15  ;;  %v2982_v18 = vsel %vm510_vm4, %v2981_v16, %v2980_v7  ;;  %v2991_v56 = vrot.slane %v2684_v41, 6  ;;  %v2993_v40 = vrot.slane %v2685_v19, 5  ;;  %v9272_v19 = vld [vmem:[%s7645_s24 + $0x24] ss:$0 sps:$4 sm:$0x11]  }
 0x13b   : > { %v2802_v25 = vsel %vm522_vm8, %v2801_v61, %v2800_v5  ;;  %v2984_v11 = vsel %vm513_vm5, %v2983_v54, %v2982_v18  ;;  %v2995_v35 = vrot.slane %v2686_v44, 4  ;;  %v2997_v31 = vrot.slane %v2687_v42, 3  ;;  %v9280_v44 = vld [vmem:[%s7645_s24 + $0x34] ss:$0 sps:$4 sm:$0x11]  }
 0x13c   : > { %v2806_v33 = vpack.c.b16 %v2802_v25, %v2788_v48  ;;  %v2986_v24 = vsel %vm516_vm6, %v2985_v22, %v2984_v11  ;;  %v2992_v30 = vsel %vm504_vm2, %v2991_v56, %v2990_v12  ;;  %v2999_v41 = vrot.slane %v2688_v43, 2  ;;  %v9287_v43 = vld [vmem:[%s7645_s24 + $0x3c] ss:$0 sps:$4 sm:$0x11]  }
 0x13d   : > { %v2988_v49 = vsel %vm519_vm7, %v2987_v0, %v2986_v24  ;;  %v3001_v62 = vrot.slane %v2689_v52, 1  ;;  %v2994_v3 = vsel %vm507_vm3, %v2993_v40, %v2992_v30  ;;  %v9290_v52 = vld [vmem:[%s7645_s24 + $0x44] ss:$0 sps:$4 sm:$0x11]   ;;  %v3349_v17 = vunpack.c.l.b16 %v9253_v10 }
 0x13e   : > { %6917 = vmatmul.mubr.msk.bf16.gmra.mrb[28].mxu0 %vm641_vm9, %v2806_v33  ;;  %v2989_v42 = vsel %vm522_vm8, %v2682_v1, %v2988_v49  ;;  %v2996_v26 = vsel %vm510_vm4, %v2995_v35, %v2994_v3  ;;  %v3350_v58 = vunpack.c.l.b16 %v9258_v34  ;;  %v3351_v9 = vunpack.c.l.b16 %v9263_v23  ;;  %v9317_v61 = vld [vmem:[%s7645_s24 + $0x74] ss:$0 sps:$4 sm:$0x11]  }
 0x13f   : > { %v2998_v59 = vsel %vm513_vm5, %v2997_v31, %v2996_v26  ;;  %v3352_v1 = vunpack.c.l.b16 %v9267_v39  ;;  %v3353_v21 = vunpack.c.l.b16 %v9272_v19  ;;  %v3354_v36 = vunpack.c.l.b16 %v9277_v51 }
 0x140   : > { %v3000_v60 = vsel %vm516_vm6, %v2999_v41, %v2998_v59  ;;  %v3355_v45 = vunpack.c.l.b16 %v9280_v44  ;;  %v3356_v57 = vunpack.c.l.b16 %v9287_v43  ;;  %v3357_v8 = vunpack.c.l.b16 %v9290_v52 }
 0x141   : > { %v3002_v2 = vsel %vm519_vm7, %v3001_v62, %v3000_v60  ;;  %v3358_v38 = vunpack.c.l.b16 %v9296_v37  ;;  %v3359_v14 = vunpack.c.l.b16 %v9299_v28  ;;  %v3360_v46 = vunpack.c.l.b16 %v7325_v63 }
 0x142   : > { %v3003_v53 = vsel %vm522_vm8, %v2690_v13, %v3002_v2  ;;  %v3361_v20 = vunpack.c.l.b16 %v9307_v47  ;;  %v3413_v16 = vrot.slane %v3350_v58, 7  ;;  %v3362_v29 = vunpack.c.l.b16 %v9314_v4 }
 0x143   : > { %v3007_v27 = vpack.c.b16 %v3003_v53, %v2989_v42  ;;  %v3363_v32 = vunpack.c.l.b16 %v9317_v61  ;;  %v3415_v54 = vrot.slane %v3351_v9, 6  ;;  %v3364_v48 = vunpack.c.l.b16 %v9326_v50 }
 0x144   : > { %v3414_v15 = vsel %vm504_vm2, %v3413_v16, %v3349_v17  ;;  %v3417_v7 = vrot.slane %v3352_v1, 5  ;;  %v3419_v55 = vrot.slane %v3353_v21, 4  ;;  %v3421_v22 = vrot.slane %v3354_v36, 3  ;;  %v9375_v16 = vld [vmem:[%s7645_s24 + $0xb4] ss:$0 sps:$4 sm:$0x11]  }
 0x145   : > { %6931 = vmatmul.mubr.msk.bf16.gmra.mrb[28].mxu1 %vm641_vm9, %v3007_v27  ;;  %v3416_v13 = vsel %vm507_vm3, %v3415_v54, %v3414_v15  ;;  %v3423_v10 = vrot.slane %v3355_v45, 2  ;;  %v3425_v5 = vrot.slane %v3356_v57, 1  ;;  %v3427_v0 = vrot.slane %v3358_v38, 7  ;;  %v9380_v54 = vld [vmem:[%s7645_s24 + $0xbc] ss:$0 sps:$4 sm:$0x11]  }
 0x146   : > { %v3418_v18 = vsel %vm510_vm4, %v3417_v7, %v3416_v13  ;;  %v3429_v12 = vrot.slane %v3359_v14, 6  ;;  %v3431_v34 = vrot.slane %v3360_v46, 5  ;;  %v3433_v11 = vrot.slane %v3361_v20, 4  ;;  %v9383_v15 = vld [vmem:[%s7645_s24 + $0xc4] ss:$0 sps:$4 sm:$0x11]  }
 0x147   : > { %v3420_v25 = vsel %vm513_vm5, %v3419_v55, %v3418_v18  ;;  %v3435_v56 = vrot.slane %v3362_v29, 3  ;;  %v3437_v40 = vrot.slane %v3363_v32, 2  ;;  %v3428_v33 = vsel %vm504_vm2, %v3427_v0, %v3357_v8  ;;  %v9389_v55 = vld [vmem:[%s7645_s24 + $0xcc] ss:$0 sps:$4 sm:$0x11]  }
 0x148   : > { %v3422_v23 = vsel %vm516_vm6, %v3421_v22, %v3420_v25  ;;  %v3439_v24 = vrot.slane %v3364_v48, 1  ;;  %v3614_v35 = vrot.slane %v3349_v17, 1  ;;  %v3430_v39 = vsel %vm507_vm3, %v3429_v12, %v3428_v33  ;;  %v9392_v13 = vld [vmem:[%s7645_s24 + $0xd4] ss:$0 sps:$4 sm:$0x11]  }
 0x149   : > { %v3424_v31 = vsel %vm519_vm7, %v3423_v10, %v3422_v23  ;;  %v3616_v49 = vrot.slane %v3351_v9, 7  ;;  %v3618_v30 = vrot.slane %v3352_v1, 6  ;;  %v3432_v62 = vsel %vm510_vm4, %v3431_v34, %v3430_v39  ;;  %v9351_v1 = vld [vmem:[%s7645_s24 + $0x84] ss:$0 sps:$4 sm:$0x11]  }
 0x14a   : > { %v3426_v41 = vsel %vm522_vm8, %v3425_v5, %v3424_v31  ;;  %v3615_v19 = vsel %vm504_vm2, %v3350_v58, %v3614_v35  ;;  %v3620_v3 = vrot.slane %v3353_v21, 5  ;;  %v3434_v51 = vsel %vm513_vm5, %v3433_v11, %v3432_v62  ;;  %v9354_v21 = vld [vmem:[%s7645_s24 + $0x8c] ss:$0 sps:$4 sm:$0x11]  }
 0x14b   : > { %v3617_v44 = vsel %vm507_vm3, %v3616_v49, %v3615_v19  ;;  %v3622_v42 = vrot.slane %v3354_v36, 4  ;;  %v3624_v26 = vrot.slane %v3355_v45, 3  ;;  %v3436_v43 = vsel %vm516_vm6, %v3435_v56, %v3434_v51  ;;  %v9360_v45 = vld [vmem:[%s7645_s24 + $0x94] ss:$0 sps:$4 sm:$0x11]  }
 0x14c   : > { %v3619_v52 = vsel %vm510_vm4, %v3618_v30, %v3617_v44  ;;  %v3626_v17 = vrot.slane %v3356_v57, 2  ;;  %v3628_v59 = vrot.slane %v3357_v8, 1  ;;  %v3438_v37 = vsel %vm519_vm7, %v3437_v40, %v3436_v43  ;;  %v9365_v8 = vld [vmem:[%s7645_s24 + $0x9c] ss:$0 sps:$4 sm:$0x11]  }
 0x14d   : > { %v3621_v28 = vsel %vm513_vm5, %v3620_v3, %v3619_v52  ;;  %v3630_v58 = vrot.slane %v3359_v14, 7  ;;  %v3632_v9 = vrot.slane %v3360_v46, 6  ;;  %v3440_v60 = vsel %vm522_vm8, %v3439_v24, %v3438_v37  ;;  %v9398_v0 = vld [vmem:[%s7645_s24 + $0xdc] ss:$0 sps:$4 sm:$0x11]  }
 0x14e   : > { %v3623_v63 = vsel %vm516_vm6, %v3622_v42, %v3621_v28  ;;  %v3629_v47 = vsel %vm504_vm2, %v3358_v38, %v3628_v59  ;;  %v3634_v36 = vrot.slane %v3361_v20, 5  ;;  %v3525_v57 = vpack.c.b16 %v3440_v60, %v3426_v41  ;;  %v7334_v38 = vld [vmem:[%s7645_s24 + $0xa4] ss:$0 sps:$4 sm:$0x11]  }
 0x14f   : > { %v3625_v2 = vsel %vm519_vm7, %v3624_v26, %v3623_v63  ;;  %v3631_v4 = vsel %vm507_vm3, %v3630_v58, %v3629_v47  ;;  %v3636_v61 = vrot.slane %v3362_v29, 4  ;;  %v3638_v53 = vrot.slane %v3363_v32, 3  ;;  %v9372_v20 = vld [vmem:[%s7645_s24 + $0xac] ss:$0 sps:$4 sm:$0x11]  }
 0x150   : > { %v3633_v14 = vsel %vm510_vm4, %v3632_v9, %v3631_v4  ;;  %v3640_v50 = vrot.slane %v3364_v48, 2  ;;  %6940 = vmatprep.mubr.msk.bf16.mxu0 %vm641_vm9, %v3525_v57  ;;  %v3627_v27 = vsel %vm522_vm8, %v3626_v17, %v3625_v2  ;;  %v3366_v32 = vunpack.c.l.b16 %v9354_v21  ;;  %v7342_v12 = vld [vmem:[%s7645_s24 + $0xe4] ss:$0 sps:$4 sm:$0x11]  }
 0x151   : > { %v3635_v46 = vsel %vm513_vm5, %v3634_v36, %v3633_v14  ;;  %v3367_v48 = vunpack.c.l.b16 %v9360_v45  ;;  %v3365_v22 = vunpack.c.l.b16 %v9351_v1  ;;  %v3368_v10 = vunpack.c.l.b16 %v9365_v8  ;;  %v9405_v40 = vld [vmem:[%s7645_s24 + $0xec] ss:$0 sps:$4 sm:$0x11]   ;;  %v9408_v23 = vld [vmem:[%s7645_s24 + $0xf4] ss:$0 sps:$4 sm:$0x11]  }
 0x152   : > { %v3637_v29 = vsel %vm516_vm6, %v3636_v61, %v3635_v46  ;;  %v3369_v5 = vunpack.c.l.b16 %v7334_v38  ;;  %v3370_v34 = vunpack.c.l.b16 %v9372_v20  ;;  %v3371_v25 = vunpack.c.l.b16 %v9375_v16  ;;  %v7345_v31 = vld [vmem:[%s7645_s24 + $0xfc] ss:$0 sps:$4 sm:$0x11]  }
 0x153   : > { %v3639_v7 = vsel %vm519_vm7, %v3638_v53, %v3637_v29  ;;  %v3372_v11 = vunpack.c.l.b16 %v9380_v54  ;;  %v3373_v33 = vunpack.c.l.b16 %v9383_v15  ;;  %v3374_v24 = vunpack.c.l.b16 %v9389_v55  ;;  %v9433_v54 = vld [vmem:[%s7645_s24 + $0x104] ss:$0 sps:$4 sm:$0x11]   ;;  %v9436_v15 = vld [vmem:[%s7645_s24 + $0x10c] ss:$0 sps:$4 sm:$0x11]  }
 0x154   : > { %v3641_v18 = vsel %vm522_vm8, %v3640_v50, %v3639_v7  ;;  %v3375_v35 = vunpack.c.l.b16 %v9392_v13  ;;  %v3376_v39 = vunpack.c.l.b16 %v9398_v0  ;;  %v3377_v49 = vunpack.c.l.b16 %v7342_v12  ;;  %v9446_v0 = vld [vmem:[%s7645_s24 + $0x11c] ss:$0 sps:$4 sm:$0x11]  }
 0x155   : > { %v3726_v56 = vpack.c.b16 %v3641_v18, %v3627_v27  ;;  %v3441_v30 = vrot.slane %v3366_v32, 7  ;;  %v3443_v41 = vrot.slane %v3367_v48, 6  ;;  %v3378_v62 = vunpack.c.l.b16 %v9405_v40 }
 0x156   : > { %v3379_v19 = vunpack.c.l.b16 %v9408_v23  ;;  %v3445_v3 = vrot.slane %v3368_v10, 5  ;;  %v3447_v51 = vrot.slane %v3369_v5, 4  ;;  %v3380_v44 = vunpack.c.l.b16 %v7345_v31  ;;  %v9456_v31 = vld [vmem:[%s7645_s24 + $0x12c] ss:$0 sps:$4 sm:$0x11]  }
 0x157   : > { %6954 = vmatprep.mubr.msk.bf16.mxu1 %vm641_vm9, %v3726_v56  ;;  %v3442_v42 = vsel %vm504_vm2, %v3441_v30, %v3365_v22  ;;  %v3449_v26 = vrot.slane %v3370_v34, 3  ;;  %v3451_v43 = vrot.slane %v3371_v25, 2  ;;  %v3453_v17 = vrot.slane %v3372_v11, 1  ;;  %v9451_v56 = vld [vmem:[%s7645_s24 + $0x124] ss:$0 sps:$4 sm:$0x11]  }
 0x158   : > { %v3444_v52 = vsel %vm507_vm3, %v3443_v41, %v3442_v42  ;;  %v3455_v59 = vrot.slane %v3374_v24, 7  ;;  %v3457_v37 = vrot.slane %v3375_v35, 6  ;;  %v3459_v58 = vrot.slane %v3376_v39, 5  ;;  %v9465_v30 = vld [vmem:[%s7645_s24 + $0x13c] ss:$0 sps:$4 sm:$0x11]  }
 0x159   : > { %v3446_v28 = vsel %vm510_vm4, %v3445_v3, %v3444_v52  ;;  %v3461_v9 = vrot.slane %v3377_v49, 4  ;;  %v3463_v1 = vrot.slane %v3378_v62, 3  ;;  %v3465_v63 = vrot.slane %v3379_v19, 2  ;;  %v9478_v3 = vld [vmem:[%s7645_s24 + $0x14c] ss:$0 sps:$4 sm:$0x11]  }
 0x15a   : > { %v3448_v21 = vsel %vm513_vm5, %v3447_v51, %v3446_v28  ;;  %v3456_v60 = vsel %vm504_vm2, %v3455_v59, %v3373_v33  ;;  %v3467_v47 = vrot.slane %v3380_v44, 1  ;;  %v3642_v57 = vrot.slane %v3365_v22, 1  ;;  %v9491_v52 = vld [vmem:[%s7645_s24 + $0x154] ss:$0 sps:$4 sm:$0x11]  }
 0x15b   : > { %v3450_v36 = vsel %vm516_vm6, %v3449_v26, %v3448_v21  ;;  %v3458_v45 = vsel %vm507_vm3, %v3457_v37, %v3456_v60  ;;  %v3644_v2 = vrot.slane %v3367_v48, 7  ;;  %v3646_v8 = vrot.slane %v3368_v10, 6 }
 0x15c   : > { %v3452_v4 = vsel %vm519_vm7, %v3451_v43, %v3450_v36  ;;  %v3460_v61 = vsel %vm510_vm4, %v3459_v58, %v3458_v45  ;;  %v3648_v14 = vrot.slane %v3369_v5, 5  ;;  %v3643_v38 = vsel %vm504_vm2, %v3366_v32, %v3642_v57  ;;  %v9441_v32 = vld [vmem:[%s7645_s24 + $0x114] ss:$0 sps:$4 sm:$0x11]   ;;  %v9487_v43 = vld [vmem:[%s11277_s1 + $0x8] sm:$0xff]  }
 0x15d   : > { %v3454_v53 = vsel %vm522_vm8, %v3453_v17, %v3452_v4  ;;  %v3462_v50 = vsel %vm513_vm5, %v3461_v9, %v3460_v61  ;;  %v3650_v46 = vrot.slane %v3370_v34, 4  ;;  %v3645_v16 = vsel %vm507_vm3, %v3644_v2, %v3643_v38  ;;  %v9494_v17 = vld [vmem:[%s7645_s24 + $0x15c] ss:$0 sps:$4 sm:$0x11]  }
 0x15e   : > { %v3464_v20 = vsel %vm516_vm6, %v3463_v1, %v3462_v50  ;;  %v3652_v27 = vrot.slane %v3371_v25, 3  ;;  %v3654_v29 = vrot.slane %v3372_v11, 2  ;;  %v3647_v7 = vsel %vm510_vm4, %v3646_v8, %v3645_v16  ;;  %v9501_v9 = vld [vmem:[%s7645_s24 + $0x164] ss:$0 sps:$4 sm:$0x11]  }
 0x15f   : > { %v3466_v48 = vsel %vm519_vm7, %v3465_v63, %v3464_v20  ;;  %v3656_v55 = vrot.slane %v3373_v33, 1  ;;  %v3658_v13 = vrot.slane %v3375_v35, 7  ;;  %v3649_v10 = vsel %vm513_vm5, %v3648_v14, %v3647_v7  ;;  %v9504_v1 = vld [vmem:[%s7645_s24 + $0x16c] ss:$0 sps:$4 sm:$0x11]  }
 0x160   : > { %v3468_v22 = vsel %vm522_vm8, %v3467_v47, %v3466_v48  ;;  %v3660_v5 = vrot.slane %v3376_v39, 6  ;;  %v3662_v18 = vrot.slane %v3377_v49, 5  ;;  %v3651_v34 = vsel %vm516_vm6, %v3650_v46, %v3649_v10  ;;  %v9462_v49 = vld [vmem:[%s7645_s24 + $0x134] ss:$0 sps:$4 sm:$0x11]  }
 0x161   : > { %v3526_v12 = vpack.c.b16 %v3468_v22, %v3454_v53  ;;  %v3657_v25 = vsel %vm504_vm2, %v3374_v24, %v3656_v55  ;;  %v3664_v11 = vrot.slane %v3378_v62, 4  ;;  %v3653_v40 = vsel %vm519_vm7, %v3652_v27, %v3651_v34  ;;  %v9471_v62 = vld [vmem:[%s11277_s1] sm:$0xff]   ;;  %v9511_v36 = vld [vmem:[%s7645_s24 + $0x174] ss:$0 sps:$4 sm:$0x11]  }
 0x162   : > { %v3659_v23 = vsel %vm507_vm3, %v3658_v13, %v3657_v25  ;;  %v3666_v33 = vrot.slane %v3379_v19, 3  ;;  %v3668_v35 = vrot.slane %v3380_v44, 2  ;;  %v3655_v39 = vsel %vm522_vm8, %v3654_v29, %v3653_v40  ;;  %v9475_v19 = vld [vmem:[%s7645_s24 + $0x144] ss:$0 sps:$4 sm:$0x11]  }
 0x163   : > { %6941 = vmatmul.mubr.msk.bf16.vlgmr.msra.gmra.mrb[32].mxu0 %vm641_vm9, %v3526_v12  ;;  %v3661_v24 = vsel %vm510_vm4, %v3660_v5, %v3659_v23  ;;  %v3381_v51 = vunpack.c.l.b16 %v9433_v54  ;;  %v3382_v44 = vunpack.c.l.b16 %v9436_v15  ;;  %v3383_v42 = vunpack.c.l.b16 %v9441_v32  ;;  %v9514_v45 = vld [vmem:[%s7645_s24 + $0x17c] ss:$0 sps:$4 sm:$0x11]  }
 0x164   : > { %v3663_v41 = vsel %vm513_vm5, %v3662_v18, %v3661_v24  ;;  %6963 = vmatpush3.bf16.msra.mxu0 %v9471_v62  ;;  %v3384_v59 = vunpack.c.l.b16 %v9446_v0  ;;  %v3385_v37 = vunpack.c.l.b16 %v9451_v56  ;;  %v3386_v28 = vunpack.c.l.b16 %v9456_v31 }
 0x165   : > { %v3665_v26 = vsel %vm516_vm6, %v3664_v11, %v3663_v41  ;;  %6964 = vmatprep.subr.bf16.mxu0 %v9487_v43  ;;  %v3387_v21 = vunpack.c.l.b16 %v9462_v49  ;;  %v3388_v60 = vunpack.c.l.b16 %v9465_v30  ;;  %v3389_v63 = vunpack.c.l.b16 %v9475_v19 }
 0x166   : > { %v3667_v58 = vsel %vm519_vm7, %v3666_v33, %v3665_v26  ;;  %v3390_v57 = vunpack.c.l.b16 %v9478_v3  ;;  %v3391_v2 = vunpack.c.l.b16 %v9491_v52  ;;  %v3392_v4 = vunpack.c.l.b16 %v9494_v17  ;;  %v9557_v26 = vld [vmem:[%s7645_s24 + $0x184] ss:$0 sps:$4 sm:$0x11]  }
 0x167   : > { %v3669_v47 = vsel %vm522_vm8, %v3668_v35, %v3667_v58  ;;  %v3393_v8 = vunpack.c.l.b16 %v9501_v9  ;;  %v3394_v14 = vunpack.c.l.b16 %v9504_v1  ;;  %v3469_v53 = vrot.slane %v3382_v44, 7  ;;  %v9567_v1 = vld [vmem:[%s7645_s24 + $0x194] ss:$0 sps:$4 sm:$0x11]  }
 0x168   : > { %v3727_v61 = vpack.c.b16 %v3669_v47, %v3655_v39  ;;  %6965 = vmatpush3.bf16.msra.mxu0 %v9487_v43  ;;  %v3395_v50 = vunpack.c.l.b16 %v9511_v36  ;;  %v3396_v38 = vunpack.c.l.b16 %v9514_v45  ;;  %v3471_v46 = vrot.slane %v3383_v42, 6  ;;  %v9601_v45 = vld [vmem:[%s7645_s24 + $0x1c4] ss:$0 sps:$4 sm:$0x11]  }
 0x169   : > { %v3473_v20 = vrot.slane %v3384_v59, 5  ;;  %6966 = vmatprep.subr.bf16.mxu0 %v7636_v6  ;;  %v3470_v16 = vsel %vm504_vm2, %v3469_v53, %v3381_v51  ;;  %v3475_v27 = vrot.slane %v3385_v37, 4  ;;  %v3477_v29 = vrot.slane %v3386_v28, 3  ;;  %v9585_v53 = vld [vmem:[%s7645_s24 + $0x1a4] ss:$0 sps:$4 sm:$0x11]  }
 0x16a   : > { %6955 = vmatmul.mubr.msk.bf16.vlgmr.msra.gmra.mrb[32].mxu1 %vm641_vm9, %v3727_v61  ;;  %v3479_v54 = vrot.slane %v3387_v21, 2  ;;  %v3472_v48 = vsel %vm507_vm3, %v3471_v46, %v3470_v16  ;;  %v3481_v7 = vrot.slane %v3388_v60, 1  ;;  %v3483_v55 = vrot.slane %v3390_v57, 7  ;;  %v9593_v46 = vld [vmem:[%s7645_s24 + $0x1b4] ss:$0 sps:$4 sm:$0x11]  }
 0x16b   : > { %6977 = vmatpush3.bf16.msra.mxu1 %v9471_v62  ;;  %v3485_v13 = vrot.slane %v3391_v2, 6  ;;  %v3474_v32 = vsel %vm510_vm4, %v3473_v20, %v3472_v48  ;;  %v3487_v22 = vrot.slane %v3392_v4, 5  ;;  %v3489_v10 = vrot.slane %v3393_v8, 4 }
 0x16c   : > { %v3491_v5 = vrot.slane %v3394_v14, 3  ;;  %6978 = vmatprep.subr.bf16.mxu1 %v9487_v43  ;;  %6967 = vmatpush3.bf16.msra.mxu0 %v7636_v6  ;;  %v3476_v18 = vsel %vm513_vm5, %v3475_v27, %v3474_v32  ;;  %v3484_v0 = vsel %vm504_vm2, %v3483_v55, %v3389_v63  ;;  %v3493_v12 = vrot.slane %v3395_v50, 2  ;;  %v7373_v32 = vld [vmem:[%s7645_s24 + $0x1dc] ss:$0 sps:$4 sm:$0x11]  }
 0x16d   : > { %v3495_v34 = vrot.slane %v3396_v38, 1  ;;  %6990 = vmatprep.subr.bf16.mxu0 %v9471_v62  ;;  %v3478_v25 = vsel %vm516_vm6, %v3477_v29, %v3476_v18  ;;  %v3486_v11 = vsel %vm507_vm3, %v3485_v13, %v3484_v0  ;;  %v3670_v56 = vrot.slane %v3381_v51, 1  ;;  %v9607_v29 = vld [vmem:[%s7645_s24 + $0x1cc] ss:$0 sps:$4 sm:$0x11]  }
 0x16e   : > { %v3672_v40 = vrot.slane %v3383_v42, 7  ;;  %v3480_v23 = vsel %vm519_vm7, %v3479_v54, %v3478_v25  ;;  %v3488_v33 = vsel %vm510_vm4, %v3487_v22, %v3486_v11  ;;  %v3674_v35 = vrot.slane %v3384_v59, 6  ;;  %v9610_v54 = vld [vmem:[%s7645_s24 + $0x1d4] ss:$0 sps:$4 sm:$0x11]  }
 0x16f   : > { %v3676_v31 = vrot.slane %v3385_v37, 5  ;;  %6979 = vmatpush3.bf16.msra.mxu1 %v9487_v43  ;;  %v3482_v39 = vsel %vm522_vm8, %v3481_v7, %v3480_v23  ;;  %v3490_v24 = vsel %vm513_vm5, %v3489_v10, %v3488_v33  ;;  %v3671_v49 = vsel %vm504_vm2, %v3382_v44, %v3670_v56  ;;  %v9562_v44 = vld [vmem:[%s7645_s24 + $0x18c] ss:$0 sps:$4 sm:$0x11]  }
 0x170   : > { %v3678_v30 = vrot.slane %v3386_v28, 4  ;;  %6980 = vmatprep.subr.bf16.mxu1 %v7636_v6  ;;  %v3492_v41 = vsel %vm516_vm6, %v3491_v5, %v3490_v24  ;;  %v3673_v19 = vsel %vm507_vm3, %v3672_v40, %v3671_v49  ;;  %v3680_v51 = vrot.slane %v3387_v21, 3  ;;  %v9618_v22 = vld [vmem:[%s7645_s24 + $0x1e4] ss:$0 sps:$4 sm:$0x11]  }
 0x171   : > { %v3682_v42 = vrot.slane %v3388_v60, 2  ;;  %v3494_v52 = vsel %vm519_vm7, %v3493_v12, %v3492_v41  ;;  %v3675_v17 = vsel %vm510_vm4, %v3674_v35, %v3673_v19  ;;  %v3684_v15 = vrot.slane %v3389_v63, 1  ;;  %v9625_v12 = vld [vmem:[%s7645_s24 + $0x1ec] ss:$0 sps:$4 sm:$0x11]  }
 0x172   : > { %v3686_v59 = vrot.slane %v3391_v2, 7  ;;  %v3496_v37 = vsel %vm522_vm8, %v3495_v34, %v3494_v52  ;;  %v3677_v28 = vsel %vm513_vm5, %v3676_v31, %v3675_v17  ;;  %v3688_v58 = vrot.slane %v3392_v4, 6  ;;  %v9575_v2 = vld [vmem:[%s7645_s24 + $0x19c] ss:$0 sps:$4 sm:$0x11]  }
 0x173   : > { %v3690_v9 = vrot.slane %v3393_v8, 5  ;;  %6981 = vmatpush3.bf16.msra.mxu1 %v7636_v6  ;;  %v3527_v21 = vpack.c.b16 %v3496_v37, %v3482_v39  ;;  %v3679_v60 = vsel %vm516_vm6, %v3678_v30, %v3677_v28  ;;  %v3685_v63 = vsel %vm504_vm2, %v3390_v57, %v3684_v15  ;;  %v9628_v34 = vld [vmem:[%s7645_s24 + $0x1f4] ss:$0 sps:$4 sm:$0x11]  }
 0x174   : > { %v3692_v47 = vrot.slane %v3394_v14, 4  ;;  %7004 = vmatprep.subr.bf16.mxu1 %v9471_v62  ;;  %v3681_v4 = vsel %vm519_vm7, %v3680_v51, %v3679_v60  ;;  %v3687_v61 = vsel %vm507_vm3, %v3686_v59, %v3685_v63  ;;  %v3694_v8 = vrot.slane %v3395_v50, 3  ;;  %v9590_v14 = vld [vmem:[%s7645_s24 + $0x1ac] ss:$0 sps:$4 sm:$0x11]  }
 0x175   : > { %v3696_v3 = vrot.slane %v3396_v38, 2  ;;  %6944 = vmatprep.mubr.msk.bf16.mxu0 %vm641_vm9, %v3527_v21  ;;  %v3689_v57 = vsel %vm510_vm4, %v3688_v58, %v3687_v61  ;;  %v3683_v20 = vsel %vm522_vm8, %v3682_v42, %v3681_v4  ;;  %v9598_v50 = vld [vmem:[%s7645_s24 + $0x1bc] ss:$0 sps:$4 sm:$0x11]   ;;  %v3397_v38 = vunpack.c.l.b16 %v9557_v26 }
 0x176   : > { %v3691_v36 = vsel %vm513_vm5, %v3690_v9, %v3689_v57  ;;  %v3398_v16 = vunpack.c.l.b16 %v9562_v44  ;;  %v3399_v48 = vunpack.c.l.b16 %v9567_v1  ;;  %v3400_v7 = vunpack.c.l.b16 %v9575_v2  ;;  %v9634_v23 = vld [vmem:[%s7645_s24 + $0x1fc] ss:$0 sps:$4 sm:$0x11]  }
 0x177   : > { %v3693_v27 = vsel %vm516_vm6, %v3692_v47, %v3691_v36  ;;  %v3401_v55 = vunpack.c.l.b16 %v9585_v53  ;;  %v3402_v10 = vunpack.c.l.b16 %v9590_v14  ;;  %v3403_v5 = vunpack.c.l.b16 %v9593_v46 }
 0x178   : > { %v3695_v13 = vsel %vm519_vm7, %v3694_v8, %v3693_v27  ;;  %v3404_v18 = vunpack.c.l.b16 %v9598_v50  ;;  %v3405_v25 = vunpack.c.l.b16 %v9601_v45  ;;  %v3406_v11 = vunpack.c.l.b16 %v9607_v29 }
 0x179   : > { %v3697_v0 = vsel %vm522_vm8, %v3696_v3, %v3695_v13  ;;  %v3407_v56 = vunpack.c.l.b16 %v9610_v54  ;;  %v3408_v33 = vunpack.c.l.b16 %v7373_v32  ;;  %v3409_v35 = vunpack.c.l.b16 %v9618_v22  ;;  %v9666_v22 = vld [vmem:[%s7645_s24 + $0x14] ss:$0 sps:$4 sm:$0x22]  }
 0x17a   : > { %v3728_v40 = vpack.c.b16 %v3697_v0, %v3683_v20  ;;  %v3497_v31 = vrot.slane %v3398_v16, 7  ;;  %v3410_v39 = vunpack.c.l.b16 %v9625_v12  ;;  %v3411_v24 = vunpack.c.l.b16 %v9628_v34  ;;  %v9671_v12 = vld [vmem:[%s7645_s24 + $0x1c] ss:$0 sps:$4 sm:$0x22]  }
 0x17b   : > { %v3499_v49 = vrot.slane %v3399_v48, 6  ;;  %v3501_v30 = vrot.slane %v3400_v7, 5  ;;  %v3412_v41 = vunpack.c.l.b16 %v9634_v23  ;;  %v3503_v51 = vrot.slane %v3401_v55, 4  ;;  %v9676_v23 = vld [vmem:[%s7645_s24 + $0x24] ss:$0 sps:$4 sm:$0x22]  }
 0x17c   : > { %6958 = vmatprep.mubr.msk.bf16.mxu1 %vm641_vm9, %v3728_v40  ;;  %v3498_v19 = vsel %vm504_vm2, %v3497_v31, %v3397_v38  ;;  %v3505_v42 = vrot.slane %v3402_v10, 3  ;;  %v3507_v52 = vrot.slane %v3403_v5, 2  ;;  %v3509_v17 = vrot.slane %v3404_v18, 1 }
 0x17d   : > { %v3500_v26 = vsel %vm507_vm3, %v3499_v49, %v3498_v19  ;;  %v3511_v15 = vrot.slane %v3406_v11, 7  ;;  %v3513_v44 = vrot.slane %v3407_v56, 6  ;;  %v3515_v37 = vrot.slane %v3408_v33, 5  ;;  %v9691_v19 = vld [vmem:[%s7645_s24 + $0x44] ss:$0 sps:$4 sm:$0x22]  }
 0x17e   : > { %v3502_v59 = vsel %vm510_vm4, %v3501_v30, %v3500_v26  ;;  %v3517_v28 = vrot.slane %v3409_v35, 4  ;;  %v3519_v1 = vrot.slane %v3410_v39, 3  ;;  %v3521_v21 = vrot.slane %v3411_v24, 2  ;;  %v9684_v30 = vld [vmem:[%s7645_s24 + $0x34] ss:$0 sps:$4 sm:$0x22]  }
 0x17f   : > { %v3504_v58 = vsel %vm513_vm5, %v3503_v51, %v3502_v59  ;;  %v3512_v9 = vsel %vm504_vm2, %v3511_v15, %v3405_v25  ;;  %v3523_v47 = vrot.slane %v3412_v41, 1  ;;  %v3698_v2 = vrot.slane %v3397_v38, 1  ;;  %v9694_v51 = vld [vmem:[%s7645_s24 + $0x4c] ss:$0 sps:$4 sm:$0x22]  }
 0x180   : > { %v3506_v60 = vsel %vm516_vm6, %v3505_v42, %v3504_v58  ;;  %v3514_v63 = vsel %vm507_vm3, %v3513_v44, %v3512_v9  ;;  %v3700_v8 = vrot.slane %v3399_v48, 7  ;;  %v3702_v3 = vrot.slane %v3400_v7, 6  ;;  %v9658_v48 = vld [vmem:[%s7645_s24 + $0x4] ss:$0 sps:$4 sm:$0x22]  }
 0x181   : > { %v3508_v4 = vsel %vm519_vm7, %v3507_v52, %v3506_v60  ;;  %v3516_v61 = vsel %vm510_vm4, %v3515_v37, %v3514_v63  ;;  %v3699_v14 = vsel %vm504_vm2, %v3398_v16, %v3698_v2  ;;  %v3704_v46 = vrot.slane %v3401_v55, 5  ;;  %v9661_v7 = vld [vmem:[%s7645_s24 + $0xc] ss:$0 sps:$4 sm:$0x22]  }
 0x182   : > { %v3510_v53 = vsel %vm522_vm8, %v3509_v17, %v3508_v4  ;;  %v3518_v57 = vsel %vm513_vm5, %v3517_v28, %v3516_v61  ;;  %v3701_v36 = vsel %vm507_vm3, %v3700_v8, %v3699_v14  ;;  %v3706_v50 = vrot.slane %v3402_v10, 4  ;;  %v9701_v17 = vld [vmem:[%s7645_s24 + $0x54] ss:$0 sps:$4 sm:$0x22]  }
 0x183   : > { %v3520_v20 = vsel %vm516_vm6, %v3519_v1, %v3518_v57  ;;  %v3708_v45 = vrot.slane %v3403_v5, 3  ;;  %v3703_v27 = vsel %vm510_vm4, %v3702_v3, %v3701_v36  ;;  %v3710_v29 = vrot.slane %v3404_v18, 2  ;;  %v9704_v15 = vld [vmem:[%s7645_s24 + $0x5c] ss:$0 sps:$4 sm:$0x22]  }
 0x184   : > { %v3522_v38 = vsel %vm519_vm7, %v3521_v21, %v3520_v20  ;;  %v3712_v54 = vrot.slane %v3405_v25, 1  ;;  %v3705_v55 = vsel %vm513_vm5, %v3704_v46, %v3703_v27  ;;  %v3714_v13 = vrot.slane %v3407_v56, 7  ;;  %v7390_v58 = vld [vmem:[%s7645_s24 + $0x64] ss:$0 sps:$4 sm:$0x22]  }
 0x185   : > { %v3524_v16 = vsel %vm522_vm8, %v3523_v47, %v3522_v38  ;;  %v3716_v32 = vrot.slane %v3408_v33, 6  ;;  %v3707_v5 = vsel %vm516_vm6, %v3706_v50, %v3705_v55  ;;  %v3718_v0 = vrot.slane %v3409_v35, 5  ;;  %v7383_v35 = vld [vmem:[%s7645_s24 + $0x2c] ss:$0 sps:$4 sm:$0x22]  }
 0x186   : > { %v3528_v10 = vpack.c.b16 %v3524_v16, %v3510_v53  ;;  %v3713_v18 = vsel %vm504_vm2, %v3406_v11, %v3712_v54  ;;  %v3709_v34 = vsel %vm519_vm7, %v3708_v45, %v3707_v5  ;;  %v3720_v56 = vrot.slane %v3410_v39, 4  ;;  %v9687_v39 = vld [vmem:[%s7645_s24 + $0x3c] ss:$0 sps:$4 sm:$0x22]  }
 0x187   : > { %v3715_v25 = vsel %vm507_vm3, %v3714_v13, %v3713_v18  ;;  %v3722_v40 = vrot.slane %v3411_v24, 3  ;;  %v3724_v11 = vrot.slane %v3412_v41, 2  ;;  %v3711_v31 = vsel %vm522_vm8, %v3710_v29, %v3709_v34  ;;  %v7391_v9 = vld [vmem:[%s7645_s24 + $0x6c] ss:$0 sps:$4 sm:$0x22]  }
 0x188   : > { %6945 = vmatmul.mubr.msk.bf16.gmra.mrb[36].mxu0 %vm641_vm9, %v3528_v10  ;;  %v3717_v33 = vsel %vm510_vm4, %v3716_v32, %v3715_v25  ;;  %v4071_v42 = vunpack.c.l.b16 %v9658_v48  ;;  %v4072_v41 = vunpack.c.l.b16 %v9661_v7  ;;  %v4073_v26 = vunpack.c.l.b16 %v9666_v22  ;;  %v7392_v47 = vld [vmem:[%s7645_s24 + $0x74] ss:$0 sps:$4 sm:$0x22]   ;;  %v9716_v2 = vld [vmem:[%s7645_s24 + $0x7c] ss:$0 sps:$4 sm:$0x22]  }
 0x189   : > { %v3719_v49 = vsel %vm513_vm5, %v3718_v0, %v3717_v33  ;;  %v4074_v59 = vunpack.c.l.b16 %v9671_v12  ;;  %v4075_v44 = vunpack.c.l.b16 %v9676_v23  ;;  %v4076_v37 = vunpack.c.l.b16 %v7383_v35 }
 0x18a   : > { %v3721_v24 = vsel %vm516_vm6, %v3720_v56, %v3719_v49  ;;  %v4077_v1 = vunpack.c.l.b16 %v9684_v30  ;;  %v4078_v21 = vunpack.c.l.b16 %v9687_v39  ;;  %v4079_v60 = vunpack.c.l.b16 %v9691_v19  ;;  %v9738_v39 = vld [vmem:[%s7645_s24 + $0x84] ss:$0 sps:$4 sm:$0x22]  }
 0x18b   : > { %v3723_v52 = vsel %vm519_vm7, %v3722_v40, %v3721_v24  ;;  %v4080_v4 = vunpack.c.l.b16 %v9694_v51  ;;  %v4081_v61 = vunpack.c.l.b16 %v9701_v17  ;;  %v4082_v8 = vunpack.c.l.b16 %v9704_v15 }
 0x18c   : > { %v3725_v28 = vsel %vm522_vm8, %v3724_v11, %v3723_v52  ;;  %v4083_v3 = vunpack.c.l.b16 %v7390_v58  ;;  %v4084_v53 = vunpack.c.l.b16 %v7391_v9  ;;  %v4135_v57 = vrot.slane %v4071_v42, 2 }
 0x18d   : > { %v3729_v63 = vpack.c.b16 %v3725_v28, %v3711_v31  ;;  %v4136_v14 = vrot.slane %v4072_v41, 1  ;;  %v4085_v46 = vunpack.c.l.b16 %v7392_v47  ;;  %v4086_v20 = vunpack.c.l.b16 %v9716_v2  ;;  %v9758_v2 = vld [vmem:[%s7645_s24 + $0xa4] ss:$0 sps:$4 sm:$0x22]  }
 0x18e   : > { %v4139_v36 = vrot.slane %v4074_v59, 7  ;;  %v4141_v50 = vrot.slane %v4075_v44, 6  ;;  %v4143_v38 = vrot.slane %v4076_v37, 5  ;;  %v4145_v27 = vrot.slane %v4077_v1, 4 }
 0x18f   : > { %6959 = vmatmul.mubr.msk.bf16.gmra.mrb[36].mxu1 %vm641_vm9, %v3729_v63  ;;  %v4137_v45 = vsel %vm504_vm2, %v4136_v14, %v4135_v57  ;;  %v4147_v29 = vrot.slane %v4078_v21, 3  ;;  %v4149_v48 = vrot.slane %v4079_v60, 2  ;;  %v4150_v7 = vrot.slane %v4080_v4, 1  ;;  %v9768_v14 = vld [vmem:[%s7645_s24 + $0xb4] ss:$0 sps:$4 sm:$0x22]  }
 0x190   : > { %v4138_v54 = vsel %vm507_vm3, %v4073_v26, %v4137_v45  ;;  %v4153_v16 = vrot.slane %v4082_v8, 7  ;;  %v4155_v13 = vrot.slane %v4083_v3, 6  ;;  %v4157_v32 = vrot.slane %v4084_v53, 5 }
 0x191   : > { %v4140_v55 = vsel %vm510_vm4, %v4139_v36, %v4138_v54  ;;  %v4159_v22 = vrot.slane %v4085_v46, 4  ;;  %v4151_v5 = vsel %vm504_vm2, %v4150_v7, %v4149_v48  ;;  %v4161_v18 = vrot.slane %v4086_v20, 3  ;;  %v9789_v54 = vld [vmem:[%s7645_s24 + $0xdc] ss:$0 sps:$4 sm:$0x22]  }
 0x192   : > { %v4142_v10 = vsel %vm513_vm5, %v4141_v50, %v4140_v55  ;;  %v4336_v0 = vrot.slane %v4071_v42, 3  ;;  %v4152_v34 = vsel %vm507_vm3, %v4081_v61, %v4151_v5  ;;  %v4337_v25 = vrot.slane %v4072_v41, 2  ;;  %v9743_v41 = vld [vmem:[%s7645_s24 + $0x8c] ss:$0 sps:$4 sm:$0x22]  }
 0x193   : > { %v4144_v12 = vsel %vm516_vm6, %v4143_v38, %v4142_v10  ;;  %v4339_v56 = vrot.slane %v4073_v26, 1  ;;  %v4154_v23 = vsel %vm510_vm4, %v4153_v16, %v4152_v34  ;;  %v4342_v33 = vrot.slane %v4075_v44, 7  ;;  %v9780_v38 = vld [vmem:[%s7645_s24 + $0xcc] ss:$0 sps:$4 sm:$0x22]  }
 0x194   : > { %v4146_v40 = vsel %vm519_vm7, %v4145_v27, %v4144_v12  ;;  %v4344_v11 = vrot.slane %v4076_v37, 6  ;;  %v4156_v31 = vsel %vm513_vm5, %v4155_v13, %v4154_v23  ;;  %v4338_v49 = vsel %vm504_vm2, %v4337_v25, %v4336_v0  ;;  %v9748_v37 = vld [vmem:[%s7645_s24 + $0x94] ss:$0 sps:$4 sm:$0x22]  }
 0x195   : > { %v4148_v35 = vsel %vm522_vm8, %v4147_v29, %v4146_v40  ;;  %v4346_v30 = vrot.slane %v4077_v1, 5  ;;  %v4158_v24 = vsel %vm516_vm6, %v4157_v32, %v4156_v31  ;;  %v4340_v19 = vsel %vm507_vm3, %v4339_v56, %v4338_v49  ;;  %v9786_v29 = vld [vmem:[%s7645_s24 + $0xd4] ss:$0 sps:$4 sm:$0x22]  }
 0x196   : > { %v4348_v51 = vrot.slane %v4078_v21, 4  ;;  %v4350_v42 = vrot.slane %v4079_v60, 3  ;;  %v4160_v26 = vsel %vm519_vm7, %v4159_v22, %v4158_v24  ;;  %v4341_v52 = vsel %vm510_vm4, %v4074_v59, %v4340_v19  ;;  %v9753_v21 = vld [vmem:[%s7645_s24 + $0x9c] ss:$0 sps:$4 sm:$0x22]  }
 0x197   : > { %v4351_v17 = vrot.slane %v4080_v4, 2  ;;  %v4353_v44 = vrot.slane %v4081_v61, 1  ;;  %v4162_v28 = vsel %vm522_vm8, %v4161_v18, %v4160_v26  ;;  %v4343_v58 = vsel %vm513_vm5, %v4342_v33, %v4341_v52  ;;  %v7406_v13 = vld [vmem:[%s7645_s24 + $0xe4] ss:$0 sps:$4 sm:$0x22]  }
 0x198   : > { %v4356_v9 = vrot.slane %v4083_v3, 7  ;;  %v4358_v1 = vrot.slane %v4084_v53, 6  ;;  %v4247_v60 = vpack.c.b16 %v4162_v28, %v4148_v35  ;;  %v4345_v63 = vsel %vm516_vm6, %v4344_v11, %v4343_v58  ;;  %v7399_v53 = vld [vmem:[%s7645_s24 + $0xac] ss:$0 sps:$4 sm:$0x22]  }
 0x199   : > { %v4352_v59 = vsel %vm504_vm2, %v4351_v17, %v4350_v42  ;;  %v4360_v47 = vrot.slane %v4085_v46, 5  ;;  %v4347_v4 = vsel %vm519_vm7, %v4346_v30, %v4345_v63  ;;  %v4362_v3 = vrot.slane %v4086_v20, 4  ;;  %v9771_v46 = vld [vmem:[%s7645_s24 + $0xbc] ss:$0 sps:$4 sm:$0x22]  }
 0x19a   : > { %v4354_v61 = vsel %vm507_vm3, %v4353_v44, %v4352_v59  ;;  %6968 = vmatprep.mubr.msk.bf16.mxu0 %vm641_vm9, %v4247_v60  ;;  %v4087_v36 = vunpack.c.l.b16 %v9738_v39  ;;  %v4349_v50 = vsel %vm522_vm8, %v4348_v51, %v4347_v4  ;;  %v9777_v20 = vld [vmem:[%s7645_s24 + $0xc4] ss:$0 sps:$4 sm:$0x22]   ;;  %v4088_v15 = vunpack.c.l.b16 %v9743_v41  ;;  %v9796_v32 = vld [vmem:[%s7645_s24 + $0xec] ss:$0 sps:$4 sm:$0x22]  }
 0x19b   : > { %v4355_v57 = vsel %vm510_vm4, %v4082_v8, %v4354_v61  ;;  %v4089_v8 = vunpack.c.l.b16 %v9748_v37  ;;  %v4090_v48 = vunpack.c.l.b16 %v9753_v21  ;;  %v4091_v7 = vunpack.c.l.b16 %v9758_v2  ;;  %v9803_v0 = vld [vmem:[%s7645_s24 + $0xf4] ss:$0 sps:$4 sm:$0x22]   ;;  %v9806_v12 = vld [vmem:[%s7645_s24 + $0xfc] ss:$0 sps:$4 sm:$0x22]  }
 0x19c   : > { %v4357_v45 = vsel %vm513_vm5, %v4356_v9, %v4355_v57  ;;  %v4092_v16 = vunpack.c.l.b16 %v7399_v53  ;;  %v4093_v22 = vunpack.c.l.b16 %v9768_v14  ;;  %v4094_v10 = vunpack.c.l.b16 %v9771_v46 }
 0x19d   : > { %v4359_v27 = vsel %vm516_vm6, %v4358_v1, %v4357_v45  ;;  %v4095_v5 = vunpack.c.l.b16 %v9777_v20  ;;  %v4096_v34 = vunpack.c.l.b16 %v9780_v38  ;;  %v4097_v25 = vunpack.c.l.b16 %v9786_v29  ;;  %v9832_v38 = vld [vmem:[%s7645_s24 + $0x104] ss:$0 sps:$4 sm:$0x22]  }
 0x19e   : > { %v4361_v55 = vsel %vm519_vm7, %v4360_v47, %v4359_v27  ;;  %v4098_v56 = vunpack.c.l.b16 %v9789_v54  ;;  %v4099_v23 = vunpack.c.l.b16 %v7406_v13  ;;  %v4100_v33 = vunpack.c.l.b16 %v9796_v32 }
 0x19f   : > { %v4363_v18 = vsel %vm522_vm8, %v4362_v3, %v4361_v55  ;;  %v4163_v11 = vrot.slane %v4087_v36, 2  ;;  %v4101_v35 = vunpack.c.l.b16 %v9803_v0  ;;  %v4102_v31 = vunpack.c.l.b16 %v9806_v12  ;;  %v9850_v12 = vld [vmem:[%s7645_s24 + $0x124] ss:$0 sps:$4 sm:$0x22]  }
 0x1a0   : > { %v4448_v40 = vpack.c.b16 %v4363_v18, %v4349_v50  ;;  %v4164_v49 = vrot.slane %v4088_v15, 1  ;;  %v4167_v30 = vrot.slane %v4090_v48, 7  ;;  %v4169_v39 = vrot.slane %v4091_v7, 6 }
 0x1a1   : > { %v4171_v24 = vrot.slane %v4092_v16, 5  ;;  %v4173_v19 = vrot.slane %v4093_v22, 4  ;;  %v4175_v51 = vrot.slane %v4094_v10, 3  ;;  %v4177_v41 = vrot.slane %v4095_v5, 2 }
 0x1a2   : > { %6982 = vmatprep.mubr.msk.bf16.mxu1 %vm641_vm9, %v4448_v40  ;;  %v4165_v42 = vsel %vm504_vm2, %v4164_v49, %v4163_v11  ;;  %v4178_v26 = vrot.slane %v4096_v34, 1  ;;  %v4181_v52 = vrot.slane %v4098_v56, 7  ;;  %v4183_v44 = vrot.slane %v4099_v23, 6 }
 0x1a3   : > { %v4166_v17 = vsel %vm507_vm3, %v4089_v8, %v4165_v42  ;;  %v4185_v37 = vrot.slane %v4100_v33, 5  ;;  %v4187_v28 = vrot.slane %v4101_v35, 4  ;;  %v4189_v1 = vrot.slane %v4102_v31, 3  ;;  %v9882_v42 = vld [vmem:[%s7645_s24 + $0x154] ss:$0 sps:$4 sm:$0x22]  }
 0x1a4   : > { %v4168_v58 = vsel %vm510_vm4, %v4167_v30, %v4166_v17  ;;  %v4179_v9 = vsel %vm504_vm2, %v4178_v26, %v4177_v41  ;;  %v4364_v21 = vrot.slane %v4087_v36, 3  ;;  %v4365_v59 = vrot.slane %v4088_v15, 2  ;;  %v9835_v15 = vld [vmem:[%s7645_s24 + $0x10c] ss:$0 sps:$4 sm:$0x22]  }
 0x1a5   : > { %v4170_v60 = vsel %vm513_vm5, %v4169_v39, %v4168_v58  ;;  %v4180_v63 = vsel %vm507_vm3, %v4097_v25, %v4179_v9  ;;  %v4367_v47 = vrot.slane %v4089_v8, 1  ;;  %v4370_v61 = vrot.slane %v4091_v7, 7  ;;  %v9863_v30 = vld [vmem:[%s7645_s24 + $0x134] ss:$0 sps:$4 sm:$0x22]  }
 0x1a6   : > { %v4172_v2 = vsel %vm516_vm6, %v4171_v24, %v4170_v60  ;;  %v4182_v4 = vsel %vm510_vm4, %v4181_v52, %v4180_v63  ;;  %v4372_v3 = vrot.slane %v4092_v16, 6  ;;  %v4366_v14 = vsel %vm504_vm2, %v4365_v59, %v4364_v21  ;;  %v9840_v16 = vld [vmem:[%s7645_s24 + $0x114] ss:$0 sps:$4 sm:$0x22]  }
 0x1a7   : > { %v4174_v53 = vsel %vm519_vm7, %v4173_v19, %v4172_v2  ;;  %v4184_v57 = vsel %vm513_vm5, %v4183_v44, %v4182_v4  ;;  %v4374_v46 = vrot.slane %v4093_v22, 5  ;;  %v4368_v45 = vsel %vm507_vm3, %v4367_v47, %v4366_v14  ;;  %v9866_v39 = vld [vmem:[%s7645_s24 + $0x13c] ss:$0 sps:$4 sm:$0x22]  }
 0x1a8   : > { %v4176_v36 = vsel %vm522_vm8, %v4175_v51, %v4174_v53  ;;  %v4186_v50 = vsel %vm516_vm6, %v4185_v37, %v4184_v57  ;;  %v4376_v20 = vrot.slane %v4094_v10, 4  ;;  %v4369_v27 = vsel %vm510_vm4, %v4090_v48, %v4368_v45  ;;  %v9845_v10 = vld [vmem:[%s7645_s24 + $0x11c] ss:$0 sps:$4 sm:$0x22]  }
 0x1a9   : > { %v4188_v8 = vsel %vm519_vm7, %v4187_v28, %v4186_v50  ;;  %v4378_v29 = vrot.slane %v4095_v5, 3  ;;  %v4379_v7 = vrot.slane %v4096_v34, 2  ;;  %v4371_v13 = vsel %vm513_vm5, %v4370_v61, %v4369_v27  ;;  %v9874_v24 = vld [vmem:[%s7645_s24 + $0x14c] ss:$0 sps:$4 sm:$0x22]  }
 0x1aa   : > { %v4190_v55 = vsel %vm522_vm8, %v4189_v1, %v4188_v8  ;;  %v4381_v32 = vrot.slane %v4097_v25, 1  ;;  %v4384_v22 = vrot.slane %v4099_v23, 7  ;;  %v4373_v0 = vsel %vm516_vm6, %v4372_v3, %v4371_v13  ;;  %v9855_v23 = vld [vmem:[%s7645_s24 + $0x12c] ss:$0 sps:$4 sm:$0x22]  }
 0x1ab   : > { %v4248_v18 = vpack.c.b16 %v4190_v55, %v4176_v36  ;;  %v4380_v48 = vsel %vm504_vm2, %v4379_v7, %v4378_v29  ;;  %v4386_v5 = vrot.slane %v4100_v33, 6  ;;  %v4375_v34 = vsel %vm519_vm7, %v4374_v46, %v4373_v0  ;;  %v9885_v41 = vld [vmem:[%s7645_s24 + $0x15c] ss:$0 sps:$4 sm:$0x22]  }
 0x1ac   : > { %v4382_v40 = vsel %vm507_vm3, %v4381_v32, %v4380_v48  ;;  %v4388_v25 = vrot.slane %v4101_v35, 5  ;;  %v4390_v11 = vrot.slane %v4102_v31, 4  ;;  %v4377_v49 = vsel %vm522_vm8, %v4376_v20, %v4375_v34  ;;  %v9871_v31 = vld [vmem:[%s7645_s24 + $0x144] ss:$0 sps:$4 sm:$0x22]  }
 0x1ad   : > { %6969 = vmatmul.mubr.msk.bf16.vlgmr.msra.gmra.mrb[40].mxu0 %vm641_vm9, %v4248_v18  ;;  %v4383_v33 = vsel %vm510_vm4, %v4098_v56, %v4382_v40  ;;  %v4103_v19 = vunpack.c.l.b16 %v9832_v38  ;;  %v4104_v54 = vunpack.c.l.b16 %v9835_v15  ;;  %v4105_v56 = vunpack.c.l.b16 %v9840_v16  ;;  %v9892_v37 = vld [vmem:[%s7645_s24 + $0x164] ss:$0 sps:$4 sm:$0x22]   ;;  %v9895_v28 = vld [vmem:[%s7645_s24 + $0x16c] ss:$0 sps:$4 sm:$0x22]  }
 0x1ae   : > { %v4385_v35 = vsel %vm513_vm5, %v4384_v22, %v4383_v33  ;;  %6991 = vmatpush3.bf16.msra.mxu0 %v9471_v62  ;;  %v4106_v26 = vunpack.c.l.b16 %v9845_v10  ;;  %v4107_v52 = vunpack.c.l.b16 %v9850_v12  ;;  %v4108_v17 = vunpack.c.l.b16 %v9855_v23  ;;  %v9902_v60 = vld [vmem:[%s7645_s24 + $0x174] ss:$0 sps:$4 sm:$0x22]   ;;  %v9905_v63 = vld [vmem:[%s7645_s24 + $0x17c] ss:$0 sps:$4 sm:$0x22]  }
 0x1af   : > { %v4387_v51 = vsel %vm516_vm6, %v4386_v5, %v4385_v35  ;;  %6992 = vmatprep.subr.bf16.mxu0 %v9487_v43  ;;  %v4109_v58 = vunpack.c.l.b16 %v9863_v30  ;;  %v4110_v9 = vunpack.c.l.b16 %v9866_v39  ;;  %v4111_v1 = vunpack.c.l.b16 %v9871_v31  ;;  %v9942_v23 = vld [vmem:[%s11277_s1 + $0x8] sm:$0xff]  }
 0x1b0   : > { %v4389_v44 = vsel %vm519_vm7, %v4388_v25, %v4387_v51  ;;  %v4112_v59 = vunpack.c.l.b16 %v9874_v24  ;;  %v4113_v47 = vunpack.c.l.b16 %v9882_v42  ;;  %v4114_v2 = vunpack.c.l.b16 %v9885_v41 }
 0x1b1   : > { %v4391_v21 = vsel %vm522_vm8, %v4390_v11, %v4389_v44  ;;  %v4115_v61 = vunpack.c.l.b16 %v9892_v37  ;;  %v4116_v3 = vunpack.c.l.b16 %v9895_v28  ;;  %v4191_v53 = vrot.slane %v4103_v19, 2 }
 0x1b2   : > { %v4449_v4 = vpack.c.b16 %v4391_v21, %v4377_v49  ;;  %6993 = vmatpush3.bf16.msra.mxu0 %v9487_v43  ;;  %v4117_v57 = vunpack.c.l.b16 %v9902_v60  ;;  %v4118_v14 = vunpack.c.l.b16 %v9905_v63  ;;  %v4192_v46 = vrot.slane %v4104_v54, 1  ;;  %v9968_v21 = vld [vmem:[%s7645_s24 + $0x19c] ss:$0 sps:$4 sm:$0x22]  }
 0x1b3   : > { %v4195_v36 = vrot.slane %v4106_v26, 7  ;;  %6994 = vmatprep.subr.bf16.mxu0 %v7636_v6  ;;  %v4197_v50 = vrot.slane %v4107_v52, 6  ;;  %v4199_v45 = vrot.slane %v4108_v17, 5  ;;  %v4201_v20 = vrot.slane %v4109_v58, 4 }
 0x1b4   : > { %6983 = vmatmul.mubr.msk.bf16.vlgmr.msra.gmra.mrb[40].mxu1 %vm641_vm9, %v4449_v4  ;;  %v4203_v38 = vrot.slane %v4110_v9, 3  ;;  %v4193_v15 = vsel %vm504_vm2, %v4192_v46, %v4191_v53  ;;  %v4205_v8 = vrot.slane %v4111_v1, 2  ;;  %v4206_v27 = vrot.slane %v4112_v59, 1  ;;  %v7431_v46 = vld [vmem:[%s7645_s24 + $0x1ac] ss:$0 sps:$4 sm:$0x22]  }
 0x1b5   : > { %7005 = vmatpush3.bf16.msra.mxu1 %v9471_v62  ;;  %v4209_v29 = vrot.slane %v4114_v2, 7  ;;  %v4194_v7 = vsel %vm507_vm3, %v4105_v56, %v4193_v15  ;;  %v4211_v16 = vrot.slane %v4115_v61, 6  ;;  %v4213_v55 = vrot.slane %v4116_v3, 5  ;;  %v10000_v60 = vld [vmem:[%s7645_s24 + $0x1bc] ss:$0 sps:$4 sm:$0x22]  }
 0x1b6   : > { %v4215_v13 = vrot.slane %v4117_v57, 4  ;;  %7006 = vmatprep.subr.bf16.mxu1 %v9487_v43  ;;  %6995 = vmatpush3.bf16.msra.mxu0 %v7636_v6  ;;  %v4196_v32 = vsel %vm510_vm4, %v4195_v36, %v4194_v7  ;;  %v4207_v22 = vsel %vm504_vm2, %v4206_v27, %v4205_v8  ;;  %v4217_v18 = vrot.slane %v4118_v14, 3  ;;  %v10004_v63 = vld [vmem:[%s7645_s24 + $0x1c4] ss:$0 sps:$4 sm:$0x22]  }
 0x1b7   : > { %v4392_v0 = vrot.slane %v4103_v19, 3  ;;  %7018 = vmatprep.subr.bf16.mxu0 %v9471_v62  ;;  %v4198_v48 = vsel %vm513_vm5, %v4197_v50, %v4196_v32  ;;  %v4208_v5 = vsel %vm507_vm3, %v4113_v47, %v4207_v22  ;;  %v4393_v12 = vrot.slane %v4104_v54, 2  ;;  %v9953_v19 = vld [vmem:[%s7645_s24 + $0x184] ss:$0 sps:$4 sm:$0x22]  }
 0x1b8   : > { %v4395_v34 = vrot.slane %v4105_v56, 1  ;;  %v4200_v43 = vsel %vm516_vm6, %v4199_v45, %v4198_v48  ;;  %v4210_v40 = vsel %vm510_vm4, %v4209_v29, %v4208_v5  ;;  %v4398_v25 = vrot.slane %v4107_v52, 7  ;;  %v9956_v54 = vld [vmem:[%s7645_s24 + $0x18c] ss:$0 sps:$4 sm:$0x22]  }
 0x1b9   : > { %v4400_v11 = vrot.slane %v4108_v17, 6  ;;  %7007 = vmatpush3.bf16.msra.mxu1 %v9942_v23  ;;  %v4202_v62 = vsel %vm519_vm7, %v4201_v20, %v4200_v43  ;;  %v4212_v49 = vsel %vm513_vm5, %v4211_v16, %v4210_v40  ;;  %v4394_v33 = vsel %vm504_vm2, %v4393_v12, %v4392_v0  ;;  %v9963_v17 = vld [vmem:[%s7645_s24 + $0x194] ss:$0 sps:$4 sm:$0x22]  }
 0x1ba   : > { %v4402_v30 = vrot.slane %v4109_v58, 5  ;;  %7008 = vmatprep.subr.bf16.mxu1 %v7636_v6  ;;  %v4204_v39 = vsel %vm522_vm8, %v4203_v38, %v4202_v62  ;;  %v4214_v35 = vsel %vm516_vm6, %v4213_v55, %v4212_v49  ;;  %v4396_v31 = vsel %vm507_vm3, %v4395_v34, %v4394_v33  ;;  %v9997_v45 = vld [vmem:[%s7645_s24 + $0x1b4] ss:$0 sps:$4 sm:$0x22]  }
 0x1bb   : > { %v4404_v24 = vrot.slane %v4110_v9, 4  ;;  %v4216_v56 = vsel %vm519_vm7, %v4215_v13, %v4214_v35  ;;  %v4397_v51 = vsel %vm510_vm4, %v4106_v26, %v4396_v31  ;;  %v4406_v42 = vrot.slane %v4111_v1, 3  ;;  %v10014_v15 = vld [vmem:[%s7645_s24 + $0x1d4] ss:$0 sps:$4 sm:$0x22]  }
 0x1bc   : > { %v4407_v52 = vrot.slane %v4112_v59, 2  ;;  %v4218_v44 = vsel %vm522_vm8, %v4217_v18, %v4216_v56  ;;  %v4399_v37 = vsel %vm513_vm5, %v4398_v25, %v4397_v51  ;;  %v4409_v58 = vrot.slane %v4113_v47, 1  ;;  %v9976_v59 = vld [vmem:[%s7645_s24 + $0x1a4] ss:$0 sps:$4 sm:$0x22]  }
 0x1bd   : > { %v4412_v9 = vrot.slane %v4115_v61, 7  ;;  %7009 = vmatpush3.bf16.msra.mxu1 %v7636_v6  ;;  %v4249_v4 = vpack.c.b16 %v4218_v44, %v4204_v39  ;;  %v4401_v10 = vsel %vm516_vm6, %v4400_v11, %v4399_v37  ;;  %v4414_v1 = vrot.slane %v4116_v3, 6  ;;  %v9981_v47 = vld [vmem:[%s11277_s1] sm:$0xff]   ;;  %v10017_v8 = vld [vmem:[%s7645_s24 + $0x1dc] ss:$0 sps:$4 sm:$0x22]  }
 0x1be   : > { %v4408_v26 = vsel %vm504_vm2, %v4407_v52, %v4406_v42  ;;  %7032 = vmatprep.subr.bf16.mxu1 %v9981_v47  ;;  %v4403_v61 = vsel %vm519_vm7, %v4402_v30, %v4401_v10  ;;  %v4416_v28 = vrot.slane %v4117_v57, 5  ;;  %v4418_v3 = vrot.slane %v4118_v14, 4  ;;  %v10007_v14 = vld [vmem:[%s7645_s24 + $0x1cc] ss:$0 sps:$4 sm:$0x22]  }
 0x1bf   : > { %v4410_v53 = vsel %vm507_vm3, %v4409_v58, %v4408_v26  ;;  %6972 = vmatprep.mubr.msk.bf16.mxu0 %vm641_vm9, %v4249_v4  ;;  %v4405_v36 = vsel %vm522_vm8, %v4404_v24, %v4403_v61  ;;  %v4119_v20 = vunpack.c.l.b16 %v9953_v19  ;;  %v4120_v38 = vunpack.c.l.b16 %v9956_v54  ;;  %v7438_v55 = vld [vmem:[%s7645_s24 + $0x1e4] ss:$0 sps:$4 sm:$0x22]   ;;  %v10024_v13 = vld [vmem:[%s7645_s24 + $0x1ec] ss:$0 sps:$4 sm:$0x22]  }
 0x1c0   : > { %v4411_v50 = vsel %vm510_vm4, %v4114_v2, %v4410_v53  ;;  %v4121_v41 = vunpack.c.l.b16 %v9963_v17  ;;  %v4122_v27 = vunpack.c.l.b16 %v9968_v21  ;;  %v4123_v29 = vunpack.c.l.b16 %v9976_v59  ;;  %v10031_v48 = vld [vmem:[%s7645_s24 + $0x1f4] ss:$0 sps:$4 sm:$0x22]   ;;  %v10034_v5 = vld [vmem:[%s7645_s24 + $0x1fc] ss:$0 sps:$4 sm:$0x22]  }
 0x1c1   : > { %v4413_v57 = vsel %vm513_vm5, %v4412_v9, %v4411_v50  ;;  %v4124_v7 = vunpack.c.l.b16 %v7431_v46  ;;  %v4125_v32 = vunpack.c.l.b16 %v9997_v45  ;;  %v4126_v22 = vunpack.c.l.b16 %v10000_v60 }
 0x1c2   : > { %v4415_v2 = vsel %vm516_vm6, %v4414_v1, %v4413_v57  ;;  %v4127_v18 = vunpack.c.l.b16 %v10004_v63  ;;  %v4128_v12 = vunpack.c.l.b16 %v10007_v14  ;;  %v4129_v34 = vunpack.c.l.b16 %v10014_v15 }
 0x1c3   : > { %v4417_v16 = vsel %vm519_vm7, %v4416_v28, %v4415_v2  ;;  %v4130_v43 = vunpack.c.l.b16 %v10017_v8  ;;  %v4131_v25 = vunpack.c.l.b16 %v7438_v55  ;;  %v4132_v11 = vunpack.c.l.b16 %v10024_v13 }
 0x1c4   : > { %v4419_v0 = vsel %vm522_vm8, %v4418_v3, %v4417_v16  ;;  %v4219_v62 = vrot.slane %v4119_v20, 2  ;;  %v4133_v49 = vunpack.c.l.b16 %v10031_v48  ;;  %v4134_v33 = vunpack.c.l.b16 %v10034_v5  ;;  %v10078_v5 = vld [vmem:[%s7645_s24 + $0x24] ss:$0 sps:$4 sm:$0x44]  }
 0x1c5   : > { %v4450_v40 = vpack.c.b16 %v4419_v0, %v4405_v36  ;;  %v4220_v30 = vrot.slane %v4120_v38, 1  ;;  %v4223_v39 = vrot.slane %v4122_v27, 7  ;;  %v4225_v35 = vrot.slane %v4123_v29, 6 }
 0x1c6   : > { %v4227_v31 = vrot.slane %v4124_v7, 5  ;;  %v4229_v24 = vrot.slane %v4125_v32, 4  ;;  %v4231_v19 = vrot.slane %v4126_v22, 3  ;;  %v4233_v56 = vrot.slane %v4127_v18, 2 }
 0x1c7   : > { %6986 = vmatprep.mubr.msk.bf16.mxu1 %vm641_vm9, %v4450_v40  ;;  %v4221_v54 = vsel %vm504_vm2, %v4220_v30, %v4219_v62  ;;  %v4234_v51 = vrot.slane %v4128_v12, 1  ;;  %v4237_v42 = vrot.slane %v4130_v43, 7  ;;  %v4239_v17 = vrot.slane %v4131_v25, 6  ;;  %v10083_v62 = vld [vmem:[%s7645_s24 + $0x2c] ss:$0 sps:$4 sm:$0x44]  }
 0x1c8   : > { %v4222_v52 = vsel %vm507_vm3, %v4121_v41, %v4221_v54  ;;  %v4241_v44 = vrot.slane %v4132_v11, 5  ;;  %v4243_v37 = vrot.slane %v4133_v49, 4  ;;  %v4245_v21 = vrot.slane %v4134_v33, 3  ;;  %v10108_v54 = vld [vmem:[%s7645_s24 + $0x54] ss:$0 sps:$4 sm:$0x44]  }
 0x1c9   : > { %v4224_v58 = vsel %vm510_vm4, %v4223_v39, %v4222_v52  ;;  %v4235_v9 = vsel %vm504_vm2, %v4234_v51, %v4233_v56  ;;  %v4420_v4 = vrot.slane %v4119_v20, 3  ;;  %v4421_v1 = vrot.slane %v4120_v38, 2  ;;  %v10060_v20 = vld [vmem:[%s7645_s24 + $0x4] ss:$0 sps:$4 sm:$0x44]  }
 0x1ca   : > { %v4226_v10 = vsel %vm513_vm5, %v4225_v35, %v4224_v58  ;;  %v4236_v26 = vsel %vm507_vm3, %v4129_v34, %v4235_v9  ;;  %v4423_v59 = vrot.slane %v4121_v41, 1  ;;  %v4426_v28 = vrot.slane %v4123_v29, 7  ;;  %v10063_v38 = vld [vmem:[%s7645_s24 + $0xc] ss:$0 sps:$4 sm:$0x44]  }
 0x1cb   : > { %v4228_v61 = vsel %vm516_vm6, %v4227_v31, %v4226_v10  ;;  %v4238_v53 = vsel %vm510_vm4, %v4237_v42, %v4236_v26  ;;  %v4428_v3 = vrot.slane %v4124_v7, 6  ;;  %v4422_v50 = vsel %vm504_vm2, %v4421_v1, %v4420_v4  ;;  %v10068_v7 = vld [vmem:[%s7645_s24 + $0x14] ss:$0 sps:$4 sm:$0x44]  }
 0x1cc   : > { %v4230_v46 = vsel %vm519_vm7, %v4229_v24, %v4228_v61  ;;  %v4240_v36 = vsel %vm513_vm5, %v4239_v17, %v4238_v53  ;;  %v4430_v45 = vrot.slane %v4125_v32, 5  ;;  %v4424_v63 = vsel %vm507_vm3, %v4423_v59, %v4422_v50  ;;  %v10091_v39 = vld [vmem:[%s7645_s24 + $0x34] ss:$0 sps:$4 sm:$0x44]  }
 0x1cd   : > { %v4232_v60 = vsel %vm522_vm8, %v4231_v19, %v4230_v46  ;;  %v4242_v57 = vsel %vm516_vm6, %v4241_v44, %v4240_v36  ;;  %v4432_v14 = vrot.slane %v4126_v22, 4  ;;  %v4425_v2 = vsel %vm510_vm4, %v4122_v27, %v4424_v63  ;;  %v10073_v22 = vld [vmem:[%s7645_s24 + $0x1c] ss:$0 sps:$4 sm:$0x44]  }
 0x1ce   : > { %v4244_v41 = vsel %vm519_vm7, %v4243_v37, %v4242_v57  ;;  %v4434_v15 = vrot.slane %v4127_v18, 3  ;;  %v4435_v29 = vrot.slane %v4128_v12, 2  ;;  %v4427_v55 = vsel %vm513_vm5, %v4426_v28, %v4425_v2  ;;  %v10094_v35 = vld [vmem:[%s7645_s24 + $0x3c] ss:$0 sps:$4 sm:$0x44]  }
 0x1cf   : > { %v4246_v16 = vsel %vm522_vm8, %v4245_v21, %v4244_v41  ;;  %v4437_v13 = vrot.slane %v4129_v34, 1  ;;  %v4440_v32 = vrot.slane %v4131_v25, 7  ;;  %v4429_v48 = vsel %vm516_vm6, %v4428_v3, %v4427_v55  ;;  %v10098_v31 = vld [vmem:[%s7645_s24 + $0x44] ss:$0 sps:$4 sm:$0x44]  }
 0x1d0   : > { %v4250_v0 = vpack.c.b16 %v4246_v16, %v4232_v60  ;;  %v4436_v27 = vsel %vm504_vm2, %v4435_v29, %v4434_v15  ;;  %v4442_v18 = vrot.slane %v4132_v11, 6  ;;  %v4431_v12 = vsel %vm519_vm7, %v4430_v45, %v4429_v48  ;;  %v10111_v56 = vld [vmem:[%s7645_s24 + $0x5c] ss:$0 sps:$4 sm:$0x44]  }
 0x1d1   : > { %v4438_v40 = vsel %vm507_vm3, %v4437_v13, %v4436_v27  ;;  %v4444_v34 = vrot.slane %v4133_v49, 5  ;;  %v4446_v25 = vrot.slane %v4134_v33, 4  ;;  %v4433_v30 = vsel %vm522_vm8, %v4432_v14, %v4431_v12  ;;  %v10101_v33 = vld [vmem:[%s7645_s24 + $0x4c] ss:$0 sps:$4 sm:$0x44]  }
 0x1d2   : > { %6973 = vmatmul.mubr.msk.bf16.gmra.mrb[44].mxu0 %vm641_vm9, %v4250_v0  ;;  %v4439_v11 = vsel %vm510_vm4, %v4130_v43, %v4438_v40  ;;  %v4793_v24 = vunpack.c.l.b16 %v10060_v20  ;;  %v4794_v19 = vunpack.c.l.b16 %v10063_v38  ;;  %v4795_v8 = vunpack.c.l.b16 %v10068_v7  ;;  %v10118_v44 = vld [vmem:[%s7645_s24 + $0x64] ss:$0 sps:$4 sm:$0x44]   ;;  %v10121_v37 = vld [vmem:[%s7645_s24 + $0x6c] ss:$0 sps:$4 sm:$0x44]  }
 0x1d3   : > { %v4441_v49 = vsel %vm513_vm5, %v4440_v32, %v4439_v11  ;;  %v4796_v51 = vunpack.c.l.b16 %v10073_v22  ;;  %v4797_v42 = vunpack.c.l.b16 %v10078_v5  ;;  %v4798_v52 = vunpack.c.l.b16 %v10083_v62  ;;  %v10128_v10 = vld [vmem:[%s7645_s24 + $0x74] ss:$0 sps:$4 sm:$0x44]   ;;  %v10131_v26 = vld [vmem:[%s7645_s24 + $0x7c] ss:$0 sps:$4 sm:$0x44]  }
 0x1d4   : > { %v4443_v43 = vsel %vm516_vm6, %v4442_v18, %v4441_v49  ;;  %v4799_v58 = vunpack.c.l.b16 %v10091_v39  ;;  %v4800_v9 = vunpack.c.l.b16 %v10094_v35  ;;  %v4801_v21 = vunpack.c.l.b16 %v10098_v31 }
 0x1d5   : > { %v4445_v17 = vsel %vm519_vm7, %v4444_v34, %v4443_v43  ;;  %v4802_v1 = vunpack.c.l.b16 %v10101_v33  ;;  %v4803_v59 = vunpack.c.l.b16 %v10108_v54  ;;  %v4804_v61 = vunpack.c.l.b16 %v10111_v56 }
 0x1d6   : > { %v4447_v4 = vsel %vm522_vm8, %v4446_v25, %v4445_v17  ;;  %v4805_v28 = vunpack.c.l.b16 %v10118_v44  ;;  %v4806_v3 = vunpack.c.l.b16 %v10121_v37  ;;  %v4857_v46 = vrot.slane %v4793_v24, 4 }
 0x1d7   : > { %v4451_v53 = vpack.c.b16 %v4447_v4, %v4433_v30  ;;  %v4807_v36 = vunpack.c.l.b16 %v10128_v10  ;;  %v4808_v50 = vunpack.c.l.b16 %v10131_v26  ;;  %v4858_v45 = vrot.slane %v4794_v19, 3  ;;  %v10173_v4 = vld [vmem:[%s7645_s24 + $0x9c] ss:$0 sps:$4 sm:$0x44]  }
 0x1d8   : > { %v4860_v60 = vrot.slane %v4795_v8, 2  ;;  %v4862_v57 = vrot.slane %v4796_v51, 1  ;;  %v4865_v63 = vrot.slane %v4798_v52, 7  ;;  %v4867_v14 = vrot.slane %v4799_v58, 6 }
 0x1d9   : > { %6987 = vmatmul.mubr.msk.bf16.gmra.mrb[44].mxu1 %vm641_vm9, %v4451_v53  ;;  %v4869_v20 = vrot.slane %v4800_v9, 5  ;;  %v4859_v38 = vsel %vm504_vm2, %v4858_v45, %v4857_v46  ;;  %v4871_v41 = vrot.slane %v4801_v21, 4  ;;  %v4872_v2 = vrot.slane %v4802_v1, 3  ;;  %v10180_v53 = vld [vmem:[%s7645_s24 + $0xa4] ss:$0 sps:$4 sm:$0x44]  }
 0x1da   : > { %v4874_v15 = vrot.slane %v4803_v59, 2  ;;  %v4861_v29 = vsel %vm507_vm3, %v4860_v60, %v4859_v38  ;;  %v4876_v7 = vrot.slane %v4804_v61, 1  ;;  %v4879_v16 = vrot.slane %v4806_v3, 7  ;;  %v10185_v60 = vld [vmem:[%s7645_s24 + $0xac] ss:$0 sps:$4 sm:$0x44]  }
 0x1db   : > { %v4881_v55 = vrot.slane %v4807_v36, 6  ;;  %v4863_v13 = vsel %vm510_vm4, %v4862_v57, %v4861_v29  ;;  %v4873_v32 = vsel %vm504_vm2, %v4872_v2, %v4871_v41  ;;  %v4883_v22 = vrot.slane %v4808_v50, 5  ;;  %v10194_v57 = vld [vmem:[%s7645_s24 + $0xbc] ss:$0 sps:$4 sm:$0x44]  }
 0x1dc   : > { %v5058_v0 = vrot.slane %v4793_v24, 5  ;;  %v4864_v48 = vsel %vm513_vm5, %v4797_v42, %v4863_v13  ;;  %v4875_v27 = vsel %vm507_vm3, %v4874_v15, %v4873_v32  ;;  %v5059_v18 = vrot.slane %v4794_v19, 4  ;;  %v10160_v19 = vld [vmem:[%s7645_s24 + $0x84] ss:$0 sps:$4 sm:$0x44]  }
 0x1dd   : > { %v5061_v5 = vrot.slane %v4795_v8, 3  ;;  %v4866_v12 = vsel %vm516_vm6, %v4865_v63, %v4864_v48  ;;  %v4877_v40 = vsel %vm510_vm4, %v4876_v7, %v4875_v27  ;;  %v5063_v34 = vrot.slane %v4796_v51, 2  ;;  %v10163_v8 = vld [vmem:[%s7645_s24 + $0x8c] ss:$0 sps:$4 sm:$0x44]  }
 0x1de   : > { %v5065_v25 = vrot.slane %v4797_v42, 1  ;;  %v4868_v30 = vsel %vm519_vm7, %v4867_v14, %v4866_v12  ;;  %v4878_v11 = vsel %vm513_vm5, %v4805_v28, %v4877_v40  ;;  %v5060_v39 = vsel %vm504_vm2, %v5059_v18, %v5058_v0  ;;  %v10168_v42 = vld [vmem:[%s7645_s24 + $0x94] ss:$0 sps:$4 sm:$0x44]  }
 0x1df   : > { %v5068_v35 = vrot.slane %v4799_v58, 7  ;;  %v4870_v49 = vsel %vm522_vm8, %v4869_v20, %v4868_v30  ;;  %v4880_v31 = vsel %vm516_vm6, %v4879_v16, %v4878_v11  ;;  %v5062_v33 = vsel %vm507_vm3, %v5061_v5, %v5060_v39  ;;  %v10198_v14 = vld [vmem:[%s7645_s24 + $0xc4] ss:$0 sps:$4 sm:$0x44]  }
 0x1e0   : > { %v5070_v24 = vrot.slane %v4800_v9, 6  ;;  %v4882_v43 = vsel %vm519_vm7, %v4881_v55, %v4880_v31  ;;  %v5064_v54 = vsel %vm510_vm4, %v5063_v34, %v5062_v33  ;;  %v5072_v56 = vrot.slane %v4801_v21, 5  ;;  %v10210_v2 = vld [vmem:[%s7645_s24 + $0xd4] ss:$0 sps:$4 sm:$0x44]  }
 0x1e1   : > { %v5073_v51 = vrot.slane %v4802_v1, 4  ;;  %v4884_v17 = vsel %vm522_vm8, %v4883_v22, %v4882_v43  ;;  %v5066_v44 = vsel %vm513_vm5, %v5065_v25, %v5064_v54  ;;  %v5075_v58 = vrot.slane %v4803_v59, 3  ;;  %v10213_v15 = vld [vmem:[%s7645_s24 + $0xdc] ss:$0 sps:$4 sm:$0x44]  }
 0x1e2   : > { %v5077_v9 = vrot.slane %v4804_v61, 2  ;;  %v4969_v10 = vpack.c.b16 %v4884_v17, %v4870_v49  ;;  %v5067_v21 = vsel %vm516_vm6, %v4798_v52, %v5066_v44  ;;  %v5079_v1 = vrot.slane %v4805_v28, 1  ;;  %v10191_v28 = vld [vmem:[%s7645_s24 + $0xb4] ss:$0 sps:$4 sm:$0x44]  }
 0x1e3   : > { %v5074_v26 = vsel %vm504_vm2, %v5073_v51, %v5072_v56  ;;  %v5069_v46 = vsel %vm519_vm7, %v5068_v35, %v5067_v21  ;;  %v5082_v61 = vrot.slane %v4807_v36, 7  ;;  %v5084_v45 = vrot.slane %v4808_v50, 6  ;;  %v10201_v36 = vld [vmem:[%s7645_s24 + $0xcc] ss:$0 sps:$4 sm:$0x44]  }
 0x1e4   : > { %v5076_v59 = vsel %vm507_vm3, %v5075_v58, %v5074_v26  ;;  %6996 = vmatprep.mubr.msk.bf16.mxu0 %vm641_vm9, %v4969_v10  ;;  %v5071_v62 = vsel %vm522_vm8, %v5070_v24, %v5069_v46  ;;  %v4809_v50 = vunpack.c.l.b16 %v10160_v19  ;;  %v4810_v20 = vunpack.c.l.b16 %v10163_v8  ;;  %v10220_v13 = vld [vmem:[%s7645_s24 + $0xe4] ss:$0 sps:$4 sm:$0x44]   ;;  %v10223_v32 = vld [vmem:[%s7645_s24 + $0xec] ss:$0 sps:$4 sm:$0x44]  }
 0x1e5   : > { %v5078_v52 = vsel %vm510_vm4, %v5077_v9, %v5076_v59  ;;  %v4811_v38 = vunpack.c.l.b16 %v10168_v42  ;;  %v4812_v29 = vunpack.c.l.b16 %v10173_v4  ;;  %v4813_v7 = vunpack.c.l.b16 %v10180_v53  ;;  %v10230_v48 = vld [vmem:[%s7645_s24 + $0xf4] ss:$0 sps:$4 sm:$0x44]   ;;  %v10233_v27 = vld [vmem:[%s7645_s24 + $0xfc] ss:$0 sps:$4 sm:$0x44]  }
 0x1e6   : > { %v5080_v63 = vsel %vm513_vm5, %v5079_v1, %v5078_v52  ;;  %v4814_v16 = vunpack.c.l.b16 %v10185_v60  ;;  %v4815_v37 = vunpack.c.l.b16 %v10191_v28  ;;  %v4817_v22 = vunpack.c.l.b16 %v10198_v14 }
 0x1e7   : > { %v5081_v41 = vsel %vm516_vm6, %v4806_v3, %v5080_v63  ;;  %v4816_v3 = vunpack.c.l.b16 %v10194_v57  ;;  %v4818_v18 = vunpack.c.l.b16 %v10201_v36  ;;  %v4819_v5 = vunpack.c.l.b16 %v10210_v2  ;;  %v10259_v63 = vld [vmem:[%s7645_s24 + $0x104] ss:$0 sps:$4 sm:$0x44]  }
 0x1e8   : > { %v5083_v55 = vsel %vm519_vm7, %v5082_v61, %v5081_v41  ;;  %v4820_v12 = vunpack.c.l.b16 %v10213_v15  ;;  %v4821_v34 = vunpack.c.l.b16 %v10220_v13  ;;  %v4822_v25 = vunpack.c.l.b16 %v10223_v32  ;;  %v10334_v32 = vld [vmem:[%s7645_s24 + $0x16c] ss:$0 sps:$4 sm:$0x44]  }
 0x1e9   : > { %v5085_v0 = vsel %vm522_vm8, %v5084_v45, %v5083_v55  ;;  %v4885_v30 = vrot.slane %v4809_v50, 4  ;;  %v4823_v11 = vunpack.c.l.b16 %v10230_v48  ;;  %v4824_v39 = vunpack.c.l.b16 %v10233_v27  ;;  %v10272_v55 = vpop.f32.mrb[0].mxu0  ;;  %v10277_v48 = vld [vmem:[%s7645_s24 + $0x11c] ss:$0 sps:$4 sm:$0x44]   ;;  %v10279_v27 = vpop.f32.mrb[0].mxu1 }
 0x1ea   : > { %v5170_v40 = vpack.c.b16 %v5085_v0, %v5071_v62  ;;  %v4886_v35 = vrot.slane %v4810_v20, 3  ;;  %v4888_v49 = vrot.slane %v4811_v38, 2  ;;  %v4890_v31 = vrot.slane %v4812_v29, 1 }
 0x1eb   : > { %v4893_v33 = vrot.slane %v4814_v16, 7  ;;  %v4895_v24 = vrot.slane %v4815_v37, 6  ;;  %v4897_v19 = vrot.slane %v4816_v3, 5  ;;  %v4899_v43 = vrot.slane %v4817_v22, 4 }
 0x1ec   : > { %7010 = vmatprep.mubr.msk.bf16.mxu1 %vm641_vm9, %v5170_v40  ;;  %v4887_v8 = vsel %vm504_vm2, %v4886_v35, %v4885_v30  ;;  %v4900_v54 = vrot.slane %v4818_v18, 3  ;;  %v4902_v56 = vrot.slane %v4819_v5, 2  ;;  %v4904_v42 = vrot.slane %v4820_v12, 1  ;;  %v10286_v35 = vld [vmem:[%s7645_s24 + $0x124] ss:$0 sps:$4 sm:$0x44]  }
 0x1ed   : > { %v4889_v51 = vsel %vm507_vm3, %v4888_v49, %v4887_v8  ;;  %v4907_v17 = vrot.slane %v4822_v25, 7  ;;  %v4909_v44 = vrot.slane %v4823_v11, 6  ;;  %v4911_v4 = vrot.slane %v4824_v39, 5 }
 0x1ee   : > { %v4891_v58 = vsel %vm510_vm4, %v4890_v31, %v4889_v51  ;;  %v4901_v9 = vsel %vm504_vm2, %v4900_v54, %v4899_v43  ;;  %v5086_v10 = vrot.slane %v4809_v50, 5  ;;  %v5087_v1 = vrot.slane %v4810_v20, 4  ;;  %v10311_v43 = vld [vmem:[%s7645_s24 + $0x14c] ss:$0 sps:$4 sm:$0x44]  }
 0x1ef   : > { %v4892_v21 = vsel %vm513_vm5, %v4813_v7, %v4891_v58  ;;  %v4903_v26 = vsel %vm507_vm3, %v4902_v56, %v4901_v9  ;;  %v5089_v53 = vrot.slane %v4811_v38, 3  ;;  %v5091_v61 = vrot.slane %v4812_v29, 2  ;;  %v10265_v38 = vld [vmem:[%s7645_s24 + $0x10c] ss:$0 sps:$4 sm:$0x44]  }
 0x1f0   : > { %v4894_v46 = vsel %vm516_vm6, %v4893_v33, %v4892_v21  ;;  %v4905_v59 = vsel %vm510_vm4, %v4904_v42, %v4903_v26  ;;  %v5093_v45 = vrot.slane %v4813_v7, 1  ;;  %v5088_v28 = vsel %vm504_vm2, %v5087_v1, %v5086_v10  ;;  %v10270_v7 = vld [vmem:[%s7645_s24 + $0x114] ss:$0 sps:$4 sm:$0x44]  }
 0x1f1   : > { %v4896_v62 = vsel %vm519_vm7, %v4895_v24, %v4894_v46  ;;  %v4906_v52 = vsel %vm513_vm5, %v4821_v34, %v4905_v59  ;;  %v5096_v57 = vrot.slane %v4815_v37, 7  ;;  %v5090_v50 = vsel %vm507_vm3, %v5089_v53, %v5088_v28  ;;  %v10291_v33 = vld [vmem:[%s7645_s24 + $0x12c] ss:$0 sps:$4 sm:$0x44]   ;;  %v10293_v24 = vpop.f32.mrb[1].mxu0 }
 0x1f2   : > { %v4898_v14 = vsel %vm522_vm8, %v4897_v19, %v4896_v62  ;;  %v4908_v36 = vsel %vm516_vm6, %v4907_v17, %v4906_v52  ;;  %v5098_v20 = vrot.slane %v4816_v3, 6  ;;  %v5092_v2 = vsel %vm510_vm4, %v5091_v61, %v5090_v50  ;;  %v10302_v19 = vld [vmem:[%s7645_s24 + $0x13c] ss:$0 sps:$4 sm:$0x44]  }
 0x1f3   : > { %v4910_v41 = vsel %vm519_vm7, %v4909_v44, %v4908_v36  ;;  %v5100_v15 = vrot.slane %v4817_v22, 5  ;;  %v5101_v29 = vrot.slane %v4818_v18, 4  ;;  %v5094_v37 = vsel %vm513_vm5, %v5093_v45, %v5092_v2  ;;  %v10321_v17 = vld [vmem:[%s7645_s24 + $0x154] ss:$0 sps:$4 sm:$0x44]  }
 0x1f4   : > { %v4912_v13 = vsel %vm522_vm8, %v4911_v4, %v4910_v41  ;;  %v5103_v0 = vrot.slane %v4819_v5, 3  ;;  %v5105_v3 = vrot.slane %v4820_v12, 2  ;;  %v5095_v22 = vsel %vm516_vm6, %v4814_v16, %v5094_v37  ;;  %v10324_v44 = vld [vmem:[%s7645_s24 + $0x15c] ss:$0 sps:$4 sm:$0x44]  }
 0x1f5   : > { %v4970_v40 = vpack.c.b16 %v4912_v13, %v4898_v14  ;;  %v5102_v18 = vsel %vm504_vm2, %v5101_v29, %v5100_v15  ;;  %v5107_v30 = vrot.slane %v4821_v34, 1  ;;  %v5097_v5 = vsel %vm519_vm7, %v5096_v57, %v5095_v22  ;;  %v10299_v34 = vld [vmem:[%s7645_s24 + $0x134] ss:$0 sps:$4 sm:$0x44]   ;;  %v10353_v14 = vpop.f32.mrb[1].mxu1 }
 0x1f6   : > { %v5104_v12 = vsel %vm507_vm3, %v5103_v0, %v5102_v18  ;;  %v5110_v49 = vrot.slane %v4823_v11, 7  ;;  %v5112_v31 = vrot.slane %v4824_v39, 6  ;;  %v5099_v60 = vsel %vm522_vm8, %v5098_v20, %v5097_v5  ;;  %v10308_v39 = vld [vmem:[%s7645_s24 + $0x144] ss:$0 sps:$4 sm:$0x44]   ;;  %v10378_v18 = vpop.f32.mrb[2].mxu1 }
 0x1f7   : > { %6997 = vmatmul.mubr.msk.bf16.vlgmr.msra.gmra.mrb[48].mxu0 %vm641_vm9, %v4970_v40  ;;  %v5106_v16 = vsel %vm510_vm4, %v5105_v3, %v5104_v12  ;;  %v4825_v8 = vunpack.c.l.b16 %v10259_v63  ;;  %v4826_v54 = vunpack.c.l.b16 %v10265_v38  ;;  %v4827_v56 = vunpack.c.l.b16 %v10270_v7  ;;  %v10331_v21 = vld [vmem:[%s7645_s24 + $0x164] ss:$0 sps:$4 sm:$0x44]   ;;  %v10342_v46 = vld [vmem:[%s7645_s24 + $0x174] ss:$0 sps:$4 sm:$0x44]  }
 0x1f8   : > { %v5108_v11 = vsel %vm513_vm5, %v5107_v30, %v5106_v16  ;;  %7019 = vmatpush3.bf16.msra.mxu0 %v9981_v47  ;;  %v4828_v51 = vunpack.c.l.b16 %v10277_v48  ;;  %v4829_v58 = vunpack.c.l.b16 %v10286_v35  ;;  %v4830_v9 = vunpack.c.l.b16 %v10291_v33  ;;  %v10345_v59 = vld [vmem:[%s7645_s24 + $0x17c] ss:$0 sps:$4 sm:$0x44]   ;;  %v10367_v3 = vpop.f32.mrb[2].mxu0 }
 0x1f9   : > { %v5109_v42 = vsel %vm516_vm6, %v4822_v25, %v5108_v11  ;;  %7020 = vmatprep.subr.bf16.mxu0 %v9942_v23  ;;  %v4831_v4 = vunpack.c.l.b16 %v10299_v34  ;;  %v4832_v25 = vunpack.c.l.b16 %v10302_v19  ;;  %v4833_v26 = vunpack.c.l.b16 %v10308_v39  ;;  %v10423_v39 = vpop.f32.mrb[3].mxu1 }
 0x1fa   : > { %v5111_v10 = vsel %vm519_vm7, %v5110_v49, %v5109_v42  ;;  %v4834_v61 = vunpack.c.l.b16 %v10311_v43  ;;  %v4835_v45 = vunpack.c.l.b16 %v10321_v17  ;;  %v4836_v62 = vunpack.c.l.b16 %v10324_v44  ;;  %v10432_v44 = vld [vmem:[%s7645_s24 + $0x1a4] ss:$0 sps:$4 sm:$0x44]  }
 0x1fb   : > { %v5113_v53 = vsel %vm522_vm8, %v5112_v31, %v5111_v10  ;;  %v4837_v28 = vunpack.c.l.b16 %v10331_v21  ;;  %v4838_v57 = vunpack.c.l.b16 %v10334_v32  ;;  %v4913_v63 = vrot.slane %v4825_v8, 4 }
 0x1fc   : > { %v5171_v52 = vpack.c.b16 %v5113_v53, %v5099_v60  ;;  %7021 = vmatpush3.bf16.msra.mxu0 %v9942_v23  ;;  %v4839_v36 = vunpack.c.l.b16 %v10342_v46  ;;  %v4840_v50 = vunpack.c.l.b16 %v10345_v59  ;;  %v4914_v20 = vrot.slane %v4826_v54, 3 }
 0x1fd   : > { %v4916_v38 = vrot.slane %v4827_v56, 2  ;;  %7022 = vmatprep.subr.bf16.mxu0 %v7636_v6  ;;  %v4918_v41 = vrot.slane %v4828_v51, 1  ;;  %v4921_v2 = vrot.slane %v4830_v9, 7  ;;  %v4923_v15 = vrot.slane %v4831_v4, 6 }
 0x1fe   : > { %7011 = vmatmul.mubr.msk.bf16.vlgmr.msra.gmra.mrb[48].mxu1 %vm641_vm9, %v5171_v52  ;;  %v4925_v29 = vrot.slane %v4832_v25, 5  ;;  %v4915_v7 = vsel %vm504_vm2, %v4914_v20, %v4913_v63  ;;  %v4927_v13 = vrot.slane %v4833_v26, 4  ;;  %v4928_v37 = vrot.slane %v4834_v61, 3  ;;  %v10402_v52 = vld [vmem:[%s7645_s24 + $0x18c] ss:$0 sps:$4 sm:$0x44]  }
 0x1ff   : > { %7033 = vmatpush3.bf16.msra.mxu1 %v9981_v47  ;;  %v4930_v0 = vrot.slane %v4835_v45, 2  ;;  %v4917_v48 = vsel %vm507_vm3, %v4916_v38, %v4915_v7  ;;  %v4932_v40 = vrot.slane %v4836_v62, 1  ;;  %v4935_v22 = vrot.slane %v4838_v57, 7 }
 0x200   : > { %v4937_v47 = vrot.slane %v4839_v36, 6  ;;  %7034 = vmatprep.subr.bf16.mxu1 %v9942_v23  ;;  %7023 = vmatpush3.bf16.msra.mxu0 %v7636_v6  ;;  %v4919_v30 = vsel %vm510_vm4, %v4918_v41, %v4917_v48  ;;  %v4929_v35 = vsel %vm504_vm2, %v4928_v37, %v4927_v13  ;;  %v4939_v5 = vrot.slane %v4840_v50, 5  ;;  %v10409_v41 = vld [vmem:[%s7645_s24 + $0x194] ss:$0 sps:$4 sm:$0x44]  }
 0x201   : > { %v5114_v12 = vrot.slane %v4825_v8, 5  ;;  %v4920_v49 = vsel %vm513_vm5, %v4829_v58, %v4919_v30  ;;  %v4931_v31 = vsel %vm507_vm3, %v4930_v0, %v4929_v35  ;;  %v5115_v60 = vrot.slane %v4826_v54, 4  ;;  %v10420_v13 = vld [vmem:[%s7645_s24 + $0x19c] ss:$0 sps:$4 sm:$0x44]  }
 0x202   : > { %v5117_v16 = vrot.slane %v4827_v56, 3  ;;  %v4922_v34 = vsel %vm516_vm6, %v4921_v2, %v4920_v49  ;;  %v4933_v19 = vsel %vm510_vm4, %v4932_v40, %v4931_v31  ;;  %v5119_v11 = vrot.slane %v4828_v51, 2  ;;  %v10395_v56 = vld [vmem:[%s7645_s24 + $0x184] ss:$0 sps:$4 sm:$0x44]   ;;  %v10411_v2 = vpop.f32.mrb[3].mxu0 }
 0x203   : > { %v5121_v43 = vrot.slane %v4829_v58, 1  ;;  %7035 = vmatpush3.bf16.msra.mxu1 %v9942_v23  ;;  %v4924_v42 = vsel %vm519_vm7, %v4923_v15, %v4922_v34  ;;  %v4934_v8 = vsel %vm513_vm5, %v4837_v28, %v4933_v19  ;;  %v5116_v10 = vsel %vm504_vm2, %v5115_v60, %v5114_v12  ;;  %v10443_v0 = vpop.f32.mrb[4].mxu0  ;;  %v10449_v48 = vld [vmem:[%s7645_s24 + $0x1b4] ss:$0 sps:$4 sm:$0x44]  }
 0x204   : > { %v5124_v54 = vrot.slane %v4831_v4, 7  ;;  %7036 = vmatprep.subr.bf16.mxu1 %v7636_v6  ;;  %v4926_v51 = vsel %vm522_vm8, %v4925_v29, %v4924_v42  ;;  %v4936_v58 = vsel %vm516_vm6, %v4935_v22, %v4934_v8  ;;  %v5118_v23 = vsel %vm507_vm3, %v5117_v16, %v5116_v10  ;;  %v10452_v40 = vld [vmem:[%s7645_s24 + $0x1bc] ss:$0 sps:$4 sm:$0x44]  }
 0x205   : > { %v5126_v53 = vrot.slane %v4832_v25, 6  ;;  %v4938_v63 = vsel %vm519_vm7, %v4937_v47, %v4936_v58  ;;  %v5120_v20 = vsel %vm510_vm4, %v5119_v11, %v5118_v23  ;;  %v5128_v4 = vrot.slane %v4833_v26, 5  ;;  %v10461_v22 = vld [vmem:[%s7645_s24 + $0x1cc] ss:$0 sps:$4 sm:$0x44]  }
 0x206   : > { %v5129_v38 = vrot.slane %v4834_v61, 4  ;;  %v4940_v15 = vsel %vm522_vm8, %v4939_v5, %v4938_v63  ;;  %v5122_v25 = vsel %vm513_vm5, %v5121_v43, %v5120_v20  ;;  %v5131_v29 = vrot.slane %v4835_v45, 3  ;;  %v10470_v12 = vld [vmem:[%s7645_s24 + $0x1d4] ss:$0 sps:$4 sm:$0x44]   ;;  %v10502_v63 = vpop.f32.mrb[4].mxu1 }
 0x207   : > { %v5133_v7 = vrot.slane %v4836_v62, 2  ;;  %7037 = vmatpush3.bf16.msra.mxu1 %v7636_v6  ;;  %v4971_v26 = vpack.c.b16 %v4940_v15, %v4926_v51  ;;  %v5123_v61 = vsel %vm516_vm6, %v4830_v9, %v5122_v25  ;;  %v5135_v17 = vrot.slane %v4837_v28, 1  ;;  %v10441_v9 = vld [vmem:[%s7645_s24 + $0x1ac] ss:$0 sps:$4 sm:$0x44]  }
 0x208   : > { %v5130_v37 = vsel %vm504_vm2, %v5129_v38, %v5128_v4  ;;  %v5125_v6 = vsel %vm519_vm7, %v5124_v54, %v5123_v61  ;;  %v5138_v62 = vrot.slane %v4839_v36, 7  ;;  %v5140_v33 = vrot.slane %v4840_v50, 6  ;;  %v10458_v50 = vld [vmem:[%s7645_s24 + $0x1c4] ss:$0 sps:$4 sm:$0x44]  }
 0x209   : > { %v5132_v45 = vsel %vm507_vm3, %v5131_v29, %v5130_v37  ;;  %7000 = vmatprep.mubr.msk.bf16.mxu0 %vm641_vm9, %v4971_v26  ;;  %v5127_v21 = vsel %vm522_vm8, %v5126_v53, %v5125_v6  ;;  %v4841_v46 = vunpack.c.l.b16 %v10395_v56  ;;  %v4842_v59 = vunpack.c.l.b16 %v10402_v52  ;;  %v10473_v49 = vld [vmem:[%s7645_s24 + $0x1dc] ss:$0 sps:$4 sm:$0x44]   ;;  %v10480_v19 = vld [vmem:[%s7645_s24 + $0x1e4] ss:$0 sps:$4 sm:$0x44]  }
 0x20a   : > { %v5134_v28 = vsel %vm510_vm4, %v5133_v7, %v5132_v45  ;;  %v4843_v47 = vunpack.c.l.b16 %v10409_v41  ;;  %v4844_v30 = vunpack.c.l.b16 %v10420_v13  ;;  %v4845_v35 = vunpack.c.l.b16 %v10432_v44  ;;  %v10483_v11 = vld [vmem:[%s7645_s24 + $0x1ec] ss:$0 sps:$4 sm:$0x44]   ;;  %v10491_v8 = vld [vmem:[%s7645_s24 + $0x1f4] ss:$0 sps:$4 sm:$0x44]  }
 0x20b   : > { %v5136_v36 = vsel %vm513_vm5, %v5135_v17, %v5134_v28  ;;  %v4846_v31 = vunpack.c.l.b16 %v10441_v9  ;;  %v4847_v60 = vunpack.c.l.b16 %v10449_v48  ;;  %v4848_v16 = vunpack.c.l.b16 %v10452_v40  ;;  %v10494_v10 = vld [vmem:[%s7645_s24 + $0x1fc] ss:$0 sps:$4 sm:$0x44]   ;;  %v10510_v17 = vpop.f32.mrb[5].mxu0 }
 0x20c   : > { %v5137_v5 = vsel %vm516_vm6, %v4838_v57, %v5136_v36  ;;  %v4849_v32 = vunpack.c.l.b16 %v10458_v50  ;;  %v4850_v57 = vunpack.c.l.b16 %v10461_v22  ;;  %v4851_v54 = vunpack.c.l.b16 %v10470_v12 }
 0x20d   : > { %v5139_v34 = vsel %vm519_vm7, %v5138_v62, %v5137_v5  ;;  %v4852_v56 = vunpack.c.l.b16 %v10473_v49  ;;  %v4853_v23 = vunpack.c.l.b16 %v10480_v19  ;;  %v4854_v53 = vunpack.c.l.b16 %v10483_v11 }
 0x20e   : > { %v5141_v42 = vsel %vm522_vm8, %v5140_v33, %v5139_v34  ;;  %v4941_v52 = vrot.slane %v4841_v46, 4  ;;  %v4855_v20 = vunpack.c.l.b16 %v10491_v8  ;;  %v4856_v4 = vunpack.c.l.b16 %v10494_v10  ;;  %v10515_v33 = vpop.f32.mrb[5].mxu1 }
 0x20f   : > { %v5172_v58 = vpack.c.b16 %v5141_v42, %v5127_v21  ;;  %v4942_v38 = vrot.slane %v4842_v59, 3  ;;  %v4944_v41 = vrot.slane %v4843_v47, 2  ;;  %v4946_v15 = vrot.slane %v4844_v30, 1 }
 0x210   : > { %v4949_v25 = vrot.slane %v4846_v31, 7  ;;  %v4951_v29 = vrot.slane %v4847_v60, 6  ;;  %v4953_v7 = vrot.slane %v4848_v16, 5  ;;  %v4955_v26 = vrot.slane %v4849_v32, 4 }
 0x211   : > { %7014 = vmatprep.mubr.msk.bf16.mxu1 %vm641_vm9, %v5172_v58  ;;  %v4943_v13 = vsel %vm504_vm2, %v4942_v38, %v4941_v52  ;;  %v4956_v61 = vrot.slane %v4850_v57, 3  ;;  %v4958_v37 = vrot.slane %v4851_v54, 2  ;;  %v4960_v6 = vrot.slane %v4852_v56, 1  ;;  %v10527_v58 = vld [vmem:[%s7645_s24 + $0x4] ss:$0 sps:$4 sm:$0x88]  }
 0x212   : > { %v4945_v44 = vsel %vm507_vm3, %v4944_v41, %v4943_v13  ;;  %v4963_v45 = vrot.slane %v4854_v53, 7  ;;  %v4965_v62 = vrot.slane %v4855_v20, 6  ;;  %v4967_v48 = vrot.slane %v4856_v4, 5 }
 0x213   : > { %v4947_v21 = vsel %vm510_vm4, %v4946_v15, %v4945_v44  ;;  %v4957_v28 = vsel %vm504_vm2, %v4956_v61, %v4955_v26  ;;  %v5142_v40 = vrot.slane %v4841_v46, 5  ;;  %v5143_v22 = vrot.slane %v4842_v59, 4  ;;  %v10545_v61 = vld [vmem:[%s7645_s24 + $0x1c] ss:$0 sps:$4 sm:$0x88]  }
 0x214   : > { %v4948_v36 = vsel %vm513_vm5, %v4845_v35, %v4947_v21  ;;  %v4959_v50 = vsel %vm507_vm3, %v4958_v37, %v4957_v28  ;;  %v5145_v5 = vrot.slane %v4843_v47, 3  ;;  %v5147_v34 = vrot.slane %v4844_v30, 2  ;;  %v10533_v30 = vld [vmem:[%s7645_s24 + $0xc] ss:$0 sps:$4 sm:$0x88]   ;;  %v10547_v37 = vpop.f32.mrb[6].mxu1 }
 0x215   : > { %v4950_v12 = vsel %vm516_vm6, %v4949_v25, %v4948_v36  ;;  %v4961_v49 = vsel %vm510_vm4, %v4960_v6, %v4959_v50  ;;  %v5149_v19 = vrot.slane %v4845_v35, 1  ;;  %v5144_v46 = vsel %vm504_vm2, %v5143_v22, %v5142_v40  ;;  %v10559_v28 = vld [vmem:[%s7645_s24 + $0x2c] ss:$0 sps:$4 sm:$0x88]  }
 0x216   : > { %v4952_v42 = vsel %vm519_vm7, %v4951_v29, %v4950_v12  ;;  %v4962_v8 = vsel %vm513_vm5, %v4853_v23, %v4961_v49  ;;  %v5152_v10 = vrot.slane %v4847_v60, 7  ;;  %v5146_v52 = vsel %vm507_vm3, %v5145_v5, %v5144_v46  ;;  %v10538_v60 = vld [vmem:[%s7645_s24 + $0x14] ss:$0 sps:$4 sm:$0x88]   ;;  %v10540_v29 = vpop.f32.mrb[6].mxu0 }
 0x217   : > { %v4954_v59 = vsel %vm522_vm8, %v4953_v7, %v4952_v42  ;;  %v4964_v47 = vsel %vm516_vm6, %v4963_v45, %v4962_v8  ;;  %v5154_v38 = vrot.slane %v4848_v16, 6  ;;  %v5148_v41 = vsel %vm510_vm4, %v5147_v34, %v5146_v52  ;;  %v10554_v45 = vld [vmem:[%s7645_s24 + $0x24] ss:$0 sps:$4 sm:$0x88]  }
 0x218   : > { %v4966_v35 = vsel %vm519_vm7, %v4965_v62, %v4964_v47  ;;  %v5156_v15 = vrot.slane %v4849_v32, 5  ;;  %v5157_v25 = vrot.slane %v4850_v57, 4  ;;  %v5150_v13 = vsel %vm513_vm5, %v5149_v19, %v5148_v41  ;;  %v10570_v40 = vld [vmem:[%s7645_s24 + $0x3c] ss:$0 sps:$4 sm:$0x88]  }
 0x219   : > { %v4968_v7 = vsel %vm522_vm8, %v4967_v48, %v4966_v35  ;;  %v5159_v26 = vrot.slane %v4851_v54, 3  ;;  %v5161_v16 = vrot.slane %v4852_v56, 2  ;;  %v5151_v32 = vsel %vm516_vm6, %v4846_v31, %v5150_v13  ;;  %v10561_v48 = vpop.f32.mrb[7].mxu0  ;;  %v10576_v50 = vld [vmem:[%s7645_s24 + $0x44] ss:$0 sps:$4 sm:$0x88]  }
 0x21a   : > { %v4972_v44 = vpack.c.b16 %v4968_v7, %v4954_v59  ;;  %v5158_v57 = vsel %vm504_vm2, %v5157_v25, %v5156_v15  ;;  %v5163_v6 = vrot.slane %v4853_v23, 1  ;;  %v5153_v54 = vsel %vm519_vm7, %v5152_v10, %v5151_v32  ;;  %v10567_v23 = vld [vmem:[%s7645_s24 + $0x34] ss:$0 sps:$4 sm:$0x88]  }
 0x21b   : > { %v5160_v56 = vsel %vm507_vm3, %v5159_v26, %v5158_v57  ;;  %v5166_v62 = vrot.slane %v4855_v20, 7  ;;  %v5168_v21 = vrot.slane %v4856_v4, 6  ;;  %v5155_v9 = vsel %vm522_vm8, %v5154_v38, %v5153_v54  ;;  %v10579_v22 = vld [vmem:[%s7645_s24 + $0x4c] ss:$0 sps:$4 sm:$0x88]  }
 0x21c   : > { %7001 = vmatmul.mubr.msk.bf16.gmra.mrb[52].mxu0 %vm641_vm9, %v4972_v44  ;;  %v5162_v31 = vsel %vm510_vm4, %v5161_v16, %v5160_v56  ;;  %v5515_v20 = vunpack.c.l.b16 %v10527_v58  ;;  %v5516_v4 = vunpack.c.l.b16 %v10533_v30  ;;  %v5517_v5 = vunpack.c.l.b16 %v10538_v60  ;;  %v10588_v19 = vld [vmem:[%s7645_s24 + $0x54] ss:$0 sps:$4 sm:$0x88]   ;;  %v10591_v42 = vld [vmem:[%s7645_s24 + $0x5c] ss:$0 sps:$4 sm:$0x88]  }
 0x21d   : > { %v5164_v36 = vsel %vm513_vm5, %v5163_v6, %v5162_v31  ;;  %v5518_v12 = vunpack.c.l.b16 %v10545_v61  ;;  %v5519_v49 = vunpack.c.l.b16 %v10554_v45  ;;  %v5520_v8 = vunpack.c.l.b16 %v10559_v28  ;;  %v10598_v59 = vld [vmem:[%s7645_s24 + $0x64] ss:$0 sps:$4 sm:$0x88]   ;;  %v10601_v47 = vld [vmem:[%s7645_s24 + $0x6c] ss:$0 sps:$4 sm:$0x88]  }
 0x21e   : > { %v5165_v34 = vsel %vm516_vm6, %v4854_v53, %v5164_v36  ;;  %v5521_v46 = vunpack.c.l.b16 %v10567_v23  ;;  %v5522_v10 = vunpack.c.l.b16 %v10570_v40  ;;  %v5523_v11 = vunpack.c.l.b16 %v10576_v50  ;;  %v10609_v30 = vld [vmem:[%s7645_s24 + $0x74] ss:$0 sps:$4 sm:$0x88]   ;;  %v10612_v35 = vld [vmem:[%s7645_s24 + $0x7c] ss:$0 sps:$4 sm:$0x88]  }
 0x21f   : > { %v5167_v58 = vsel %vm519_vm7, %v5166_v62, %v5165_v34  ;;  %v5524_v53 = vunpack.c.l.b16 %v10579_v22  ;;  %v5525_v41 = vunpack.c.l.b16 %v10588_v19  ;;  %v5526_v15 = vunpack.c.l.b16 %v10591_v42  ;;  %v10620_v16 = vpop.f32.mrb[7].mxu1  ;;  %v10628_v31 = vpop.f32.mrb[8].mxu0 }
 0x220   : > { %v5169_v38 = vsel %vm522_vm8, %v5168_v21, %v5167_v58  ;;  %v5527_v7 = vunpack.c.l.b16 %v10598_v59  ;;  %v5528_v13 = vunpack.c.l.b16 %v10601_v47  ;;  %v5579_v26 = vrot.slane %v5515_v20, 6  ;;  %v10633_v34 = vpop.f32.mrb[8].mxu1 }
 0x221   : > { %v5173_v60 = vpack.c.b16 %v5169_v38, %v5155_v9  ;;  %v5529_v61 = vunpack.c.l.b16 %v10609_v30  ;;  %v5530_v44 = vunpack.c.l.b16 %v10612_v35  ;;  %v5580_v32 = vrot.slane %v5516_v4, 5  ;;  %11289 = vst [vmem:[#allocation2_spill] sm:$0xff] %v10633_v34 }
 0x222   : > { %v5582_v57 = vrot.slane %v5517_v5, 4  ;;  %v5584_v6 = vrot.slane %v5518_v12, 3  ;;  %v5586_v45 = vrot.slane %v5519_v49, 2  ;;  %v5588_v54 = vrot.slane %v5520_v8, 1 }
 0x223   : > { %7015 = vmatmul.mubr.msk.bf16.gmra.mrb[52].mxu1 %vm641_vm9, %v5173_v60  ;;  %v5591_v56 = vrot.slane %v5522_v10, 7  ;;  %v5581_v62 = vsel %vm504_vm2, %v5580_v32, %v5579_v26  ;;  %v5593_v21 = vrot.slane %v5523_v11, 6  ;;  %v5594_v28 = vrot.slane %v5524_v53, 5 }
 0x224   : > { %v5596_v9 = vrot.slane %v5525_v41, 4  ;;  %v5583_v23 = vsel %vm507_vm3, %v5582_v57, %v5581_v62  ;;  %v5598_v36 = vrot.slane %v5526_v15, 3  ;;  %v5600_v50 = vrot.slane %v5527_v7, 2 }
 0x225   : > { %v5602_v22 = vrot.slane %v5528_v13, 1  ;;  %v5585_v19 = vsel %vm510_vm4, %v5584_v6, %v5583_v23  ;;  %v5595_v42 = vsel %vm504_vm2, %v5594_v28, %v5593_v21  ;;  %v5605_v58 = vrot.slane %v5530_v44, 7 }
 0x226   : > { %v5780_v59 = vrot.slane %v5515_v20, 7  ;;  %v5587_v38 = vsel %vm513_vm5, %v5586_v45, %v5585_v19  ;;  %v5597_v30 = vsel %vm507_vm3, %v5596_v9, %v5595_v42  ;;  %v5781_v60 = vrot.slane %v5516_v4, 6  ;;  %v10647_v45 = vld [vmem:[%s7645_s24 + $0x84] ss:$0 sps:$4 sm:$0x88]   ;;  %v10660_v42 = vpop.f32.mrb[9].mxu0 }
 0x227   : > { %v5783_v26 = vrot.slane %v5517_v5, 5  ;;  %v5589_v32 = vsel %vm516_vm6, %v5588_v54, %v5587_v38  ;;  %v5599_v57 = vsel %vm510_vm4, %v5598_v36, %v5597_v30  ;;  %v5785_v62 = vrot.slane %v5518_v12, 4  ;;  %v10653_v12 = vld [vmem:[%s7645_s24 + $0x8c] ss:$0 sps:$4 sm:$0x88]   ;;  %v10667_v30 = vpop.f32.mrb[9].mxu1 }
 0x228   : > { %v5787_v6 = vrot.slane %v5519_v49, 3  ;;  %v5590_v21 = vsel %vm519_vm7, %v5521_v46, %v5589_v32  ;;  %v5601_v28 = vsel %vm513_vm5, %v5600_v50, %v5599_v57  ;;  %v5782_v20 = vsel %vm504_vm2, %v5781_v60, %v5780_v59  ;;  %v10665_v38 = vld [vmem:[%s7645_s24 + $0x9c] ss:$0 sps:$4 sm:$0x88]   ;;  %v10742_v35 = vpop.f32.mrb[10].mxu1 }
 0x229   : > { %v5789_v23 = vrot.slane %v5520_v8, 2  ;;  %v5592_v4 = vsel %vm522_vm8, %v5591_v56, %v5590_v21  ;;  %v5603_v5 = vsel %vm516_vm6, %v5602_v22, %v5601_v28  ;;  %v5784_v54 = vsel %vm507_vm3, %v5783_v26, %v5782_v20  ;;  %v10658_v8 = vld [vmem:[%s7645_s24 + $0x94] ss:$0 sps:$4 sm:$0x88]  }
 0x22a   : > { %v5791_v9 = vrot.slane %v5521_v46, 1  ;;  %v5604_v49 = vsel %vm519_vm7, %v5529_v61, %v5603_v5  ;;  %v5786_v36 = vsel %vm510_vm4, %v5785_v62, %v5784_v54  ;;  %v5794_v50 = vrot.slane %v5523_v11, 7  ;;  %v10672_v32 = vld [vmem:[%s7645_s24 + $0xa4] ss:$0 sps:$4 sm:$0x88]  }
 0x22b   : > { %v5795_v19 = vrot.slane %v5524_v53, 6  ;;  %v5606_v56 = vsel %vm522_vm8, %v5605_v58, %v5604_v49  ;;  %v5788_v22 = vsel %vm513_vm5, %v5787_v6, %v5786_v36  ;;  %v5797_v59 = vrot.slane %v5525_v41, 5  ;;  %v10679_v62 = vld [vmem:[%s7645_s24 + $0xac] ss:$0 sps:$4 sm:$0x88]   ;;  %v10681_v6 = vpop.f32.mrb[10].mxu0 }
 0x22c   : > { %v5799_v46 = vrot.slane %v5526_v15, 4  ;;  %v5691_v60 = vpack.c.b16 %v5606_v56, %v5592_v4  ;;  %v5790_v11 = vsel %vm516_vm6, %v5789_v23, %v5788_v22  ;;  %v5801_v26 = vrot.slane %v5527_v7, 3  ;;  %v10689_v28 = vld [vmem:[%s7645_s24 + $0xb4] ss:$0 sps:$4 sm:$0x88]  }
 0x22d   : > { %v5796_v53 = vsel %vm504_vm2, %v5795_v19, %v5794_v50  ;;  %v5792_v58 = vsel %vm519_vm7, %v5791_v9, %v5790_v11  ;;  %v5803_v15 = vrot.slane %v5528_v13, 2  ;;  %v5805_v57 = vrot.slane %v5529_v61, 1  ;;  %v10692_v20 = vld [vmem:[%s7645_s24 + $0xbc] ss:$0 sps:$4 sm:$0x88]  }
 0x22e   : > { %v5798_v41 = vsel %vm507_vm3, %v5797_v59, %v5796_v53  ;;  %7024 = vmatprep.mubr.msk.bf16.mxu0 %vm641_vm9, %v5691_v60  ;;  %v5793_v7 = vsel %vm522_vm8, %v5522_v10, %v5792_v58  ;;  %v5531_v47 = vunpack.c.l.b16 %v10647_v45  ;;  %v5532_v13 = vunpack.c.l.b16 %v10653_v12  ;;  %v10698_v23 = vld [vmem:[%s7645_s24 + $0xc4] ss:$0 sps:$4 sm:$0x88]   ;;  %v10701_v4 = vld [vmem:[%s7645_s24 + $0xcc] ss:$0 sps:$4 sm:$0x88]  }
 0x22f   : > { %v5800_v21 = vsel %vm510_vm4, %v5799_v46, %v5798_v41  ;;  %v5533_v40 = vunpack.c.l.b16 %v10658_v8  ;;  %v5534_v10 = vunpack.c.l.b16 %v10665_v38  ;;  %v5535_v5 = vunpack.c.l.b16 %v10672_v32  ;;  %v10708_v45 = vld [vmem:[%s7645_s24 + $0xd4] ss:$0 sps:$4 sm:$0x88]   ;;  %v10711_v9 = vld [vmem:[%s7645_s24 + $0xdc] ss:$0 sps:$4 sm:$0x88]  }
 0x230   : > { %v5802_v61 = vsel %vm513_vm5, %v5801_v26, %v5800_v21  ;;  %v5536_v12 = vunpack.c.l.b16 %v10679_v62  ;;  %v5537_v49 = vunpack.c.l.b16 %v10689_v28  ;;  %v11280_v36 = vunpack.c.l.b16 %v10692_v20  ;;  %v10718_v19 = vld [vmem:[%s7645_s24 + $0xe4] ss:$0 sps:$4 sm:$0x88]   ;;  %v10721_v8 = vld [vmem:[%s7645_s24 + $0xec] ss:$0 sps:$4 sm:$0x88]  }
 0x231   : > { %v5804_v54 = vsel %vm516_vm6, %v5803_v15, %v5802_v61  ;;  %v5539_v56 = vunpack.c.l.b16 %v10698_v23  ;;  %v5540_v22 = vunpack.c.l.b16 %v10701_v4  ;;  %v10731_v38 = vld [vmem:[%s7645_s24 + $0xf4] ss:$0 sps:$4 sm:$0x88]   ;;  %v10734_v60 = vld [vmem:[%s7645_s24 + $0xfc] ss:$0 sps:$4 sm:$0x88]   ;;  %v5541_v11 = vunpack.c.l.b16 %v10708_v45 }
 0x232   : > { %v5806_v50 = vsel %vm519_vm7, %v5805_v57, %v5804_v54  ;;  %v5542_v53 = vunpack.c.l.b16 %v10711_v9  ;;  %v5543_v58 = vunpack.c.l.b16 %v10718_v19  ;;  %v5544_v41 = vunpack.c.l.b16 %v10721_v8  ;;  %v10755_v26 = vpop.f32.mrb[11].mxu1 }
 0x233   : > { %v5807_v46 = vsel %vm522_vm8, %v5530_v44, %v5806_v50  ;;  %v5607_v15 = vrot.slane %v5531_v47, 6  ;;  %v5545_v44 = vunpack.c.l.b16 %v10731_v38  ;;  %v5546_v57 = vunpack.c.l.b16 %v10734_v60  ;;  %v10750_v50 = vpop.f32.mrb[11].mxu0 }
 0x234   : > { %v5892_v32 = vpack.c.b16 %v5807_v46, %v5793_v7  ;;  %v5608_v62 = vrot.slane %v5532_v13, 5  ;;  %v5610_v21 = vrot.slane %v5533_v40, 4  ;;  %v5612_v28 = vrot.slane %v5534_v10, 3 }
 0x235   : > { %v5614_v61 = vrot.slane %v5535_v5, 2  ;;  %v5616_v23 = vrot.slane %v5536_v12, 1  ;;  %v5619_v7 = vrot.slane %v11280_v36, 7  ;;  %v5621_v54 = vrot.slane %v5539_v56, 6 }
 0x236   : > { %7038 = vmatprep.mubr.msk.bf16.mxu1 %vm641_vm9, %v5892_v32  ;;  %v5609_v4 = vsel %vm504_vm2, %v5608_v62, %v5607_v15  ;;  %v5622_v45 = vrot.slane %v5540_v22, 5  ;;  %v5624_v9 = vrot.slane %v5541_v11, 4  ;;  %v5626_v46 = vrot.slane %v5542_v53, 3 }
 0x237   : > { %v5611_v19 = vsel %vm507_vm3, %v5610_v21, %v5609_v4  ;;  %v5628_v38 = vrot.slane %v5543_v58, 2  ;;  %v5630_v32 = vrot.slane %v5544_v41, 1  ;;  %v5633_v15 = vrot.slane %v5546_v57, 7 }
 0x238   : > { %v5613_v59 = vsel %vm510_vm4, %v5612_v28, %v5611_v19  ;;  %v5623_v25 = vsel %vm504_vm2, %v5622_v45, %v5621_v54  ;;  %v5808_v62 = vrot.slane %v5531_v47, 7  ;;  %v5809_v4 = vrot.slane %v5532_v13, 6 }
 0x239   : > { %v5615_v52 = vsel %vm513_vm5, %v5614_v61, %v5613_v59  ;;  %v5625_v21 = vsel %vm507_vm3, %v5624_v9, %v5623_v25  ;;  %v5811_v51 = vrot.slane %v5533_v40, 5  ;;  %v5813_v36 = vrot.slane %v5534_v10, 4  ;;  %v10769_v59 = vld [vmem:[%s7645_s24 + $0x104] ss:$0 sps:$4 sm:$0x88]  }
 0x23a   : > { %v5617_v43 = vsel %vm516_vm6, %v5616_v23, %v5615_v52  ;;  %v5627_v1 = vsel %vm510_vm4, %v5626_v46, %v5625_v21  ;;  %v5815_v28 = vrot.slane %v5535_v5, 3  ;;  %v5810_v47 = vsel %vm504_vm2, %v5809_v4, %v5808_v62  ;;  %v10775_v10 = vld [vmem:[%s7645_s24 + $0x10c] ss:$0 sps:$4 sm:$0x88]   ;;  %v10782_v23 = vpop.f32.mrb[12].mxu0 }
 0x23b   : > { %v5618_v54 = vsel %vm519_vm7, %v5537_v49, %v5617_v43  ;;  %v5629_v45 = vsel %vm513_vm5, %v5628_v38, %v5627_v1  ;;  %v5817_v19 = vrot.slane %v5536_v12, 2  ;;  %v5812_v52 = vsel %vm507_vm3, %v5811_v51, %v5810_v47  ;;  %v10780_v12 = vld [vmem:[%s7645_s24 + $0x114] ss:$0 sps:$4 sm:$0x88]   ;;  %v10789_v38 = vpop.f32.mrb[12].mxu1 }
 0x23c   : > { %v5620_v25 = vsel %vm522_vm8, %v5619_v7, %v5618_v54  ;;  %v5631_v13 = vsel %vm516_vm6, %v5630_v32, %v5629_v45  ;;  %v5819_v40 = vrot.slane %v5537_v49, 1  ;;  %v5814_v1 = vsel %vm510_vm4, %v5813_v36, %v5812_v52  ;;  %v10787_v46 = vld [vmem:[%s7645_s24 + $0x11c] ss:$0 sps:$4 sm:$0x88]   ;;  %11290 = vst [vmem:[#allocation3_spill] sm:$0xff] %v10789_v38 }
 0x23d   : > { %v5632_v5 = vsel %vm519_vm7, %v5545_v44, %v5631_v13  ;;  %v5822_v43 = vrot.slane %v5539_v56, 7  ;;  %v5823_v61 = vrot.slane %v5540_v22, 6  ;;  %v5816_v9 = vsel %vm513_vm5, %v5815_v28, %v5814_v1  ;;  %v10794_v62 = vld [vmem:[%s7645_s24 + $0x124] ss:$0 sps:$4 sm:$0x88]   ;;  %v10803_v28 = vpop.f32.mrb[13].mxu0 }
 0x23e   : > { %v5634_v7 = vsel %vm522_vm8, %v5633_v15, %v5632_v5  ;;  %v5825_v51 = vrot.slane %v5541_v11, 5  ;;  %v5827_v49 = vrot.slane %v5542_v53, 4  ;;  %v5818_v56 = vsel %vm516_vm6, %v5817_v19, %v5816_v9  ;;  %v10801_v4 = vld [vmem:[%s7645_s24 + $0x12c] ss:$0 sps:$4 sm:$0x88]  }
 0x23f   : > { %v5692_v36 = vpack.c.b16 %v5634_v7, %v5620_v25  ;;  %v5824_v22 = vsel %vm504_vm2, %v5823_v61, %v5822_v43  ;;  %v5829_v32 = vrot.slane %v5543_v58, 3  ;;  %v5820_v15 = vsel %vm519_vm7, %v5819_v40, %v5818_v56  ;;  %v10811_v47 = vld [vmem:[%s7645_s24 + $0x134] ss:$0 sps:$4 sm:$0x88]  }
 0x240   : > { %v5826_v11 = vsel %vm507_vm3, %v5825_v51, %v5824_v22  ;;  %v5831_v53 = vrot.slane %v5544_v41, 2  ;;  %v5833_v21 = vrot.slane %v5545_v44, 1  ;;  %v11291_v58 = vunpack.c.l.b16 %v10692_v20  ;;  %v10814_v19 = vld [vmem:[%s7645_s24 + $0x13c] ss:$0 sps:$4 sm:$0x88]  }
 0x241   : > { %7025 = vmatmul.mubr.msk.bf16.vlgmr.msra.gmra.mrb[56].mxu0 %vm641_vm9, %v5692_v36  ;;  %v5828_v45 = vsel %vm510_vm4, %v5827_v49, %v5826_v11  ;;  %v5547_v8 = vunpack.c.l.b16 %v10769_v59  ;;  %v5548_v41 = vunpack.c.l.b16 %v10775_v10  ;;  %v10820_v25 = vld [vmem:[%s7645_s24 + $0x144] ss:$0 sps:$4 sm:$0x88]   ;;  %v10823_v13 = vld [vmem:[%s7645_s24 + $0x14c] ss:$0 sps:$4 sm:$0x88]   ;;  %v5549_v20 = vunpack.c.l.b16 %v10780_v12 }
 0x242   : > { %v5821_v54 = vsel %vm522_vm8, %v11291_v58, %v5820_v15  ;;  %v5830_v44 = vsel %vm513_vm5, %v5829_v32, %v5828_v45  ;;  %v5550_v52 = vunpack.c.l.b16 %v10787_v46  ;;  %v5551_v40 = vunpack.c.l.b16 %v10794_v62  ;;  %v10830_v59 = vld [vmem:[%s7645_s24 + $0x154] ss:$0 sps:$4 sm:$0x88]   ;;  %v10833_v1 = vld [vmem:[%s7645_s24 + $0x15c] ss:$0 sps:$4 sm:$0x88]  }
 0x243   : > { %v5832_v5 = vsel %vm516_vm6, %v5831_v53, %v5830_v44  ;;  %v5552_v10 = vunpack.c.l.b16 %v10801_v4  ;;  %v5553_v43 = vunpack.c.l.b16 %v10811_v47  ;;  %v11281_v61 = vunpack.c.l.b16 %v10814_v19  ;;  %v10840_v7 = vld [vmem:[%s7645_s24 + $0x164] ss:$0 sps:$4 sm:$0x88]   ;;  %v10843_v9 = vld [vmem:[%s7645_s24 + $0x16c] ss:$0 sps:$4 sm:$0x88]  }
 0x244   : > { %v5834_v12 = vsel %vm519_vm7, %v5833_v21, %v5832_v5  ;;  %v5555_v51 = vunpack.c.l.b16 %v10820_v25  ;;  %v5556_v49 = vunpack.c.l.b16 %v10823_v13  ;;  %v10853_v56 = vld [vmem:[%s7645_s24 + $0x174] ss:$0 sps:$4 sm:$0x88]   ;;  %v10856_v22 = vld [vmem:[%s7645_s24 + $0x17c] ss:$0 sps:$4 sm:$0x88]   ;;  %v5557_v32 = vunpack.c.l.b16 %v10830_v59 }
 0x245   : > { %v5835_v36 = vsel %vm522_vm8, %v5546_v57, %v5834_v12  ;;  %v5558_v62 = vunpack.c.l.b16 %v10833_v1  ;;  %v11292_v15 = vmax.f32 %v10272_v55, %v10279_v27  ;;  %v11282_v21 = vunpack.c.l.b16 %v10840_v7  ;;  %v10868_v4 = vpop.f32.mrb[13].mxu1  ;;  %v10876_v1 = vpop.f32.mrb[14].mxu0 }
 0x246   : > { %v5893_v53 = vpack.c.b16 %v5835_v36, %v5821_v54  ;;  %v11283_v60 = vunpack.c.l.b16 %v10843_v9  ;;  %v5635_v57 = vrot.slane %v5547_v8, 6  ;;  %11294 = vst [vmem:[#allocation5_spill] sm:$0xff] %v10868_v4  ;;  %v5562_v45 = vunpack.c.l.b16 %v10856_v22  ;;  %v10883_v46 = vpop.f32.mrb[14].mxu1 }
 0x247   : > { %v10864_v11 = vmax.f32 %v11292_v15, %v10628_v31  ;;  %v5636_v47 = vrot.slane %v5548_v41, 5  ;;  %v5638_v44 = vrot.slane %v5549_v20, 4  ;;  %v5640_v25 = vrot.slane %v5550_v52, 3  ;;  %11295 = vst [vmem:[#allocation6_spill] sm:$0xff] %v10883_v46 }
 0x248   : > { %7039 = vmatmul.mubr.msk.bf16.vlgmr.msra.gmra.mrb[56].mxu1 %vm641_vm9, %v5893_v53  ;;  %v5642_v55 = vrot.slane %v5551_v40, 2  ;;  %v5644_v27 = vrot.slane %v5552_v10, 1  ;;  %v5647_v31 = vrot.slane %v11281_v61, 7  ;;  %v5649_v13 = vrot.slane %v5555_v51, 6 }
 0x249   : > { %11293 = vst [vmem:[#allocation4_spill] sm:$0xff] %v10864_v11  ;;  %v5637_v54 = vsel %vm504_vm2, %v5636_v47, %v5635_v57  ;;  %v5650_v5 = vrot.slane %v5556_v49, 5  ;;  %v5652_v59 = vrot.slane %v5557_v32, 4  ;;  %v5654_v36 = vrot.slane %v5558_v62, 3 }
 0x24a   : > { %v5639_v12 = vsel %vm507_vm3, %v5638_v44, %v5637_v54  ;;  %v5656_v15 = vrot.slane %v11282_v21, 2  ;;  %v5658_v53 = vrot.slane %v11283_v60, 1  ;;  %v5661_v47 = vrot.slane %v5562_v45, 7 }
 0x24b   : > { %v5641_v61 = vsel %vm510_vm4, %v5640_v25, %v5639_v12  ;;  %v5651_v57 = vsel %vm504_vm2, %v5650_v5, %v5649_v13  ;;  %v5836_v58 = vrot.slane %v5547_v8, 7  ;;  %v5837_v21 = vrot.slane %v5548_v41, 6 }
 0x24c   : > { %v5643_v44 = vsel %vm513_vm5, %v5642_v55, %v5641_v61  ;;  %v5653_v54 = vsel %vm507_vm3, %v5652_v59, %v5651_v57  ;;  %v5839_v4 = vrot.slane %v5549_v20, 5  ;;  %v5841_v38 = vrot.slane %v5550_v52, 4  ;;  %v10897_v61 = vld [vmem:[%s7645_s24 + $0x184] ss:$0 sps:$4 sm:$0x88]  }
 0x24d   : > { %v5645_v60 = vsel %vm516_vm6, %v5644_v27, %v5643_v44  ;;  %v5655_v46 = vsel %vm510_vm4, %v5654_v36, %v5653_v54  ;;  %v5843_v25 = vrot.slane %v5551_v40, 3  ;;  %v5838_v8 = vsel %vm504_vm2, %v5837_v21, %v5836_v58  ;;  %v10903_v52 = vld [vmem:[%s7645_s24 + $0x18c] ss:$0 sps:$4 sm:$0x88]   ;;  %v10905_v40 = vpop.f32.mrb[15].mxu0 }
 0x24e   : > { %v5646_v12 = vsel %vm519_vm7, %v5553_v43, %v5645_v60  ;;  %v5657_v13 = vsel %vm513_vm5, %v5656_v15, %v5655_v46  ;;  %v5845_v5 = vrot.slane %v5552_v10, 2  ;;  %v5840_v20 = vsel %vm507_vm3, %v5839_v4, %v5838_v8  ;;  %v10907_v60 = vpop.f32.mrb[15].mxu1  ;;  %v10914_v59 = vld [vmem:[%s7645_s24 + $0x194] ss:$0 sps:$4 sm:$0x88]   ;;  %v10916_v36 = vpop.f32.mrb[16].mxu0 }
 0x24f   : > { %v5648_v55 = vsel %vm522_vm8, %v5647_v31, %v5646_v12  ;;  %v5659_v41 = vsel %vm516_vm6, %v5658_v53, %v5657_v13  ;;  %v5847_v27 = vrot.slane %v5553_v43, 1  ;;  %v11296_v46 = vunpack.c.l.b16 %v10853_v56  ;;  %v10921_v57 = vld [vmem:[%s7645_s24 + $0x19c] ss:$0 sps:$4 sm:$0x88]   ;;  %v10923_v44 = vpop.f32.mrb[16].mxu1 }
 0x250   : > { %v5842_v21 = vsel %vm510_vm4, %v5841_v38, %v5840_v20  ;;  %v5850_v58 = vrot.slane %v5555_v51, 7  ;;  %v5851_v31 = vrot.slane %v5556_v49, 6  ;;  %v5853_v15 = vrot.slane %v5557_v32, 5  ;;  %11297 = vst [vmem:[#allocation7_spill] sm:$0xff] %v10923_v44  ;;  %v10934_v32 = vpop.f32.mrb[17].mxu1 }
 0x251   : > { %v5660_v10 = vsel %vm519_vm7, %v11296_v46, %v5659_v41  ;;  %v5844_v4 = vsel %vm513_vm5, %v5843_v25, %v5842_v21  ;;  %v5855_v53 = vrot.slane %v5558_v62, 4  ;;  %v11298_v49 = vunpack.c.l.b16 %v10840_v7  ;;  %v10932_v25 = vpop.f32.mrb[17].mxu0  ;;  %11300 = vst [vmem:[#allocation9_spill] sm:$0xff] %v10934_v32  ;;  %v10943_v7 = vld [vmem:[%s7645_s24 + $0x1ac] ss:$0 sps:$4 sm:$0x88]  }
 0x252   : > { %v5662_v43 = vsel %vm522_vm8, %v5661_v47, %v5660_v10  ;;  %v5846_v38 = vsel %vm516_vm6, %v5845_v5, %v5844_v4  ;;  %v5852_v51 = vsel %vm504_vm2, %v5851_v31, %v5850_v58  ;;  %v10930_v47 = vld [vmem:[%s7645_s24 + $0x1a4] ss:$0 sps:$4 sm:$0x88]   ;;  %11299 = vst [vmem:[#allocation8_spill] sm:$0xff] %v10932_v25  ;;  %v11301_v8 = vunpack.c.l.b16 %v10843_v9  ;;  %v10945_v20 = vpop.f32.mrb[18].mxu0 }
 0x253   : > { %v5693_v54 = vpack.c.b16 %v5662_v43, %v5648_v55  ;;  %v5857_v12 = vrot.slane %v11298_v49, 3  ;;  %v5848_v62 = vsel %vm519_vm7, %v5847_v27, %v5846_v38  ;;  %v5854_v13 = vsel %vm507_vm3, %v5853_v15, %v5852_v51  ;;  %11303 = vst [vmem:[#allocation10_spill] sm:$0xff] %v10945_v20  ;;  %v10953_v21 = vld [vmem:[%s7645_s24 + $0x1b4] ss:$0 sps:$4 sm:$0x88]  }
 0x254   : > { %v5859_v5 = vrot.slane %v11301_v8, 2  ;;  %v11302_v55 = vmov %v11296_v46  ;;  %v11304_v46 = vunpack.c.l.b16 %v10814_v19  ;;  %v5856_v10 = vsel %vm510_vm4, %v5855_v53, %v5854_v13  ;;  %v10956_v9 = vld [vmem:[%s7645_s24 + $0x1bc] ss:$0 sps:$4 sm:$0x88]  }
 0x255   : > { %v5861_v41 = vrot.slane %v11302_v55, 1  ;;  %7028 = vmatprep.mubr.msk.bf16.mxu0 %vm641_vm9, %v5693_v54  ;;  %v5563_v56 = vunpack.c.l.b16 %v10897_v61  ;;  %v11284_v58 = vunpack.c.l.b16 %v10903_v52  ;;  %v5858_v31 = vsel %vm513_vm5, %v5857_v12, %v5856_v10  ;;  %v10962_v43 = vld [vmem:[%s7645_s24 + $0x1c4] ss:$0 sps:$4 sm:$0x88]   ;;  %v11012_v12 = vpop.f32.mrb[19].mxu0 }
 0x256   : > { %v5849_v27 = vsel %vm522_vm8, %v11304_v46, %v5848_v62  ;;  %v10965_v4 = vld [vmem:[%s7645_s24 + $0x1cc] ss:$0 sps:$4 sm:$0x88]   ;;  %v5565_v19 = vunpack.c.l.b16 %v10914_v59  ;;  %v11285_v15 = vunpack.c.l.b16 %v10921_v57  ;;  %v11286_v53 = vunpack.c.l.b16 %v10930_v47  ;;  %v10972_v61 = vld [vmem:[%s7645_s24 + $0x1d4] ss:$0 sps:$4 sm:$0x88]  }
 0x257   : > { %v5860_v54 = vsel %vm516_vm6, %v5859_v5, %v5858_v31  ;;  %v10975_v38 = vld [vmem:[%s7645_s24 + $0x1dc] ss:$0 sps:$4 sm:$0x88]   ;;  %v10982_v62 = vld [vmem:[%s7645_s24 + $0x1e4] ss:$0 sps:$4 sm:$0x88]   ;;  %v11305_v49 = vmax.f32 %v10293_v24, %v10353_v14 }
 0x258   : > { %v5862_v59 = vsel %vm519_vm7, %v5861_v41, %v5860_v54  ;;  %v10985_v13 = vld [vmem:[%s7645_s24 + $0x1ec] ss:$0 sps:$4 sm:$0x88]   ;;  %v10995_v10 = vld [vmem:[%s7645_s24 + $0x1f4] ss:$0 sps:$4 sm:$0x88]   ;;  %v11311_v54 = vunpack.c.l.b16 %v10956_v9 }
 0x259   : > { %v5863_v46 = vsel %vm522_vm8, %v5562_v45, %v5862_v59  ;;  %v10998_v31 = vld [vmem:[%s7645_s24 + $0x1fc] ss:$0 sps:$4 sm:$0x88]   ;;  %v11006_v5 = vmax.f32 %v11305_v49, %v10660_v42  ;;  %v5663_v45 = vrot.slane %v5563_v56, 6  ;;  %v11010_v59 = vpop.f32.mrb[18].mxu1  ;;  %11307 = vst [vmem:[#allocation12_spill] sm:$0xff] %v11012_v12 }
 0x25a   : > { %v5894_v8 = vpack.c.b16 %v5863_v46, %v5849_v27  ;;  %11306 = vst [vmem:[#allocation11_spill] sm:$0xff] %v11010_v59  ;;  %v5664_v51 = vrot.slane %v11284_v58, 5  ;;  %v5666_v24 = vrot.slane %v5565_v19, 4  ;;  %v11018_v14 = vpop.f32.mrb[19].mxu1  ;;  %v11020_v42 = vpop.f32.mrb[20].mxu0  ;;  %v5668_v27 = vrot.slane %v11285_v15, 3 }
 0x25b   : > { %11308 = vst [vmem:[#allocation13_spill] sm:$0xff] %v11018_v14  ;;  %11309 = vst [vmem:[#allocation14_spill] sm:$0xff] %v11020_v42  ;;  %v5670_v49 = vrot.slane %v11286_v53, 2  ;;  %v11310_v46 = vunpack.c.l.b16 %v10943_v7  ;;  %v5675_v22 = vrot.slane %v11311_v54, 7  ;;  %v11031_v58 = vpop.f32.mrb[20].mxu1  ;;  %v11033_v55 = vpop.f32.mrb[21].mxu0  ;;  %v11315_v15 = vunpack.c.l.b16 %v10965_v4 }
 0x25c   : > { %7042 = vmatprep.mubr.msk.bf16.mxu1 %vm641_vm9, %v5894_v8  ;;  %11312 = vst [vmem:[#allocation15_spill] sm:$0xff] %v11031_v58  ;;  %11313 = vst [vmem:[#allocation16_spill] sm:$0xff] %v11033_v55  ;;  %v5665_v14 = vsel %vm504_vm2, %v5664_v51, %v5663_v45  ;;  %v11314_v8 = vunpack.c.l.b16 %v10962_v43  ;;  %v11316_v53 = vunpack.c.l.b16 %v10972_v61  ;;  %v11042_v44 = vpop.f32.mrb[21].mxu1  ;;  %v11319_v58 = vunpack.c.l.b16 %v10975_v38 }
 0x25d   : > { %v5672_v41 = vrot.slane %v11310_v46, 1  ;;  %v5678_v32 = vrot.slane %v11315_v15, 5  ;;  %11317 = vst [vmem:[#allocation17_spill] sm:$0xff] %v11042_v44  ;;  %v11044_v46 = vpop.f32.mrb[22].mxu0  ;;  %v5667_v54 = vsel %vm507_vm3, %v5666_v24, %v5665_v14  ;;  %v11320_v51 = vunpack.c.l.b16 %v10982_v62  ;;  %v11053_v20 = vpop.f32.mrb[22].mxu1 }
 0x25e   : > { %v5677_v59 = vrot.slane %v11314_v8, 6  ;;  %v5680_v42 = vrot.slane %v11316_v53, 4  ;;  %11318 = vst [vmem:[#allocation18_spill] sm:$0xff] %v11044_v46  ;;  %v5682_v55 = vrot.slane %v11319_v58, 3  ;;  %v11321_v8 = vunpack.c.l.b16 %v10985_v13  ;;  %11322 = vst [vmem:[#allocation19_spill] sm:$0xff] %v11053_v20  ;;  %v11055_v15 = vpop.f32.mrb[23].mxu0 }
 0x25f   : > { %v5684_v45 = vrot.slane %v11320_v51, 2  ;;  %11323 = vst [vmem:[#allocation20_spill] sm:$0xff] %v11055_v15  ;;  %v5669_v53 = vsel %vm510_vm4, %v5668_v27, %v5667_v54  ;;  %v11324_v46 = vunpack.c.l.b16 %v10998_v31  ;;  %v5864_v14 = vrot.slane %v5563_v56, 7  ;;  %v11061_v25 = vpop.f32.mrb[23].mxu1  ;;  %v11063_v58 = vpop.f32.mrb[24].mxu0 }
 0x260   : > { %v5686_v12 = vrot.slane %v11321_v8, 1  ;;  %v5679_v44 = vsel %vm504_vm2, %v5678_v32, %v5677_v59  ;;  %v5671_v51 = vsel %vm513_vm5, %v5670_v49, %v5669_v53  ;;  %v11325_v20 = vunpack.c.l.b16 %v10903_v52  ;;  %v11069_v11 = vpop.f32.mrb[24].mxu1  ;;  %v11071_v27 = vpop.f32.mrb[25].mxu0 }
 0x261   : > { %v5689_v24 = vrot.slane %v11324_v46, 7  ;;  %v5681_v8 = vsel %vm507_vm3, %v5680_v42, %v5679_v44  ;;  %v5867_v15 = vrot.slane %v5565_v19, 5  ;;  %v5673_v32 = vsel %vm516_vm6, %v5672_v41, %v5671_v51  ;;  %v11079_v53 = vpop.f32.mrb[25].mxu1  ;;  %v11081_v44 = vpop.f32.mrb[26].mxu0 }
 0x262   : > { %v5865_v34 = vrot.slane %v11325_v20, 6  ;;  %v5683_v56 = vsel %vm510_vm4, %v5682_v55, %v5681_v8  ;;  %v11326_v59 = vunpack.c.l.b16 %v10921_v57  ;;  %v11327_v54 = vunpack.c.l.b16 %v10930_v47  ;;  %v11090_v57 = vpop.f32.mrb[26].mxu1  ;;  %v11092_v51 = vpop.f32.mrb[27].mxu0 }
 0x263   : > { %v11328_v52 = vunpack.c.l.b16 %v10953_v21  ;;  %v5685_v19 = vsel %vm513_vm5, %v5684_v45, %v5683_v56  ;;  %v11329_v55 = vunpack.c.l.b16 %v10943_v7  ;;  %v11101_v45 = vpop.f32.mrb[28].mxu0  ;;  %v11332_v56 = vunpack.c.l.b16 %v10962_v43 }
 0x264   : > { %v5869_v46 = vrot.slane %v11326_v59, 4  ;;  %v5871_v49 = vrot.slane %v11327_v54, 3  ;;  %v5866_v41 = vsel %vm504_vm2, %v5865_v34, %v5864_v14  ;;  %v5687_v8 = vsel %vm516_vm6, %v5686_v12, %v5685_v19  ;;  %v11113_v21 = vpop.f32.mrb[29].mxu0 }
 0x265   : > { %v5674_v20 = vsel %vm519_vm7, %v11328_v52, %v5673_v32  ;;  %v5873_v42 = vrot.slane %v11329_v55, 2  ;;  %v5868_v59 = vsel %vm507_vm3, %v5867_v15, %v5866_v41  ;;  %v11330_v54 = vmov %v11328_v52  ;;  %v11099_v52 = vpop.f32.mrb[27].mxu1  ;;  %v11123_v43 = vpop.f32.mrb[30].mxu0 }
 0x266   : > { %v5676_v47 = vsel %vm522_vm8, %v5675_v22, %v5674_v20  ;;  %v5875_v32 = vrot.slane %v11330_v54, 1  ;;  %v11331_v34 = vunpack.c.l.b16 %v10995_v10  ;;  %v5870_v14 = vsel %vm510_vm4, %v5869_v46, %v5868_v59  ;;  %v11111_v15 = vpop.f32.mrb[28].mxu1 }
 0x267   : > { %v5878_v22 = vrot.slane %v11332_v56, 7  ;;  %v11333_v12 = vunpack.c.l.b16 %v10965_v4  ;;  %v5872_v41 = vsel %vm513_vm5, %v5871_v49, %v5870_v14  ;;  %v11334_v55 = vunpack.c.l.b16 %v10972_v61  ;;  %v11121_v59 = vpop.f32.mrb[29].mxu1  ;;  %v11131_v49 = vpop.f32.mrb[31].mxu0 }
 0x268   : > { %v5688_v7 = vsel %vm519_vm7, %v11331_v34, %v5687_v8  ;;  %v11335_v8 = vunpack.c.l.b16 %v10975_v38  ;;  %v5874_v34 = vsel %vm516_vm6, %v5873_v42, %v5872_v41  ;;  %v11337_v14 = vunpack.c.l.b16 %v10985_v13 }
 0x269   : > { %v5879_v20 = vrot.slane %v11333_v12, 6  ;;  %v5690_v19 = vsel %vm522_vm8, %v5689_v24, %v5688_v7  ;;  %v5881_v54 = vrot.slane %v11334_v55, 5  ;;  %v11336_v12 = vunpack.c.l.b16 %v10982_v62  ;;  %v11129_v7 = vpop.f32.mrb[30].mxu1 }
 0x26a   : > { %v5883_v46 = vrot.slane %v11335_v8, 4  ;;  %v5694_v4 = vpack.c.b16 %v5690_v19, %v5676_v47  ;;  %v5876_v61 = vsel %vm519_vm7, %v5875_v32, %v5874_v34  ;;  %v5887_v55 = vrot.slane %v11337_v14, 2  ;;  %v11139_v42 = vpop.f32.mrb[31].mxu1  ;;  %v11350_v14 = vld [vmem:[#allocation4_spill] sm:$0xff] }
 0x26b   : > { %v5880_v56 = vsel %vm504_vm2, %v5879_v20, %v5878_v22  ;;  %v5885_v24 = vrot.slane %v11336_v12, 3  ;;  %v11338_v47 = vunpack.c.l.b16 %v10995_v10  ;;  %v11141_v22 = vpop.f32.mrb[32].mxu0  ;;  %v11339_v62 = vunpack.c.l.b16 %v10956_v9 }
 0x26c   : > { %v5882_v38 = vsel %vm507_vm3, %v5881_v54, %v5880_v56  ;;  %7029 = vmatmul.mubr.msk.bf16.gmra.mrb[60].mxu0 %vm641_vm9, %v5694_v4  ;;  %v1641_v41 = vmax.f32 %v11006_v5, %v10667_v30  ;;  %v11340_v13 = vmax.f32 %v10367_v3, %v10378_v18  ;;  %v11154_v54 = vpop.f32.mrb[32].mxu1  ;;  %v11156_v8 = vpop.f32.mrb[33].mxu0  ;;  %v11341_v9 = vmax.f32 %v10411_v2, %v10423_v39 }
 0x26d   : > { %v5889_v19 = vrot.slane %v11338_v47, 1  ;;  %v5877_v20 = vsel %vm522_vm8, %v11339_v62, %v5876_v61  ;;  %v5884_v32 = vsel %vm510_vm4, %v5883_v46, %v5882_v38  ;;  %v11342_v30 = vmax.f32 %v10443_v0, %v10502_v63  ;;  %v6943_v46 = vpop.f32.mrb[34].mxu0 }
 0x26e   : > { %v1443_v10 = vmax.f32 %v11340_v13, %v10681_v6  ;;  %v5886_v4 = vsel %vm513_vm5, %v5885_v24, %v5884_v32  ;;  %v1441_v34 = vmax.f32 %v11341_v9, %v10750_v50  ;;  %v11343_v3 = vmax.f32 %v10510_v17, %v10515_v33  ;;  %v11171_v6 = vpop.f32.mrb[33].mxu1  ;;  %v3578_v17 = vpop.f32.mrb[35].mxu0  ;;  %v11353_v13 = vld [vmem:[#allocation8_spill] sm:$0xff] }
 0x26f   : > { %v1446_v5 = vmax.f32 %v11342_v30, %v10782_v23  ;;  %v5888_v56 = vsel %vm516_vm6, %v5887_v55, %v5886_v4  ;;  %v11344_v2 = vmax.f32 %v10540_v29, %v10547_v37  ;;  %v11345_v0 = vmax.f32 %v10561_v48, %v10620_v16  ;;  %v11183_v50 = vpop.f32.mrb[34].mxu1  ;;  %v6946_v29 = vpop.f32.mrb[36].mxu0  ;;  %v11349_v48 = vld [vmem:[#allocation6_spill] sm:$0xff] }
 0x270   : > { %v1444_v18 = vmax.f32 %v11343_v3, %v10803_v28  ;;  %v1644_v12 = vmax.f32 %v1443_v10, %v10742_v35  ;;  %v5890_v33 = vsel %vm519_vm7, %v5889_v19, %v5888_v56  ;;  %v1642_v23 = vmax.f32 %v1441_v34, %v10755_v26  ;;  %v11346_v28 = vld [vmem:[#allocation3_spill] sm:$0xff]  ;;  %v11347_v35 = vld [vmem:[#allocation5_spill] sm:$0xff]  ;;  %v11189_v38 = vpop.f32.mrb[35].mxu1  ;;  %v11351_v55 = vld [vmem:[#allocation2_spill] sm:$0xff]  ;;  %v3591_v62 = vpop.f32.mrb[37].mxu0 }
 0x271   : > { %v1447_v39 = vmax.f32 %v11344_v2, %v10876_v1  ;;  %v1445_v63 = vmax.f32 %v11345_v0, %v10905_v40  ;;  %v1647_v24 = vmax.f32 %v1446_v5, %v11346_v28  ;;  %v11348_v37 = vunpack.c.l.b16 %v10998_v31  ;;  %v11200_v19 = vpop.f32.mrb[36].mxu1  ;;  %v11354_v4 = vld [vmem:[#allocation10_spill] sm:$0xff]  ;;  %v11355_v31 = vld [vmem:[#allocation12_spill] sm:$0xff]  ;;  %v6947_v5 = vpop.f32.mrb[38].mxu0  ;;  %v11356_v3 = vld [vmem:[#allocation7_spill] sm:$0xff] }
 0x272   : > { %v1645_v61 = vmax.f32 %v1444_v18, %v11347_v35  ;;  %v11352_v47 = vmax.f32 %v11350_v14, %v11351_v55  ;;  %v2162_v10 = vmax.f32 %v1641_v41, %v11353_v13  ;;  %v2165_v9 = vmax.f32 %v1644_v12, %v11354_v4  ;;  %v11205_v30 = vpop.f32.mrb[37].mxu1  ;;  %v11357_v18 = vld [vmem:[#allocation14_spill] sm:$0xff]  ;;  %v11358_v2 = vld [vmem:[#allocation16_spill] sm:$0xff]  ;;  %v11360_v41 = vld [vmem:[#allocation9_spill] sm:$0xff] }
 0x273   : > { %v5891_v1 = vsel %vm522_vm8, %v11348_v37, %v5890_v33  ;;  %v1648_v16 = vmax.f32 %v1447_v39, %v11349_v48  ;;  %v1646_v40 = vmax.f32 %v1445_v63, %v10907_v60  ;;  %v2163_v34 = vmax.f32 %v1642_v23, %v11355_v31  ;;  %v11211_v63 = vpop.f32.mrb[38].mxu1  ;;  %v11361_v33 = vld [vmem:[#allocation11_spill] sm:$0xff]  ;;  %v11362_v28 = vld [vmem:[#allocation13_spill] sm:$0xff]  ;;  %v11363_v37 = vld [vmem:[#allocation20_spill] sm:$0xff] }
 0x274   : > { %v2164_v26 = vmax.f32 %v11352_v47, %v10916_v36  ;;  %v5895_v32 = vpack.c.b16 %v5891_v1, %v5877_v20  ;;  %v2168_v56 = vmax.f32 %v1647_v24, %v11357_v18  ;;  %v2166_v39 = vmax.f32 %v1645_v61, %v11358_v2  ;;  %v11359_v36 = vld [vmem:[#allocation18_spill] sm:$0xff]  ;;  %v3594_v20 = vpop.f32.mrb[39].mxu0  ;;  %v3795_v48 = vpop.f32.mrb[39].mxu1  ;;  %v11364_v14 = vld [vmem:[#allocation15_spill] sm:$0xff]  ;;  %v11365_v55 = vld [vmem:[#allocation17_spill] sm:$0xff] }
 0x275   : > { %v2169_v0 = vmax.f32 %v1648_v16, %v11359_v36  ;;  %v2363_v12 = vmax.f32 %v2162_v10, %v11360_v41  ;;  %v2366_v23 = vmax.f32 %v2165_v9, %v11361_v33  ;;  %v2364_v35 = vmax.f32 %v2163_v34, %v11362_v28  ;;  %v11366_v47 = vld [vmem:[#allocation19_spill] sm:$0xff] }
 0x276   : > { %v2365_v60 = vmax.f32 %v2164_v26, %v11356_v3  ;;  %7043 = vmatmul.mubr.msk.bf16.gmra.mrb[60].mxu1 %vm641_vm9, %v5895_v32  ;;  %v2167_v1 = vmax.f32 %v1646_v40, %v11363_v37  ;;  %v2369_v24 = vmax.f32 %v2168_v56, %v11364_v14  ;;  %v2367_v61 = vmax.f32 %v2166_v39, %v11365_v55 }
 0x277   : > { %v2370_v16 = vmax.f32 %v2169_v0, %v11366_v47  ;;  %v2884_v32 = vmax.f32 %v2363_v12, %v11071_v27  ;;  %v2887_v10 = vmax.f32 %v2366_v23, %v11081_v44  ;;  %v2885_v4 = vmax.f32 %v2364_v35, %v11092_v51 }
 0x278   : > { %v2886_v26 = vmax.f32 %v2365_v60, %v11063_v58  ;;  %v2368_v13 = vmax.f32 %v2167_v1, %v11061_v25  ;;  %v2890_v40 = vmax.f32 %v2369_v24, %v11101_v45  ;;  %v2888_v31 = vmax.f32 %v2367_v61, %v11113_v21 }
 0x279   : > { %v2891_v34 = vmax.f32 %v2370_v16, %v11123_v43  ;;  %v3085_v3 = vmax.f32 %v2884_v32, %v11079_v53  ;;  %v3088_v58 = vmax.f32 %v2887_v10, %v11090_v57  ;;  %v3086_v25 = vmax.f32 %v2885_v4, %v11099_v52 }
 0x27a   : > { %v3087_v9 = vmax.f32 %v2886_v26, %v11069_v11  ;;  %v2889_v27 = vmax.f32 %v2368_v13, %v11131_v49  ;;  %v3091_v44 = vmax.f32 %v2890_v40, %v11111_v15  ;;  %v3089_v51 = vmax.f32 %v2888_v31, %v11121_v59 }
 0x27b   : > { %v3092_v11 = vmax.f32 %v2891_v34, %v11129_v7  ;;  %v3606_v43 = vmax.f32 %v3085_v3, %v11156_v8  ;;  %v3609_v60 = vmax.f32 %v3088_v58, %v6943_v46  ;;  %v3607_v53 = vmax.f32 %v3086_v25, %v3578_v17 }
 0x27c   : > { %v3608_v45 = vmax.f32 %v3087_v9, %v11141_v22  ;;  %v3090_v21 = vmax.f32 %v2889_v27, %v11139_v42  ;;  %v3612_v18 = vmax.f32 %v3091_v44, %v6946_v29  ;;  %v3610_v52 = vmax.f32 %v3089_v51, %v3591_v62 }
 0x27d   : > { %v3613_v56 = vmax.f32 %v3092_v11, %v6947_v5  ;;  %v3807_v49 = vmax.f32 %v3606_v43, %v11171_v6  ;;  %v3810_v15 = vmax.f32 %v3609_v60, %v11183_v50  ;;  %v3808_v59 = vmax.f32 %v3607_v53, %v11189_v38 }
 0x27e   : > { %v3809_v57 = vmax.f32 %v3608_v45, %v11154_v54  ;;  %v3611_v7 = vmax.f32 %v3090_v21, %v3594_v20  ;;  %v3813_v22 = vmax.f32 %v3612_v18, %v11200_v19  ;;  %v3811_v42 = vmax.f32 %v3610_v52, %v11205_v30 }
 0x27f   : > { %v3814_v8 = vmax.f32 %v3613_v56, %v11211_v63 }
 0x280   : > { %v3812_v46 = vmax.f32 %v3611_v7, %v3795_v48  ;;  %v6970_v17 = vpop.f32.mrb[40].mxu0 }
 0x281   : > { %v4330_v2 = vmax.f32 %v3809_v57, %v6970_v17  ;;  %v4297_v54 = vpop.f32.mrb[41].mxu0 }
 0x282   : > { %v4328_v29 = vmax.f32 %v3807_v49, %v4297_v54  ;;  %v6971_v62 = vpop.f32.mrb[42].mxu0 }
 0x283   : > { %v4331_v5 = vmax.f32 %v3810_v15, %v6971_v62  ;;  %v4300_v39 = vpop.f32.mrb[43].mxu0 }
 0x284   : > { %v4329_v6 = vmax.f32 %v3808_v59, %v4300_v39 }
 0x287   : > { %v6984_v36 = vpop.f32.mrb[40].mxu1 }
 0x288   : > { %v4531_v50 = vmax.f32 %v4330_v2, %v6984_v36  ;;  %v4498_v0 = vpop.f32.mrb[41].mxu1 }
 0x289   : > { %v4529_v38 = vmax.f32 %v4328_v29, %v4498_v0  ;;  %v6985_v20 = vpop.f32.mrb[42].mxu1 }
 0x28a   : > { %v4532_v41 = vmax.f32 %v4331_v5, %v6985_v20  ;;  %v4501_v19 = vpop.f32.mrb[43].mxu1 }
 0x28b   : > { %v4530_v12 = vmax.f32 %v4329_v6, %v4501_v19 }
 0x2a5   : > { %v6974_v30 = vpop.f32.mrb[44].mxu0 }
 0x2a6   : > { %v4334_v33 = vmax.f32 %v3813_v22, %v6974_v30  ;;  %v4313_v63 = vpop.f32.mrb[45].mxu0 }
 0x2a7   : > { %v4332_v23 = vmax.f32 %v3811_v42, %v4313_v63  ;;  %v6975_v28 = vpop.f32.mrb[46].mxu0 }
 0x2a8   : > { %v4335_v35 = vmax.f32 %v3814_v8, %v6975_v28  ;;  %v4316_v37 = vpop.f32.mrb[47].mxu0 }
 0x2a9   : > { %v4333_v1 = vmax.f32 %v3812_v46, %v4316_v37 }
 0x2ac   : > { %v6988_v48 = vpop.f32.mrb[44].mxu1 }
 0x2ad   : > { %v4535_v14 = vmax.f32 %v4334_v33, %v6988_v48  ;;  %v4514_v24 = vpop.f32.mrb[45].mxu1 }
 0x2ae   : > { %v4533_v55 = vmax.f32 %v4332_v23, %v4514_v24  ;;  %v6989_v61 = vpop.f32.mrb[46].mxu1 }
 0x2af   : > { %v4536_v47 = vmax.f32 %v4335_v35, %v6989_v61  ;;  %v4517_v16 = vpop.f32.mrb[47].mxu1 }
 0x2b0   : > { %v4534_v26 = vmax.f32 %v4333_v1, %v4517_v16 }
 0x2ca   : > { %v6998_v13 = vpop.f32.mrb[48].mxu0 }
 0x2cb   : > { %v5052_v32 = vmax.f32 %v4531_v50, %v6998_v13  ;;  %v5019_v10 = vpop.f32.mrb[49].mxu0  ;;  %v6690_v50 = vld [vmem:[%s11278_s2] ss:$0 sm:$0xff] }
 0x2cc   : > { %v5050_v4 = vmax.f32 %v4529_v38, %v5019_v10  ;;  %v6999_v9 = vpop.f32.mrb[50].mxu0 }
 0x2cd   : > { %v5053_v40 = vmax.f32 %v4532_v41, %v6999_v9  ;;  %v5022_v31 = vpop.f32.mrb[51].mxu0 }
 0x2ce   : > { %v5051_v34 = vmax.f32 %v4530_v12, %v5022_v31 }
 0x2d1   : > { %v7012_v3 = vpop.f32.mrb[48].mxu1 }
 0x2d2   : > { %v5253_v58 = vmax.f32 %v5052_v32, %v7012_v3  ;;  %v5220_v25 = vpop.f32.mrb[49].mxu1 }
 0x2d3   : > { %v5251_v27 = vmax.f32 %v5050_v4, %v5220_v25  ;;  %v7013_v44 = vpop.f32.mrb[50].mxu1 }
 0x2d4   : > { %v5254_v51 = vmax.f32 %v5053_v40, %v7013_v44  ;;  %v5223_v11 = vpop.f32.mrb[51].mxu1 }
 0x2d5   : > { %v5252_v45 = vmax.f32 %v5051_v34, %v5223_v11 }
 0x2ef   : > { %v7002_v21 = vpop.f32.mrb[52].mxu0 }
 0x2f0   : > { %v5056_v43 = vmax.f32 %v4535_v14, %v7002_v21  ;;  %v5035_v60 = vpop.f32.mrb[53].mxu0 }
 0x2f1   : > { %v5054_v53 = vmax.f32 %v4533_v55, %v5035_v60  ;;  %v7003_v57 = vpop.f32.mrb[54].mxu0 }
 0x2f2   : > { %v5057_v18 = vmax.f32 %v4536_v47, %v7003_v57  ;;  %v5038_v52 = vpop.f32.mrb[55].mxu0 }
 0x2f3   : > { %v5055_v56 = vmax.f32 %v4534_v26, %v5038_v52 }
 0x2f6   : > { %v7016_v49 = vpop.f32.mrb[52].mxu1 }
 0x2f7   : > { %v5257_v15 = vmax.f32 %v5056_v43, %v7016_v49  ;;  %v5236_v59 = vpop.f32.mrb[53].mxu1 }
 0x2f8   : > { %v5255_v7 = vmax.f32 %v5054_v53, %v5236_v59  ;;  %v7017_v22 = vpop.f32.mrb[54].mxu1 }
 0x2f9   : > { %v5258_v42 = vmax.f32 %v5057_v18, %v7017_v22  ;;  %v5239_v8 = vpop.f32.mrb[55].mxu1 }
 0x2fa   : > { %v5256_v46 = vmax.f32 %v5055_v56, %v5239_v8 }
 0x314   : > { %v7026_v17 = vpop.f32.mrb[56].mxu0 }
 0x315   : > { %v5774_v2 = vmax.f32 %v5253_v58, %v7026_v17  ;;  %v5741_v54 = vpop.f32.mrb[57].mxu0 }
 0x316   : > { %v5772_v29 = vmax.f32 %v5251_v27, %v5741_v54  ;;  %v7027_v62 = vpop.f32.mrb[58].mxu0 }
 0x317   : > { %v5775_v5 = vmax.f32 %v5254_v51, %v7027_v62  ;;  %v5744_v39 = vpop.f32.mrb[59].mxu0 }
 0x318   : > { %v5773_v6 = vmax.f32 %v5252_v45, %v5744_v39 }
 0x31b   : > { %v7040_v36 = vpop.f32.mrb[56].mxu1 }
 0x31c   : > { %v5975_v0 = vmax.f32 %v5774_v2, %v7040_v36  ;;  %v5942_v38 = vpop.f32.mrb[57].mxu1 }
 0x31d   : > { %v5973_v20 = vmax.f32 %v5772_v29, %v5942_v38  ;;  %v7041_v41 = vpop.f32.mrb[58].mxu1 }
 0x31e   : > { %v5990_v19 = vadd.f32 %v6690_v50, %v5975_v0  ;;  %v5976_v12 = vmax.f32 %v5775_v5, %v7041_v41  ;;  %v5945_v30 = vpop.f32.mrb[59].mxu1 }
 0x31f   : > { %v5988_v33 = vadd.f32 %v6690_v50, %v5973_v20  ;;  %v5974_v63 = vmax.f32 %v5773_v6, %v5945_v30 }
 0x320   : > { %v5998_v23 = vmax.f32 %v5990_v19, 0.0  ;;  %v5991_v28 = vadd.f32 %v6690_v50, %v5976_v12 }
 0x321   : > { %v5996_v35 = vmax.f32 %v5988_v33, 0.0  ;;  %v5989_v37 = vadd.f32 %v6690_v50, %v5974_v63 }
 0x322   : > { %v6704_v1 = vpack.c.bf16 %v5998_v23, %v5998_v23  ;;  %v5999_v48 = vmax.f32 %v5991_v28, 0.0 }
 0x323   : > { %v6702_v14 = vpack.c.bf16 %v5996_v35, %v5996_v35  ;;  %v5997_v24 = vmax.f32 %v5989_v37, 0.0 }
 0x324   : > { %6039 = vst.msk [vmem:[%s11255_s21 + $0x8] sm:$0xf] %vm6036_vm10, %v6704_v1  ;;  %v6705_v55 = vpack.c.bf16 %v5999_v48, %v5999_v48 }
 0x325   : > { %6037 = vst.msk [vmem:[%s11255_s21] sm:$0xf] %vm6036_vm10, %v6702_v14  ;;  %v6703_v61 = vpack.c.bf16 %v5997_v24, %v5997_v24 }
 0x326   : > { %6040 = vst.msk [vmem:[%s11255_s21 + $0xc] sm:$0xf] %vm6036_vm10, %v6705_v55 }
 0x327   : > { %6038 = vst.msk [vmem:[%s11255_s21 + $0x4] sm:$0xf] %vm6036_vm10, %v6703_v61 }
 0x33f   : > { %v7030_v47 = vpop.f32.mrb[60].mxu0 }
 0x340   : > { %v5778_v16 = vmax.f32 %v5257_v15, %v7030_v47  ;;  %v5757_v26 = vpop.f32.mrb[61].mxu0 }
 0x341   : > { %v5776_v13 = vmax.f32 %v5255_v7, %v5757_v26  ;;  %v7031_v32 = vpop.f32.mrb[62].mxu0 }
 0x342   : > { %v5779_v10 = vmax.f32 %v5258_v42, %v7031_v32  ;;  %v5760_v4 = vpop.f32.mrb[63].mxu0 }
 0x343   : > { %v5777_v9 = vmax.f32 %v5256_v46, %v5760_v4 }
 0x349   : > { %v7044_v40 = vpop.f32.mrb[60].mxu1 }
 0x34a   : > { %v5979_v31 = vmax.f32 %v5778_v16, %v7044_v40  ;;  %v5958_v34 = vpop.f32.mrb[61].mxu1 }
 0x34b   : > { %v5977_v3 = vmax.f32 %v5776_v13, %v5958_v34  ;;  %v7045_v58 = vpop.f32.mrb[62].mxu1 }
 0x34c   : > { %v5994_v25 = vadd.f32 %v6690_v50, %v5979_v31  ;;  %v5980_v27 = vmax.f32 %v5779_v10, %v7045_v58  ;;  %v5961_v44 = vpop.f32.mrb[63].mxu1 }
 0x34d   : > { %v5992_v51 = vadd.f32 %v6690_v50, %v5977_v3  ;;  %v5978_v11 = vmax.f32 %v5777_v9, %v5961_v44 }
 0x34e   : > { %v6002_v45 = vmax.f32 %v5994_v25, 0.0  ;;  %v5995_v21 = vadd.f32 %v6690_v50, %v5980_v27 }
 0x34f   : > { %v6000_v43 = vmax.f32 %v5992_v51, 0.0  ;;  %v5993_v60 = vadd.f32 %v6690_v50, %v5978_v11 }
 0x350   : > { %v6708_v53 = vpack.c.bf16 %v6002_v45, %v6002_v45  ;;  %v6003_v57 = vmax.f32 %v5995_v21, 0.0 }
 0x351   : > { %v6706_v18 = vpack.c.bf16 %v6000_v43, %v6000_v43  ;;  %v6001_v52 = vmax.f32 %v5993_v60, 0.0 }
 0x352   : > { %6043 = vst.msk [vmem:[%s11255_s21 + $0x18] sm:$0xf] %vm6036_vm10, %v6708_v53  ;;  %v6709_v56 = vpack.c.bf16 %v6003_v57, %v6003_v57 }
 0x353   : > { %6041 = vst.msk [vmem:[%s11255_s21 + $0x10] sm:$0xf] %vm6036_vm10, %v6706_v18  ;;  %v6707_v49 = vpack.c.bf16 %v6001_v52, %v6001_v52 }
 0x354   : > { %6044 = vst.msk [vmem:[%s11255_s21 + $0x1c] sm:$0xf] %vm6036_vm10, %v6709_v56 }
 0x355   : > { %6042 = vst.msk [vmem:[%s11255_s21 + $0x14] sm:$0xf] %vm6036_vm10, %v6707_v49 }
 0x356 PF: > { %s13_s12 = sadd.s32 1, %s7584_s12  }
 0x357   : > { %p10_p5 = scmp.ge.s32.totalorder %s13_s12, 4  }
 0x359   :  { %12 = sbr.rel (!%p10_p5) target bundleno = 1 (0x1), region = 62 }

// kernel: pointnext_forward.7
= control target key start
LH: loop header
LB: loop body
LE: loop exit
PB: predicated region body
PF: predicated region fallthrough
CT: control target
= control target key end

     0   :  { %v1576_v1 = vmov 0   ;;  %vm313_vm0 = vcmask 1041409   ;;  %vm315_vm1 = vcmask 1042434   ;;  %vm317_vm2 = vcmask 1043459   ;;  %s2043_s1 = inlined_call_operand.vmem [shape: bf16[128,512], index: 1, kind: input, shape index: {}]   ;;  %s2044_s0 = inlined_call_operand.vmem [shape: bf16[8,32,128], index: 0, kind: input, shape index: {}]   ;;  %s2045_s3 = inlined_call_operand.vmem [shape: bf16[512,256], index: 3, kind: input, shape index: {}]   ;;  %s2046_s5 = inlined_call_operand.vmem [shape: bf16[256,16], index: 5, kind: input, shape index: {}]   ;;  %s2047_s2 = inlined_call_operand.vmem [shape: f32[1,512], index: 2, kind: input, shape index: {}]   ;;  %s2048_s4 = inlined_call_operand.vmem [shape: f32[1,256], index: 4, kind: input, shape index: {}]   ;;  %s2049_s6 = inlined_call_operand.vmem [shape: f32[1,16], index: 6, kind: input, shape index: {}]   ;;  %s2050_s7 = inlined_call_operand.vmem [shape: f32[8,16], index: 7, kind: output, shape index: {}]  }
   0x1   :  { %v1400_v0 = vld [vmem:[%s2043_s1 + $0x4] ss:$16 sps:$4 sm:$0xff]   ;;  %521 = vmatprep.mubr.bf16.mxu1 %v1576_v1  ;;  %v1402_v2 = vld [vmem:[%s2043_s1] ss:$16 sps:$4 sm:$0xff]   ;;  %v1425_v16 = vld [vmem:[%s2044_s0 + $0x8] sm:$0xff]   ;;  %vm319_vm3 = vcmask 1044484  }
   0x2   :  { %489 = vmatprep.subr.bf16.mxu1 %v1400_v0  ;;  %v1403_v3 = vld [vmem:[%s2043_s1 + $0x24] ss:$16 sps:$4 sm:$0xff]   ;;  %v1405_v4 = vld [vmem:[%s2043_s1 + $0x20] ss:$16 sps:$4 sm:$0xff]   ;;  %v1427_v19 = vld [vmem:[%s2044_s0 + $0x18] sm:$0xff]   ;;  %vm321_vm4 = vcmask 1045509  }
   0x3   :  { %490 = vmatpush1.bf16.msra.mxu1 %v1402_v2  ;;  %v1406_v5 = vld [vmem:[%s2043_s1 + $0x44] ss:$16 sps:$4 sm:$0xff]   ;;  %v1408_v6 = vld [vmem:[%s2043_s1 + $0x40] ss:$16 sps:$4 sm:$0xff]   ;;  %v1429_v21 = vld [vmem:[%s2044_s0 + $0x28] sm:$0xff]   ;;  %vm323_vm5 = vcmask 1046534  }
   0x4   :  { %491 = vmatprep.subr.bf16.mxu1 %v1403_v3  ;;  %v1409_v7 = vld [vmem:[%s2043_s1 + $0x64] ss:$16 sps:$4 sm:$0xff]   ;;  %v1411_v8 = vld [vmem:[%s2043_s1 + $0x60] ss:$16 sps:$4 sm:$0xff]   ;;  %v1431_v23 = vld [vmem:[%s2044_s0 + $0x38] sm:$0xff]   ;;  %vm325_vm6 = vcmask 1047559  }
   0x5   :  { %v1412_v9 = vld [vmem:[%s2043_s1 + $0x84] ss:$16 sps:$4 sm:$0xff]   ;;  %v1414_v10 = vld [vmem:[%s2043_s1 + $0x80] ss:$16 sps:$4 sm:$0xff]   ;;  %v1433_v26 = vld [vmem:[%s2044_s0 + $0x48] sm:$0xff]   ;;  %vm1236_vm7 = vcmask 130048  }
   0x6   :  { %v1415_v11 = vld [vmem:[%s2043_s1 + $0xa4] ss:$16 sps:$4 sm:$0xff]   ;;  %v1417_v12 = vld [vmem:[%s2043_s1 + $0xa0] ss:$16 sps:$4 sm:$0xff]   ;;  %v1435_v29 = vld [vmem:[%s2044_s0 + $0x58] sm:$0xff]  }
   0x7   :  { %492 = vmatpush1.bf16.msra.mxu1 %v1405_v4  ;;  %v1418_v13 = vld [vmem:[%s2043_s1 + $0xc4] ss:$16 sps:$4 sm:$0xff]   ;;  %v1420_v14 = vld [vmem:[%s2043_s1 + $0xc0] ss:$16 sps:$4 sm:$0xff]   ;;  %v1437_v31 = vld [vmem:[%s2044_s0 + $0x68] sm:$0xff]  }
   0x8   :  { %493 = vmatprep.subr.bf16.mxu1 %v1406_v5  ;;  %v1424_v15 = vld [vmem:[%s2044_s0] sm:$0xff]   ;;  %v1426_v18 = vld [vmem:[%s2044_s0 + $0x10] sm:$0xff]   ;;  %v1439_v37 = vld [vmem:[%s2044_s0 + $0x78] sm:$0xff]  }
   0x9   :  { %v1421_v17 = vld [vmem:[%s2043_s1 + $0xe4] ss:$16 sps:$4 sm:$0xff]   ;;  %v155_v24 = vmax.bf16 %v1425_v16, %v1424_v15  ;;  %v166_v28 = vmax.bf16 %v1427_v19, %v1426_v18  ;;  %v1423_v41 = vld [vmem:[%s2043_s1 + $0xe0] ss:$16 sps:$4 sm:$0xff]   ;;  %v1442_v50 = vld [vmem:[%s2043_s1 + $0xc] ss:$16 sps:$4 sm:$0xff]  }
   0xa   :  { %v1428_v20 = vld [vmem:[%s2044_s0 + $0x20] sm:$0xff]   ;;  %v1430_v22 = vld [vmem:[%s2044_s0 + $0x30] sm:$0xff]  }
   0xb   :  { %494 = vmatpush1.bf16.msra.mxu1 %v1408_v6  ;;  %v1432_v25 = vld [vmem:[%s2044_s0 + $0x40] sm:$0xff]   ;;  %v1434_v27 = vld [vmem:[%s2044_s0 + $0x50] sm:$0xff]   ;;  %v156_v32 = vunpack.i.l.bf16 %v155_v24  ;;  %v157_v33 = vunpack.i.h.bf16 %v155_v24  ;;  %v177_v34 = vmax.bf16 %v1429_v21, %v1428_v20  ;;  %v188_v35 = vmax.bf16 %v1431_v23, %v1430_v22 }
   0xc   :  { %495 = vmatprep.subr.bf16.mxu1 %v1409_v7  ;;  %v1436_v30 = vld [vmem:[%s2044_s0 + $0x60] sm:$0xff]   ;;  %v1438_v36 = vld [vmem:[%s2044_s0 + $0x70] sm:$0xff]   ;;  %v167_v38 = vunpack.i.l.bf16 %v166_v28  ;;  %v168_v39 = vunpack.i.h.bf16 %v166_v28  ;;  %v199_v40 = vmax.bf16 %v1433_v26, %v1432_v25  ;;  %v210_v53 = vmax.bf16 %v1435_v29, %v1434_v27 }
   0xd   :  { %v158_v42 = vmax.f32 %v156_v32, %v157_v33  ;;  %v178_v43 = vunpack.i.l.bf16 %v177_v34  ;;  %v179_v44 = vunpack.i.h.bf16 %v177_v34  ;;  %v189_v45 = vunpack.i.l.bf16 %v188_v35  ;;  %v1464_v28 = vld [vmem:[%s2045_s3 + $0x4] ss:$8 sps:$4 sm:$0xff]   ;;  %v1466_v29 = vld [vmem:[%s2045_s3] ss:$8 sps:$4 sm:$0xff]   ;;  %v1467_v34 = vld [vmem:[%s2045_s3 + $0x14] ss:$8 sps:$4 sm:$0xff]  }
   0xe   :  { %v169_v46 = vmax.f32 %v167_v38, %v168_v39  ;;  %v190_v47 = vunpack.i.h.bf16 %v188_v35  ;;  %v200_v48 = vunpack.i.l.bf16 %v199_v40  ;;  %v201_v49 = vunpack.i.h.bf16 %v199_v40  ;;  %975 = vmatprep.subr.bf16.mxu0 %v1464_v28  ;;  %v1448_v28 = vld [vmem:[%s2043_s1 + $0x4c] ss:$16 sps:$4 sm:$0xff]  }
   0xf   :  { %496 = vmatpush1.bf16.msra.mxu1 %v1411_v8  ;;  %v159_v51 = vrot.slane %v158_v42, 4  ;;  %v180_v52 = vmax.f32 %v178_v43, %v179_v44  ;;  %v221_v54 = vmax.bf16 %v1437_v31, %v1436_v30  ;;  %v232_v58 = vmax.bf16 %v1439_v37, %v1438_v36  ;;  %976 = vmatpush1.bf16.msra.mxu0 %v1466_v29  ;;  %v1469_v43 = vld [vmem:[%s2045_s3 + $0x10] ss:$8 sps:$4 sm:$0xff]   ;;  %v1484_v29 = vld [vmem:[%s2045_s3 + $0x60] ss:$8 sps:$4 sm:$0xff]  }
  0x10   :  { %497 = vmatprep.subr.bf16.mxu1 %v1412_v9  ;;  %v170_v55 = vrot.slane %v169_v46, 4  ;;  %v191_v56 = vmax.f32 %v189_v45, %v190_v47  ;;  %v202_v57 = vmax.f32 %v200_v48, %v201_v49  ;;  %v211_v61 = vunpack.i.l.bf16 %v210_v53  ;;  %977 = vmatprep.subr.bf16.mxu0 %v1467_v34  ;;  %v1470_v48 = vld [vmem:[%s2045_s3 + $0x24] ss:$8 sps:$4 sm:$0xff]   ;;  %v1449_v34 = vld [vmem:[%s2043_s1 + $0x68] ss:$16 sps:$4 sm:$0xff]  }
  0x11   :  { %v160_v59 = vmax.f32 %v158_v42, %v159_v51  ;;  %v181_v60 = vrot.slane %v180_v52, 4  ;;  %v212_v62 = vunpack.i.h.bf16 %v210_v53  ;;  %v222_v3 = vunpack.i.l.bf16 %v221_v54 }
  0x12   :  { %v171_v63 = vmax.f32 %v169_v46, %v170_v55  ;;  %v192_v0 = vrot.slane %v191_v56, 4  ;;  %v203_v2 = vrot.slane %v202_v57, 4  ;;  %v223_v7 = vunpack.i.h.bf16 %v221_v54 }
  0x13   :  { %498 = vmatpush1.bf16.msra.mxu1 %v1414_v10  ;;  %v161_v4 = vrot.slane %v160_v59, 2  ;;  %v182_v5 = vmax.f32 %v180_v52, %v181_v60  ;;  %v213_v6 = vmax.f32 %v211_v61, %v212_v62  ;;  %v234_v19 = vunpack.i.h.bf16 %v232_v58  ;;  %978 = vmatpush1.bf16.msra.mxu0 %v1469_v43  ;;  %v1472_v60 = vld [vmem:[%s2045_s3 + $0x20] ss:$8 sps:$4 sm:$0xff]   ;;  %v1460_v43 = vld [vmem:[%s2043_s1 + $0xcc] ss:$16 sps:$4 sm:$0xff]  }
  0x14   :  { %499 = vmatprep.subr.bf16.mxu1 %v1415_v11  ;;  %v172_v8 = vrot.slane %v171_v63, 2  ;;  %v193_v9 = vmax.f32 %v191_v56, %v192_v0  ;;  %v204_v10 = vmax.f32 %v202_v57, %v203_v2  ;;  %v233_v11 = vunpack.i.l.bf16 %v232_v58  ;;  %979 = vmatprep.subr.bf16.mxu0 %v1470_v48  ;;  %v1473_v2 = vld [vmem:[%s2045_s3 + $0x34] ss:$8 sps:$4 sm:$0xff]   ;;  %v1499_v48 = vld [vmem:[%s2045_s3 + $0xb0] ss:$8 sps:$4 sm:$0xff]  }
  0x15   :  { %v224_v15 = vmax.f32 %v222_v3, %v223_v7 }
  0x16   :  { %v173_v16 = vmax.f32 %v171_v63, %v172_v8  ;;  %v205_v18 = vrot.slane %v204_v10, 2  ;;  %v235_v27 = vmax.f32 %v233_v11, %v234_v19  ;;  %v1475_v11 = vld [vmem:[%s2045_s3 + $0x30] ss:$8 sps:$4 sm:$0xff]  }
  0x17   :  { %500 = vmatpush1.bf16.msra.mxu1 %v1417_v12  ;;  %v162_v12 = vmax.f32 %v160_v59, %v161_v4  ;;  %v225_v23 = vrot.slane %v224_v15, 4  ;;  %980 = vmatpush1.bf16.msra.mxu0 %v1472_v60  ;;  %v1561_v60 = vld [vmem:[%s2046_s5] sm:$0xff]  }
  0x18   :  { %501 = vmatprep.subr.bf16.mxu1 %v1418_v13  ;;  %v183_v13 = vrot.slane %v182_v5, 2  ;;  %v174_v24 = vrot.slane %v173_v16, 1  ;;  %v206_v26 = vmax.f32 %v204_v10, %v205_v18  ;;  %v236_v38 = vrot.slane %v235_v27, 4  ;;  %981 = vmatprep.subr.bf16.mxu0 %v1473_v2  ;;  %v1478_v18 = vld [vmem:[%s2045_s3 + $0x40] ss:$8 sps:$4 sm:$0xff]   ;;  %v1566_v2 = vld [vmem:[%s2046_s5 + $0x58] sm:$0xff]  }
  0x19   :  { %v163_v20 = vrot.slane %v162_v12, 1  ;;  %v226_v33 = vmax.f32 %v224_v15, %v225_v23  ;;  %v1445_v23 = vld [vmem:[%s2043_s1 + $0x2c] ss:$16 sps:$4 sm:$0xff]  }
  0x1a   :  { %v184_v21 = vmax.f32 %v182_v5, %v183_v13  ;;  %v175_v35 = vmax.f32 %v173_v16, %v174_v24  ;;  %v207_v37 = vrot.slane %v206_v26, 1  ;;  %v237_v47 = vmax.f32 %v235_v27, %v236_v38  ;;  %v1476_v13 = vld [vmem:[%s2045_s3 + $0x44] ss:$8 sps:$4 sm:$0xff]   ;;  %v1481_v24 = vld [vmem:[%s2045_s3 + $0x50] ss:$8 sps:$4 sm:$0xff]  }
  0x1b   :  { %502 = vmatpush1.bf16.msra.mxu1 %v1420_v14  ;;  %v214_v14 = vrot.slane %v213_v6, 4  ;;  %v164_v30 = vmax.f32 %v162_v12, %v163_v20  ;;  %v227_v42 = vrot.slane %v226_v33, 2  ;;  %982 = vmatpush1.bf16.msra.mxu0 %v1475_v11  ;;  %v1479_v20 = vld [vmem:[%s2045_s3 + $0x54] ss:$8 sps:$4 sm:$0xff]   ;;  %v1443_v27 = vld [vmem:[%s2043_s1 + $0x28] ss:$16 sps:$4 sm:$0xff]  }
  0x1c   :  { %503 = vmatprep.subr.bf16.mxu1 %v1421_v17  ;;  %v194_v17 = vrot.slane %v193_v9, 2  ;;  %v185_v31 = vrot.slane %v184_v21, 1  ;;  %v176_v44 = vpack.i.bf16 %v175_v35, %v175_v35  ;;  %v208_v46 = vmax.f32 %v206_v26, %v207_v37  ;;  %983 = vmatprep.subr.bf16.mxu0 %v1476_v13  ;;  %v1454_v35 = vld [vmem:[%s2043_s1 + $0x8c] ss:$16 sps:$4 sm:$0xff]   ;;  %v1452_v38 = vld [vmem:[%s2043_s1 + $0x88] ss:$16 sps:$4 sm:$0xff]  }
  0x1d   :  { %v215_v22 = vmax.f32 %v213_v6, %v214_v14  ;;  %v165_v39 = vpack.i.bf16 %v164_v30, %v164_v30  ;;  %v228_v51 = vmax.f32 %v226_v33, %v227_v42  ;;  %v238_v55 = vrot.slane %v237_v47, 2  ;;  %v1485_v30 = vld [vmem:[%s2045_s3 + $0x74] ss:$8 sps:$4 sm:$0xff]   ;;  %v1487_v33 = vld [vmem:[%s2045_s3 + $0x70] ss:$8 sps:$4 sm:$0xff]  }
  0x1e   :  { %v195_v25 = vmax.f32 %v193_v9, %v194_v17  ;;  %v186_v40 = vmax.f32 %v184_v21, %v185_v31  ;;  %v209_v54 = vpack.i.bf16 %v208_v46, %v208_v46  ;;  %v306_v56 = vunpack.c.l.b16 %v176_v44  ;;  %v1440_v21 = vld [vmem:[%s2043_s1 + $0x8] ss:$16 sps:$4 sm:$0xff]   ;;  %v1491_v37 = vld [vmem:[%s2045_s3 + $0x94] ss:$8 sps:$4 sm:$0xff]   ;;  %v1912_v11 = vld [vmem:[%s2047_s2] sm:$0xf] }
  0x1f   :  { %504 = vmatpush1.bf16.msra.mxu1 %v1423_v41  ;;  %v216_v32 = vrot.slane %v215_v22, 2  ;;  %v305_v52 = vunpack.c.l.b16 %v165_v39  ;;  %v229_v58 = vrot.slane %v228_v51, 1  ;;  %v239_v61 = vmax.f32 %v237_v47, %v238_v55  ;;  %984 = vmatpush1.bf16.msra.mxu0 %v1478_v18  ;;  %v1446_v31 = vld [vmem:[%s2043_s1 + $0x48] ss:$16 sps:$4 sm:$0xff]   ;;  %v1457_v39 = vld [vmem:[%s2043_s1 + $0xac] ss:$16 sps:$4 sm:$0xff]  }
  0x20   :  { %530 = vmatprep.subr.bf16.mxu1 %v1442_v50  ;;  %v196_v36 = vrot.slane %v195_v25, 1  ;;  %v187_v49 = vpack.i.bf16 %v186_v40, %v186_v40  ;;  %v309_v63 = vunpack.c.l.b16 %v209_v54  ;;  %985 = vmatprep.subr.bf16.mxu0 %v1479_v20  ;;  %v1493_v40 = vld [vmem:[%s2045_s3 + $0x90] ss:$8 sps:$4 sm:$0xff]   ;;  %v1496_v44 = vld [vmem:[%s2045_s3 + $0xa0] ss:$8 sps:$4 sm:$0xff]  }
  0x21   :  { %v217_v41 = vmax.f32 %v215_v22, %v216_v32  ;;  %v314_v0 = vsel %vm313_vm0, %v306_v56, %v305_v52  ;;  %v230_v4 = vmax.f32 %v228_v51, %v229_v58  ;;  %v240_v6 = vrot.slane %v239_v61, 1  ;;  %v1451_v32 = vld [vmem:[%s2043_s1 + $0x6c] ss:$16 sps:$4 sm:$0xff]   ;;  %v1455_v42 = vld [vmem:[%s2043_s1 + $0xa8] ss:$16 sps:$4 sm:$0xff]  }
  0x22   :  { %v197_v45 = vmax.f32 %v195_v25, %v196_v36  ;;  %v307_v59 = vunpack.c.l.b16 %v187_v49  ;;  %v1482_v25 = vld [vmem:[%s2045_s3 + $0x64] ss:$8 sps:$4 sm:$0xff]   ;;  %v1490_v36 = vld [vmem:[%s2045_s3 + $0x80] ss:$8 sps:$4 sm:$0xff]   ;;  %v1503_v52 = vld [vmem:[%s2045_s3 + $0xd4] ss:$8 sps:$4 sm:$0xff]  }
  0x23   :  { %v218_v50 = vrot.slane %v217_v41, 1  ;;  %v231_v8 = vpack.i.bf16 %v230_v4, %v230_v4  ;;  %v241_v12 = vmax.f32 %v239_v61, %v240_v6  ;;  %986 = vmatpush1.bf16.msra.mxu0 %v1481_v24  ;;  %v1458_v46 = vld [vmem:[%s2043_s1 + $0xc8] ss:$16 sps:$4 sm:$0xff]   ;;  %v1463_v47 = vld [vmem:[%s2043_s1 + $0xec] ss:$16 sps:$4 sm:$0xff]   ;;  %v1568_v4 = vld [vmem:[%s2046_s5 + $0x60] sm:$0xff]  }
  0x24   :  { %v198_v53 = vpack.i.bf16 %v197_v45, %v197_v45  ;;  %v316_v5 = vsel %vm315_vm1, %v307_v59, %v314_v0  ;;  %987 = vmatprep.subr.bf16.mxu0 %v1482_v25  ;;  %v1497_v45 = vld [vmem:[%s2045_s3 + $0xb4] ss:$8 sps:$4 sm:$0xff]   ;;  %v1500_v49 = vld [vmem:[%s2045_s3 + $0xc4] ss:$8 sps:$4 sm:$0xff]   ;;  %v1502_v51 = vld [vmem:[%s2045_s3 + $0xc0] ss:$8 sps:$4 sm:$0xff]  }
  0x25   :  { %v219_v57 = vmax.f32 %v217_v41, %v218_v50  ;;  %v311_v14 = vunpack.c.l.b16 %v231_v8  ;;  %v242_v16 = vpack.i.bf16 %v241_v12, %v241_v12  ;;  %v1494_v41 = vld [vmem:[%s2045_s3 + $0xa4] ss:$8 sps:$4 sm:$0xff]   ;;  %v1461_v50 = vld [vmem:[%s2043_s1 + $0xe8] ss:$16 sps:$4 sm:$0xff]   ;;  %v1509_v56 = vld [vmem:[%s2045_s3 + $0xf4] ss:$8 sps:$4 sm:$0xff]   ;;  %v277_v8 = vlaneseq }
  0x26   :  { %v308_v62 = vunpack.c.l.b16 %v198_v53  ;;  %v1505_v53 = vld [vmem:[%s2045_s3 + $0xd0] ss:$8 sps:$4 sm:$0xff]   ;;  %v1506_v54 = vld [vmem:[%s2045_s3 + $0xe4] ss:$8 sps:$4 sm:$0xff]   ;;  %v1508_v55 = vld [vmem:[%s2045_s3 + $0xe0] ss:$8 sps:$4 sm:$0xff]  }
  0x27   :  { %v220_v3 = vpack.i.bf16 %v219_v57, %v219_v57  ;;  %v312_v19 = vunpack.c.l.b16 %v242_v16  ;;  %988 = vmatpush1.bf16.msra.mxu0 %v1484_v29  ;;  %v1511_v57 = vld [vmem:[%s2045_s3 + $0xf0] ss:$8 sps:$4 sm:$0xff]   ;;  %v1514_v58 = vld [vmem:[%s2045_s3 + $0x104] ss:$8 sps:$4 sm:$0xff]   ;;  %v1512_v24 = vld [vmem:[%s2045_s3 + $0x100] ss:$8 sps:$4 sm:$0xff]  }
  0x28   :  { %v318_v7 = vsel %vm317_vm2, %v308_v62, %v316_v5  ;;  %989 = vmatprep.subr.bf16.mxu0 %v1485_v30  ;;  %v1560_v59 = vld [vmem:[%s2046_s5 + $0x40] sm:$0xff]   ;;  %v1562_v61 = vld [vmem:[%s2046_s5 + $0x48] sm:$0xff]   ;;  %v1565_v0 = vld [vmem:[%s2046_s5 + $0x10] sm:$0xff]  }
  0x29   :  { %v310_v9 = vunpack.c.l.b16 %v220_v3  ;;  %v320_v10 = vsel %vm319_vm3, %v309_v63, %v318_v7  ;;  %v1563_v62 = vld [vmem:[%s2046_s5 + $0x8] sm:$0xff]   ;;  %v1564_v63 = vld [vmem:[%s2046_s5 + $0x50] sm:$0xff]   ;;  %v1567_v3 = vld [vmem:[%s2046_s5 + $0x18] sm:$0xff]  }
  0x2a   :  { %v1569_v5 = vld [vmem:[%s2046_s5 + $0x20] sm:$0xff]   ;;  %v1570_v6 = vld [vmem:[%s2046_s5 + $0x68] sm:$0xff]   ;;  %v1523_v30 = vld [vmem:[%s2045_s3 + $0x134] ss:$8 sps:$4 sm:$0xff]  }
  0x2b   :  { %v322_v15 = vsel %vm321_vm4, %v310_v9, %v320_v10  ;;  %990 = vmatpush1.bf16.msra.mxu0 %v1487_v33  ;;  %v1571_v7 = vld [vmem:[%s2046_s5 + $0x28] sm:$0xff]   ;;  %v1906_v9 = vshrl.u32 %v277_v8, 7  ;;  %v1574_v8 = vld [vmem:[%s2046_s5 + $0x78] sm:$0xff]  }
  0x2c   :  { %v324_v17 = vsel %vm323_vm5, %v311_v14, %v322_v15  ;;  %v1518_v29 = vld [vmem:[%s2045_s3 + $0x120] ss:$8 sps:$4 sm:$0xff]  }
  0x2d   :  { %v326_v22 = vsel %vm325_vm6, %v312_v19, %v324_v17  ;;  %v279_v10 = vsub.s32 0, %v1906_v9  ;;  %v283_v12 = vsub.s32 1, %v1906_v9  ;;  %v1524_v33 = vld [vmem:[%s2045_s3 + $0x140] ss:$8 sps:$4 sm:$0xff]  }
  0x2e   :  { %v1766_v26 = vpack.c.b16 %v326_v22, %v326_v22 }
  0x2f   :  { %v280_v13 = vrot.slane %v1912_v11, %v279_v10  ;;  %v284_v14 = vrot.slane %v1912_v11, %v283_v12 }
  0x30   :  { %522 = vmatmul.mubr.bf16.vlgmr.msra.gmra.mrb[0].mxu1 %v1766_v26 }
  0x31   :  { %531 = vmatpush1.bf16.msra.mxu1 %v1440_v21  ;;  %562 = vmatprep.mubr.bf16.mxu1 %v1576_v1  ;;  %v1488_v1 = vld [vmem:[%s2045_s3 + $0x84] ss:$8 sps:$4 sm:$0xff]  }
  0x32   :  { %532 = vmatprep.subr.bf16.mxu1 %v1445_v23  ;;  %991 = vmatprep.subr.bf16.mxu0 %v1488_v1  ;;  %v1529_v1 = vld [vmem:[%s2045_s3 + $0x154] ss:$8 sps:$4 sm:$0xff]  }
  0x33   :  { %992 = vmatpush1.bf16.msra.mxu0 %v1490_v36  ;;  %v1532_v36 = vld [vmem:[%s2045_s3 + $0x164] ss:$8 sps:$4 sm:$0xff]  }
  0x34   :  { %993 = vmatprep.subr.bf16.mxu0 %v1491_v37  ;;  %v1530_v37 = vld [vmem:[%s2045_s3 + $0x160] ss:$8 sps:$4 sm:$0xff]  }
  0x35   :  { %533 = vmatpush1.bf16.msra.mxu1 %v1443_v27  ;;  %v1515_v27 = vld [vmem:[%s2045_s3 + $0x110] ss:$8 sps:$4 sm:$0xff]  }
  0x36   :  { %534 = vmatprep.subr.bf16.mxu1 %v1448_v28  ;;  %v1520_v28 = vld [vmem:[%s2045_s3 + $0x124] ss:$8 sps:$4 sm:$0xff]  }
  0x37   :  { %994 = vmatpush1.bf16.msra.mxu0 %v1493_v40 }
  0x38   :  { %995 = vmatprep.subr.bf16.mxu0 %v1494_v41 }
  0x39   :  { %535 = vmatpush1.bf16.msra.mxu1 %v1446_v31  ;;  %v1521_v31 = vld [vmem:[%s2045_s3 + $0x130] ss:$8 sps:$4 sm:$0xff]  }
  0x3a   :  { %536 = vmatprep.subr.bf16.mxu1 %v1451_v32  ;;  %v1526_v32 = vld [vmem:[%s2045_s3 + $0x144] ss:$8 sps:$4 sm:$0xff]  }
  0x3b   :  { %996 = vmatpush1.bf16.msra.mxu0 %v1496_v44 }
  0x3c   :  { %997 = vmatprep.subr.bf16.mxu0 %v1497_v45  ;;  %v1538_v45 = vld [vmem:[%s2045_s3 + $0x184] ss:$8 sps:$4 sm:$0xff]  }
  0x3d   :  { %537 = vmatpush1.bf16.msra.mxu1 %v1449_v34  ;;  %v1527_v34 = vld [vmem:[%s2045_s3 + $0x150] ss:$8 sps:$4 sm:$0xff]  }
  0x3e   :  { %538 = vmatprep.subr.bf16.mxu1 %v1454_v35  ;;  %v291_v35 = vsub.s32 3, %v1906_v9 }
  0x3f   :  { %998 = vmatpush1.bf16.msra.mxu0 %v1499_v48  ;;  %v1536_v48 = vld [vmem:[%s2045_s3 + $0x180] ss:$8 sps:$4 sm:$0xff]  }
  0x40   :  { %999 = vmatprep.subr.bf16.mxu0 %v1500_v49 }
  0x41   :  { %539 = vmatpush1.bf16.msra.mxu1 %v1452_v38  ;;  %v292_v38 = vrot.slane %v1912_v11, %v291_v35 }
  0x42   :  { %540 = vmatprep.subr.bf16.mxu1 %v1457_v39  ;;  %v1535_v39 = vld [vmem:[%s2045_s3 + $0x174] ss:$8 sps:$4 sm:$0xff]  }
  0x43   :  { %1000 = vmatpush1.bf16.msra.mxu0 %v1502_v51  ;;  %v1539_v51 = vld [vmem:[%s2045_s3 + $0x190] ss:$8 sps:$4 sm:$0xff]  }
  0x44   :  { %1001 = vmatprep.subr.bf16.mxu0 %v1503_v52  ;;  %v1544_v52 = vld [vmem:[%s2045_s3 + $0x1a4] ss:$8 sps:$4 sm:$0xff]  }
  0x45   :  { %541 = vmatpush1.bf16.msra.mxu1 %v1455_v42  ;;  %v1533_v42 = vld [vmem:[%s2045_s3 + $0x170] ss:$8 sps:$4 sm:$0xff]  }
  0x46   :  { %542 = vmatprep.subr.bf16.mxu1 %v1460_v43 }
  0x47   :  { %1002 = vmatpush1.bf16.msra.mxu0 %v1505_v53  ;;  %v1542_v53 = vld [vmem:[%s2045_s3 + $0x1a0] ss:$8 sps:$4 sm:$0xff]  }
  0x48   :  { %1003 = vmatprep.subr.bf16.mxu0 %v1506_v54  ;;  %v1547_v54 = vld [vmem:[%s2045_s3 + $0x1b4] ss:$8 sps:$4 sm:$0xff]  }
  0x49   :  { %543 = vmatpush1.bf16.msra.mxu1 %v1458_v46 }
  0x4a   :  { %544 = vmatprep.subr.bf16.mxu1 %v1463_v47 }
  0x4b   :  { %1004 = vmatpush1.bf16.msra.mxu0 %v1508_v55  ;;  %v1545_v55 = vld [vmem:[%s2045_s3 + $0x1b0] ss:$8 sps:$4 sm:$0xff]  }
  0x4c   :  { %1005 = vmatprep.subr.bf16.mxu0 %v1509_v56  ;;  %v1550_v56 = vld [vmem:[%s2045_s3 + $0x1c4] ss:$8 sps:$4 sm:$0xff]  }
  0x4d   :  { %545 = vmatpush1.bf16.msra.mxu1 %v1461_v50  ;;  %v1541_v50 = vld [vmem:[%s2045_s3 + $0x194] ss:$8 sps:$4 sm:$0xff]  }
  0x4e   :  { %1371 = vmatprep.subr.bf16.mxu1 %v1560_v59  ;;  %v1553_v59 = vld [vmem:[%s2045_s3 + $0x1d4] ss:$8 sps:$4 sm:$0xff]  }
  0x4f   :  { %1006 = vmatpush1.bf16.msra.mxu0 %v1511_v57  ;;  %v1548_v57 = vld [vmem:[%s2045_s3 + $0x1c0] ss:$8 sps:$4 sm:$0xff]  }
  0x50   :  { %563 = vmatmul.mubr.bf16.vlgmr.msra.gmra.mrb[4].mxu1 %v1766_v26  ;;  %1016 = vmatprep.subr.bf16.mxu0 %v1514_v58  ;;  %v1517_v26 = vld [vmem:[%s2045_s3 + $0x114] ss:$8 sps:$4 sm:$0xff]   ;;  %v287_v58 = vsub.s32 2, %v1906_v9 }
  0x51   :  { %1372 = vmatpush3.bf16.msra.mxu1 %v1561_v60  ;;  %v1551_v60 = vld [vmem:[%s2045_s3 + $0x1d0] ss:$8 sps:$4 sm:$0xff]  }
  0x52   :  { %1373 = vmatprep.subr.bf16.mxu1 %v1562_v61  ;;  %v288_v61 = vrot.slane %v1912_v11, %v287_v58  ;;  %v1575_v11 = vld [vmem:[%s2046_s5 + $0x38] sm:$0xff]  }
  0x55   :  { %1374 = vmatpush3.bf16.msra.mxu1 %v1563_v62  ;;  %v1556_v62 = vld [vmem:[%s2045_s3 + $0x1e4] ss:$8 sps:$4 sm:$0xff]  }
  0x56   :  { %1375 = vmatprep.subr.bf16.mxu1 %v1564_v63  ;;  %v1554_v63 = vld [vmem:[%s2045_s3 + $0x1e0] ss:$8 sps:$4 sm:$0xff]  }
  0x59   :  { %1376 = vmatpush3.bf16.msra.mxu1 %v1565_v0 }
  0x5a   :  { %1377 = vmatprep.subr.bf16.mxu1 %v1566_v2  ;;  %v1559_v2 = vld [vmem:[%s2045_s3 + $0x1f4] ss:$8 sps:$4 sm:$0xff]  }
  0x5d   :  { %1378 = vmatpush3.bf16.msra.mxu1 %v1567_v3  ;;  %v1557_v3 = vld [vmem:[%s2045_s3 + $0x1f0] ss:$8 sps:$4 sm:$0xff]  }
  0x5e   :  { %1379 = vmatprep.subr.bf16.mxu1 %v1568_v4 }
  0x61   :  { %1380 = vmatpush3.bf16.msra.mxu1 %v1569_v5 }
  0x62   :  { %1381 = vmatprep.subr.bf16.mxu1 %v1570_v6  ;;  %v1572_v6 = vld [vmem:[%s2046_s5 + $0x70] sm:$0xff]  }
  0x65   :  { %1382 = vmatpush3.bf16.msra.mxu1 %v1571_v7  ;;  %v1573_v7 = vld [vmem:[%s2046_s5 + $0x30] sm:$0xff]  }
  0x66   :  { %1383 = vmatprep.subr.bf16.mxu1 %v1572_v6 }
  0x69   :  { %1384 = vmatpush3.bf16.msra.mxu1 %v1573_v7 }
  0x6a   :  { %1385 = vmatprep.subr.bf16.mxu1 %v1574_v8 }
  0x6d   :  { %1386 = vmatpush3.bf16.msra.mxu1 %v1575_v11 }
 0x103   :  { %v523_v15 = vpop.f32.mrb[0].mxu1 }
 0x104   :  { %v524_v16 = vadd.f32 %v523_v15, %v280_v13  ;;  %v525_v17 = vpop.f32.mrb[1].mxu1  ;;  %v643_v13 = vld [vmem:[%s2048_s4] sm:$0x3] }
 0x105   :  { %v526_v18 = vadd.f32 %v525_v17, %v284_v14  ;;  %v527_v19 = vpop.f32.mrb[2].mxu1  ;;  %v648_v14 = vrot.slane %v643_v13, %v279_v10  ;;  %v652_v15 = vrot.slane %v643_v13, %v283_v12  ;;  %v1354_v10 = vld [vmem:[%s2049_s6] ss:$0 sm:$0xff] }
 0x106   :  { %v571_v20 = vmax.f32 %v524_v16, 0.0  ;;  %v528_v21 = vpop.f32.mrb[3].mxu1 }
 0x107   :  { %v572_v22 = vmax.f32 %v526_v18, 0.0 }
 0x108   :  { %v575_v25 = vpack.c.bf16 %v571_v20, %v571_v20 }
 0x109   :  { %v576_v23 = vpack.c.bf16 %v572_v22, %v572_v22 }
 0x10b   :  { %1007 = vmatprep.mubr.bf16.mxu0 %v576_v23 }
 0x10c   :  { %1008 = vmatmul.mubr.bf16.vlgmr.msra.gmra.mrb[0].mxu0 %v575_v25 }
 0x10d   :  { %1017 = vmatpush1.bf16.msra.mxu0 %v1512_v24 }
 0x10e   :  { %1018 = vmatprep.subr.bf16.mxu0 %v1517_v26 }
 0x111   :  { %1019 = vmatpush1.bf16.msra.mxu0 %v1515_v27 }
 0x112   :  { %1020 = vmatprep.subr.bf16.mxu0 %v1520_v28 }
 0x115   :  { %1021 = vmatpush1.bf16.msra.mxu0 %v1518_v29 }
 0x116   :  { %1022 = vmatprep.subr.bf16.mxu0 %v1523_v30 }
 0x119   :  { %1023 = vmatpush1.bf16.msra.mxu0 %v1521_v31 }
 0x11a   :  { %1024 = vmatprep.subr.bf16.mxu0 %v1526_v32 }
 0x11d   :  { %1025 = vmatpush1.bf16.msra.mxu0 %v1524_v33 }
 0x11e   :  { %1026 = vmatprep.subr.bf16.mxu0 %v1529_v1 }
 0x121   :  { %1027 = vmatpush1.bf16.msra.mxu0 %v1527_v34 }
 0x122   :  { %1028 = vmatprep.subr.bf16.mxu0 %v1532_v36 }
 0x123   :  { %v564_v40 = vpop.f32.mrb[4].mxu1 }
 0x124   :  { %v566_v41 = vpop.f32.mrb[5].mxu1  ;;  %v565_v0 = vadd.f32 %v564_v40, %v288_v61 }
 0x125   :  { %1029 = vmatpush1.bf16.msra.mxu0 %v1530_v37  ;;  %v567_v43 = vadd.f32 %v566_v41, %v292_v38  ;;  %v568_v44 = vpop.f32.mrb[6].mxu1 }
 0x126   :  { %1030 = vmatprep.subr.bf16.mxu0 %v1535_v39  ;;  %v569_v46 = vpop.f32.mrb[7].mxu1  ;;  %v573_v4 = vmax.f32 %v565_v0, 0.0 }
 0x127   :  { %v574_v47 = vmax.f32 %v567_v43, 0.0 }
 0x128   :  { %v577_v5 = vpack.c.bf16 %v573_v4, %v573_v4 }
 0x129   :  { %1031 = vmatpush1.bf16.msra.mxu0 %v1533_v42  ;;  %v578_v49 = vpack.c.bf16 %v574_v47, %v574_v47 }
 0x12a   :  { %1032 = vmatprep.subr.bf16.mxu0 %v1538_v45 }
 0x12b   :  { %1048 = vmatprep.mubr.bf16.mxu0 %v578_v49 }
 0x12d   :  { %1033 = vmatpush1.bf16.msra.mxu0 %v1536_v48 }
 0x12e   :  { %1034 = vmatprep.subr.bf16.mxu0 %v1541_v50 }
 0x131   :  { %1035 = vmatpush1.bf16.msra.mxu0 %v1539_v51 }
 0x132   :  { %1036 = vmatprep.subr.bf16.mxu0 %v1544_v52 }
 0x135   :  { %1037 = vmatpush1.bf16.msra.mxu0 %v1542_v53 }
 0x136   :  { %1038 = vmatprep.subr.bf16.mxu0 %v1547_v54 }
 0x139   :  { %1039 = vmatpush1.bf16.msra.mxu0 %v1545_v55 }
 0x13a   :  { %1040 = vmatprep.subr.bf16.mxu0 %v1550_v56 }
 0x13d   :  { %1041 = vmatpush1.bf16.msra.mxu0 %v1548_v57 }
 0x13e   :  { %1042 = vmatprep.subr.bf16.mxu0 %v1553_v59 }
 0x141   :  { %1043 = vmatpush1.bf16.msra.mxu0 %v1551_v60 }
 0x142   :  { %1044 = vmatprep.subr.bf16.mxu0 %v1556_v62 }
 0x145   :  { %1045 = vmatpush1.bf16.msra.mxu0 %v1554_v63 }
 0x146   :  { %1046 = vmatprep.subr.bf16.mxu0 %v1559_v2 }
 0x149   :  { %1047 = vmatpush1.bf16.msra.mxu0 %v1557_v3 }
 0x14c   :  { %1049 = vmatmul.mubr.bf16.vlgmr.msra.gmra.mrb[0].mxu0 %v577_v5 }
 0x21f   :  { %v1050_v16 = vpop.f32.mrb[0].mxu0 }
 0x220   :  { %v1393_v17 = vadd.f32 %v1050_v16, %v648_v14  ;;  %v1052_v18 = vpop.f32.mrb[1].mxu0 }
 0x221   :  { %v1394_v19 = vadd.f32 %v1052_v18, %v652_v15  ;;  %v1054_v20 = vpop.f32.mrb[2].mxu0 }
 0x222   :  { %v1057_v21 = vmax.f32 %v1393_v17, 0.0  ;;  %v1055_v22 = vpop.f32.mrb[3].mxu0 }
 0x223   :  { %v1058_v23 = vmax.f32 %v1394_v19, 0.0 }
 0x224   :  { %v1059_v25 = vpack.c.bf16 %v1057_v21, %v1057_v21 }
 0x225   :  { %v1060_v24 = vpack.c.bf16 %v1058_v23, %v1058_v23 }
 0x227   :  { %1228 = vmatprep.mubr.bf16.mxu1 %v1060_v24 }
 0x228   :  { %1229 = vmatmul.mubr.bf16.vlgmr.msra.gmra.mrb[8].mxu1 %v1059_v25 }
 0x2fb   :  { %v1387_v26 = vpop.f32.mrb[8].mxu1 }
 0x2fc   :  { %v1388_v27 = vpop.f32.mrb[9].mxu1 }
 0x2fd   :  { %v1389_v9 = vadd.f32 %v1388_v27, %v1387_v26  ;;  %v1390_v12 = vpop.f32.mrb[10].mxu1 }
 0x2fe   :  { %v1391_v28 = vpop.f32.mrb[11].mxu1 }
 0x2ff   :  { %v1231_v29 = vadd.f32 %v1389_v9, %v1354_v10 }
 0x301   :  { %1237 = vst.msk [vmem:[%s2050_s7] sm:$0xff] %vm1236_vm7, %v1231_v29 }

// kernel: pointnext_forward.6
= control target key start
LH: loop header
LB: loop body
LE: loop exit
PB: predicated region body
PF: predicated region fallthrough
CT: control target
= control target key end

     0   :  { %s4441_s12 = smov 0   ;;  %s6483_s0 = inlined_call_operand.vmem [shape: bf16[64,16,67], index: 0, kind: input, shape index: {}]   ;;  %s6484_s1 = inlined_call_operand.vmem [shape: bf16[67,128], index: 1, kind: input, shape index: {}]   ;;  %s6485_s2 = inlined_call_operand.vmem [shape: f32[1,128], index: 2, kind: input, shape index: {}]   ;;  %s6486_s3 = inlined_call_operand.vmem [shape: bf16[64,128], index: 3, kind: output, shape index: {}]  }
   0x1 LB: > { %s3468_s13 = sadd.s32 4294967295, %s4418_s12   ;;  %p3472_p0 = scmp.ge.s32.totalorder %s4418_s12, 1  ;;  %s4418_s12 = sphi %s4441_s12, %s13_s12  }
   0x2   : > { %p139_p1 = scmp.lt.s32.totalorder %s4418_s12, 3 }
   0x4   : > { %p140_p2 = pnand %p3472_p0, %p139_p1 }
   0x5   : > { %v4452_v0 = vld [vmem:[%s6484_s1] sm:$0xff] (!%p140_p2)   ;;  %v4457_v1 = vld [vmem:[%s6484_s1 + $0x8] sm:$0xff] (!%p140_p2)   ;;  %vm446_vm0 = vcmask (!%p140_p2), 1040384   ;;  %v4468_v2 = vld [vmem:[%s6484_s1 + $0x10] sm:$0xff] (!%p140_p2)   ;;  %s3473_s20 = sshll.u32 (!%p140_p2), %s3468_s13, 5  ;;  %vm447_vm1 = vcmask (!%p140_p2), 1041408  }
   0x6   : > { %143 = sbr.rel (%p140_p2) target bundleno = 547 (0x223), region = 32  ;;  %3906 = vmatprep.subr.bf16.mxu0 (!%p140_p2), %v4452_v0  ;;  %3920 = vmatprep.subr.bf16.mxu1 (!%p140_p2), %v4452_v0  ;;  %v4420_v3 = vmov (!%p140_p2), 65535   ;;  %p165_p3 = scmp.lt.s32.totalorder (!%p140_p2), %s3473_s20, 63  ;;  %v4479_v5 = vld [vmem:[%s6484_s1 + $0x18] sm:$0xff] (!%p140_p2)   ;;  %vm348_vm2 = vcmask (!%p140_p2), 1041409   ;;  %vm351_vm3 = vcmask (!%p140_p2), 1042434  }
   0x7   : > { %3907 = vmatpush3.bf16.msra.mxu0 (!%p140_p2), %v4452_v0  ;;  %3921 = vmatpush3.bf16.msra.mxu1 (!%p140_p2), %v4452_v0  ;;  %v448_v4 = vsel (!%p140_p2), %vm446_vm0, 4294967295, %v4420_v3  ;;  %v4143_v6 = vld [vmem:[%s6484_s1 + $0x20] ss:$0 sps:$4 sm:$0x33] (!%p140_p2)   ;;  %vm354_vm4 = vcmask (!%p140_p2), 1043459   ;;  %vm357_vm5 = vcmask (!%p140_p2), 1044484  }
   0x8   : > { %3908 = vmatprep.subr.bf16.mxu0 (!%p140_p2), %v4457_v1  ;;  %3922 = vmatprep.subr.bf16.mxu1 (!%p140_p2), %v4457_v1  ;;  %v449_v7 = vsel (!%p140_p2), %vm447_vm1, %v448_v4, 0  ;;  %vm360_vm6 = vcmask (!%p140_p2), 1045509   ;;  %vm363_vm7 = vcmask (!%p140_p2), 1046534   ;;  %vm366_vm8 = vcmask (!%p140_p2), 1047559  }
   0x9   : > { %v4493_v8 = vand.u32 (!%p140_p2), %v4143_v6, %v449_v7  ;;  %vm439_vm9 = vcmask (!%p140_p2), 547840  }
   0xb   : > { %3909 = vmatpush3.bf16.msra.mxu0 (!%p140_p2), %v4457_v1  ;;  %3923 = vmatpush3.bf16.msra.mxu1 (!%p140_p2), %v4457_v1 }
   0xc   : > { %3910 = vmatprep.subr.bf16.mxu0 (!%p140_p2), %v4468_v2  ;;  %3924 = vmatprep.subr.bf16.mxu1 (!%p140_p2), %v4468_v2 }
   0xd   : > { %s6490_s20 = smov (!%p165_p3, %s3473_s20), 63 }
   0xe   : > { %s3778_s25 = sshll.u32 %s6490_s20, 3 }
   0xf   : > { %3911 = vmatpush3.bf16.msra.mxu0 %v4468_v2  ;;  %3925 = vmatpush3.bf16.msra.mxu1 %v4468_v2  ;;  %s4489_s28 = scalar_lea.vmem %s6483_s0, %s3778_s25 }
  0x10   : > { %3912 = vmatprep.subr.bf16.mxu0 %v4479_v5  ;;  %3926 = vmatprep.subr.bf16.mxu1 %v4479_v5  ;;  %v4500_v9 = vld [vmem:[%s4489_s28] ss:$0 sps:$4 sm:$0x11]   ;;  %v4503_v10 = vld [vmem:[%s4489_s28 + $0x8] ss:$0 sps:$4 sm:$0x11]  }
  0x11   : > { %v4146_v11 = vld [vmem:[%s4489_s28 + $0x10] ss:$0 sps:$4 sm:$0x11]   ;;  %v4147_v12 = vld [vmem:[%s4489_s28 + $0x18] ss:$0 sps:$4 sm:$0x11]   ;;  %v316_v18 = vunpack.c.l.b16 %v4503_v10  ;;  %v315_v26 = vunpack.c.l.b16 %v4500_v9 }
  0x12   : > { %v4148_v13 = vld [vmem:[%s4489_s28 + $0x20] ss:$0 sps:$4 sm:$0x11]   ;;  %v4511_v14 = vld [vmem:[%s4489_s28 + $0x28] ss:$0 sps:$4 sm:$0x11]   ;;  %v317_v19 = vunpack.c.l.b16 %v4146_v11  ;;  %v318_v22 = vunpack.c.l.b16 %v4147_v12 }
  0x13   : > { %3913 = vmatpush3.bf16.msra.mxu0 %v4479_v5  ;;  %3927 = vmatpush3.bf16.msra.mxu1 %v4479_v5  ;;  %v4514_v15 = vld [vmem:[%s4489_s28 + $0x30] ss:$0 sps:$4 sm:$0x11]   ;;  %v4151_v16 = vld [vmem:[%s4489_s28 + $0x38] ss:$0 sps:$4 sm:$0x11]   ;;  %v319_v23 = vunpack.c.l.b16 %v4148_v13  ;;  %v320_v27 = vunpack.c.l.b16 %v4511_v14 }
  0x14   : > { %3914 = vmatprep.subr.bf16.mxu0 %v4493_v8  ;;  %3928 = vmatprep.subr.bf16.mxu1 %v4493_v8  ;;  %v4520_v17 = vld [vmem:[%s4489_s28 + $0x40] ss:$0 sps:$4 sm:$0x11]   ;;  %v4524_v20 = vld [vmem:[%s4489_s28 + $0x48] ss:$0 sps:$4 sm:$0x11]   ;;  %v321_v28 = vunpack.c.l.b16 %v4514_v15  ;;  %v322_v31 = vunpack.c.l.b16 %v4151_v16 }
  0x15   : > { %v4154_v21 = vld [vmem:[%s4489_s28 + $0x50] ss:$0 sps:$4 sm:$0x11]   ;;  %v4155_v24 = vld [vmem:[%s4489_s28 + $0x58] ss:$0 sps:$4 sm:$0x11]   ;;  %v323_v32 = vunpack.c.l.b16 %v4520_v17  ;;  %v324_v33 = vunpack.c.l.b16 %v4524_v20 }
  0x16   : > { %v4156_v25 = vld [vmem:[%s4489_s28 + $0x60] ss:$0 sps:$4 sm:$0x11]   ;;  %v4157_v29 = vld [vmem:[%s4489_s28 + $0x68] ss:$0 sps:$4 sm:$0x11]   ;;  %v325_v34 = vunpack.c.l.b16 %v4154_v21  ;;  %v326_v36 = vunpack.c.l.b16 %v4155_v24 }
  0x17   : > { %3915 = vmatpush3.bf16.msra.mxu0 %v4493_v8  ;;  %3929 = vmatpush3.bf16.msra.mxu1 %v4493_v8  ;;  %v4534_v30 = vld [vmem:[%s4489_s28 + $0x70] ss:$0 sps:$4 sm:$0x11]   ;;  %v4159_v35 = vld [vmem:[%s4489_s28 + $0x78] ss:$0 sps:$4 sm:$0x11]   ;;  %v327_v37 = vunpack.c.l.b16 %v4156_v25  ;;  %v328_v40 = vunpack.c.l.b16 %v4157_v29 }
  0x18   : > { %3934 = vmatprep.subr.bf16.mxu0 %v4452_v0  ;;  %3948 = vmatprep.subr.bf16.mxu1 %v4452_v0  ;;  %v347_v38 = vrot.slane %v316_v18, 7  ;;  %v350_v39 = vrot.slane %v317_v19, 6  ;;  %v329_v41 = vunpack.c.l.b16 %v4534_v30  ;;  %v353_v42 = vrot.slane %v318_v22, 5 }
  0x19   : > { %v356_v43 = vrot.slane %v319_v23, 4  ;;  %v330_v44 = vunpack.c.l.b16 %v4159_v35  ;;  %v359_v46 = vrot.slane %v320_v27, 3  ;;  %v362_v47 = vrot.slane %v321_v28, 2 }
  0x1a   : > { %v349_v45 = vsel %vm348_vm2, %v347_v38, %v315_v26  ;;  %v365_v49 = vrot.slane %v322_v31, 1  ;;  %v368_v50 = vrot.slane %v324_v33, 7  ;;  %v370_v51 = vrot.slane %v325_v34, 6 }
  0x1b   : > { %v352_v48 = vsel %vm351_vm3, %v350_v39, %v349_v45  ;;  %v372_v53 = vrot.slane %v326_v36, 5  ;;  %v374_v54 = vrot.slane %v327_v37, 4  ;;  %v376_v55 = vrot.slane %v328_v40, 3  ;;  %v4575_v39 = vld [vmem:[%s4489_s28 + $0xa0] ss:$0 sps:$4 sm:$0x11]  }
  0x1c   : > { %v355_v52 = vsel %vm354_vm4, %v353_v42, %v352_v48  ;;  %v369_v57 = vsel %vm348_vm2, %v368_v50, %v323_v32  ;;  %v378_v58 = vrot.slane %v329_v41, 2  ;;  %v380_v59 = vrot.slane %v330_v44, 1  ;;  %v4590_v45 = vld [vmem:[%s4489_s28 + $0xc0] ss:$0 sps:$4 sm:$0x11]  }
  0x1d   : > { %v358_v56 = vsel %vm357_vm5, %v356_v43, %v355_v52  ;;  %v371_v61 = vsel %vm351_vm3, %v370_v51, %v369_v57  ;;  %v502_v62 = vrot.slane %v315_v26, 1  ;;  %v504_v63 = vrot.slane %v317_v19, 7  ;;  %v4562_v26 = vld [vmem:[%s4489_s28 + $0x88] ss:$0 sps:$4 sm:$0x11]  }
  0x1e   : > { %v361_v60 = vsel %vm360_vm6, %v359_v46, %v358_v56  ;;  %v373_v4 = vsel %vm354_vm4, %v372_v53, %v371_v61  ;;  %v506_v6 = vrot.slane %v318_v22, 6  ;;  %v508_v7 = vrot.slane %v319_v23, 5  ;;  %v4557_v22 = vld [vmem:[%s4489_s28 + $0x80] ss:$0 sps:$4 sm:$0x11]  }
  0x1f   : > { %v364_v3 = vsel %vm363_vm7, %v362_v47, %v361_v60  ;;  %v375_v10 = vsel %vm357_vm5, %v374_v54, %v373_v4  ;;  %v503_v11 = vsel %vm348_vm2, %v316_v18, %v502_v62  ;;  %v510_v12 = vrot.slane %v320_v27, 4  ;;  %v4583_v43 = vld [vmem:[%s4489_s28 + $0xb0] ss:$0 sps:$4 sm:$0x11]  }
  0x20   : > { %v367_v9 = vsel %vm366_vm8, %v365_v49, %v364_v3  ;;  %v377_v13 = vsel %vm360_vm6, %v376_v55, %v375_v10  ;;  %v505_v14 = vsel %vm351_vm3, %v504_v63, %v503_v11  ;;  %v512_v15 = vrot.slane %v321_v28, 3  ;;  %v4593_v46 = vld [vmem:[%s4489_s28 + $0xc8] ss:$0 sps:$4 sm:$0x11]  }
  0x21   : > { %v514_v16 = vrot.slane %v322_v31, 2  ;;  %v379_v17 = vsel %vm363_vm7, %v378_v58, %v377_v13  ;;  %v507_v19 = vsel %vm354_vm4, %v506_v6, %v505_v14  ;;  %v516_v20 = vrot.slane %v323_v32, 1  ;;  %v4567_v31 = vld [vmem:[%s4489_s28 + $0x90] ss:$0 sps:$4 sm:$0x11]  }
  0x22   : > { %v518_v21 = vrot.slane %v325_v34, 7  ;;  %v381_v23 = vsel %vm366_vm8, %v380_v59, %v379_v17  ;;  %v509_v18 = vsel %vm357_vm5, %v508_v7, %v507_v19  ;;  %v520_v24 = vrot.slane %v326_v36, 6  ;;  %v4170_v51 = vld [vmem:[%s4489_s28 + $0xd0] ss:$0 sps:$4 sm:$0x11]  }
  0x23   : > { %v522_v25 = vrot.slane %v327_v37, 5  ;;  %v410_v27 = vpack.c.b16 %v381_v23, %v367_v9  ;;  %v511_v28 = vsel %vm360_vm6, %v510_v12, %v509_v18  ;;  %v517_v29 = vsel %vm348_vm2, %v324_v33, %v516_v20  ;;  %v4163_v37 = vld [vmem:[%s4489_s28 + $0x98] ss:$0 sps:$4 sm:$0x11]  }
  0x24   : > { %v524_v30 = vrot.slane %v328_v40, 4  ;;  %v513_v32 = vsel %vm363_vm7, %v512_v15, %v511_v28  ;;  %v519_v34 = vsel %vm351_vm3, %v518_v21, %v517_v29  ;;  %v526_v35 = vrot.slane %v329_v41, 3  ;;  %v4578_v33 = vld [vmem:[%s4489_s28 + $0xa8] ss:$0 sps:$4 sm:$0x11]  }
  0x25   : > { %v528_v36 = vrot.slane %v330_v44, 2  ;;  %3916 = vmatprep.mubr.msk.bf16.mxu0 %vm439_vm9, %v410_v27  ;;  %v521_v38 = vsel %vm354_vm4, %v520_v24, %v519_v34  ;;  %v515_v40 = vsel %vm366_vm8, %v514_v16, %v513_v32  ;;  %v4586_v41 = vld [vmem:[%s4489_s28 + $0xb8] ss:$0 sps:$4 sm:$0x11]   ;;  %v331_v47 = vunpack.c.l.b16 %v4557_v22 }
  0x26   : > { %v523_v42 = vsel %vm357_vm5, %v522_v25, %v521_v38  ;;  %v332_v48 = vunpack.c.l.b16 %v4562_v26  ;;  %v333_v49 = vunpack.c.l.b16 %v4567_v31  ;;  %v4601_v52 = vld [vmem:[%s4489_s28 + $0xd8] ss:$0 sps:$4 sm:$0x11]   ;;  %v334_v53 = vunpack.c.l.b16 %v4163_v37  ;;  %v4172_v57 = vld [vmem:[%s4489_s28 + $0xe0] ss:$0 sps:$4 sm:$0x11]  }
  0x27   : > { %v525_v44 = vsel %vm360_vm6, %v524_v30, %v523_v42  ;;  %v335_v54 = vunpack.c.l.b16 %v4575_v39  ;;  %v336_v55 = vunpack.c.l.b16 %v4578_v33  ;;  %v4608_v58 = vld [vmem:[%s4489_s28 + $0xe8] ss:$0 sps:$4 sm:$0x11]   ;;  %v337_v59 = vunpack.c.l.b16 %v4583_v43  ;;  %v4614_v63 = vld [vmem:[%s4489_s28 + $0xf0] ss:$0 sps:$4 sm:$0x11]  }
  0x28   : > { %v527_v50 = vsel %vm363_vm7, %v526_v35, %v525_v44  ;;  %v338_v60 = vunpack.c.l.b16 %v4586_v41  ;;  %v339_v61 = vunpack.c.l.b16 %v4590_v45  ;;  %v4617_v3 = vld [vmem:[%s4489_s28 + $0xf8] ss:$0 sps:$4 sm:$0x11]   ;;  %v340_v4 = vunpack.c.l.b16 %v4593_v46 }
  0x29   : > { %v529_v56 = vsel %vm366_vm8, %v528_v36, %v527_v50  ;;  %v341_v6 = vunpack.c.l.b16 %v4170_v51  ;;  %v342_v7 = vunpack.c.l.b16 %v4601_v52  ;;  %v343_v9 = vunpack.c.l.b16 %v4172_v57  ;;  %v4641_v50 = vld [vmem:[%s4489_s28] ss:$0 sps:$4 sm:$0x22]  }
  0x2a   : > { %v558_v62 = vpack.c.b16 %v529_v56, %v515_v40  ;;  %v344_v10 = vunpack.c.l.b16 %v4608_v58  ;;  %v382_v11 = vrot.slane %v332_v48, 7  ;;  %v384_v12 = vrot.slane %v333_v49, 6 }
  0x2b   : > { %v345_v13 = vunpack.c.l.b16 %v4614_v63  ;;  %v346_v14 = vunpack.c.l.b16 %v4617_v3  ;;  %v386_v15 = vrot.slane %v334_v53, 5  ;;  %v388_v16 = vrot.slane %v335_v54, 4  ;;  %v4656_v3 = vld [vmem:[%s4489_s28 + $0x18] ss:$0 sps:$4 sm:$0x22]  }
  0x2c   : > { %3930 = vmatprep.mubr.msk.bf16.mxu1 %vm439_vm9, %v558_v62  ;;  %v383_v17 = vsel %vm348_vm2, %v382_v11, %v331_v47  ;;  %v390_v19 = vrot.slane %v336_v55, 3  ;;  %v392_v20 = vrot.slane %v337_v59, 2  ;;  %v394_v21 = vrot.slane %v338_v60, 1 }
  0x2d   : > { %v385_v22 = vsel %vm351_vm3, %v384_v12, %v383_v17  ;;  %v396_v23 = vrot.slane %v340_v4, 7  ;;  %v398_v18 = vrot.slane %v341_v6, 6  ;;  %v400_v24 = vrot.slane %v342_v7, 5 }
  0x2e   : > { %v387_v25 = vsel %vm354_vm4, %v386_v15, %v385_v22  ;;  %v402_v26 = vrot.slane %v343_v9, 4  ;;  %v404_v27 = vrot.slane %v344_v10, 3  ;;  %v406_v28 = vrot.slane %v345_v13, 2  ;;  %v4665_v15 = vld [vmem:[%s4489_s28 + $0x28] ss:$0 sps:$4 sm:$0x22]  }
  0x2f   : > { %v389_v29 = vsel %vm357_vm5, %v388_v16, %v387_v25  ;;  %v397_v30 = vsel %vm348_vm2, %v396_v23, %v339_v61  ;;  %v408_v31 = vrot.slane %v346_v14, 1  ;;  %v530_v32 = vrot.slane %v331_v47, 1  ;;  %v4668_v16 = vld [vmem:[%s4489_s28 + $0x30] ss:$0 sps:$4 sm:$0x22]  }
  0x30   : > { %v391_v34 = vsel %vm360_vm6, %v390_v19, %v389_v29  ;;  %v399_v35 = vsel %vm351_vm3, %v398_v18, %v397_v30  ;;  %v532_v36 = vrot.slane %v333_v49, 7  ;;  %v534_v37 = vrot.slane %v334_v53, 6  ;;  %v4687_v22 = vld [vmem:[%s4489_s28 + $0x50] ss:$0 sps:$4 sm:$0x22]  }
  0x31   : > { %v393_v38 = vsel %vm363_vm7, %v392_v20, %v391_v34  ;;  %v401_v39 = vsel %vm354_vm4, %v400_v24, %v399_v35  ;;  %v531_v33 = vsel %vm348_vm2, %v332_v48, %v530_v32  ;;  %v536_v40 = vrot.slane %v335_v54, 5  ;;  %v4646_v54 = vld [vmem:[%s4489_s28 + $0x8] ss:$0 sps:$4 sm:$0x22]  }
  0x32   : > { %v395_v42 = vsel %vm366_vm8, %v394_v21, %v393_v38  ;;  %v403_v43 = vsel %vm357_vm5, %v402_v26, %v401_v39  ;;  %v533_v41 = vsel %vm351_vm3, %v532_v36, %v531_v33  ;;  %v538_v44 = vrot.slane %v336_v55, 4  ;;  %v4684_v21 = vld [vmem:[%s4489_s28 + $0x48] ss:$0 sps:$4 sm:$0x22]  }
  0x33   : > { %v405_v45 = vsel %vm360_vm6, %v404_v27, %v403_v43  ;;  %v535_v46 = vsel %vm354_vm4, %v534_v37, %v533_v41  ;;  %v540_v47 = vrot.slane %v337_v59, 3  ;;  %v542_v49 = vrot.slane %v338_v60, 2  ;;  %v4651_v59 = vld [vmem:[%s4489_s28 + $0x10] ss:$0 sps:$4 sm:$0x22]  }
  0x34   : > { %v407_v48 = vsel %vm363_vm7, %v406_v28, %v405_v45  ;;  %v537_v51 = vsel %vm357_vm5, %v536_v40, %v535_v46  ;;  %v544_v52 = vrot.slane %v339_v61, 1  ;;  %v546_v53 = vrot.slane %v341_v6, 7  ;;  %v4694_v26 = vld [vmem:[%s4489_s28 + $0x58] ss:$0 sps:$4 sm:$0x22]  }
  0x35   : > { %v409_v55 = vsel %vm366_vm8, %v408_v31, %v407_v48  ;;  %v539_v56 = vsel %vm360_vm6, %v538_v44, %v537_v51  ;;  %v548_v57 = vrot.slane %v342_v7, 6  ;;  %v550_v58 = vrot.slane %v343_v9, 5  ;;  %v4660_v7 = vld [vmem:[%s4489_s28 + $0x20] ss:$0 sps:$4 sm:$0x22]  }
  0x36   : > { %v411_v60 = vpack.c.b16 %v409_v55, %v395_v42  ;;  %v541_v62 = vsel %vm363_vm7, %v540_v47, %v539_v56  ;;  %v545_v61 = vsel %vm348_vm2, %v340_v4, %v544_v52  ;;  %v552_v63 = vrot.slane %v344_v10, 4  ;;  %v4697_v27 = vld [vmem:[%s4489_s28 + $0x60] ss:$0 sps:$4 sm:$0x22]  }
  0x37   : > { %v547_v6 = vsel %vm351_vm3, %v546_v53, %v545_v61  ;;  %v554_v11 = vrot.slane %v345_v13, 3  ;;  %v556_v12 = vrot.slane %v346_v14, 2  ;;  %v543_v4 = vsel %vm366_vm8, %v542_v49, %v541_v62  ;;  %v4674_v13 = vld [vmem:[%s4489_s28 + $0x38] ss:$0 sps:$4 sm:$0x22]  }
  0x38   : > { %3917 = vmatmul.mubr.msk.bf16.vlgmr.msra.gmra.mrb[0].mxu0 %vm439_vm9, %v411_v60  ;;  %v549_v9 = vsel %vm354_vm4, %v548_v57, %v547_v6  ;;  %v4677_v14 = vld [vmem:[%s4489_s28 + $0x40] ss:$0 sps:$4 sm:$0x22]   ;;  %v747_v17 = vunpack.c.l.b16 %v4641_v50  ;;  %v748_v19 = vunpack.c.l.b16 %v4646_v54  ;;  %v749_v23 = vunpack.c.l.b16 %v4651_v59  ;;  %v4704_v32 = vld [vmem:[%s4489_s28 + $0x68] ss:$0 sps:$4 sm:$0x22]  }
  0x39   : > { %v551_v10 = vsel %vm357_vm5, %v550_v58, %v549_v9  ;;  %3935 = vmatpush3.bf16.msra.mxu0 %v4452_v0  ;;  %v750_v18 = vunpack.c.l.b16 %v4656_v3  ;;  %v751_v24 = vunpack.c.l.b16 %v4660_v7  ;;  %v752_v28 = vunpack.c.l.b16 %v4665_v15  ;;  %v4707_v34 = vld [vmem:[%s4489_s28 + $0x70] ss:$0 sps:$4 sm:$0x22]   ;;  %v4714_v39 = vld [vmem:[%s4489_s28 + $0x78] ss:$0 sps:$4 sm:$0x22]  }
  0x3a   : > { %v553_v20 = vsel %vm360_vm6, %v552_v63, %v551_v10  ;;  %3936 = vmatprep.subr.bf16.mxu0 %v4457_v1  ;;  %v753_v29 = vunpack.c.l.b16 %v4668_v16  ;;  %v754_v30 = vunpack.c.l.b16 %v4674_v13  ;;  %v755_v35 = vunpack.c.l.b16 %v4677_v14 }
  0x3b   : > { %v555_v25 = vsel %vm363_vm7, %v554_v11, %v553_v20  ;;  %v756_v36 = vunpack.c.l.b16 %v4684_v21  ;;  %v757_v37 = vunpack.c.l.b16 %v4687_v22  ;;  %v758_v33 = vunpack.c.l.b16 %v4694_v26 }
  0x3c   : > { %v557_v31 = vsel %vm366_vm8, %v556_v12, %v555_v25  ;;  %v759_v40 = vunpack.c.l.b16 %v4697_v27  ;;  %v779_v42 = vrot.slane %v747_v17, 2  ;;  %v760_v43 = vunpack.c.l.b16 %v4704_v32  ;;  %v4769_v32 = vld [vmem:[%s4489_s28 + $0x88] ss:$0 sps:$4 sm:$0x22]  }
  0x3d   : > { %v559_v38 = vpack.c.b16 %v557_v31, %v543_v4  ;;  %3937 = vmatpush3.bf16.msra.mxu0 %v4457_v1  ;;  %v761_v41 = vunpack.c.l.b16 %v4707_v34  ;;  %v780_v44 = vrot.slane %v748_v19, 1  ;;  %v783_v45 = vrot.slane %v750_v18, 7 }
  0x3e   : > { %3938 = vmatprep.subr.bf16.mxu0 %v4468_v2  ;;  %v762_v46 = vunpack.c.l.b16 %v4714_v39  ;;  %v785_v47 = vrot.slane %v751_v24, 6  ;;  %v787_v49 = vrot.slane %v752_v28, 5  ;;  %v789_v50 = vrot.slane %v753_v29, 4 }
  0x3f   : > { %3931 = vmatmul.mubr.msk.bf16.vlgmr.msra.gmra.mrb[0].mxu1 %vm439_vm9, %v559_v38  ;;  %v781_v48 = vsel %vm348_vm2, %v780_v44, %v779_v42  ;;  %v791_v51 = vrot.slane %v754_v30, 3  ;;  %v793_v52 = vrot.slane %v755_v35, 2  ;;  %v794_v53 = vrot.slane %v756_v36, 1  ;;  %v4794_v44 = vld [vmem:[%s4489_s28 + $0xa0] ss:$0 sps:$4 sm:$0x22]  }
  0x40   : > { %3949 = vmatpush3.bf16.msra.mxu1 %v4452_v0  ;;  %v782_v54 = vsel %vm351_vm3, %v749_v23, %v781_v48  ;;  %v797_v55 = vrot.slane %v758_v33, 7  ;;  %v799_v56 = vrot.slane %v759_v40, 6  ;;  %v801_v57 = vrot.slane %v760_v43, 5  ;;  %v4824_v48 = vld [vmem:[%s4489_s28 + $0xd0] ss:$0 sps:$4 sm:$0x22]  }
  0x41   : > { %3950 = vmatprep.subr.bf16.mxu1 %v4457_v1  ;;  %3939 = vmatpush3.bf16.msra.mxu0 %v4468_v2  ;;  %v784_v58 = vsel %vm354_vm4, %v783_v45, %v782_v54  ;;  %v795_v59 = vsel %vm348_vm2, %v794_v53, %v793_v52  ;;  %v803_v60 = vrot.slane %v761_v41, 4  ;;  %v805_v62 = vrot.slane %v762_v46, 3  ;;  %v4811_v45 = vld [vmem:[%s4489_s28 + $0xb8] ss:$0 sps:$4 sm:$0x22]  }
  0x42   : > { %3940 = vmatprep.subr.bf16.mxu0 %v4479_v5  ;;  %v786_v61 = vsel %vm357_vm5, %v785_v47, %v784_v58  ;;  %v796_v63 = vsel %vm351_vm3, %v757_v37, %v795_v59  ;;  %v896_v6 = vrot.slane %v747_v17, 3  ;;  %v897_v11 = vrot.slane %v748_v19, 2  ;;  %v4831_v53 = vld [vmem:[%s4489_s28 + $0xd8] ss:$0 sps:$4 sm:$0x22]  }
  0x43   : > { %v788_v12 = vsel %vm360_vm6, %v787_v49, %v786_v61  ;;  %v798_v7 = vsel %vm354_vm4, %v797_v55, %v796_v63  ;;  %v899_v9 = vrot.slane %v749_v23, 1  ;;  %v902_v15 = vrot.slane %v751_v24, 7  ;;  %v4760_v23 = vld [vmem:[%s4489_s28 + $0x80] ss:$0 sps:$4 sm:$0x22]  }
  0x44   : > { %3951 = vmatpush3.bf16.msra.mxu1 %v4457_v1  ;;  %v790_v16 = vsel %vm363_vm7, %v789_v50, %v788_v12  ;;  %v800_v4 = vsel %vm357_vm5, %v799_v56, %v798_v7  ;;  %v898_v10 = vsel %vm348_vm2, %v897_v11, %v896_v6  ;;  %v904_v14 = vrot.slane %v752_v28, 6  ;;  %v4821_v50 = vld [vmem:[%s4489_s28 + $0xc8] ss:$0 sps:$4 sm:$0x22]  }
  0x45   : > { %3952 = vmatprep.subr.bf16.mxu1 %v4468_v2  ;;  %3941 = vmatpush3.bf16.msra.mxu0 %v4479_v5  ;;  %v792_v1 = vsel %vm366_vm8, %v791_v51, %v790_v16  ;;  %v802_v17 = vsel %vm360_vm6, %v801_v57, %v800_v4  ;;  %v900_v19 = vsel %vm351_vm3, %v899_v9, %v898_v10  ;;  %v906_v20 = vrot.slane %v753_v29, 5  ;;  %v4834_v54 = vld [vmem:[%s4489_s28 + $0xe0] ss:$0 sps:$4 sm:$0x22]  }
  0x46   : > { %3942 = vmatprep.subr.bf16.mxu0 %v4493_v8  ;;  %v804_v24 = vsel %vm363_vm7, %v803_v60, %v802_v17  ;;  %v901_v25 = vsel %vm354_vm4, %v750_v18, %v900_v19  ;;  %v908_v28 = vrot.slane %v754_v30, 4  ;;  %v910_v31 = vrot.slane %v755_v35, 3  ;;  %v4779_v18 = vld [vmem:[%s4489_s28 + $0x90] ss:$0 sps:$4 sm:$0x22]  }
  0x47   : > { %v806_v38 = vsel %vm366_vm8, %v805_v62, %v804_v24  ;;  %v903_v29 = vsel %vm357_vm5, %v902_v15, %v901_v25  ;;  %v911_v39 = vrot.slane %v756_v36, 2  ;;  %v913_v3 = vrot.slane %v757_v37, 1  ;;  %v4787_v35 = vld [vmem:[%s4489_s28 + $0x98] ss:$0 sps:$4 sm:$0x22]  }
  0x48   : > { %3953 = vmatpush3.bf16.msra.mxu1 %v4468_v2  ;;  %v835_v2 = vpack.c.b16 %v806_v38, %v792_v1  ;;  %v905_v13 = vsel %vm360_vm6, %v904_v14, %v903_v29  ;;  %v916_v30 = vrot.slane %v759_v40, 7  ;;  %v918_v21 = vrot.slane %v760_v43, 6  ;;  %v4800_v40 = vld [vmem:[%s4489_s28 + $0xa8] ss:$0 sps:$4 sm:$0x22]  }
  0x49   : > { %3954 = vmatprep.subr.bf16.mxu1 %v4479_v5  ;;  %3943 = vmatpush3.bf16.msra.mxu0 %v4493_v8  ;;  %v907_v22 = vsel %vm363_vm7, %v906_v20, %v905_v13  ;;  %v912_v36 = vsel %vm348_vm2, %v911_v39, %v910_v31  ;;  %v920_v37 = vrot.slane %v761_v41, 5  ;;  %v922_v42 = vrot.slane %v762_v46, 4  ;;  %v4803_v43 = vld [vmem:[%s4489_s28 + $0xb0] ss:$0 sps:$4 sm:$0x22]  }
  0x4a   : > { %3962 = vmatprep.subr.bf16.mxu0 %v4452_v0  ;;  %3944 = vmatprep.mubr.msk.bf16.mxu0 %vm439_vm9, %v835_v2  ;;  %v914_v27 = vsel %vm351_vm3, %v913_v3, %v912_v36  ;;  %v909_v34 = vsel %vm366_vm8, %v908_v28, %v907_v22  ;;  %v4814_v46 = vld [vmem:[%s4489_s28 + $0xc0] ss:$0 sps:$4 sm:$0x22]   ;;  %v763_v47 = vunpack.c.l.b16 %v4760_v23  ;;  %v764_v49 = vunpack.c.l.b16 %v4769_v32  ;;  %v4205_v59 = vld [vmem:[%s4489_s28 + $0xe8] ss:$0 sps:$4 sm:$0x22]  }
  0x4b   : > { %v915_v41 = vsel %vm354_vm4, %v758_v33, %v914_v27  ;;  %v765_v26 = vunpack.c.l.b16 %v4779_v18  ;;  %v766_v33 = vunpack.c.l.b16 %v4787_v35  ;;  %v767_v51 = vunpack.c.l.b16 %v4794_v44  ;;  %v4842_v60 = vld [vmem:[%s4489_s28 + $0xf0] ss:$0 sps:$4 sm:$0x22]   ;;  %v4850_v11 = vld [vmem:[%s4489_s28 + $0xf8] ss:$0 sps:$4 sm:$0x22]  }
  0x4c   : > { %3955 = vmatpush3.bf16.msra.mxu1 %v4479_v5  ;;  %v917_v5 = vsel %vm357_vm5, %v916_v30, %v915_v41  ;;  %v768_v55 = vunpack.c.l.b16 %v4800_v40  ;;  %v769_v56 = vunpack.c.l.b16 %v4803_v43  ;;  %v770_v57 = vunpack.c.l.b16 %v4811_v45 }
  0x4d   : > { %3956 = vmatprep.subr.bf16.mxu1 %v4493_v8  ;;  %v919_v52 = vsel %vm360_vm6, %v918_v21, %v917_v5  ;;  %v771_v62 = vunpack.c.l.b16 %v4814_v46  ;;  %v772_v61 = vunpack.c.l.b16 %v4821_v50  ;;  %v773_v63 = vunpack.c.l.b16 %v4824_v48 }
  0x4e   : > { %v921_v58 = vsel %vm363_vm7, %v920_v37, %v919_v52  ;;  %v774_v12 = vunpack.c.l.b16 %v4831_v53  ;;  %v775_v7 = vunpack.c.l.b16 %v4834_v54  ;;  %v807_v9 = vrot.slane %v763_v47, 2  ;;  %v4913_v53 = vld [vmem:[%s4489_s28 + $0x30] ss:$0 sps:$4 sm:$0x44]  }
  0x4f   : > { %v923_v6 = vsel %vm366_vm8, %v922_v42, %v921_v58  ;;  %v776_v16 = vunpack.c.l.b16 %v4205_v59  ;;  %v777_v4 = vunpack.c.l.b16 %v4842_v60  ;;  %v808_v10 = vrot.slane %v764_v49, 1 }
  0x50   : > { %3957 = vmatpush3.bf16.msra.mxu1 %v4493_v8  ;;  %v952_v15 = vpack.c.b16 %v923_v6, %v909_v34  ;;  %v778_v14 = vunpack.c.l.b16 %v4850_v11  ;;  %v811_v1 = vrot.slane %v766_v33, 7  ;;  %v813_v17 = vrot.slane %v767_v51, 6  ;;  %v4892_v6 = vld [vmem:[%s4489_s28 + $0x18] ss:$0 sps:$4 sm:$0x44]  }
  0x51   : > { %3976 = vmatprep.subr.bf16.mxu1 %v4452_v0  ;;  %v815_v19 = vrot.slane %v768_v55, 5  ;;  %v809_v20 = vsel %vm348_vm2, %v808_v10, %v807_v9  ;;  %v817_v23 = vrot.slane %v769_v56, 4  ;;  %v819_v24 = vrot.slane %v770_v57, 3  ;;  %v4902_v9 = vld [vmem:[%s4489_s28 + $0x28] ss:$0 sps:$4 sm:$0x44]  }
  0x52   : > { %3958 = vmatprep.mubr.msk.bf16.mxu1 %vm439_vm9, %v952_v15  ;;  %v821_v25 = vrot.slane %v771_v62, 2  ;;  %v810_v28 = vsel %vm351_vm3, %v765_v26, %v809_v20  ;;  %v822_v31 = vrot.slane %v772_v61, 1  ;;  %v825_v32 = vrot.slane %v774_v12, 7 }
  0x53   : > { %v827_v38 = vrot.slane %v775_v7, 6  ;;  %v812_v0 = vsel %vm354_vm4, %v811_v1, %v810_v28  ;;  %v829_v29 = vrot.slane %v776_v16, 5  ;;  %v831_v39 = vrot.slane %v777_v4, 4  ;;  %v4926_v1 = vld [vmem:[%s4489_s28 + $0x40] ss:$0 sps:$4 sm:$0x44]  }
  0x54   : > { %v833_v3 = vrot.slane %v778_v14, 3  ;;  %v814_v18 = vsel %vm357_vm5, %v813_v17, %v812_v0  ;;  %v823_v2 = vsel %vm348_vm2, %v822_v31, %v821_v25  ;;  %v924_v13 = vrot.slane %v763_v47, 3  ;;  %v4929_v17 = vld [vmem:[%s4489_s28 + $0x48] ss:$0 sps:$4 sm:$0x44]  }
  0x55   : > { %v925_v30 = vrot.slane %v764_v49, 2  ;;  %v816_v21 = vsel %vm360_vm6, %v815_v19, %v814_v18  ;;  %v824_v35 = vsel %vm351_vm3, %v773_v63, %v823_v2  ;;  %v927_v22 = vrot.slane %v765_v26, 1  ;;  %v4936_v25 = vld [vmem:[%s4489_s28 + $0x50] ss:$0 sps:$4 sm:$0x44]  }
  0x56   : > { %v930_v36 = vrot.slane %v767_v51, 7  ;;  %v818_v37 = vsel %vm363_vm7, %v817_v23, %v816_v21  ;;  %v826_v42 = vsel %vm354_vm4, %v825_v32, %v824_v35  ;;  %v932_v27 = vrot.slane %v768_v55, 6  ;;  %v4878_v51 = vld [vmem:[%s4489_s28] ss:$0 sps:$4 sm:$0x44]  }
  0x57   : > { %v926_v44 = vsel %vm348_vm2, %v925_v30, %v924_v13  ;;  %v820_v40 = vsel %vm366_vm8, %v819_v24, %v818_v37  ;;  %v828_v43 = vsel %vm357_vm5, %v827_v38, %v826_v42  ;;  %v934_v41 = vrot.slane %v769_v56, 5  ;;  %v4883_v56 = vld [vmem:[%s4489_s28 + $0x8] ss:$0 sps:$4 sm:$0x44]   ;;  %v4967_v37 = vld [vmem:[%s6484_s1 + $0x10] sm:$0xff]  }
  0x58   : > { %v928_v34 = vsel %vm351_vm3, %v927_v22, %v926_v44  ;;  %v830_v45 = vsel %vm360_vm6, %v829_v29, %v828_v43  ;;  %v936_v47 = vrot.slane %v770_v57, 4  ;;  %v938_v49 = vrot.slane %v771_v62, 3  ;;  %v4888_v62 = vld [vmem:[%s4489_s28 + $0x10] ss:$0 sps:$4 sm:$0x44]  }
  0x59   : > { %v929_v46 = vsel %vm354_vm4, %v766_v33, %v928_v34  ;;  %v832_v5 = vsel %vm363_vm7, %v831_v39, %v830_v45  ;;  %v939_v48 = vrot.slane %v772_v61, 2  ;;  %v941_v26 = vrot.slane %v773_v63, 1  ;;  %v4939_v28 = vld [vmem:[%s4489_s28 + $0x58] ss:$0 sps:$4 sm:$0x44]  }
  0x5a   : > { %v931_v50 = vsel %vm357_vm5, %v930_v36, %v929_v46  ;;  %v834_v52 = vsel %vm366_vm8, %v833_v3, %v832_v5  ;;  %v944_v55 = vrot.slane %v775_v7, 7  ;;  %v946_v33 = vrot.slane %v776_v16, 6  ;;  %v4899_v7 = vld [vmem:[%s4489_s28 + $0x20] ss:$0 sps:$4 sm:$0x44]  }
  0x5b   : > { %v933_v54 = vsel %vm360_vm6, %v932_v27, %v931_v50  ;;  %v836_v57 = vpack.c.b16 %v834_v52, %v820_v40  ;;  %v940_v59 = vsel %vm348_vm2, %v939_v48, %v938_v49  ;;  %v948_v60 = vrot.slane %v777_v4, 5  ;;  %v4909_v4 = vld [vmem:[%s6484_s1] sm:$0xff]   ;;  %v4949_v39 = vld [vmem:[%s4489_s28 + $0x68] ss:$0 sps:$4 sm:$0x44]   ;;  %v4985_v52 = vld [vmem:[%s6484_s1 + $0x18] sm:$0xff]  }
  0x5c   : > { %v935_v58 = vsel %vm363_vm7, %v934_v41, %v933_v54  ;;  %v942_v61 = vsel %vm351_vm3, %v941_v26, %v940_v59  ;;  %v950_v63 = vrot.slane %v778_v14, 4  ;;  %v4922_v14 = vld [vmem:[%s6484_s1 + $0x8] sm:$0xff]   ;;  %v1141_v19 = vunpack.c.l.b16 %v4878_v51  ;;  %v4946_v29 = vld [vmem:[%s4489_s28 + $0x60] ss:$0 sps:$4 sm:$0x44]  }
  0x5d   : > { %3945 = vmatmul.mubr.msk.bf16.vlgmr.msra.gmra.mrb[4].mxu0 %vm439_vm9, %v836_v57  ;;  %v943_v11 = vsel %vm354_vm4, %v774_v12, %v942_v61  ;;  %v937_v15 = vsel %vm366_vm8, %v936_v47, %v935_v58  ;;  %v4916_v12 = vld [vmem:[%s4489_s28 + $0x38] ss:$0 sps:$4 sm:$0x44]   ;;  %v1142_v20 = vunpack.c.l.b16 %v4883_v56  ;;  %v1143_v23 = vunpack.c.l.b16 %v4888_v62  ;;  %v4956_v30 = vld [vmem:[%s4489_s28 + $0x70] ss:$0 sps:$4 sm:$0x44]  }
  0x5e   : > { %v945_v16 = vsel %vm357_vm5, %v944_v55, %v943_v11  ;;  %3963 = vmatpush3.bf16.msra.mxu0 %v4909_v4  ;;  %v1144_v31 = vunpack.c.l.b16 %v4892_v6  ;;  %v1145_v32 = vunpack.c.l.b16 %v4899_v7  ;;  %v1146_v38 = vunpack.c.l.b16 %v4902_v9  ;;  %v4959_v21 = vld [vmem:[%s4489_s28 + $0x78] ss:$0 sps:$4 sm:$0x44]  }
  0x5f   : > { %v947_v10 = vsel %vm360_vm6, %v946_v33, %v945_v16  ;;  %3964 = vmatprep.subr.bf16.mxu0 %v4922_v14  ;;  %v1147_v3 = vunpack.c.l.b16 %v4913_v53  ;;  %v1148_v18 = vunpack.c.l.b16 %v4916_v12  ;;  %v1149_v2 = vunpack.c.l.b16 %v4926_v1 }
  0x60   : > { %v949_v24 = vsel %vm363_vm7, %v948_v60, %v947_v10  ;;  %v1150_v35 = vunpack.c.l.b16 %v4929_v17  ;;  %v1151_v22 = vunpack.c.l.b16 %v4936_v25  ;;  %v1152_v36 = vunpack.c.l.b16 %v4939_v28  ;;  %v5013_v17 = vld [vmem:[%s4489_s28 + $0x80] ss:$0 sps:$4 sm:$0x44]   ;;  %v5018_v25 = vld [vmem:[%s4489_s28 + $0x88] ss:$0 sps:$4 sm:$0x44]  }
  0x61   : > { %v951_v0 = vsel %vm366_vm8, %v950_v63, %v949_v24  ;;  %v1153_v42 = vunpack.c.l.b16 %v4946_v29  ;;  %v1154_v44 = vunpack.c.l.b16 %v4949_v39  ;;  %v1173_v27 = vrot.slane %v1141_v19, 4  ;;  %v5044_v28 = vld [vmem:[%s4489_s28 + $0xa0] ss:$0 sps:$4 sm:$0x44]  }
  0x62   : > { %v953_v13 = vpack.c.b16 %v951_v0, %v937_v15  ;;  %3965 = vmatpush3.bf16.msra.mxu0 %v4922_v14  ;;  %v1174_v40 = vrot.slane %v1142_v20, 3  ;;  %v1155_v43 = vunpack.c.l.b16 %v4956_v30  ;;  %v1156_v34 = vunpack.c.l.b16 %v4959_v21 }
  0x63   : > { %3966 = vmatprep.subr.bf16.mxu0 %v4967_v37  ;;  %v1176_v41 = vrot.slane %v1143_v23, 2  ;;  %v1178_v45 = vrot.slane %v1144_v31, 1  ;;  %v1181_v47 = vrot.slane %v1146_v38, 7  ;;  %v1183_v49 = vrot.slane %v1147_v3, 6 }
  0x64   : > { %3959 = vmatmul.mubr.msk.bf16.vlgmr.msra.gmra.mrb[4].mxu1 %vm439_vm9, %v953_v13  ;;  %v1175_v46 = vsel %vm348_vm2, %v1174_v40, %v1173_v27  ;;  %v1185_v5 = vrot.slane %v1148_v18, 5  ;;  %v1187_v48 = vrot.slane %v1149_v2, 4  ;;  %v1188_v26 = vrot.slane %v1150_v35, 3  ;;  %v5024_v13 = vld [vmem:[%s4489_s28 + $0x90] ss:$0 sps:$4 sm:$0x44]  }
  0x65   : > { %3977 = vmatpush3.bf16.msra.mxu1 %v4909_v4  ;;  %v1177_v50 = vsel %vm351_vm3, %v1176_v41, %v1175_v46  ;;  %v1190_v51 = vrot.slane %v1151_v22, 2  ;;  %v1192_v55 = vrot.slane %v1152_v36, 1  ;;  %v1195_v33 = vrot.slane %v1154_v44, 7 }
  0x66   : > { %3978 = vmatprep.subr.bf16.mxu1 %v4922_v14  ;;  %3967 = vmatpush3.bf16.msra.mxu0 %v4967_v37  ;;  %v1179_v54 = vsel %vm354_vm4, %v1178_v45, %v1177_v50  ;;  %v1197_v56 = vrot.slane %v1155_v43, 6  ;;  %v1189_v58 = vsel %vm348_vm2, %v1188_v26, %v1187_v48  ;;  %v1199_v59 = vrot.slane %v1156_v34, 5 }
  0x67   : > { %3968 = vmatprep.subr.bf16.mxu0 %v4985_v52  ;;  %v1180_v57 = vsel %vm357_vm5, %v1145_v32, %v1179_v54  ;;  %v1290_v60 = vrot.slane %v1141_v19, 5  ;;  %v1191_v61 = vsel %vm351_vm3, %v1190_v51, %v1189_v58  ;;  %v1291_v63 = vrot.slane %v1142_v20, 4  ;;  %v5079_v51 = vld [vmem:[%s4489_s28 + $0xd0] ss:$0 sps:$4 sm:$0x44]  }
  0x68   : > { %v1182_v62 = vsel %vm360_vm6, %v1181_v47, %v1180_v57  ;;  %v1293_v6 = vrot.slane %v1143_v23, 3  ;;  %v1193_v7 = vsel %vm354_vm4, %v1192_v55, %v1191_v61  ;;  %v1295_v15 = vrot.slane %v1144_v31, 2  ;;  %v5082_v54 = vld [vmem:[%s4489_s28 + $0xd8] ss:$0 sps:$4 sm:$0x44]  }
  0x69   : > { %3979 = vmatpush3.bf16.msra.mxu1 %v4922_v14  ;;  %v1184_v11 = vsel %vm363_vm7, %v1183_v49, %v1182_v62  ;;  %v1297_v16 = vrot.slane %v1145_v32, 1  ;;  %v1194_v12 = vsel %vm357_vm5, %v1153_v42, %v1193_v7  ;;  %v1292_v10 = vsel %vm348_vm2, %v1291_v63, %v1290_v60  ;;  %v5068_v49 = vld [vmem:[%s4489_s28 + $0xc0] ss:$0 sps:$4 sm:$0x44]  }
  0x6a   : > { %3980 = vmatprep.subr.bf16.mxu1 %v4967_v37  ;;  %3969 = vmatpush3.bf16.msra.mxu0 %v4985_v52  ;;  %v1186_v53 = vsel %vm366_vm8, %v1185_v5, %v1184_v11  ;;  %v1300_v1 = vrot.slane %v1147_v3, 7  ;;  %v1196_v19 = vsel %vm360_vm6, %v1195_v33, %v1194_v12  ;;  %v1294_v20 = vsel %vm351_vm3, %v1293_v6, %v1292_v10  ;;  %v5071_v5 = vld [vmem:[%s4489_s28 + $0xc8] ss:$0 sps:$4 sm:$0x44]  }
  0x6b   : > { %3970 = vmatprep.subr.bf16.mxu0 %v4493_v8  ;;  %v1302_v23 = vrot.slane %v1148_v18, 6  ;;  %v1304_v24 = vrot.slane %v1149_v2, 5  ;;  %v1198_v31 = vsel %vm363_vm7, %v1197_v56, %v1196_v19  ;;  %v1296_v32 = vsel %vm354_vm4, %v1295_v15, %v1294_v20  ;;  %v5089_v58 = vld [vmem:[%s4489_s28 + $0xe0] ss:$0 sps:$4 sm:$0x44]  }
  0x6c   : > { %v1305_v0 = vrot.slane %v1150_v35, 4  ;;  %v1307_v3 = vrot.slane %v1151_v22, 3  ;;  %v1200_v18 = vsel %vm366_vm8, %v1199_v59, %v1198_v31  ;;  %v1298_v2 = vsel %vm357_vm5, %v1297_v16, %v1296_v32  ;;  %v5035_v35 = vld [vmem:[%s4489_s28 + $0x98] ss:$0 sps:$4 sm:$0x44]  }
  0x6d   : > { %3981 = vmatpush3.bf16.msra.mxu1 %v4967_v37  ;;  %v1309_v27 = vrot.slane %v1152_v36, 2  ;;  %v1311_v40 = vrot.slane %v1153_v42, 1  ;;  %v1229_v22 = vpack.c.b16 %v1200_v18, %v1186_v53  ;;  %v1299_v41 = vsel %vm360_vm6, %v1146_v38, %v1298_v2  ;;  %v5052_v38 = vld [vmem:[%s4489_s28 + $0xa8] ss:$0 sps:$4 sm:$0x44]  }
  0x6e   : > { %3982 = vmatprep.subr.bf16.mxu1 %v4985_v52  ;;  %3971 = vmatpush3.bf16.msra.mxu0 %v4493_v8  ;;  %v1306_v45 = vsel %vm348_vm2, %v1305_v0, %v1304_v24  ;;  %v1314_v46 = vrot.slane %v1155_v43, 7  ;;  %v1301_v29 = vsel %vm363_vm7, %v1300_v1, %v1299_v41  ;;  %v1316_v9 = vrot.slane %v1156_v34, 6  ;;  %v5058_v42 = vld [vmem:[%s4489_s28 + $0xb0] ss:$0 sps:$4 sm:$0x44]  }
  0x6f   : > { %3990 = vmatprep.subr.bf16.mxu0 %v4909_v4  ;;  %v1308_v36 = vsel %vm351_vm3, %v1307_v3, %v1306_v45  ;;  %3972 = vmatprep.mubr.msk.bf16.mxu0 %vm439_vm9, %v1229_v22  ;;  %v5061_v43 = vld [vmem:[%s4489_s28 + $0xb8] ss:$0 sps:$4 sm:$0x44]   ;;  %v1157_v47 = vunpack.c.l.b16 %v5013_v17  ;;  %v1303_v21 = vsel %vm366_vm8, %v1302_v23, %v1301_v29  ;;  %v1158_v50 = vunpack.c.l.b16 %v5018_v25  ;;  %v5092_v59 = vld [vmem:[%s4489_s28 + $0xe8] ss:$0 sps:$4 sm:$0x44]  }
  0x70   : > { %v1310_v30 = vsel %vm354_vm4, %v1309_v27, %v1308_v36  ;;  %v1159_v48 = vunpack.c.l.b16 %v5024_v13  ;;  %v1160_v55 = vunpack.c.l.b16 %v5035_v35  ;;  %v1161_v33 = vunpack.c.l.b16 %v5044_v28  ;;  %v5100_v61 = vld [vmem:[%s4489_s28 + $0xf0] ss:$0 sps:$4 sm:$0x44]   ;;  %v5103_v63 = vld [vmem:[%s4489_s28 + $0xf8] ss:$0 sps:$4 sm:$0x44]  }
  0x71   : > { %3983 = vmatpush3.bf16.msra.mxu1 %v4985_v52  ;;  %v1312_v34 = vsel %vm357_vm5, %v1311_v40, %v1310_v30  ;;  %v1162_v56 = vunpack.c.l.b16 %v5052_v38  ;;  %v1163_v39 = vunpack.c.l.b16 %v5058_v42  ;;  %v1165_v60 = vunpack.c.l.b16 %v5068_v49 }
  0x72   : > { %3984 = vmatprep.subr.bf16.mxu1 %v4493_v8  ;;  %v1313_v26 = vsel %vm360_vm6, %v1154_v44, %v1312_v34  ;;  %v1164_v44 = vunpack.c.l.b16 %v5061_v43  ;;  %v1166_v6 = vunpack.c.l.b16 %v5071_v5  ;;  %v1167_v11 = vunpack.c.l.b16 %v5079_v51  ;;  %v5136_v51 = vld [vmem:[%s4489_s28 + $0x8] ss:$0 sps:$4 sm:$0x88]  }
  0x73   : > { %v1315_v57 = vsel %vm363_vm7, %v1314_v46, %v1313_v26  ;;  %v1168_v7 = vunpack.c.l.b16 %v5082_v54  ;;  %v1169_v16 = vunpack.c.l.b16 %v5089_v58  ;;  %v1170_v53 = vunpack.c.l.b16 %v5092_v59  ;;  %v5133_v26 = vld [vmem:[%s4489_s28] ss:$0 sps:$4 sm:$0x88]   ;;  %v5141_v58 = vld [vmem:[%s4489_s28 + $0x10] ss:$0 sps:$4 sm:$0x88]  }
  0x74   : > { %v1317_v62 = vsel %vm366_vm8, %v1316_v9, %v1315_v57  ;;  %v1201_v12 = vrot.slane %v1157_v47, 4  ;;  %v1171_v10 = vunpack.c.l.b16 %v5100_v61  ;;  %v1172_v1 = vunpack.c.l.b16 %v5103_v63  ;;  %v5146_v63 = vld [vmem:[%s4489_s28 + $0x18] ss:$0 sps:$4 sm:$0x88]  }
  0x75   : > { %3985 = vmatpush3.bf16.msra.mxu1 %v4493_v8  ;;  %v1346_v15 = vpack.c.b16 %v1317_v62, %v1303_v21  ;;  %v1202_v17 = vrot.slane %v1158_v50, 3  ;;  %v1204_v19 = vrot.slane %v1159_v48, 2  ;;  %v1206_v20 = vrot.slane %v1160_v55, 1  ;;  %v5198_v59 = vld [vmem:[%s4489_s28 + $0x68] ss:$0 sps:$4 sm:$0x88]  }
  0x76   : > { %4004 = vmatprep.subr.bf16.mxu1 %v4909_v4  ;;  %v1209_v23 = vrot.slane %v1162_v56, 7  ;;  %v1211_v24 = vrot.slane %v1163_v39, 6  ;;  %v1213_v25 = vrot.slane %v1164_v44, 5  ;;  %v1215_v32 = vrot.slane %v1165_v60, 4 }
  0x77   : > { %3986 = vmatprep.mubr.msk.bf16.mxu1 %vm439_vm9, %v1346_v15  ;;  %v1203_v31 = vsel %vm348_vm2, %v1202_v17, %v1201_v12  ;;  %v1216_v0 = vrot.slane %v1166_v6, 3  ;;  %v1218_v3 = vrot.slane %v1167_v11, 2  ;;  %v1220_v18 = vrot.slane %v1168_v7, 1  ;;  %v5153_v17 = vld [vmem:[%s4489_s28 + $0x20] ss:$0 sps:$4 sm:$0x88]  }
  0x78   : > { %v1205_v13 = vsel %vm351_vm3, %v1204_v19, %v1203_v31  ;;  %v1223_v2 = vrot.slane %v1170_v53, 7  ;;  %v1225_v27 = vrot.slane %v1171_v10, 6  ;;  %v1227_v22 = vrot.slane %v1172_v1, 5 }
  0x79   : > { %v1207_v40 = vsel %vm354_vm4, %v1206_v20, %v1205_v13  ;;  %v1217_v35 = vsel %vm348_vm2, %v1216_v0, %v1215_v32  ;;  %v1318_v41 = vrot.slane %v1157_v47, 5  ;;  %v1319_v28 = vrot.slane %v1158_v50, 4  ;;  %v5185_v13 = vld [vmem:[%s4489_s28 + $0x50] ss:$0 sps:$4 sm:$0x88]  }
  0x7a   : > { %v1208_v45 = vsel %vm357_vm5, %v1161_v33, %v1207_v40  ;;  %v1219_v46 = vsel %vm351_vm3, %v1218_v3, %v1217_v35  ;;  %v1321_v29 = vrot.slane %v1159_v48, 3  ;;  %v1323_v30 = vrot.slane %v1160_v55, 2 }
  0x7b   : > { %v1210_v36 = vsel %vm360_vm6, %v1209_v23, %v1208_v45  ;;  %v1221_v9 = vsel %vm354_vm4, %v1220_v18, %v1219_v46  ;;  %v1325_v42 = vrot.slane %v1161_v33, 1  ;;  %v1320_v47 = vsel %vm348_vm2, %v1319_v28, %v1318_v41  ;;  %v5158_v23 = vld [vmem:[%s4489_s28 + $0x28] ss:$0 sps:$4 sm:$0x88]  }
  0x7c   : > { %v1212_v43 = vsel %vm363_vm7, %v1211_v24, %v1210_v36  ;;  %v1222_v21 = vsel %vm357_vm5, %v1169_v16, %v1221_v9  ;;  %v1328_v34 = vrot.slane %v1163_v39, 7  ;;  %v1322_v50 = vsel %vm351_vm3, %v1321_v29, %v1320_v47  ;;  %v5164_v24 = vld [vmem:[%s4489_s28 + $0x30] ss:$0 sps:$4 sm:$0x88]  }
  0x7d   : > { %v1214_v49 = vsel %vm366_vm8, %v1213_v25, %v1212_v43  ;;  %v1224_v5 = vsel %vm360_vm6, %v1223_v2, %v1222_v21  ;;  %v1330_v48 = vrot.slane %v1164_v44, 6  ;;  %v1324_v55 = vsel %vm354_vm4, %v1323_v30, %v1322_v50  ;;  %v5188_v18 = vld [vmem:[%s4489_s28 + $0x58] ss:$0 sps:$4 sm:$0x88]  }
  0x7e   : > { %v1226_v54 = vsel %vm363_vm7, %v1225_v27, %v1224_v5  ;;  %v1332_v33 = vrot.slane %v1165_v60, 5  ;;  %v1333_v57 = vrot.slane %v1166_v6, 4  ;;  %v1326_v62 = vsel %vm357_vm5, %v1325_v42, %v1324_v55  ;;  %v5205_v28 = vld [vmem:[%s4489_s28 + $0x70] ss:$0 sps:$4 sm:$0x88]  }
  0x7f   : > { %v1228_v39 = vsel %vm366_vm8, %v1227_v22, %v1226_v54  ;;  %v1335_v61 = vrot.slane %v1167_v11, 3  ;;  %v1337_v44 = vrot.slane %v1168_v7, 2  ;;  %v1327_v12 = vsel %vm360_vm6, %v1162_v56, %v1326_v62  ;;  %v5195_v22 = vld [vmem:[%s4489_s28 + $0x60] ss:$0 sps:$4 sm:$0x88]  }
  0x80   : > { %v1230_v15 = vpack.c.b16 %v1228_v39, %v1214_v49  ;;  %v1334_v60 = vsel %vm348_vm2, %v1333_v57, %v1332_v33  ;;  %v1339_v6 = vrot.slane %v1169_v16, 1  ;;  %v1329_v19 = vsel %vm363_vm7, %v1328_v34, %v1327_v12  ;;  %v5167_v16 = vld [vmem:[%s4489_s28 + $0x38] ss:$0 sps:$4 sm:$0x88]  }
  0x81   : > { %v1336_v11 = vsel %vm351_vm3, %v1335_v61, %v1334_v60  ;;  %v1342_v7 = vrot.slane %v1171_v10, 7  ;;  %v1344_v20 = vrot.slane %v1172_v1, 6  ;;  %v1331_v38 = vsel %vm366_vm8, %v1330_v48, %v1329_v19  ;;  %v5172_v10 = vld [vmem:[%s4489_s28 + $0x40] ss:$0 sps:$4 sm:$0x88]  }
  0x82   : > { %3973 = vmatmul.mubr.msk.bf16.vlgmr.msra.gmra.mrb[8].mxu0 %vm439_vm9, %v1230_v15  ;;  %v1338_v56 = vsel %vm354_vm4, %v1337_v44, %v1336_v11  ;;  %v5175_v1 = vld [vmem:[%s4489_s28 + $0x48] ss:$0 sps:$4 sm:$0x88]   ;;  %v1535_v31 = vunpack.c.l.b16 %v5133_v26  ;;  %v1536_v32 = vunpack.c.l.b16 %v5136_v51  ;;  %v1537_v0 = vunpack.c.l.b16 %v5141_v58  ;;  %v5208_v29 = vld [vmem:[%s4489_s28 + $0x78] ss:$0 sps:$4 sm:$0x88]  }
  0x83   : > { %v1340_v25 = vsel %vm357_vm5, %v1339_v6, %v1338_v56  ;;  %3991 = vmatpush3.bf16.msra.mxu0 %v4909_v4  ;;  %v1538_v2 = vunpack.c.l.b16 %v5146_v63  ;;  %v1539_v27 = vunpack.c.l.b16 %v5153_v17  ;;  %v1540_v40 = vunpack.c.l.b16 %v5158_v23 }
  0x84   : > { %v1341_v3 = vsel %vm360_vm6, %v1170_v53, %v1340_v25  ;;  %3992 = vmatprep.subr.bf16.mxu0 %v4922_v14  ;;  %v1541_v53 = vunpack.c.l.b16 %v5164_v24  ;;  %v1542_v41 = vunpack.c.l.b16 %v5167_v16  ;;  %v1543_v45 = vunpack.c.l.b16 %v5172_v10 }
  0x85   : > { %v1343_v35 = vsel %vm363_vm7, %v1342_v7, %v1341_v3  ;;  %v1544_v36 = vunpack.c.l.b16 %v5175_v1  ;;  %v1545_v9 = vunpack.c.l.b16 %v5185_v13  ;;  %v1546_v30 = vunpack.c.l.b16 %v5188_v18  ;;  %v5288_v18 = vld [vmem:[%s4489_s28 + $0xa0] ss:$0 sps:$4 sm:$0x88]  }
  0x86   : > { %v1345_v46 = vsel %vm366_vm8, %v1344_v20, %v1343_v35  ;;  %v1547_v43 = vunpack.c.l.b16 %v5195_v22  ;;  %v1548_v21 = vunpack.c.l.b16 %v5198_v59  ;;  %v1567_v47 = vrot.slane %v1535_v31, 6  ;;  %v5309_v59 = vld [vmem:[%s4489_s28 + $0xb8] ss:$0 sps:$4 sm:$0x88]  }
  0x87   : > { %v1347_v42 = vpack.c.b16 %v1345_v46, %v1331_v38  ;;  %3993 = vmatpush3.bf16.msra.mxu0 %v4922_v14  ;;  %v1549_v34 = vunpack.c.l.b16 %v5205_v28  ;;  %v1550_v49 = vunpack.c.l.b16 %v5208_v29  ;;  %v1568_v5 = vrot.slane %v1536_v32, 5 }
  0x88   : > { %3994 = vmatprep.subr.bf16.mxu0 %v4967_v37  ;;  %v1570_v50 = vrot.slane %v1537_v0, 4  ;;  %v1572_v48 = vrot.slane %v1538_v2, 3  ;;  %v1574_v26 = vrot.slane %v1539_v27, 2  ;;  %v1576_v51 = vrot.slane %v1540_v40, 1 }
  0x89   : > { %3987 = vmatmul.mubr.msk.bf16.vlgmr.msra.gmra.mrb[8].mxu1 %vm439_vm9, %v1347_v42  ;;  %v1579_v54 = vrot.slane %v1542_v41, 7  ;;  %v1569_v55 = vsel %vm348_vm2, %v1568_v5, %v1567_v47  ;;  %v1581_v33 = vrot.slane %v1543_v45, 6  ;;  %v1582_v57 = vrot.slane %v1544_v36, 5  ;;  %v5269_v47 = vld [vmem:[%s4489_s28 + $0x90] ss:$0 sps:$4 sm:$0x88]  }
  0x8a   : > { %4005 = vmatpush3.bf16.msra.mxu1 %v4909_v4  ;;  %v1584_v58 = vrot.slane %v1545_v9, 4  ;;  %v1571_v39 = vsel %vm351_vm3, %v1570_v50, %v1569_v55  ;;  %v1586_v62 = vrot.slane %v1546_v30, 3  ;;  %v1588_v61 = vrot.slane %v1547_v43, 2  ;;  %v5297_v55 = vld [vmem:[%s4489_s28 + $0xa8] ss:$0 sps:$4 sm:$0x88]  }
  0x8b   : > { %4006 = vmatprep.subr.bf16.mxu1 %v4922_v14  ;;  %3995 = vmatpush3.bf16.msra.mxu0 %v4967_v37  ;;  %v1590_v44 = vrot.slane %v1548_v21, 1  ;;  %v1573_v63 = vsel %vm354_vm4, %v1572_v48, %v1571_v39  ;;  %v1583_v15 = vsel %vm348_vm2, %v1582_v57, %v1581_v33  ;;  %v1593_v12 = vrot.slane %v1550_v49, 7  ;;  %v5306_v33 = vld [vmem:[%s4489_s28 + $0xb0] ss:$0 sps:$4 sm:$0x88]  }
  0x8c   : > { %3996 = vmatprep.subr.bf16.mxu0 %v4985_v52  ;;  %v1684_v60 = vrot.slane %v1535_v31, 7  ;;  %v1575_v6 = vsel %vm357_vm5, %v1574_v26, %v1573_v63  ;;  %v1585_v17 = vsel %vm351_vm3, %v1584_v58, %v1583_v15  ;;  %v1685_v19 = vrot.slane %v1536_v32, 6  ;;  %v5279_v26 = vld [vmem:[%s4489_s28 + $0x98] ss:$0 sps:$4 sm:$0x88]  }
  0x8d   : > { %v1687_v11 = vrot.slane %v1537_v0, 5  ;;  %v1577_v7 = vsel %vm360_vm6, %v1576_v51, %v1575_v6  ;;  %v1587_v20 = vsel %vm354_vm4, %v1586_v62, %v1585_v17  ;;  %v1689_v23 = vrot.slane %v1538_v2, 4  ;;  %v5257_v2 = vld [vmem:[%s4489_s28 + $0x80] ss:$0 sps:$4 sm:$0x88]  }
  0x8e   : > { %4007 = vmatpush3.bf16.msra.mxu1 %v4922_v14  ;;  %v1691_v38 = vrot.slane %v1539_v27, 3  ;;  %v1578_v56 = vsel %vm363_vm7, %v1541_v53, %v1577_v7  ;;  %v1589_v24 = vsel %vm357_vm5, %v1588_v61, %v1587_v20  ;;  %v1686_v25 = vsel %vm348_vm2, %v1685_v19, %v1684_v60  ;;  %v5260_v27 = vld [vmem:[%s4489_s28 + $0x88] ss:$0 sps:$4 sm:$0x88]  }
  0x8f   : > { %4008 = vmatprep.subr.bf16.mxu1 %v4967_v37  ;;  %3997 = vmatpush3.bf16.msra.mxu0 %v4985_v52  ;;  %v1693_v1 = vrot.slane %v1540_v40, 2  ;;  %v1580_v31 = vsel %vm366_vm8, %v1579_v54, %v1578_v56  ;;  %v1591_v32 = vsel %vm360_vm6, %v1590_v44, %v1589_v24  ;;  %v1688_v0 = vsel %vm351_vm3, %v1687_v11, %v1686_v25  ;;  %v5325_v39 = vld [vmem:[%s4489_s28 + $0xd0] ss:$0 sps:$4 sm:$0x88]  }
  0x90   : > { %3998 = vmatprep.subr.bf16.mxu0 %v4493_v8  ;;  %v1695_v3 = vrot.slane %v1541_v53, 1  ;;  %v1592_v35 = vsel %vm363_vm7, %v1549_v34, %v1591_v32  ;;  %v1690_v40 = vsel %vm354_vm4, %v1689_v23, %v1688_v0  ;;  %v1698_v46 = vrot.slane %v1543_v45, 7  ;;  %v5328_v62 = vld [vmem:[%s4489_s28 + $0xd8] ss:$0 sps:$4 sm:$0x88]  }
  0x91   : > { %v1699_v42 = vrot.slane %v1544_v36, 6  ;;  %v1594_v53 = vsel %vm366_vm8, %v1593_v12, %v1592_v35  ;;  %v1692_v5 = vsel %vm357_vm5, %v1691_v38, %v1690_v40  ;;  %v1701_v50 = vrot.slane %v1545_v9, 5  ;;  %v5335_v12 = vld [vmem:[%s4489_s28 + $0xe0] ss:$0 sps:$4 sm:$0x88]  }
  0x92   : > { %4009 = vmatpush3.bf16.msra.mxu1 %v4967_v37  ;;  %v1703_v48 = vrot.slane %v1546_v30, 4  ;;  %v1623_v10 = vpack.c.b16 %v1594_v53, %v1580_v31  ;;  %v1694_v45 = vsel %vm360_vm6, %v1693_v1, %v1692_v5  ;;  %v1705_v13 = vrot.slane %v1547_v43, 3  ;;  %v5338_v60 = vld [vmem:[%s4489_s28 + $0xe8] ss:$0 sps:$4 sm:$0x88]  }
  0x93   : > { %4010 = vmatprep.subr.bf16.mxu1 %v4985_v52  ;;  %3999 = vmatpush3.bf16.msra.mxu0 %v4493_v8  ;;  %v1700_v36 = vsel %vm348_vm2, %v1699_v42, %v1698_v46  ;;  %v1696_v9 = vsel %vm363_vm7, %v1695_v3, %v1694_v45  ;;  %v1707_v51 = vrot.slane %v1548_v21, 2  ;;  %v1709_v54 = vrot.slane %v1549_v34, 1  ;;  %v5314_v21 = vld [vmem:[%s4489_s28 + $0xc0] ss:$0 sps:$4 sm:$0x88]  }
  0x94   : > { %v1702_v30 = vsel %vm351_vm3, %v1701_v50, %v1700_v36  ;;  %4018 = vmatprep.subr.bf16.mxu0 %v4909_v4  ;;  %4000 = vmatprep.mubr.msk.bf16.mxu0 %vm439_vm9, %v1623_v10  ;;  %v1697_v22 = vsel %vm366_vm8, %v1542_v41, %v1696_v9  ;;  %v5317_v34 = vld [vmem:[%s4489_s28 + $0xc8] ss:$0 sps:$4 sm:$0x88]   ;;  %v1551_v16 = vunpack.c.l.b16 %v5257_v2  ;;  %v1552_v41 = vunpack.c.l.b16 %v5260_v27  ;;  %v5347_v7 = vld [vmem:[%s4489_s28 + $0xf0] ss:$0 sps:$4 sm:$0x88]  }
  0x95   : > { %v1704_v43 = vsel %vm354_vm4, %v1703_v48, %v1702_v30  ;;  %v1553_v57 = vunpack.c.l.b16 %v5269_v47  ;;  %v1554_v61 = vunpack.c.l.b16 %v5279_v26  ;;  %v1555_v44 = vunpack.c.l.b16 %v5288_v18  ;;  %v5350_v20 = vld [vmem:[%s4489_s28 + $0xf8] ss:$0 sps:$4 sm:$0x88]  }
  0x96   : > { %4011 = vmatpush3.bf16.msra.mxu1 %v4985_v52  ;;  %v1706_v28 = vsel %vm357_vm5, %v1705_v13, %v1704_v43  ;;  %v1556_v63 = vunpack.c.l.b16 %v5297_v55  ;;  %v1557_v6 = vunpack.c.l.b16 %v5306_v33  ;;  %v1558_v17 = vunpack.c.l.b16 %v5309_v59 }
  0x97   : > { %4012 = vmatprep.subr.bf16.mxu1 %v4493_v8  ;;  %v1708_v58 = vsel %vm360_vm6, %v1707_v51, %v1706_v28  ;;  %v1559_v19 = vunpack.c.l.b16 %v5314_v21  ;;  %v1560_v23 = vunpack.c.l.b16 %v5317_v34  ;;  %v1561_v38 = vunpack.c.l.b16 %v5325_v39  ;;  %v5384_v39 = vld [vmem:[%s4489_s28 + $0xc] ss:$0 sps:$4 sm:$0x11]  }
  0x98   : > { %v1710_v15 = vsel %vm363_vm7, %v1709_v54, %v1708_v58  ;;  %v1562_v56 = vunpack.c.l.b16 %v5328_v62  ;;  %v1563_v25 = vunpack.c.l.b16 %v5335_v12  ;;  %v1564_v1 = vunpack.c.l.b16 %v5338_v60  ;;  %v5381_v58 = vld [vmem:[%s4489_s28 + $0x4] ss:$0 sps:$4 sm:$0x11]  }
  0x99   : > { %v1711_v11 = vsel %vm366_vm8, %v1550_v49, %v1710_v15  ;;  %v1595_v29 = vrot.slane %v1551_v16, 6  ;;  %v1565_v49 = vunpack.c.l.b16 %v5347_v7  ;;  %v1566_v31 = vunpack.c.l.b16 %v5350_v20  ;;  %v5394_v7 = vld [vmem:[%s4489_s28 + $0x1c] ss:$0 sps:$4 sm:$0x11]  }
  0x9a   : > { %4013 = vmatpush3.bf16.msra.mxu1 %v4493_v8  ;;  %v1740_v24 = vpack.c.b16 %v1711_v11, %v1697_v22  ;;  %v1596_v32 = vrot.slane %v1552_v41, 5  ;;  %v1598_v0 = vrot.slane %v1553_v57, 4  ;;  %v1600_v3 = vrot.slane %v1554_v61, 3 }
  0x9b   : > { %4032 = vmatprep.subr.bf16.mxu1 %v4909_v4  ;;  %v1602_v2 = vrot.slane %v1555_v44, 2  ;;  %v1604_v27 = vrot.slane %v1556_v63, 1  ;;  %v1607_v35 = vrot.slane %v1558_v17, 7  ;;  %v1609_v46 = vrot.slane %v1559_v19, 6 }
  0x9c   : > { %4014 = vmatprep.mubr.msk.bf16.mxu1 %vm439_vm9, %v1740_v24  ;;  %v1597_v40 = vsel %vm348_vm2, %v1596_v32, %v1595_v29  ;;  %v1610_v42 = vrot.slane %v1560_v23, 5  ;;  %v1612_v47 = vrot.slane %v1561_v38, 4  ;;  %v1614_v5 = vrot.slane %v1562_v56, 3  ;;  %v5399_v32 = vld [vmem:[%s4489_s28 + $0x24] ss:$0 sps:$4 sm:$0x11]  }
  0x9d   : > { %v1599_v53 = vsel %vm351_vm3, %v1598_v0, %v1597_v40  ;;  %v1616_v50 = vrot.slane %v1563_v25, 2  ;;  %v1618_v48 = vrot.slane %v1564_v1, 1  ;;  %v1621_v45 = vrot.slane %v1566_v31, 7  ;;  %v5415_v40 = vld [vmem:[%s4489_s28 + $0x3c] ss:$0 sps:$4 sm:$0x11]  }
  0x9e   : > { %v1601_v26 = vsel %vm354_vm4, %v1600_v3, %v1599_v53  ;;  %v1611_v10 = vsel %vm348_vm2, %v1610_v42, %v1609_v46  ;;  %v1712_v36 = vrot.slane %v1551_v16, 7  ;;  %v1713_v9 = vrot.slane %v1552_v41, 6  ;;  %v5423_v46 = vld [vmem:[%s4489_s28 + $0x4c] ss:$0 sps:$4 sm:$0x11]  }
  0x9f   : > { %v1603_v13 = vsel %vm357_vm5, %v1602_v2, %v1601_v26  ;;  %v1613_v18 = vsel %vm351_vm3, %v1612_v47, %v1611_v10  ;;  %v1715_v30 = vrot.slane %v1553_v57, 5  ;;  %v1717_v55 = vrot.slane %v1554_v61, 4  ;;  %v5431_v53 = vld [vmem:[%s4489_s28 + $0x54] ss:$0 sps:$4 sm:$0x11]  }
  0xa0   : > { %v1605_v51 = vsel %vm360_vm6, %v1604_v27, %v1603_v13  ;;  %v1615_v54 = vsel %vm354_vm4, %v1614_v5, %v1613_v18  ;;  %v1719_v22 = vrot.slane %v1555_v44, 3  ;;  %v1714_v28 = vsel %vm348_vm2, %v1713_v9, %v1712_v36  ;;  %v5434_v5 = vld [vmem:[%s4489_s28 + $0x5c] ss:$0 sps:$4 sm:$0x11]  }
  0xa1   : > { %v1606_v43 = vsel %vm363_vm7, %v1557_v6, %v1605_v51  ;;  %v1617_v33 = vsel %vm357_vm5, %v1616_v50, %v1615_v54  ;;  %v1721_v21 = vrot.slane %v1556_v63, 2  ;;  %v1716_v41 = vsel %vm351_vm3, %v1715_v30, %v1714_v28  ;;  %v5389_v63 = vld [vmem:[%s4489_s28 + $0x14] ss:$0 sps:$4 sm:$0x11]  }
  0xa2   : > { %v1608_v34 = vsel %vm366_vm8, %v1607_v35, %v1606_v43  ;;  %v1619_v16 = vsel %vm360_vm6, %v1618_v48, %v1617_v33  ;;  %v1723_v57 = vrot.slane %v1557_v6, 1  ;;  %v1718_v61 = vsel %vm354_vm4, %v1717_v55, %v1716_v41  ;;  %v5412_v35 = vld [vmem:[%s4489_s28 + $0x34] ss:$0 sps:$4 sm:$0x11]  }
  0xa3   : > { %v1620_v62 = vsel %vm363_vm7, %v1565_v49, %v1619_v16  ;;  %v1726_v44 = vrot.slane %v1559_v19, 7  ;;  %v1727_v15 = vrot.slane %v1560_v23, 6  ;;  %v1720_v60 = vsel %vm357_vm5, %v1719_v22, %v1718_v61  ;;  %v5441_v10 = vld [vmem:[%s4489_s28 + $0x64] ss:$0 sps:$4 sm:$0x11]  }
  0xa4   : > { %v1622_v12 = vsel %vm366_vm8, %v1621_v45, %v1620_v62  ;;  %v1729_v11 = vrot.slane %v1561_v38, 5  ;;  %v1731_v6 = vrot.slane %v1562_v56, 4  ;;  %v1722_v29 = vsel %vm360_vm6, %v1721_v21, %v1720_v60  ;;  %v5404_v56 = vld [vmem:[%s4489_s28 + $0x2c] ss:$0 sps:$4 sm:$0x11]   ;;  %v5474_v62 = vld [vmem:[%s6484_s1] sm:$0xff]  }
  0xa5   : > { %v1624_v24 = vpack.c.b16 %v1622_v12, %v1608_v34  ;;  %v1728_v19 = vsel %vm348_vm2, %v1727_v15, %v1726_v44  ;;  %v1733_v23 = vrot.slane %v1563_v25, 3  ;;  %v1724_v0 = vsel %vm363_vm7, %v1723_v57, %v1722_v29  ;;  %v5444_v45 = vld [vmem:[%s4489_s28 + $0x6c] ss:$0 sps:$4 sm:$0x11]  }
  0xa6   : > { %v1730_v3 = vsel %vm351_vm3, %v1729_v11, %v1728_v19  ;;  %v1735_v38 = vrot.slane %v1564_v1, 2  ;;  %v1737_v2 = vrot.slane %v1565_v49, 1  ;;  %v1725_v27 = vsel %vm366_vm8, %v1558_v17, %v1724_v0  ;;  %v5420_v49 = vld [vmem:[%s4489_s28 + $0x44] ss:$0 sps:$4 sm:$0x11]   ;;  %v5483_v12 = vld [vmem:[%s6484_s1 + $0x8] sm:$0xff]  }
  0xa7   : > { %4001 = vmatmul.mubr.msk.bf16.vlgmr.msra.gmra.mrb[12].mxu0 %vm439_vm9, %v1624_v24  ;;  %v1732_v25 = vsel %vm354_vm4, %v1731_v6, %v1730_v3  ;;  %v1929_v59 = vunpack.c.l.b16 %v5381_v58  ;;  %v1930_v17 = vunpack.c.l.b16 %v5384_v39  ;;  %v1931_v42 = vunpack.c.l.b16 %v5389_v63  ;;  %v5453_v30 = vld [vmem:[%s4489_s28 + $0x74] ss:$0 sps:$4 sm:$0x11]   ;;  %v5456_v51 = vld [vmem:[%s4489_s28 + $0x7c] ss:$0 sps:$4 sm:$0x11]  }
  0xa8   : > { %v1734_v1 = vsel %vm357_vm5, %v1733_v23, %v1732_v25  ;;  %4019 = vmatpush3.bf16.msra.mxu0 %v4909_v4  ;;  %v1932_v4 = vunpack.c.l.b16 %v5394_v7  ;;  %v1933_v50 = vunpack.c.l.b16 %v5399_v32  ;;  %v1934_v48 = vunpack.c.l.b16 %v5404_v56  ;;  %v5511_v25 = vld [vmem:[%s6484_s1 + $0x10] sm:$0xff]  }
  0xa9   : > { %v1736_v47 = vsel %vm360_vm6, %v1735_v38, %v1734_v1  ;;  %4020 = vmatprep.subr.bf16.mxu0 %v4922_v14  ;;  %v1935_v36 = vunpack.c.l.b16 %v5412_v35  ;;  %v1936_v13 = vunpack.c.l.b16 %v5415_v40  ;;  %v1937_v18 = vunpack.c.l.b16 %v5420_v49  ;;  %v5549_v49 = vld [vmem:[%s6484_s1 + $0x18] sm:$0xff]  }
  0xaa   : > { %v1738_v26 = vsel %vm363_vm7, %v1737_v2, %v1736_v47  ;;  %v1938_v54 = vunpack.c.l.b16 %v5423_v46  ;;  %v1939_v55 = vunpack.c.l.b16 %v5431_v53  ;;  %v1940_v22 = vunpack.c.l.b16 %v5434_v5  ;;  %v5569_v46 = vld [vmem:[%s4489_s28 + $0xac] ss:$0 sps:$4 sm:$0x11]  }
  0xab   : > { %v1739_v9 = vsel %vm366_vm8, %v1566_v31, %v1738_v26  ;;  %v1941_v33 = vunpack.c.l.b16 %v5441_v10  ;;  %v1942_v28 = vunpack.c.l.b16 %v5444_v45  ;;  %v1961_v20 = vrot.slane %v1930_v17, 7 }
  0xac   : > { %v1741_v43 = vpack.c.b16 %v1739_v9, %v1725_v27  ;;  %4021 = vmatpush3.bf16.msra.mxu0 %v4922_v14  ;;  %v1943_v31 = vunpack.c.l.b16 %v5453_v30  ;;  %v1944_v21 = vunpack.c.l.b16 %v5456_v51  ;;  %v1963_v34 = vrot.slane %v1931_v42, 6  ;;  %v5534_v9 = vld [vmem:[%s4489_s28 + $0x94] ss:$0 sps:$4 sm:$0x11]  }
  0xad   : > { %4022 = vmatprep.subr.bf16.mxu0 %v4967_v37  ;;  %v1965_v16 = vrot.slane %v1932_v4, 5  ;;  %v1962_v41 = vsel %vm348_vm2, %v1961_v20, %v1929_v59  ;;  %v1967_v14 = vrot.slane %v1933_v50, 4  ;;  %v1969_v57 = vrot.slane %v1934_v48, 3  ;;  %v5584_v51 = vld [vmem:[%s4489_s28 + $0xc4] ss:$0 sps:$4 sm:$0x11]  }
  0xae   : > { %4015 = vmatmul.mubr.msk.bf16.vlgmr.msra.gmra.mrb[12].mxu1 %vm439_vm9, %v1741_v43  ;;  %v1971_v58 = vrot.slane %v1935_v36, 2  ;;  %v1964_v61 = vsel %vm351_vm3, %v1963_v34, %v1962_v41  ;;  %v1973_v44 = vrot.slane %v1936_v13, 1  ;;  %v1975_v15 = vrot.slane %v1938_v54, 7  ;;  %v5544_v34 = vld [vmem:[%s4489_s28 + $0x9c] ss:$0 sps:$4 sm:$0x11]  }
  0xaf   : > { %4033 = vmatpush3.bf16.msra.mxu1 %v5474_v62  ;;  %v1977_v63 = vrot.slane %v1939_v55, 6  ;;  %v1966_v60 = vsel %vm354_vm4, %v1965_v16, %v1964_v61  ;;  %v1979_v11 = vrot.slane %v1940_v22, 5  ;;  %v1981_v6 = vrot.slane %v1941_v33, 4 }
  0xb0   : > { %4034 = vmatprep.subr.bf16.mxu1 %v5483_v12  ;;  %4023 = vmatpush3.bf16.msra.mxu0 %v4967_v37  ;;  %v1983_v7 = vrot.slane %v1942_v28, 3  ;;  %v1968_v24 = vsel %vm357_vm5, %v1967_v14, %v1966_v60  ;;  %v1976_v29 = vsel %vm348_vm2, %v1975_v15, %v1937_v18  ;;  %v1985_v37 = vrot.slane %v1943_v31, 2  ;;  %v5595_v15 = vld [vmem:[%s4489_s28 + $0xd4] ss:$0 sps:$4 sm:$0x11]  }
  0xb1   : > { %4024 = vmatprep.subr.bf16.mxu0 %v4985_v52  ;;  %v1987_v19 = vrot.slane %v1944_v21, 1  ;;  %v1970_v23 = vsel %vm360_vm6, %v1969_v57, %v1968_v24  ;;  %v1978_v32 = vsel %vm351_vm3, %v1977_v63, %v1976_v29  ;;  %v2078_v0 = vrot.slane %v1929_v59, 1  ;;  %v5579_v57 = vld [vmem:[%s4489_s28 + $0xbc] ss:$0 sps:$4 sm:$0x11]  }
  0xb2   : > { %v2080_v3 = vrot.slane %v1931_v42, 7  ;;  %v1972_v38 = vsel %vm363_vm7, %v1971_v58, %v1970_v23  ;;  %v1980_v2 = vsel %vm354_vm4, %v1979_v11, %v1978_v32  ;;  %v2082_v56 = vrot.slane %v1932_v4, 6  ;;  %v5598_v63 = vld [vmem:[%s4489_s28 + $0xdc] ss:$0 sps:$4 sm:$0x11]  }
  0xb3   : > { %4035 = vmatpush3.bf16.msra.mxu1 %v5483_v12  ;;  %v2084_v27 = vrot.slane %v1933_v50, 5  ;;  %v1974_v35 = vsel %vm366_vm8, %v1973_v44, %v1972_v38  ;;  %v1982_v40 = vsel %vm357_vm5, %v1981_v6, %v1980_v2  ;;  %v2079_v1 = vsel %vm348_vm2, %v1930_v17, %v2078_v0  ;;  %v5527_v50 = vld [vmem:[%s4489_s28 + $0x8c] ss:$0 sps:$4 sm:$0x11]  }
  0xb4   : > { %4036 = vmatprep.subr.bf16.mxu1 %v5511_v25  ;;  %4025 = vmatpush3.bf16.msra.mxu0 %v4985_v52  ;;  %v2086_v59 = vrot.slane %v1934_v48, 4  ;;  %v1984_v42 = vsel %vm360_vm6, %v1983_v7, %v1982_v40  ;;  %v2081_v47 = vsel %vm351_vm3, %v2080_v3, %v2079_v1  ;;  %v2088_v53 = vrot.slane %v1935_v36, 3  ;;  %v5524_v52 = vld [vmem:[%s4489_s28 + $0x84] ss:$0 sps:$4 sm:$0x11]  }
  0xb5   : > { %4026 = vmatprep.subr.bf16.mxu0 %v4493_v8  ;;  %v2090_v4 = vrot.slane %v1936_v13, 2  ;;  %v1986_v26 = vsel %vm363_vm7, %v1985_v37, %v1984_v42  ;;  %v2083_v39 = vsel %vm354_vm4, %v2082_v56, %v2081_v47  ;;  %v2092_v17 = vrot.slane %v1937_v18, 1  ;;  %v5605_v24 = vld [vmem:[%s4489_s28 + $0xe4] ss:$0 sps:$4 sm:$0x11]  }
  0xb6   : > { %v2094_v48 = vrot.slane %v1939_v55, 7  ;;  %v1988_v36 = vsel %vm366_vm8, %v1987_v19, %v1986_v26  ;;  %v2085_v13 = vsel %vm357_vm5, %v2084_v27, %v2083_v39  ;;  %v2096_v43 = vrot.slane %v1940_v22, 6  ;;  %v5560_v22 = vld [vmem:[%s4489_s28 + $0xa4] ss:$0 sps:$4 sm:$0x11]  }
  0xb7   : > { %4037 = vmatpush3.bf16.msra.mxu1 %v5511_v25  ;;  %v2098_v20 = vrot.slane %v1941_v33, 5  ;;  %v2017_v18 = vpack.c.b16 %v1988_v36, %v1974_v35  ;;  %v2087_v5 = vsel %vm360_vm6, %v2086_v59, %v2085_v13  ;;  %v2093_v10 = vsel %vm348_vm2, %v1938_v54, %v2092_v17  ;;  %v5608_v29 = vld [vmem:[%s4489_s28 + $0xec] ss:$0 sps:$4 sm:$0x11]  }
  0xb8   : > { %4038 = vmatprep.subr.bf16.mxu1 %v5549_v49  ;;  %4027 = vmatpush3.bf16.msra.mxu0 %v4493_v8  ;;  %v2100_v55 = vrot.slane %v1942_v28, 4  ;;  %v2089_v33 = vsel %vm363_vm7, %v2088_v53, %v2087_v5  ;;  %v2095_v16 = vsel %vm351_vm3, %v2094_v48, %v2093_v10  ;;  %v2102_v41 = vrot.slane %v1943_v31, 3  ;;  %v5576_v28 = vld [vmem:[%s4489_s28 + $0xb4] ss:$0 sps:$4 sm:$0x11]  }
  0xb9   : > { %v2104_v14 = vrot.slane %v1944_v21, 2  ;;  %4046 = vmatprep.subr.bf16.mxu0 %v5474_v62  ;;  %4028 = vmatprep.mubr.msk.bf16.mxu0 %vm439_vm9, %v2017_v18  ;;  %v2091_v45 = vsel %vm366_vm8, %v2090_v4, %v2089_v33  ;;  %v2097_v54 = vsel %vm354_vm4, %v2096_v43, %v2095_v16  ;;  %v5587_v31 = vld [vmem:[%s4489_s28 + $0xcc] ss:$0 sps:$4 sm:$0x11]   ;;  %v1945_v21 = vunpack.c.l.b16 %v5524_v52 }
  0xba   : > { %v2099_v30 = vsel %vm357_vm5, %v2098_v20, %v2097_v54  ;;  %v1946_v58 = vunpack.c.l.b16 %v5527_v50  ;;  %v1947_v61 = vunpack.c.l.b16 %v5534_v9  ;;  %v1948_v60 = vunpack.c.l.b16 %v5544_v34  ;;  %v5615_v0 = vld [vmem:[%s4489_s28 + $0xf4] ss:$0 sps:$4 sm:$0x11]   ;;  %v5618_v3 = vld [vmem:[%s4489_s28 + $0xfc] ss:$0 sps:$4 sm:$0x11]  }
  0xbb   : > { %4039 = vmatpush3.bf16.msra.mxu1 %v5549_v49  ;;  %v2101_v44 = vsel %vm360_vm6, %v2100_v55, %v2099_v30  ;;  %v1949_v11 = vunpack.c.l.b16 %v5560_v22  ;;  %v1950_v6 = vunpack.c.l.b16 %v5569_v46  ;;  %v1951_v37 = vunpack.c.l.b16 %v5576_v28 }
  0xbc   : > { %4040 = vmatprep.subr.bf16.mxu1 %v4493_v8  ;;  %v2103_v7 = vsel %vm363_vm7, %v2102_v41, %v2101_v44  ;;  %v1952_v19 = vunpack.c.l.b16 %v5579_v57  ;;  %v1953_v23 = vunpack.c.l.b16 %v5584_v51  ;;  %v1954_v38 = vunpack.c.l.b16 %v5587_v31  ;;  %v5645_v44 = vld [vmem:[%s4489_s28 + $0x4] ss:$0 sps:$4 sm:$0x22]  }
  0xbd   : > { %v2105_v32 = vsel %vm366_vm8, %v2104_v14, %v2103_v7  ;;  %v1955_v2 = vunpack.c.l.b16 %v5595_v15  ;;  %v1956_v56 = vunpack.c.l.b16 %v5598_v63  ;;  %v1957_v35 = vunpack.c.l.b16 %v5605_v24  ;;  %v5648_v15 = vld [vmem:[%s4489_s28 + $0xc] ss:$0 sps:$4 sm:$0x22]  }
  0xbe   : > { %v2134_v27 = vpack.c.b16 %v2105_v32, %v2091_v45  ;;  %v1958_v40 = vunpack.c.l.b16 %v5608_v29  ;;  %v1989_v1 = vrot.slane %v1946_v58, 7  ;;  %v1959_v59 = vunpack.c.l.b16 %v5615_v0 }
  0xbf   : > { %4041 = vmatpush3.bf16.msra.mxu1 %v4493_v8  ;;  %v1960_v42 = vunpack.c.l.b16 %v5618_v3  ;;  %v1991_v47 = vrot.slane %v1947_v61, 6  ;;  %v1993_v53 = vrot.slane %v1948_v60, 5  ;;  %v1995_v52 = vrot.slane %v1949_v11, 4 }
  0xc0   : > { %4060 = vmatprep.subr.bf16.mxu1 %v5474_v62  ;;  %4042 = vmatprep.mubr.msk.bf16.mxu1 %vm439_vm9, %v2134_v27  ;;  %v1990_v4 = vsel %vm348_vm2, %v1989_v1, %v1945_v21  ;;  %v1997_v50 = vrot.slane %v1950_v6, 3  ;;  %v1999_v26 = vrot.slane %v1951_v37, 2  ;;  %v2001_v17 = vrot.slane %v1952_v19, 1 }
  0xc1   : > { %v1992_v39 = vsel %vm351_vm3, %v1991_v47, %v1990_v4  ;;  %v2003_v48 = vrot.slane %v1954_v38, 7  ;;  %v2005_v9 = vrot.slane %v1955_v2, 6  ;;  %v2007_v13 = vrot.slane %v1956_v56, 5  ;;  %v5674_v4 = vld [vmem:[%s4489_s28 + $0x34] ss:$0 sps:$4 sm:$0x22]  }
  0xc2   : > { %v1994_v36 = vsel %vm354_vm4, %v1993_v53, %v1992_v39  ;;  %v2009_v43 = vrot.slane %v1957_v35, 4  ;;  %v2011_v20 = vrot.slane %v1958_v40, 3  ;;  %v2013_v5 = vrot.slane %v1959_v59, 2 }
  0xc3   : > { %v1996_v34 = vsel %vm357_vm5, %v1995_v52, %v1994_v36  ;;  %v2004_v18 = vsel %vm348_vm2, %v2003_v48, %v1953_v23  ;;  %v2015_v10 = vrot.slane %v1960_v42, 1  ;;  %v2106_v33 = vrot.slane %v1945_v21, 1  ;;  %v5693_v48 = vld [vmem:[%s4489_s28 + $0x54] ss:$0 sps:$4 sm:$0x22]  }
  0xc4   : > { %v1998_v55 = vsel %vm360_vm6, %v1997_v50, %v1996_v34  ;;  %v2006_v22 = vsel %vm351_vm3, %v2005_v9, %v2004_v18  ;;  %v2108_v16 = vrot.slane %v1947_v61, 7  ;;  %v2110_v46 = vrot.slane %v1948_v60, 6  ;;  %v5696_v9 = vld [vmem:[%s4489_s28 + $0x5c] ss:$0 sps:$4 sm:$0x22]  }
  0xc5   : > { %v2000_v41 = vsel %vm363_vm7, %v1999_v26, %v1998_v55  ;;  %v2008_v14 = vsel %vm354_vm4, %v2007_v13, %v2006_v22  ;;  %v2112_v45 = vrot.slane %v1949_v11, 5  ;;  %v2107_v57 = vsel %vm348_vm2, %v1946_v58, %v2106_v33  ;;  %v5653_v58 = vld [vmem:[%s4489_s28 + $0x14] ss:$0 sps:$4 sm:$0x22]  }
  0xc6   : > { %v2002_v54 = vsel %vm366_vm8, %v2001_v17, %v2000_v41  ;;  %v2010_v28 = vsel %vm357_vm5, %v2009_v43, %v2008_v14  ;;  %v2114_v30 = vrot.slane %v1950_v6, 4  ;;  %v2109_v31 = vsel %vm351_vm3, %v2108_v16, %v2107_v57  ;;  %v5703_v34 = vld [vmem:[%s4489_s28 + $0x64] ss:$0 sps:$4 sm:$0x22]  }
  0xc7   : > { %v2012_v51 = vsel %vm360_vm6, %v2011_v20, %v2010_v28  ;;  %v2116_v21 = vrot.slane %v1951_v37, 3  ;;  %v2118_v61 = vrot.slane %v1952_v19, 2  ;;  %v2111_v60 = vsel %vm354_vm4, %v2110_v46, %v2109_v31  ;;  %v5658_v19 = vld [vmem:[%s4489_s28 + $0x1c] ss:$0 sps:$4 sm:$0x22]  }
  0xc8   : > { %v2014_v63 = vsel %vm363_vm7, %v2013_v5, %v2012_v51  ;;  %v2120_v11 = vrot.slane %v1953_v23, 1  ;;  %v2122_v7 = vrot.slane %v1955_v2, 7  ;;  %v2113_v24 = vsel %vm357_vm5, %v2112_v45, %v2111_v60  ;;  %v5663_v2 = vld [vmem:[%s4489_s28 + $0x24] ss:$0 sps:$4 sm:$0x22]  }
  0xc9   : > { %v2016_v6 = vsel %vm366_vm8, %v2015_v10, %v2014_v63  ;;  %v2124_v29 = vrot.slane %v1956_v56, 6  ;;  %v2126_v37 = vrot.slane %v1957_v35, 5  ;;  %v2115_v0 = vsel %vm360_vm6, %v2114_v30, %v2113_v24  ;;  %v5668_v35 = vld [vmem:[%s4489_s28 + $0x2c] ss:$0 sps:$4 sm:$0x22]  }
  0xca   : > { %v2018_v32 = vpack.c.b16 %v2016_v6, %v2002_v54  ;;  %v2121_v23 = vsel %vm348_vm2, %v1954_v38, %v2120_v11  ;;  %v2128_v3 = vrot.slane %v1958_v40, 4  ;;  %v2117_v27 = vsel %vm363_vm7, %v2116_v21, %v2115_v0  ;;  %v5677_v40 = vld [vmem:[%s4489_s28 + $0x3c] ss:$0 sps:$4 sm:$0x22]  }
  0xcb   : > { %v2123_v1 = vsel %vm351_vm3, %v2122_v7, %v2121_v23  ;;  %v2130_v56 = vrot.slane %v1959_v59, 3  ;;  %v2132_v47 = vrot.slane %v1960_v42, 2  ;;  %v2119_v53 = vsel %vm366_vm8, %v2118_v61, %v2117_v27  ;;  %v5682_v59 = vld [vmem:[%s4489_s28 + $0x44] ss:$0 sps:$4 sm:$0x22]  }
  0xcc   : > { %4029 = vmatmul.mubr.msk.bf16.vlgmr.msra.gmra.mrb[16].mxu0 %vm439_vm9, %v2018_v32  ;;  %v2125_v38 = vsel %vm354_vm4, %v2124_v29, %v2123_v1  ;;  %v5685_v42 = vld [vmem:[%s4489_s28 + $0x4c] ss:$0 sps:$4 sm:$0x22]   ;;  %v2323_v50 = vunpack.c.l.b16 %v5645_v44  ;;  %v2324_v26 = vunpack.c.l.b16 %v5648_v15  ;;  %v2325_v39 = vunpack.c.l.b16 %v5653_v58  ;;  %v5713_v33 = vld [vmem:[%s4489_s28 + $0x74] ss:$0 sps:$4 sm:$0x22]  }
  0xcd   : > { %v2127_v52 = vsel %vm357_vm5, %v2126_v37, %v2125_v38  ;;  %4047 = vmatpush3.bf16.msra.mxu0 %v5474_v62  ;;  %v2326_v36 = vunpack.c.l.b16 %v5658_v19  ;;  %v2327_v13 = vunpack.c.l.b16 %v5663_v2  ;;  %v2328_v43 = vunpack.c.l.b16 %v5668_v35  ;;  %v5706_v18 = vld [vmem:[%s4489_s28 + $0x6c] ss:$0 sps:$4 sm:$0x22]   ;;  %v5716_v16 = vld [vmem:[%s4489_s28 + $0x7c] ss:$0 sps:$4 sm:$0x22]  }
  0xce   : > { %v2129_v17 = vsel %vm360_vm6, %v2128_v3, %v2127_v52  ;;  %4048 = vmatprep.subr.bf16.mxu0 %v5483_v12  ;;  %v2329_v5 = vunpack.c.l.b16 %v5674_v4  ;;  %v2330_v10 = vunpack.c.l.b16 %v5677_v40  ;;  %v2331_v55 = vunpack.c.l.b16 %v5682_v59 }
  0xcf   : > { %v2131_v20 = vsel %vm363_vm7, %v2130_v56, %v2129_v17  ;;  %v2332_v41 = vunpack.c.l.b16 %v5685_v42  ;;  %v2333_v14 = vunpack.c.l.b16 %v5693_v48  ;;  %v2334_v46 = vunpack.c.l.b16 %v5696_v9  ;;  %v5763_v17 = vld [vmem:[%s4489_s28 + $0x84] ss:$0 sps:$4 sm:$0x22]   ;;  %v5787_v48 = vld [vmem:[%s4489_s28 + $0x9c] ss:$0 sps:$4 sm:$0x22]  }
  0xd0   : > { %v2133_v22 = vsel %vm366_vm8, %v2132_v47, %v2131_v20  ;;  %v2335_v54 = vunpack.c.l.b16 %v5703_v34  ;;  %v2336_v28 = vunpack.c.l.b16 %v5706_v18  ;;  %v2355_v57 = vrot.slane %v2323_v50, 2 }
  0xd1   : > { %v2135_v45 = vpack.c.b16 %v2133_v22, %v2119_v53  ;;  %4049 = vmatpush3.bf16.msra.mxu0 %v5483_v12  ;;  %v2337_v30 = vunpack.c.l.b16 %v5713_v33  ;;  %v2338_v51 = vunpack.c.l.b16 %v5716_v16  ;;  %v2356_v31 = vrot.slane %v2324_v26, 1 }
  0xd2   : > { %4050 = vmatprep.subr.bf16.mxu0 %v5511_v25  ;;  %v2359_v21 = vrot.slane %v2326_v36, 7  ;;  %v2361_v61 = vrot.slane %v2327_v13, 6  ;;  %v2363_v44 = vrot.slane %v2328_v43, 5  ;;  %v2365_v15 = vrot.slane %v2329_v5, 4 }
  0xd3   : > { %4043 = vmatmul.mubr.msk.bf16.vlgmr.msra.gmra.mrb[16].mxu1 %vm439_vm9, %v2135_v45  ;;  %v2367_v63 = vrot.slane %v2330_v10, 3  ;;  %v2357_v60 = vsel %vm348_vm2, %v2356_v31, %v2355_v57  ;;  %v2369_v11 = vrot.slane %v2331_v55, 2  ;;  %v2370_v7 = vrot.slane %v2332_v41, 1  ;;  %v5778_v31 = vld [vmem:[%s4489_s28 + $0x94] ss:$0 sps:$4 sm:$0x22]  }
  0xd4   : > { %4061 = vmatpush3.bf16.msra.mxu1 %v5474_v62  ;;  %v2373_v58 = vrot.slane %v2334_v46, 7  ;;  %v2358_v6 = vsel %vm351_vm3, %v2325_v39, %v2357_v60  ;;  %v2375_v24 = vrot.slane %v2335_v54, 6  ;;  %v2377_v29 = vrot.slane %v2336_v28, 5  ;;  %v5823_v60 = vld [vmem:[%s4489_s28 + $0xcc] ss:$0 sps:$4 sm:$0x22]  }
  0xd5   : > { %4062 = vmatprep.subr.bf16.mxu1 %v5483_v12  ;;  %4051 = vmatpush3.bf16.msra.mxu0 %v5511_v25  ;;  %v2379_v37 = vrot.slane %v2337_v30, 4  ;;  %v2360_v32 = vsel %vm354_vm4, %v2359_v21, %v2358_v6  ;;  %v2371_v0 = vsel %vm348_vm2, %v2370_v7, %v2369_v11  ;;  %v2381_v23 = vrot.slane %v2338_v51, 3  ;;  %v5826_v11 = vld [vmem:[%s4489_s28 + $0xd4] ss:$0 sps:$4 sm:$0x22]  }
  0xd6   : > { %4052 = vmatprep.subr.bf16.mxu0 %v5549_v49  ;;  %v2472_v3 = vrot.slane %v2323_v50, 3  ;;  %v2362_v2 = vsel %vm357_vm5, %v2361_v61, %v2360_v32  ;;  %v2372_v27 = vsel %vm351_vm3, %v2333_v14, %v2371_v0  ;;  %v2473_v1 = vrot.slane %v2324_v26, 2 }
  0xd7   : > { %v2475_v56 = vrot.slane %v2325_v39, 1  ;;  %v2364_v47 = vsel %vm360_vm6, %v2363_v44, %v2362_v2  ;;  %v2374_v35 = vsel %vm354_vm4, %v2373_v58, %v2372_v27  ;;  %v2478_v53 = vrot.slane %v2327_v13, 7  ;;  %v5796_v44 = vld [vmem:[%s4489_s28 + $0xa4] ss:$0 sps:$4 sm:$0x22]  }
  0xd8   : > { %4063 = vmatpush3.bf16.msra.mxu1 %v5483_v12  ;;  %v2480_v38 = vrot.slane %v2328_v43, 6  ;;  %v2366_v4 = vsel %vm363_vm7, %v2365_v15, %v2364_v47  ;;  %v2376_v40 = vsel %vm357_vm5, %v2375_v24, %v2374_v35  ;;  %v2474_v52 = vsel %vm348_vm2, %v2473_v1, %v2472_v3  ;;  %v5807_v15 = vld [vmem:[%s4489_s28 + $0xb4] ss:$0 sps:$4 sm:$0x22]  }
  0xd9   : > { %4064 = vmatprep.subr.bf16.mxu1 %v5511_v25  ;;  %4053 = vmatpush3.bf16.msra.mxu0 %v5549_v49  ;;  %v2482_v59 = vrot.slane %v2329_v5, 5  ;;  %v2368_v42 = vsel %vm366_vm8, %v2367_v63, %v2366_v4  ;;  %v2378_v50 = vsel %vm360_vm6, %v2377_v29, %v2376_v40  ;;  %v2476_v26 = vsel %vm351_vm3, %v2475_v56, %v2474_v52  ;;  %v5770_v5 = vld [vmem:[%s4489_s28 + $0x8c] ss:$0 sps:$4 sm:$0x22]  }
  0xda   : > { %4054 = vmatprep.subr.bf16.mxu0 %v4493_v8  ;;  %v2484_v39 = vrot.slane %v2330_v10, 4  ;;  %v2380_v13 = vsel %vm363_vm7, %v2379_v37, %v2378_v50  ;;  %v2477_v43 = vsel %vm354_vm4, %v2326_v36, %v2476_v26  ;;  %v2486_v20 = vrot.slane %v2331_v55, 3  ;;  %v5833_v29 = vld [vmem:[%s4489_s28 + $0xdc] ss:$0 sps:$4 sm:$0x22]  }
  0xdb   : > { %v2487_v34 = vrot.slane %v2332_v41, 2  ;;  %v2382_v22 = vsel %vm366_vm8, %v2381_v23, %v2380_v13  ;;  %v2479_v10 = vsel %vm357_vm5, %v2478_v53, %v2477_v43  ;;  %v2489_v45 = vrot.slane %v2333_v14, 1  ;;  %v5836_v37 = vld [vmem:[%s4489_s28 + $0xe4] ss:$0 sps:$4 sm:$0x22]  }
  0xdc   : > { %4065 = vmatpush3.bf16.msra.mxu1 %v5511_v25  ;;  %v2492_v57 = vrot.slane %v2335_v54, 7  ;;  %v2411_v19 = vpack.c.b16 %v2382_v22, %v2368_v42  ;;  %v2481_v36 = vsel %vm360_vm6, %v2480_v38, %v2479_v10  ;;  %v2494_v41 = vrot.slane %v2336_v28, 6  ;;  %v5804_v28 = vld [vmem:[%s4489_s28 + $0xac] ss:$0 sps:$4 sm:$0x22]  }
  0xdd   : > { %4066 = vmatprep.subr.bf16.mxu1 %v5549_v49  ;;  %4055 = vmatpush3.bf16.msra.mxu0 %v4493_v8  ;;  %v2488_v55 = vsel %vm348_vm2, %v2487_v34, %v2486_v20  ;;  %v2483_v14 = vsel %vm363_vm7, %v2482_v59, %v2481_v36  ;;  %v2496_v21 = vrot.slane %v2337_v30, 5  ;;  %v2498_v61 = vrot.slane %v2338_v51, 4  ;;  %v5813_v30 = vld [vmem:[%s4489_s28 + $0xbc] ss:$0 sps:$4 sm:$0x22]  }
  0xde   : > { %v2490_v54 = vsel %vm351_vm3, %v2489_v45, %v2488_v55  ;;  %4074 = vmatprep.subr.bf16.mxu0 %v5474_v62  ;;  %4056 = vmatprep.mubr.msk.bf16.mxu0 %vm439_vm9, %v2411_v19  ;;  %v2485_v33 = vsel %vm366_vm8, %v2484_v39, %v2483_v14  ;;  %v5816_v51 = vld [vmem:[%s4489_s28 + $0xc4] ss:$0 sps:$4 sm:$0x22]   ;;  %v2339_v9 = vunpack.c.l.b16 %v5763_v17  ;;  %v2341_v7 = vunpack.c.l.b16 %v5778_v31  ;;  %v5843_v2 = vld [vmem:[%s4489_s28 + $0xec] ss:$0 sps:$4 sm:$0x22]  }
  0xdf   : > { %v2491_v18 = vsel %vm354_vm4, %v2334_v46, %v2490_v54  ;;  %v2340_v46 = vunpack.c.l.b16 %v5770_v5  ;;  %v2342_v58 = vunpack.c.l.b16 %v5787_v48  ;;  %v2343_v6 = vunpack.c.l.b16 %v5796_v44  ;;  %v5846_v27 = vld [vmem:[%s4489_s28 + $0xf4] ss:$0 sps:$4 sm:$0x22]   ;;  %v4335_v53 = vld [vmem:[%s4489_s28 + $0xfc] ss:$0 sps:$4 sm:$0x22]  }
  0xe0   : > { %4067 = vmatpush3.bf16.msra.mxu1 %v5549_v49  ;;  %v2493_v16 = vsel %vm357_vm5, %v2492_v57, %v2491_v18  ;;  %v2344_v32 = vunpack.c.l.b16 %v5804_v28  ;;  %v2345_v0 = vunpack.c.l.b16 %v5807_v15  ;;  %v2346_v23 = vunpack.c.l.b16 %v5813_v30 }
  0xe1   : > { %4068 = vmatprep.subr.bf16.mxu1 %v4493_v8  ;;  %v2495_v63 = vsel %vm360_vm6, %v2494_v41, %v2493_v16  ;;  %v2347_v1 = vunpack.c.l.b16 %v5816_v51  ;;  %v2348_v56 = vunpack.c.l.b16 %v5823_v60  ;;  %v2349_v47 = vunpack.c.l.b16 %v5826_v11 }
  0xe2   : > { %v2497_v24 = vsel %vm363_vm7, %v2496_v21, %v2495_v63  ;;  %v2350_v38 = vunpack.c.l.b16 %v5833_v29  ;;  %v2351_v4 = vunpack.c.l.b16 %v5836_v37  ;;  %v2383_v40 = vrot.slane %v2339_v9, 2  ;;  %v5876_v63 = vld [vmem:[%s4489_s28 + $0x4] ss:$0 sps:$4 sm:$0x44]  }
  0xe3   : > { %v2499_v3 = vsel %vm366_vm8, %v2498_v61, %v2497_v24  ;;  %v2352_v52 = vunpack.c.l.b16 %v5843_v2  ;;  %v2353_v59 = vunpack.c.l.b16 %v5846_v27  ;;  %v2384_v42 = vrot.slane %v2340_v46, 1  ;;  %v5881_v24 = vld [vmem:[%s4489_s28 + $0xc] ss:$0 sps:$4 sm:$0x44]  }
  0xe4   : > { %4069 = vmatpush3.bf16.msra.mxu1 %v4493_v8  ;;  %v2528_v35 = vpack.c.b16 %v2499_v3, %v2485_v33  ;;  %v2387_v50 = vrot.slane %v2342_v58, 7  ;;  %v2354_v26 = vunpack.c.l.b16 %v4335_v53  ;;  %v2389_v39 = vrot.slane %v2343_v6, 6  ;;  %v5886_v2 = vld [vmem:[%s4489_s28 + $0x14] ss:$0 sps:$4 sm:$0x44]  }
  0xe5   : > { %4088 = vmatprep.subr.bf16.mxu1 %v5474_v62  ;;  %v2391_v17 = vrot.slane %v2344_v32, 5  ;;  %v2393_v13 = vrot.slane %v2345_v0, 4  ;;  %v2385_v43 = vsel %vm348_vm2, %v2384_v42, %v2383_v40  ;;  %v2395_v20 = vrot.slane %v2346_v23, 3  ;;  %v5921_v29 = vld [vmem:[%s4489_s28 + $0x4c] ss:$0 sps:$4 sm:$0x44]  }
  0xe6   : > { %4070 = vmatprep.mubr.msk.bf16.mxu1 %vm439_vm9, %v2528_v35  ;;  %v2397_v34 = vrot.slane %v2347_v1, 2  ;;  %v2398_v5 = vrot.slane %v2348_v56, 1  ;;  %v2386_v22 = vsel %vm351_vm3, %v2341_v7, %v2385_v43  ;;  %v2401_v10 = vrot.slane %v2350_v38, 7 }
  0xe7   : > { %v2403_v45 = vrot.slane %v2351_v4, 6  ;;  %v2405_v57 = vrot.slane %v2352_v52, 5  ;;  %v2388_v31 = vsel %vm354_vm4, %v2387_v50, %v2386_v22  ;;  %v2407_v36 = vrot.slane %v2353_v59, 4 }
  0xe8   : > { %v2399_v19 = vsel %vm348_vm2, %v2398_v5, %v2397_v34  ;;  %v2409_v55 = vrot.slane %v2354_v26, 3  ;;  %v2390_v41 = vsel %vm357_vm5, %v2389_v39, %v2388_v31  ;;  %v2500_v14 = vrot.slane %v2339_v9, 3  ;;  %v5900_v39 = vld [vmem:[%s4489_s28 + $0x2c] ss:$0 sps:$4 sm:$0x44]  }
  0xe9   : > { %v2400_v48 = vsel %vm351_vm3, %v2349_v47, %v2399_v19  ;;  %v2501_v54 = vrot.slane %v2340_v46, 2  ;;  %v2392_v21 = vsel %vm360_vm6, %v2391_v17, %v2390_v41  ;;  %v2503_v44 = vrot.slane %v2341_v7, 1  ;;  %v5914_v17 = vld [vmem:[%s4489_s28 + $0x44] ss:$0 sps:$4 sm:$0x44]  }
  0xea   : > { %v2402_v61 = vsel %vm354_vm4, %v2401_v10, %v2400_v48  ;;  %v2506_v18 = vrot.slane %v2343_v6, 7  ;;  %v2394_v28 = vsel %vm363_vm7, %v2393_v13, %v2392_v21  ;;  %v2508_v16 = vrot.slane %v2344_v32, 6  ;;  %v5924_v34 = vld [vmem:[%s4489_s28 + $0x54] ss:$0 sps:$4 sm:$0x44]  }
  0xeb   : > { %v2404_v15 = vsel %vm357_vm5, %v2403_v45, %v2402_v61  ;;  %v2502_v33 = vsel %vm348_vm2, %v2501_v54, %v2500_v14  ;;  %v2396_v30 = vsel %vm366_vm8, %v2395_v20, %v2394_v28  ;;  %v2510_v46 = vrot.slane %v2345_v0, 5  ;;  %v5931_v45 = vld [vmem:[%s4489_s28 + $0x5c] ss:$0 sps:$4 sm:$0x44]  }
  0xec   : > { %v2406_v51 = vsel %vm360_vm6, %v2405_v57, %v2404_v15  ;;  %v2504_v9 = vsel %vm351_vm3, %v2503_v44, %v2502_v33  ;;  %v2512_v7 = vrot.slane %v2346_v23, 4  ;;  %v2514_v6 = vrot.slane %v2347_v1, 3  ;;  %v5890_v1 = vld [vmem:[%s4489_s28 + $0x1c] ss:$0 sps:$4 sm:$0x44]  }
  0xed   : > { %v2408_v60 = vsel %vm363_vm7, %v2407_v36, %v2406_v51  ;;  %v2505_v11 = vsel %vm354_vm4, %v2342_v58, %v2504_v9  ;;  %v2515_v3 = vrot.slane %v2348_v56, 2  ;;  %v2517_v0 = vrot.slane %v2349_v47, 1  ;;  %v5895_v47 = vld [vmem:[%s4489_s28 + $0x24] ss:$0 sps:$4 sm:$0x44]  }
  0xee   : > { %v2410_v37 = vsel %vm366_vm8, %v2409_v55, %v2408_v60  ;;  %v2507_v32 = vsel %vm357_vm5, %v2506_v18, %v2505_v11  ;;  %v2520_v58 = vrot.slane %v2351_v4, 7  ;;  %v2522_v23 = vrot.slane %v2352_v52, 6  ;;  %v5903_v4 = vld [vmem:[%s4489_s28 + $0x34] ss:$0 sps:$4 sm:$0x44]  }
  0xef   : > { %v2412_v27 = vpack.c.b16 %v2410_v37, %v2396_v30  ;;  %v2509_v35 = vsel %vm360_vm6, %v2508_v16, %v2507_v32  ;;  %v2516_v40 = vsel %vm348_vm2, %v2515_v3, %v2514_v6  ;;  %v2524_v42 = vrot.slane %v2353_v59, 5  ;;  %v5934_v57 = vld [vmem:[%s4489_s28 + $0x64] ss:$0 sps:$4 sm:$0x44]  }
  0xf0   : > { %v2511_v53 = vsel %vm363_vm7, %v2510_v46, %v2509_v35  ;;  %v2526_v56 = vrot.slane %v2354_v26, 4  ;;  %v2518_v50 = vsel %vm351_vm3, %v2517_v0, %v2516_v40  ;;  %v5911_v26 = vld [vmem:[%s4489_s28 + $0x3c] ss:$0 sps:$4 sm:$0x44]   ;;  %v2717_v13 = vunpack.c.l.b16 %v5876_v63 }
  0xf1   : > { %4057 = vmatmul.mubr.msk.bf16.vlgmr.msra.gmra.mrb[20].mxu0 %vm439_vm9, %v2412_v27  ;;  %v2513_v52 = vsel %vm366_vm8, %v2512_v7, %v2511_v53  ;;  %v2519_v59 = vsel %vm354_vm4, %v2350_v38, %v2518_v50  ;;  %v2718_v43 = vunpack.c.l.b16 %v5881_v24  ;;  %v2719_v38 = vunpack.c.l.b16 %v5886_v2  ;;  %v5941_v41 = vld [vmem:[%s4489_s28 + $0x6c] ss:$0 sps:$4 sm:$0x44]   ;;  %v5944_v48 = vld [vmem:[%s4489_s28 + $0x74] ss:$0 sps:$4 sm:$0x44]  }
  0xf2   : > { %4075 = vmatpush3.bf16.msra.mxu0 %v5474_v62  ;;  %v2521_v20 = vsel %vm357_vm5, %v2520_v58, %v2519_v59  ;;  %v2720_v5 = vunpack.c.l.b16 %v5890_v1  ;;  %v2721_v22 = vunpack.c.l.b16 %v5895_v47  ;;  %v2722_v31 = vunpack.c.l.b16 %v5900_v39  ;;  %v5952_v44 = vld [vmem:[%s4489_s28 + $0x7c] ss:$0 sps:$4 sm:$0x44]  }
  0xf3   : > { %4076 = vmatprep.subr.bf16.mxu0 %v5483_v12  ;;  %v2523_v10 = vsel %vm360_vm6, %v2522_v23, %v2521_v20  ;;  %v2723_v19 = vunpack.c.l.b16 %v5903_v4  ;;  %v2724_v36 = vunpack.c.l.b16 %v5911_v26  ;;  %v2725_v14 = vunpack.c.l.b16 %v5914_v17 }
  0xf4   : > { %v2525_v55 = vsel %vm363_vm7, %v2524_v42, %v2523_v10  ;;  %v2726_v54 = vunpack.c.l.b16 %v5921_v29  ;;  %v2727_v21 = vunpack.c.l.b16 %v5924_v34  ;;  %v2728_v18 = vunpack.c.l.b16 %v5931_v45 }
  0xf5   : > { %v2527_v61 = vsel %vm366_vm8, %v2526_v56, %v2525_v55  ;;  %v2729_v28 = vunpack.c.l.b16 %v5934_v57  ;;  %v2749_v15 = vrot.slane %v2717_v13, 4  ;;  %v2730_v16 = vunpack.c.l.b16 %v5941_v41  ;;  %v6028_v57 = vld [vmem:[%s6484_s1] sm:$0xff]  }
  0xf6   : > { %4077 = vmatpush3.bf16.msra.mxu0 %v5483_v12  ;;  %v2529_v33 = vpack.c.b16 %v2527_v61, %v2513_v52  ;;  %v2731_v30 = vunpack.c.l.b16 %v5944_v48  ;;  %v2750_v51 = vrot.slane %v2718_v43, 3  ;;  %v2732_v9 = vunpack.c.l.b16 %v5952_v44  ;;  %v6002_v61 = vld [vmem:[%s4489_s28 + $0x8c] ss:$0 sps:$4 sm:$0x44]  }
  0xf7   : > { %4078 = vmatprep.subr.bf16.mxu0 %v5511_v25  ;;  %v2752_v46 = vrot.slane %v2719_v38, 2  ;;  %v2754_v63 = vrot.slane %v2720_v5, 1  ;;  %v2757_v60 = vrot.slane %v2722_v31, 7  ;;  %v2759_v7 = vrot.slane %v2723_v19, 6 }
  0xf8   : > { %4071 = vmatmul.mubr.msk.bf16.vlgmr.msra.gmra.mrb[20].mxu1 %vm439_vm9, %v2529_v33  ;;  %v2751_v11 = vsel %vm348_vm2, %v2750_v51, %v2749_v15  ;;  %v2761_v6 = vrot.slane %v2724_v36, 5  ;;  %v2763_v24 = vrot.slane %v2725_v14, 4  ;;  %v2764_v32 = vrot.slane %v2726_v54, 3  ;;  %v6035_v33 = vld [vmem:[%s4489_s28 + $0xa4] ss:$0 sps:$4 sm:$0x44]  }
  0xf9   : > { %4089 = vmatpush3.bf16.msra.mxu1 %v5474_v62  ;;  %v2753_v37 = vsel %vm351_vm3, %v2752_v46, %v2751_v11  ;;  %v2766_v3 = vrot.slane %v2727_v21, 2  ;;  %v2768_v0 = vrot.slane %v2728_v18, 1  ;;  %v2771_v27 = vrot.slane %v2730_v16, 7  ;;  %v6043_v51 = vld [vmem:[%s4489_s28 + $0xb4] ss:$0 sps:$4 sm:$0x44]  }
  0xfa   : > { %4079 = vmatpush3.bf16.msra.mxu0 %v5511_v25  ;;  %4090 = vmatprep.subr.bf16.mxu1 %v5483_v12  ;;  %v2755_v2 = vsel %vm354_vm4, %v2754_v63, %v2753_v37  ;;  %v2773_v62 = vrot.slane %v2731_v30, 6  ;;  %v2775_v35 = vrot.slane %v2732_v9, 5  ;;  %v2765_v23 = vsel %vm348_vm2, %v2764_v32, %v2763_v24  ;;  %v6052_v63 = vld [vmem:[%s4489_s28 + $0xc4] ss:$0 sps:$4 sm:$0x44]  }
  0xfb   : > { %4080 = vmatprep.subr.bf16.mxu0 %v5549_v49  ;;  %v2756_v58 = vsel %vm357_vm5, %v2721_v22, %v2755_v2  ;;  %v2866_v1 = vrot.slane %v2717_v13, 5  ;;  %v2867_v53 = vrot.slane %v2718_v43, 4  ;;  %v2767_v42 = vsel %vm351_vm3, %v2766_v3, %v2765_v23  ;;  %v6074_v2 = vld [vmem:[%s4489_s28 + $0xe4] ss:$0 sps:$4 sm:$0x44]  }
  0xfc   : > { %v2758_v40 = vsel %vm360_vm6, %v2757_v60, %v2756_v58  ;;  %v2869_v56 = vrot.slane %v2719_v38, 3  ;;  %v2871_v47 = vrot.slane %v2720_v5, 2  ;;  %v2769_v4 = vsel %vm354_vm4, %v2768_v0, %v2767_v42  ;;  %v5997_v38 = vld [vmem:[%s4489_s28 + $0x84] ss:$0 sps:$4 sm:$0x44]  }
  0xfd   : > { %4091 = vmatpush3.bf16.msra.mxu1 %v5483_v12  ;;  %v2760_v50 = vsel %vm363_vm7, %v2759_v7, %v2758_v40  ;;  %v2868_v52 = vsel %vm348_vm2, %v2867_v53, %v2866_v1  ;;  %v2873_v59 = vrot.slane %v2721_v22, 1  ;;  %v2770_v12 = vsel %vm357_vm5, %v2729_v28, %v2769_v4  ;;  %v6061_v7 = vld [vmem:[%s4489_s28 + $0xcc] ss:$0 sps:$4 sm:$0x44]  }
  0xfe   : > { %4081 = vmatpush3.bf16.msra.mxu0 %v5549_v49  ;;  %4092 = vmatprep.subr.bf16.mxu1 %v5511_v25  ;;  %v2762_v26 = vsel %vm366_vm8, %v2761_v6, %v2760_v50  ;;  %v2870_v17 = vsel %vm351_vm3, %v2869_v56, %v2868_v52  ;;  %v2876_v13 = vrot.slane %v2723_v19, 7  ;;  %v2772_v43 = vsel %vm360_vm6, %v2771_v27, %v2770_v12  ;;  %v6064_v6 = vld [vmem:[%s4489_s28 + $0xd4] ss:$0 sps:$4 sm:$0x44]  }
  0xff   : > { %4082 = vmatprep.subr.bf16.mxu0 %v4493_v8  ;;  %v2872_v20 = vsel %vm354_vm4, %v2871_v47, %v2870_v17  ;;  %v2878_v29 = vrot.slane %v2724_v36, 6  ;;  %v2880_v34 = vrot.slane %v2725_v14, 5  ;;  %v2774_v5 = vsel %vm363_vm7, %v2773_v62, %v2772_v43  ;;  %v6071_v0 = vld [vmem:[%s4489_s28 + $0xdc] ss:$0 sps:$4 sm:$0x44]  }
 0x100   : > { %v2874_v22 = vsel %vm357_vm5, %v2873_v59, %v2872_v20  ;;  %v2881_v10 = vrot.slane %v2726_v54, 4  ;;  %v2883_v55 = vrot.slane %v2727_v21, 3  ;;  %v2776_v19 = vsel %vm366_vm8, %v2775_v35, %v2774_v5  ;;  %v6015_v21 = vld [vmem:[%s4489_s28 + $0x94] ss:$0 sps:$4 sm:$0x44]  }
 0x101   : > { %4093 = vmatpush3.bf16.msra.mxu1 %v5511_v25  ;;  %v2875_v36 = vsel %vm360_vm6, %v2722_v31, %v2874_v22  ;;  %v2885_v14 = vrot.slane %v2728_v18, 2  ;;  %v2887_v54 = vrot.slane %v2729_v28, 1  ;;  %v2805_v25 = vpack.c.b16 %v2776_v19, %v2762_v26  ;;  %v6023_v31 = vld [vmem:[%s4489_s28 + $0x9c] ss:$0 sps:$4 sm:$0x44]  }
 0x102   : > { %4083 = vmatpush3.bf16.msra.mxu0 %v4493_v8  ;;  %4094 = vmatprep.subr.bf16.mxu1 %v5549_v49  ;;  %v2877_v15 = vsel %vm363_vm7, %v2876_v13, %v2875_v36  ;;  %v2882_v39 = vsel %vm348_vm2, %v2881_v10, %v2880_v34  ;;  %v2890_v45 = vrot.slane %v2731_v30, 7  ;;  %v2892_v28 = vrot.slane %v2732_v9, 6  ;;  %v6040_v30 = vld [vmem:[%s4489_s28 + $0xac] ss:$0 sps:$4 sm:$0x44]  }
 0x103   : > { %4102 = vmatprep.subr.bf16.mxu0 %v6028_v57  ;;  %v2884_v18 = vsel %vm351_vm3, %v2883_v55, %v2882_v39  ;;  %4084 = vmatprep.mubr.msk.bf16.mxu0 %vm439_vm9, %v2805_v25  ;;  %v2879_v46 = vsel %vm366_vm8, %v2878_v29, %v2877_v15  ;;  %v6049_v9 = vld [vmem:[%s4489_s28 + $0xbc] ss:$0 sps:$4 sm:$0x44]   ;;  %v2733_v60 = vunpack.c.l.b16 %v5997_v38  ;;  %v2734_v11 = vunpack.c.l.b16 %v6002_v61  ;;  %v6081_v35 = vld [vmem:[%s4489_s28 + $0xec] ss:$0 sps:$4 sm:$0x44]  }
 0x104   : > { %v2886_v48 = vsel %vm354_vm4, %v2885_v14, %v2884_v18  ;;  %v2735_v24 = vunpack.c.l.b16 %v6015_v21  ;;  %v2736_v37 = vunpack.c.l.b16 %v6023_v31  ;;  %v2737_v32 = vunpack.c.l.b16 %v6035_v33  ;;  %v6084_v58 = vld [vmem:[%s4489_s28 + $0xf4] ss:$0 sps:$4 sm:$0x44]   ;;  %v6091_v42 = vld [vmem:[%s4489_s28 + $0xfc] ss:$0 sps:$4 sm:$0x44]  }
 0x105   : > { %4095 = vmatpush3.bf16.msra.mxu1 %v5549_v49  ;;  %v2888_v44 = vsel %vm357_vm5, %v2887_v54, %v2886_v48  ;;  %v2738_v41 = vunpack.c.l.b16 %v6040_v30  ;;  %v2740_v27 = vunpack.c.l.b16 %v6049_v9  ;;  %v2741_v23 = vunpack.c.l.b16 %v6052_v63  ;;  %v6158_v30 = vld [vmem:[%s4489_s28 + $0x24] ss:$0 sps:$4 sm:$0x88]  }
 0x106   : > { %4096 = vmatprep.subr.bf16.mxu1 %v4493_v8  ;;  %v2889_v49 = vsel %vm360_vm6, %v2730_v16, %v2888_v44  ;;  %v2739_v16 = vunpack.c.l.b16 %v6043_v51  ;;  %v2742_v1 = vunpack.c.l.b16 %v6061_v7  ;;  %v2743_v53 = vunpack.c.l.b16 %v6064_v6  ;;  %v6129_v6 = vld [vmem:[%s4489_s28 + $0x4] ss:$0 sps:$4 sm:$0x88]  }
 0x107   : > { %v2891_v3 = vsel %vm363_vm7, %v2890_v45, %v2889_v49  ;;  %v2744_v56 = vunpack.c.l.b16 %v6071_v0  ;;  %v2745_v47 = vunpack.c.l.b16 %v6074_v2  ;;  %v2777_v50 = vrot.slane %v2733_v60, 4 }
 0x108   : > { %v2893_v62 = vsel %vm366_vm8, %v2892_v28, %v2891_v3  ;;  %v2746_v4 = vunpack.c.l.b16 %v6081_v35  ;;  %v2747_v52 = vunpack.c.l.b16 %v6084_v58  ;;  %v2778_v59 = vrot.slane %v2734_v11, 3 }
 0x109   : > { %4097 = vmatpush3.bf16.msra.mxu1 %v4493_v8  ;;  %v2922_v40 = vpack.c.b16 %v2893_v62, %v2879_v46  ;;  %v2780_v26 = vrot.slane %v2735_v24, 2  ;;  %v2748_v12 = vunpack.c.l.b16 %v6091_v42  ;;  %v2782_v17 = vrot.slane %v2736_v37, 1 }
 0x10a   : > { %4116 = vmatprep.subr.bf16.mxu1 %v6028_v57  ;;  %v2785_v13 = vrot.slane %v2738_v41, 7  ;;  %v2787_v43 = vrot.slane %v2739_v16, 6  ;;  %v2779_v29 = vsel %vm348_vm2, %v2778_v59, %v2777_v50  ;;  %v2789_v34 = vrot.slane %v2740_v27, 5  ;;  %v6141_v50 = vld [vmem:[%s4489_s28 + $0x14] ss:$0 sps:$4 sm:$0x88]  }
 0x10b   : > { %4098 = vmatprep.mubr.msk.bf16.mxu1 %vm439_vm9, %v2922_v40  ;;  %v6102_v20 = vpop.f32.mrb[0].mxu0  ;;  %v2791_v38 = vrot.slane %v2741_v23, 4  ;;  %v2792_v5 = vrot.slane %v2742_v1, 3  ;;  %v2781_v10 = vsel %vm351_vm3, %v2780_v26, %v2779_v29  ;;  %v2794_v55 = vrot.slane %v2743_v53, 2 }
 0x10c   : > { %v2796_v61 = vrot.slane %v2744_v56, 1  ;;  %v2799_v19 = vrot.slane %v2746_v4, 7  ;;  %v6110_v36 = vpop.f32.mrb[1].mxu0  ;;  %v2783_v14 = vsel %vm354_vm4, %v2782_v17, %v2781_v10  ;;  %v2801_v21 = vrot.slane %v2747_v52, 6 }
 0x10d   : > { %v2793_v54 = vsel %vm348_vm2, %v2792_v5, %v2791_v38  ;;  %v2803_v25 = vrot.slane %v2748_v12, 5  ;;  %v2784_v15 = vsel %vm357_vm5, %v2737_v32, %v2783_v14  ;;  %v2894_v45 = vrot.slane %v2733_v60, 5  ;;  %v6136_v2 = vpop.f32.mrb[2].mxu0  ;;  %v6169_v5 = vld [vmem:[%s4489_s28 + $0x34] ss:$0 sps:$4 sm:$0x88]  }
 0x10e   : > { %v2795_v39 = vsel %vm351_vm3, %v2794_v55, %v2793_v54  ;;  %v2895_v31 = vrot.slane %v2734_v11, 4  ;;  %v2786_v18 = vsel %vm360_vm6, %v2785_v13, %v2784_v15  ;;  %v2897_v33 = vrot.slane %v2735_v24, 3  ;;  %v6149_v13 = vld [vmem:[%s4489_s28 + $0x1c] ss:$0 sps:$4 sm:$0x88]  }
 0x10f   : > { %v2797_v28 = vsel %vm354_vm4, %v2796_v61, %v2795_v39  ;;  %v2899_v48 = vrot.slane %v2736_v37, 2  ;;  %v2788_v51 = vsel %vm363_vm7, %v2787_v43, %v2786_v18  ;;  %v2901_v9 = vrot.slane %v2737_v32, 1  ;;  %v6134_v32 = vld [vmem:[%s4489_s28 + $0xc] ss:$0 sps:$4 sm:$0x88]   ;;  %v6151_v43 = vpop.f32.mrb[3].mxu0 }
 0x110   : > { %v2798_v46 = vsel %vm357_vm5, %v2745_v47, %v2797_v28  ;;  %v2896_v44 = vsel %vm348_vm2, %v2895_v31, %v2894_v45  ;;  %v2790_v60 = vsel %vm366_vm8, %v2789_v34, %v2788_v51  ;;  %v2904_v7 = vrot.slane %v2739_v16, 7  ;;  %v6176_v10 = vld [vmem:[%s4489_s28 + $0x3c] ss:$0 sps:$4 sm:$0x88]  }
 0x111   : > { %v2800_v11 = vsel %vm360_vm6, %v2799_v19, %v2798_v46  ;;  %v2898_v49 = vsel %vm351_vm3, %v2897_v33, %v2896_v44  ;;  %v2906_v3 = vrot.slane %v2740_v27, 6  ;;  %v2908_v0 = vrot.slane %v2741_v23, 5  ;;  %v6179_v55 = vld [vmem:[%s4489_s28 + $0x44] ss:$0 sps:$4 sm:$0x88]  }
 0x112   : > { %v6105_v22 = vpop.f32.mrb[0].mxu1  ;;  %v2802_v24 = vsel %vm363_vm7, %v2801_v21, %v2800_v11  ;;  %v2900_v37 = vsel %vm354_vm4, %v2899_v48, %v2898_v49  ;;  %v2909_v42 = vrot.slane %v2742_v1, 4  ;;  %v2911_v16 = vrot.slane %v2743_v53, 3  ;;  %v4409_v21 = vld [vmem:[%s6484_s1 + $0x8] sm:$0xff]  }
 0x113   : > { %v6123_v63 = vpop.f32.mrb[1].mxu1  ;;  %v2804_v62 = vsel %vm366_vm8, %v2803_v25, %v2802_v24  ;;  %v2902_v40 = vsel %vm357_vm5, %v2901_v9, %v2900_v37  ;;  %v2913_v23 = vrot.slane %v2744_v56, 2  ;;  %v2915_v17 = vrot.slane %v2745_v47, 1  ;;  %v6166_v47 = vld [vmem:[%s4489_s28 + $0x2c] ss:$0 sps:$4 sm:$0x88]  }
 0x114   : > { %v6143_v59 = vpop.f32.mrb[2].mxu1  ;;  %v2806_v26 = vpack.c.b16 %v2804_v62, %v2790_v60  ;;  %v2903_v27 = vsel %vm360_vm6, %v2738_v41, %v2902_v40  ;;  %v2910_v53 = vsel %vm348_vm2, %v2909_v42, %v2908_v0  ;;  %v2918_v29 = vrot.slane %v2747_v52, 7  ;;  %v6189_v25 = vld [vmem:[%s4489_s28 + $0x4c] ss:$0 sps:$4 sm:$0x88]   ;;  %v4410_v62 = vld [vmem:[%s6484_s1 + $0x10] sm:$0xff]  }
 0x115   : > { %v2905_v1 = vsel %vm363_vm7, %v2904_v7, %v2903_v27  ;;  %v2920_v34 = vrot.slane %v2748_v12, 6  ;;  %v6160_v38 = vpop.f32.mrb[3].mxu1  ;;  %v2912_v56 = vsel %vm351_vm3, %v2911_v16, %v2910_v53  ;;  %v3111_v58 = vunpack.c.l.b16 %v6129_v6  ;;  %v6192_v15 = vld [vmem:[%s4489_s28 + $0x54] ss:$0 sps:$4 sm:$0x88]  }
 0x116   : > { %4085 = vmatmul.mubr.msk.bf16.vlgmr.msra.gmra.mrb[24].mxu0 %vm439_vm9, %v2806_v26  ;;  %v2907_v41 = vsel %vm366_vm8, %v2906_v3, %v2905_v1  ;;  %v3112_v52 = vunpack.c.l.b16 %v6134_v32  ;;  %v2914_v12 = vsel %vm354_vm4, %v2913_v23, %v2912_v56  ;;  %v3113_v61 = vunpack.c.l.b16 %v6141_v50  ;;  %v6202_v28 = vld [vmem:[%s4489_s28 + $0x5c] ss:$0 sps:$4 sm:$0x88]   ;;  %v6205_v33 = vld [vmem:[%s4489_s28 + $0x64] ss:$0 sps:$4 sm:$0x88]  }
 0x117   : > { %4103 = vmatpush3.bf16.msra.mxu0 %v6028_v57  ;;  %v3114_v19 = vunpack.c.l.b16 %v6149_v13  ;;  %v3115_v14 = vunpack.c.l.b16 %v6158_v30  ;;  %v2916_v54 = vsel %vm357_vm5, %v2915_v17, %v2914_v12  ;;  %v3116_v39 = vunpack.c.l.b16 %v6166_v47  ;;  %v6213_v9 = vld [vmem:[%s4489_s28 + $0x6c] ss:$0 sps:$4 sm:$0x88]   ;;  %v6216_v60 = vld [vmem:[%s4489_s28 + $0x74] ss:$0 sps:$4 sm:$0x88]  }
 0x118   : > { %4104 = vmatprep.subr.bf16.mxu0 %v4409_v21  ;;  %v3117_v45 = vunpack.c.l.b16 %v6169_v5  ;;  %v617_v31 = vmax.f32 %v6102_v20, %v6105_v22  ;;  %v2917_v18 = vsel %vm360_vm6, %v2746_v4, %v2916_v54  ;;  %v3118_v48 = vunpack.c.l.b16 %v6176_v10  ;;  %v6224_v7 = vld [vmem:[%s4489_s28 + $0x7c] ss:$0 sps:$4 sm:$0x88]   ;;  %v6313_v5 = vld [vmem:[%s4489_s28 + $0x8c] ss:$0 sps:$4 sm:$0x88]  }
 0x119   : > { %v3119_v51 = vunpack.c.l.b16 %v6179_v55  ;;  %v2919_v44 = vsel %vm363_vm7, %v2918_v29, %v2917_v18  ;;  %v3120_v35 = vunpack.c.l.b16 %v6189_v25  ;;  %v3121_v4 = vunpack.c.l.b16 %v6192_v15  ;;  %v4411_v18 = vld [vmem:[%s6484_s1 + $0x18] sm:$0xff]   ;;  %v6323_v15 = vld [vmem:[%s4489_s28 + $0x94] ss:$0 sps:$4 sm:$0x88]  }
 0x11a   : > { %v2921_v49 = vsel %vm366_vm8, %v2920_v34, %v2919_v44  ;;  %v3122_v24 = vunpack.c.l.b16 %v6202_v28  ;;  %v3123_v37 = vunpack.c.l.b16 %v6205_v33  ;;  %v3143_v3 = vrot.slane %v3111_v58, 6  ;;  %v6330_v28 = vld [vmem:[%s4489_s28 + $0x9c] ss:$0 sps:$4 sm:$0x88]  }
 0x11b   : > { %4105 = vmatpush3.bf16.msra.mxu0 %v4409_v21  ;;  %v2923_v0 = vpack.c.b16 %v2921_v49, %v2907_v41  ;;  %v3124_v40 = vunpack.c.l.b16 %v6213_v9  ;;  %v3125_v42 = vunpack.c.l.b16 %v6216_v60  ;;  %v3144_v16 = vrot.slane %v3112_v52, 5  ;;  %v6378_v22 = vld [vmem:[%s4489_s28 + $0xdc] ss:$0 sps:$4 sm:$0x88]  }
 0x11c   : > { %4106 = vmatprep.subr.bf16.mxu0 %v4410_v62  ;;  %v3126_v26 = vunpack.c.l.b16 %v6224_v7  ;;  %v3146_v27 = vrot.slane %v3113_v61, 4  ;;  %v3148_v23 = vrot.slane %v3114_v19, 3  ;;  %v3150_v17 = vrot.slane %v3115_v14, 2 }
 0x11d   : > { %4099 = vmatmul.mubr.msk.bf16.vlgmr.msra.gmra.mrb[24].mxu1 %vm439_vm9, %v2923_v0  ;;  %v3145_v1 = vsel %vm348_vm2, %v3144_v16, %v3143_v3  ;;  %v3152_v53 = vrot.slane %v3116_v39, 1  ;;  %v3155_v29 = vrot.slane %v3118_v48, 7  ;;  %v3157_v34 = vrot.slane %v3119_v51, 6 }
 0x11e   : > { %4117 = vmatpush3.bf16.msra.mxu1 %v6028_v57  ;;  %v3147_v41 = vsel %vm351_vm3, %v3146_v27, %v3145_v1  ;;  %v3158_v56 = vrot.slane %v3120_v35, 5  ;;  %v3160_v12 = vrot.slane %v3121_v4, 4  ;;  %v3162_v54 = vrot.slane %v3122_v24, 3 }
 0x11f   : > { %4107 = vmatpush3.bf16.msra.mxu0 %v4410_v62  ;;  %4118 = vmatprep.subr.bf16.mxu1 %v4409_v21  ;;  %v3149_v57 = vsel %vm354_vm4, %v3148_v23, %v3147_v41  ;;  %v3164_v44 = vrot.slane %v3123_v37, 2  ;;  %v3166_v49 = vrot.slane %v3124_v40, 1  ;;  %v3169_v3 = vrot.slane %v3126_v26, 7 }
 0x120   : > { %4108 = vmatprep.subr.bf16.mxu0 %v4411_v18  ;;  %v3151_v0 = vsel %vm357_vm5, %v3150_v17, %v3149_v57  ;;  %v3159_v16 = vsel %vm348_vm2, %v3158_v56, %v3157_v34  ;;  %v3260_v27 = vrot.slane %v3111_v58, 7  ;;  %v3261_v1 = vrot.slane %v3112_v52, 6  ;;  %v6344_v56 = vld [vmem:[%s4489_s28 + $0xac] ss:$0 sps:$4 sm:$0x88]  }
 0x121   : > { %v3153_v23 = vsel %vm360_vm6, %v3152_v53, %v3151_v0  ;;  %v3161_v41 = vsel %vm351_vm3, %v3160_v12, %v3159_v16  ;;  %v3263_v11 = vrot.slane %v3113_v61, 5  ;;  %v3265_v46 = vrot.slane %v3114_v19, 4  ;;  %v6302_v53 = vld [vmem:[%s4489_s28 + $0x84] ss:$0 sps:$4 sm:$0x88]  }
 0x122   : > { %4119 = vmatpush3.bf16.msra.mxu1 %v4409_v21  ;;  %v3154_v6 = vsel %vm363_vm7, %v3117_v45, %v3153_v23  ;;  %v3163_v32 = vsel %vm354_vm4, %v3162_v54, %v3161_v41  ;;  %v3262_v58 = vsel %vm348_vm2, %v3261_v1, %v3260_v27  ;;  %v3267_v52 = vrot.slane %v3115_v14, 3  ;;  %v6347_v12 = vld [vmem:[%s4489_s28 + $0xb4] ss:$0 sps:$4 sm:$0x88]  }
 0x123   : > { %4109 = vmatpush3.bf16.msra.mxu0 %v4411_v18  ;;  %4120 = vmatprep.subr.bf16.mxu1 %v4410_v62  ;;  %v3156_v50 = vsel %vm366_vm8, %v3155_v29, %v3154_v6  ;;  %v3165_v13 = vsel %vm357_vm5, %v3164_v44, %v3163_v32  ;;  %v3264_v61 = vsel %vm351_vm3, %v3263_v11, %v3262_v58  ;;  %v3269_v19 = vrot.slane %v3116_v39, 2  ;;  %v6352_v54 = vld [vmem:[%s4489_s28 + $0xbc] ss:$0 sps:$4 sm:$0x88]  }
 0x124   : > { %4110 = vmatprep.subr.bf16.mxu0 %v4493_v8  ;;  %v3167_v21 = vsel %vm360_vm6, %v3166_v49, %v3165_v13  ;;  %v3266_v17 = vsel %vm354_vm4, %v3265_v46, %v3264_v61  ;;  %v3271_v30 = vrot.slane %v3117_v45, 1  ;;  %v3274_v14 = vrot.slane %v3119_v51, 7  ;;  %v6355_v57 = vld [vmem:[%s4489_s28 + $0xc4] ss:$0 sps:$4 sm:$0x88]  }
 0x125   : > { %v3168_v11 = vsel %vm363_vm7, %v3125_v42, %v3167_v21  ;;  %v3268_v47 = vsel %vm357_vm5, %v3267_v52, %v3266_v17  ;;  %v3275_v39 = vrot.slane %v3120_v35, 6  ;;  %v3277_v46 = vrot.slane %v3121_v4, 5  ;;  %v6368_v49 = vld [vmem:[%s4489_s28 + $0xcc] ss:$0 sps:$4 sm:$0x88]  }
 0x126   : > { %4121 = vmatpush3.bf16.msra.mxu1 %v4410_v62  ;;  %v3170_v55 = vsel %vm366_vm8, %v3169_v3, %v3168_v11  ;;  %v3270_v45 = vsel %vm360_vm6, %v3269_v19, %v3268_v47  ;;  %v3279_v51 = vrot.slane %v3122_v24, 4  ;;  %v3281_v25 = vrot.slane %v3123_v37, 3  ;;  %v6336_v37 = vld [vmem:[%s4489_s28 + $0xa4] ss:$0 sps:$4 sm:$0x88]  }
 0x127   : > { %4111 = vmatpush3.bf16.msra.mxu0 %v4493_v8  ;;  %4122 = vmatprep.subr.bf16.mxu1 %v4411_v18  ;;  %v3199_v35 = vpack.c.b16 %v3170_v55, %v3156_v50  ;;  %v3272_v4 = vsel %vm363_vm7, %v3271_v30, %v3270_v45  ;;  %v3276_v62 = vsel %vm348_vm2, %v3275_v39, %v3274_v14  ;;  %v3283_v29 = vrot.slane %v3124_v40, 2  ;;  %v6371_v3 = vld [vmem:[%s4489_s28 + $0xd4] ss:$0 sps:$4 sm:$0x88]  }
 0x128   : > { %v3278_v33 = vsel %vm351_vm3, %v3277_v46, %v3276_v62  ;;  %v3285_v24 = vrot.slane %v3125_v42, 1  ;;  %v3273_v9 = vsel %vm366_vm8, %v3118_v48, %v3272_v4  ;;  %v3127_v60 = vunpack.c.l.b16 %v6302_v53  ;;  %v6390_v32 = vld [vmem:[%s4489_s28 + $0xec] ss:$0 sps:$4 sm:$0x88]  }
 0x129   : > { %4112 = vmatprep.mubr.msk.bf16.mxu0 %vm439_vm9, %v3199_v35  ;;  %v3280_v40 = vsel %vm354_vm4, %v3279_v51, %v3278_v33  ;;  %v3128_v10 = vunpack.c.l.b16 %v6313_v5  ;;  %v616_v48 = vmax.f32 %v6151_v43, %v6160_v38  ;;  %v3129_v0 = vunpack.c.l.b16 %v6323_v15  ;;  %v6393_v58 = vld [vmem:[%s4489_s28 + $0xf4] ss:$0 sps:$4 sm:$0x88]   ;;  %v6400_v19 = vld [vmem:[%s4489_s28 + $0xfc] ss:$0 sps:$4 sm:$0x88]  }
 0x12a   : > { %4123 = vmatpush3.bf16.msra.mxu1 %v4411_v18  ;;  %v3282_v42 = vsel %vm357_vm5, %v3281_v25, %v3280_v40  ;;  %v3130_v16 = vunpack.c.l.b16 %v6330_v28  ;;  %v3131_v27 = vunpack.c.l.b16 %v6336_v37  ;;  %v3132_v1 = vunpack.c.l.b16 %v6344_v56 }
 0x12b   : > { %4124 = vmatprep.subr.bf16.mxu1 %v4493_v8  ;;  %v3284_v18 = vsel %vm360_vm6, %v3283_v29, %v3282_v42  ;;  %v3133_v23 = vunpack.c.l.b16 %v6347_v12  ;;  %v3134_v41 = vunpack.c.l.b16 %v6352_v54  ;;  %v3135_v52 = vunpack.c.l.b16 %v6355_v57 }
 0x12c   : > { %v3286_v20 = vsel %vm363_vm7, %v3285_v24, %v3284_v18  ;;  %v3136_v50 = vunpack.c.l.b16 %v6368_v49  ;;  %v3137_v13 = vunpack.c.l.b16 %v6371_v3  ;;  %v3138_v21 = vunpack.c.l.b16 %v6378_v22 }
 0x12d   : > { %v3287_v6 = vsel %vm366_vm8, %v3126_v26, %v3286_v20  ;;  %v3171_v26 = vrot.slane %v3127_v60, 6  ;;  %v3140_v30 = vunpack.c.l.b16 %v6390_v32  ;;  %v3141_v14 = vunpack.c.l.b16 %v6393_v58 }
 0x12e   : > { %4125 = vmatpush3.bf16.msra.mxu1 %v4493_v8  ;;  %v3316_v61 = vpack.c.b16 %v3287_v6, %v3273_v9  ;;  %v3172_v11 = vrot.slane %v3128_v10, 5  ;;  %v3174_v47 = vrot.slane %v3129_v0, 4  ;;  %v3142_v46 = vunpack.c.l.b16 %v6400_v19 }
 0x12f   : > { %v3176_v5 = vrot.slane %v3130_v16, 3  ;;  %v3178_v55 = vrot.slane %v3131_v27, 2  ;;  %v3180_v45 = vrot.slane %v3132_v1, 1  ;;  %v3183_v35 = vrot.slane %v3134_v41, 7 }
 0x130   : > { %v3946_v34 = vpop.f32.mrb[4].mxu0  ;;  %4126 = vmatprep.mubr.msk.bf16.mxu1 %vm439_vm9, %v3316_v61  ;;  %v3173_v15 = vsel %vm348_vm2, %v3172_v11, %v3171_v26  ;;  %v3185_v4 = vrot.slane %v3135_v52, 6  ;;  %v3186_v62 = vrot.slane %v3136_v50, 5  ;;  %v3188_v33 = vrot.slane %v3137_v13, 4 }
 0x131   : > { %v6363_v44 = vmax.f32 %v617_v31, %v3946_v34  ;;  %v6381_v31 = vld [vmem:[%s4489_s28 + $0xe4] ss:$0 sps:$4 sm:$0x88]   ;;  %v6406_v17 = vpop.f32.mrb[5].mxu0  ;;  %v3175_v28 = vsel %vm351_vm3, %v3174_v47, %v3173_v15  ;;  %v3190_v24 = vrot.slane %v3138_v21, 3  ;;  %v3194_v56 = vrot.slane %v3140_v30, 1 }
 0x132   : > { %v3139_v7 = vunpack.c.l.b16 %v6381_v31  ;;  %v3947_v8 = vpop.f32.mrb[6].mxu0  ;;  %v3177_v9 = vsel %vm354_vm4, %v3176_v5, %v3175_v28  ;;  %v3187_v40 = vsel %vm348_vm2, %v3186_v62, %v3185_v4  ;;  %v3197_v12 = vrot.slane %v3142_v46, 7  ;;  %s3476_s28 = sshll.u32 %s3468_s13, 2 }
 0x133   : > { %v880_v25 = vpop.f32.mrb[7].mxu0  ;;  %v3179_v42 = vsel %vm357_vm5, %v3178_v55, %v3177_v9  ;;  %v3189_v57 = vsel %vm351_vm3, %v3188_v33, %v3187_v40  ;;  %v3288_v18 = vrot.slane %v3127_v60, 7  ;;  %v3289_v49 = vrot.slane %v3128_v10, 6  ;;  %p172_p4 = scmp.lt.s32.totalorder %s3476_s28, 7 }
 0x134   : > { %v3192_v37 = vrot.slane %v3139_v7, 2  ;;  %v3181_v3 = vsel %vm360_vm6, %v3180_v45, %v3179_v42  ;;  %v3191_v20 = vsel %vm354_vm4, %v3190_v24, %v3189_v57  ;;  %v3291_v22 = vrot.slane %v3129_v0, 5 }
 0x135   : > { %v3293_v31 = vrot.slane %v3130_v16, 4  ;;  %v3182_v6 = vsel %vm363_vm7, %v3133_v23, %v3181_v3  ;;  %v3290_v58 = vsel %vm348_vm2, %v3289_v49, %v3288_v18  ;;  %v3295_v61 = vrot.slane %v3131_v27, 3  ;;  %s6492_s28 = smov (!%p172_p4, %s3476_s28), 7 }
 0x136   : > { %v3193_v32 = vsel %vm357_vm5, %v3192_v37, %v3191_v20  ;;  %v3184_v26 = vsel %vm366_vm8, %v3183_v35, %v3182_v6  ;;  %v3292_v53 = vsel %vm351_vm3, %v3291_v22, %v3290_v58  ;;  %v3297_v60 = vrot.slane %v3132_v1, 2  ;;  %s3477_s4 = sshll.u32 %s6492_s28, 2 }
 0x137   : > { %v6410_v39 = vpop.f32.mrb[4].mxu1  ;;  %v3195_v11 = vsel %vm360_vm6, %v3194_v56, %v3193_v32  ;;  %v3294_v47 = vsel %vm354_vm4, %v3293_v31, %v3292_v53  ;;  %v3299_v0 = vrot.slane %v3133_v23, 1  ;;  %v3302_v16 = vrot.slane %v3135_v52, 7  ;;  %s175_s6 = scalar_lea.vmem %s6486_s3, %s3477_s4 }
 0x138   : > { %v6414_v51 = vpop.f32.mrb[5].mxu1  ;;  %v3196_v10 = vsel %vm363_vm7, %v3141_v14, %v3195_v11  ;;  %v3296_v55 = vsel %vm357_vm5, %v3295_v61, %v3294_v47  ;;  %v3303_v45 = vrot.slane %v3136_v50, 6  ;;  %v3305_v15 = vrot.slane %v3137_v13, 5 }
 0x139   : > { %v6419_v29 = vpop.f32.mrb[6].mxu1  ;;  %v3198_v5 = vsel %vm366_vm8, %v3197_v12, %v3196_v10  ;;  %v3298_v35 = vsel %vm360_vm6, %v3297_v60, %v3296_v55  ;;  %v3307_v4 = vrot.slane %v3138_v21, 4  ;;  %v3309_v62 = vrot.slane %v3139_v7, 3 }
 0x13a   : > { %v997_v34 = vpop.f32.mrb[7].mxu1  ;;  %v3200_v27 = vpack.c.b16 %v3198_v5, %v3184_v26  ;;  %v3300_v28 = vsel %vm363_vm7, %v3299_v0, %v3298_v35  ;;  %v3304_v1 = vsel %vm348_vm2, %v3303_v45, %v3302_v16  ;;  %v3311_v33 = vrot.slane %v3140_v30, 2 }
 0x13b   : > { %v3306_v23 = vsel %vm351_vm3, %v3305_v15, %v3304_v1  ;;  %v3313_v52 = vrot.slane %v3141_v14, 1  ;;  %v1011_v24 = vmax.f32 %v6363_v44, %v6410_v39  ;;  %v6487_v50 = vmax.f32 %v6110_v36, %v6123_v63 }
 0x13c   : > { %4113 = vmatmul.mubr.msk.bf16.vlgmr.msra.gmra.mrb[28].mxu0 %vm439_vm9, %v3200_v27  ;;  %v3308_v21 = vsel %vm354_vm4, %v3307_v4, %v3306_v23  ;;  %v6488_v7 = vmax.f32 %v6136_v2, %v6143_v59  ;;  %v893_v30 = vmax.f32 %v616_v48, %v880_v25  ;;  %v3301_v44 = vsel %vm366_vm8, %v3134_v41, %v3300_v28 }
 0x13d   : > { %v892_v13 = vmax.f32 %v6487_v50, %v6406_v17  ;;  %v3310_v14 = vsel %vm357_vm5, %v3309_v62, %v3308_v21 }
 0x13e   : > { %v895_v37 = vmax.f32 %v6488_v7, %v3947_v8  ;;  %v3312_v36 = vsel %vm360_vm6, %v3311_v33, %v3310_v14  ;;  %v1010_v17 = vmax.f32 %v893_v30, %v997_v34 }
 0x13f   : > { %v1009_v9 = vmax.f32 %v892_v13, %v6414_v51  ;;  %v3314_v2 = vsel %vm363_vm7, %v3313_v52, %v3312_v36 }
 0x140   : > { %v1012_v63 = vmax.f32 %v895_v37, %v6419_v29  ;;  %v3315_v59 = vsel %vm366_vm8, %v3142_v46, %v3314_v2 }
 0x141   : > { %v3317_v43 = vpack.c.b16 %v3315_v59, %v3301_v44 }
 0x143   : > { %4127 = vmatmul.mubr.msk.bf16.vlgmr.msra.gmra.mrb[28].mxu1 %vm439_vm9, %v3317_v43 }
 0x155   : > { %v3974_v38 = vpop.f32.mrb[8].mxu0 }
 0x156   : > { %v1288_v48 = vmax.f32 %v1011_v24, %v3974_v38  ;;  %v1271_v39 = vpop.f32.mrb[9].mxu0 }
 0x157   : > { %v1286_v54 = vmax.f32 %v1009_v9, %v1271_v39  ;;  %v3975_v8 = vpop.f32.mrb[10].mxu0 }
 0x158   : > { %v1289_v41 = vmax.f32 %v1012_v63, %v3975_v8  ;;  %v1274_v51 = vpop.f32.mrb[11].mxu0 }
 0x159   : > { %v1287_v25 = vmax.f32 %v1010_v17, %v1274_v51 }
 0x15c   : > { %v3988_v40 = vpop.f32.mrb[8].mxu1 }
 0x15d   : > { %v1405_v29 = vmax.f32 %v1288_v48, %v3988_v40  ;;  %v1388_v34 = vpop.f32.mrb[9].mxu1 }
 0x15e   : > { %v1403_v56 = vmax.f32 %v1286_v54, %v1388_v34  ;;  %v3989_v12 = vpop.f32.mrb[10].mxu1 }
 0x15f   : > { %v1406_v42 = vmax.f32 %v1289_v41, %v3989_v12  ;;  %v1391_v19 = vpop.f32.mrb[11].mxu1 }
 0x160   : > { %v1404_v57 = vmax.f32 %v1287_v25, %v1391_v19 }
 0x17a   : > { %v4002_v46 = vpop.f32.mrb[12].mxu0 }
 0x17b   : > { %v1682_v18 = vmax.f32 %v1405_v29, %v4002_v46  ;;  %v1665_v49 = vpop.f32.mrb[13].mxu0 }
 0x17c   : > { %v1680_v3 = vmax.f32 %v1403_v56, %v1665_v49  ;;  %v4003_v20 = vpop.f32.mrb[14].mxu0 }
 0x17d   : > { %v1683_v22 = vmax.f32 %v1406_v42, %v4003_v20  ;;  %v1668_v31 = vpop.f32.mrb[15].mxu0 }
 0x17e   : > { %v1681_v6 = vmax.f32 %v1404_v57, %v1668_v31 }
 0x181   : > { %v4016_v32 = vpop.f32.mrb[12].mxu1 }
 0x182   : > { %v1799_v58 = vmax.f32 %v1682_v18, %v4016_v32  ;;  %v1782_v61 = vpop.f32.mrb[13].mxu1 }
 0x183   : > { %v1797_v26 = vmax.f32 %v1680_v3, %v1782_v61  ;;  %v4017_v11 = vpop.f32.mrb[14].mxu1 }
 0x184   : > { %v1800_v53 = vmax.f32 %v1683_v22, %v4017_v11  ;;  %v1785_v60 = vpop.f32.mrb[15].mxu1 }
 0x185   : > { %v1798_v10 = vmax.f32 %v1681_v6, %v1785_v60 }
 0x19f   : > { %v4030_v47 = vpop.f32.mrb[16].mxu0 }
 0x1a0   : > { %v2076_v0 = vmax.f32 %v1799_v58, %v4030_v47  ;;  %v2059_v16 = vpop.f32.mrb[17].mxu0  ;;  %v3771_v58 = vld [vmem:[%s6485_s2] ss:$0 sm:$0xff] }
 0x1a1   : > { %v2074_v5 = vmax.f32 %v1797_v26, %v2059_v16  ;;  %v4031_v55 = vpop.f32.mrb[18].mxu0 }
 0x1a2   : > { %v2077_v45 = vmax.f32 %v1800_v53, %v4031_v55  ;;  %v2062_v15 = vpop.f32.mrb[19].mxu0 }
 0x1a3   : > { %v2075_v27 = vmax.f32 %v1798_v10, %v2062_v15 }
 0x1a6   : > { %v4044_v35 = vpop.f32.mrb[16].mxu1 }
 0x1a7   : > { %v2193_v4 = vmax.f32 %v2076_v0, %v4044_v35  ;;  %v2176_v62 = vpop.f32.mrb[17].mxu1 }
 0x1a8   : > { %v2191_v28 = vmax.f32 %v2074_v5, %v2176_v62  ;;  %v4045_v1 = vpop.f32.mrb[18].mxu1 }
 0x1a9   : > { %v2194_v33 = vmax.f32 %v2077_v45, %v4045_v1  ;;  %v2179_v23 = vpop.f32.mrb[19].mxu1 }
 0x1aa   : > { %v2192_v52 = vmax.f32 %v2075_v27, %v2179_v23 }
 0x1c4   : > { %v4058_v24 = vpop.f32.mrb[20].mxu0 }
 0x1c5   : > { %v2470_v50 = vmax.f32 %v2193_v4, %v4058_v24  ;;  %v2453_v13 = vpop.f32.mrb[21].mxu0 }
 0x1c6   : > { %v2468_v21 = vmax.f32 %v2191_v28, %v2453_v13  ;;  %v4059_v7 = vpop.f32.mrb[22].mxu0 }
 0x1c7   : > { %v2471_v37 = vmax.f32 %v2194_v33, %v4059_v7  ;;  %v2456_v30 = vpop.f32.mrb[23].mxu0 }
 0x1c8   : > { %v2469_v14 = vmax.f32 %v2192_v52, %v2456_v30 }
 0x1cb   : > { %v4072_v9 = vpop.f32.mrb[20].mxu1 }
 0x1cc   : > { %v2587_v44 = vmax.f32 %v2470_v50, %v4072_v9  ;;  %v2570_v36 = vpop.f32.mrb[21].mxu1 }
 0x1cd   : > { %v2585_v63 = vmax.f32 %v2468_v21, %v2570_v36  ;;  %v4073_v17 = vpop.f32.mrb[22].mxu1 }
 0x1ce   : > { %v2588_v2 = vmax.f32 %v2471_v37, %v4073_v17  ;;  %v2573_v59 = vpop.f32.mrb[23].mxu1 }
 0x1cf   : > { %v2586_v43 = vmax.f32 %v2469_v14, %v2573_v59 }
 0x1e9   : > { %v4086_v38 = vpop.f32.mrb[24].mxu0 }
 0x1ea   : > { %v2864_v48 = vmax.f32 %v2587_v44, %v4086_v38  ;;  %v2847_v39 = vpop.f32.mrb[25].mxu0 }
 0x1eb   : > { %v2862_v54 = vmax.f32 %v2585_v63, %v2847_v39  ;;  %v4087_v8 = vpop.f32.mrb[26].mxu0 }
 0x1ec   : > { %v2865_v41 = vmax.f32 %v2588_v2, %v4087_v8  ;;  %v2850_v51 = vpop.f32.mrb[27].mxu0 }
 0x1ed   : > { %v2863_v25 = vmax.f32 %v2586_v43, %v2850_v51 }
 0x1f0   : > { %v4100_v40 = vpop.f32.mrb[24].mxu1 }
 0x1f1   : > { %v2981_v29 = vmax.f32 %v2864_v48, %v4100_v40  ;;  %v2964_v34 = vpop.f32.mrb[25].mxu1 }
 0x1f2   : > { %v2979_v56 = vmax.f32 %v2862_v54, %v2964_v34  ;;  %v4101_v12 = vpop.f32.mrb[26].mxu1 }
 0x1f3   : > { %v2982_v42 = vmax.f32 %v2865_v41, %v4101_v12  ;;  %v2967_v19 = vpop.f32.mrb[27].mxu1 }
 0x1f4   : > { %v2980_v57 = vmax.f32 %v2863_v25, %v2967_v19 }
 0x20f   : > { %v4114_v46 = vpop.f32.mrb[28].mxu0 }
 0x210   : > { %v3258_v18 = vmax.f32 %v2981_v29, %v4114_v46  ;;  %v3241_v49 = vpop.f32.mrb[29].mxu0 }
 0x211   : > { %v3256_v3 = vmax.f32 %v2979_v56, %v3241_v49  ;;  %v4115_v20 = vpop.f32.mrb[30].mxu0 }
 0x212   : > { %v3259_v22 = vmax.f32 %v2982_v42, %v4115_v20  ;;  %v3244_v31 = vpop.f32.mrb[31].mxu0 }
 0x213   : > { %v3257_v6 = vmax.f32 %v2980_v57, %v3244_v31 }
 0x216   : > { %v4128_v32 = vpop.f32.mrb[28].mxu1 }
 0x217   : > { %v3375_v61 = vmax.f32 %v3258_v18, %v4128_v32  ;;  %v3358_v26 = vpop.f32.mrb[29].mxu1 }
 0x218   : > { %v3373_v11 = vmax.f32 %v3256_v3, %v3358_v26  ;;  %v4129_v53 = vpop.f32.mrb[30].mxu1 }
 0x219   : > { %v3386_v60 = vadd.f32 %v3771_v58, %v3375_v61  ;;  %v3376_v10 = vmax.f32 %v3259_v22, %v4129_v53  ;;  %v3361_v47 = vpop.f32.mrb[31].mxu1 }
 0x21a   : > { %v3384_v0 = vadd.f32 %v3771_v58, %v3373_v11  ;;  %v3374_v16 = vmax.f32 %v3257_v6, %v3361_v47 }
 0x21b   : > { %v3387_v5 = vadd.f32 %v3771_v58, %v3376_v10  ;;  %v3390_v45 = vmax.f32 %v3386_v60, 0.0 }
 0x21c   : > { %v3385_v55 = vadd.f32 %v3771_v58, %v3374_v16  ;;  %v3388_v27 = vmax.f32 %v3384_v0, 0.0 }
 0x21d   : > { %v3391_v15 = vmax.f32 %v3387_v5, 0.0 }
 0x21e   : > { %v3389_v35 = vmax.f32 %v3385_v55, 0.0 }
 0x21f   : > { %v3791_v4 = vpack.c.bf16 %v3391_v15, %v3390_v45 }
 0x220   : > { %v3786_v62 = vpack.c.bf16 %v3389_v35, %v3388_v27 }
 0x221   : > { %3793 = vst [vmem:[%s175_s6 + $0x8] sm:$0xff] %v3791_v4  }
 0x222   : > { %3787 = vst [vmem:[%s175_s6] sm:$0xff] %v3786_v62  }
 0x223 PF: > { %s13_s12 = sadd.s32 1, %s4418_s12  }
 0x224   : > { %p10_p5 = scmp.ge.s32.totalorder %s13_s12, 4  }
 0x226   :  { %12 = sbr.rel (!%p10_p5) target bundleno = 1 (0x1), region = 62 }

</bundles_post_ra>
